<compile_context>
chip_gen: v5e
topology: v5e:2x2
jax: 0.10.0
libtpu: 0.0.40
codegen_flags: <defaults>
</compile_context>

<pallas_src>
import functools

import jax
import jax.numpy as jnp
from jax.experimental import pallas as pl
from jax.experimental.pallas import tpu as pltpu

_EPS = 1e-5
_VMEM_BLOCK_BUDGET = 24 * 1024 * 1024   # per-step block budget (v7x-safe)


def _vmem_limit_bytes(block_bytes):
    # Generous headroom over the double-buffered block footprint, but stay below
    # v7x's 64 MiB physical VMEM.
    return int(min(56 * 1024 * 1024, max(8 * 1024 * 1024, 2 * int(block_bytes))))


def _pick_batch_tile(n, hq, wq, ck, ho, wo, cout):
    """Largest divisor of n whose double-buffered block footprint fits the budget."""
    def footprint(bt):
        in_blk = bt * hq * wq * ck * 2        # bf16 input block
        out_blk = bt * ho * wo * cout * 2     # bf16 conv/output block
        acc = bt * ho * wo * cout * 4         # f32 accumulator scratch
        return 2 * (in_blk + out_blk) + acc   # x2: double buffering
    for bt in range(n, 0, -1):
        if n % bt == 0 and footprint(bt) <= _VMEM_BLOCK_BUDGET:
            return bt, footprint(bt)
    return 1, footprint(1)


# ---------------------------------------------------------------------------
# Pass 1: conv (shifted bf16 matmuls on MXU) + global BN statistics
# ---------------------------------------------------------------------------
def _conv_stats_kernel(x_ref, w_ref, conv_ref, sum_ref, sq_ref, acc_ref,
                       *, qh, qw, ho, wo):
    @pl.when(pl.program_id(0) == 0)
    def _():
        sum_ref[...] = jnp.zeros_like(sum_ref)
        sq_ref[...] = jnp.zeros_like(sq_ref)

    bt = x_ref.shape[0]
    ck = w_ref.shape[1]
    m = bt * ho * wo

    acc_ref[...] = jnp.zeros_like(acc_ref)
    # Shifted-matmul conv: qh*qw taps, bf16 operands straight from HBM (no cast),
    # f32 accumulation in a VMEM scratch.
    # TODO(synk): collapse the taps into a single K=qh*qw*ck matmul (in-kernel
    # channel concat) if per-tap MXU pushes ever become the bottleneck.
    for qi in range(qh):
        for qj in range(qw):
            xs = x_ref[:, pl.ds(qi, ho), pl.ds(qj, wo), :].reshape(m, ck)
            acc_ref[...] += jnp.dot(xs, w_ref[qi * qw + qj],
                                    preferred_element_type=jnp.float32)

    acc = acc_ref[...]
    conv_ref[...] = acc.astype(conv_ref.dtype)            # bf16 store to HBM
    # BN statistics from the f32 accumulator (exact batch stats despite bf16 storage).
    sum_ref[...] += jnp.sum(acc, axis=0, keepdims=True)
    sq_ref[...] += jnp.sum(acc * acc, axis=0, keepdims=True)


# ---------------------------------------------------------------------------
# Pass 2: BN apply (+ residual) (+ ReLU)
# ---------------------------------------------------------------------------
def _make_bn_apply_kernel(apply_relu, add_residual, inv_m):
    def _body(conv_ref, sum_ref, sq_ref, g_ref, b_ref, r_ref, o_ref):
        mean = sum_ref[...] * inv_m                        # (1, Cout)
        var = sq_ref[...] * inv_m - mean * mean            # biased (training) variance
        var = jnp.maximum(var, 0.0)
        scale = g_ref[...] * jax.lax.rsqrt(var + _EPS)
        shift = b_ref[...] - mean * scale
        y = conv_ref[...].astype(jnp.float32) * scale + shift
        if r_ref is not None:
            y = y + r_ref[...].astype(jnp.float32)
        if apply_relu:
            y = jnp.maximum(y, 0.0)
        o_ref[...] = y.astype(o_ref.dtype)

    if add_residual:
        def kernel(c_ref, s_ref, q_ref, g_ref, b_ref, r_ref, o_ref):
            _body(c_ref, s_ref, q_ref, g_ref, b_ref, r_ref, o_ref)
    else:
        def kernel(c_ref, s_ref, q_ref, g_ref, b_ref, o_ref):
            _body(c_ref, s_ref, q_ref, g_ref, b_ref, None, o_ref)
    return kernel


# ---------------------------------------------------------------------------
# Host-side glue: pad + space-to-depth (bf16) + weight packing (bf16)
# ---------------------------------------------------------------------------
def _space_to_depth(x_nhwc, stride, padding, ho, wo, qh, qw):
    n, h, w, c = x_nhwc.shape
    hq = ho + qh - 1
    wq = wo + qw - 1
    hp2 = stride * hq
    wp2 = stride * wq
    pad_h = max(hp2, h + 2 * padding) - h - padding
    pad_w = max(wp2, w + 2 * padding) - w - padding
    xp = jnp.pad(x_nhwc, ((0, 0), (padding, pad_h), (padding, pad_w), (0, 0)))
    xp = xp[:, :hp2, :wp2, :]
    if stride == 1:
        return xp                                           # (n, hq, wq, c)
    xp = xp.reshape(n, hq, stride, wq, stride, c)
    xp = jnp.transpose(xp, (0, 1, 3, 2, 4, 5))
    return xp.reshape(n, hq, wq, stride * stride * c)


def _pack_weights(w_oihw, stride, qh, qw):
    cout, cin, kh, kw = w_oihw.shape
    s = stride
    ck = s * s * cin if s > 1 else cin
    w_k = jnp.transpose(w_oihw, (2, 3, 1, 0)).astype(jnp.float32)   # [kh,kw,cin,cout]
    w2 = jnp.zeros((qh * qw, ck, cout), jnp.float32)
    for i in range(kh):
        for j in range(kw):
            qi, ri = divmod(i, s)
            qj, rj = divmod(j, s)
            p = (ri * s + rj) if s > 1 else 0
            w2 = w2.at[qi * qw + qj, p * cin:(p + 1) * cin, :].set(w_k[i, j])
    return w2.astype(jnp.bfloat16)


# ---------------------------------------------------------------------------
# conv2d (groups=1, bias=False) -> BatchNorm2d (train mode) [-> +res] [-> ReLU]
# ---------------------------------------------------------------------------
def conv_bn(x_nhwc, w_oihw, gamma, beta, *, stride, padding,
            relu=False, residual=None, out_dtype=jnp.bfloat16):
    """Returns (out_flat, ho, wo); out_flat has shape (N*ho*wo, Cout)."""
    n, h, w, cin = x_nhwc.shape
    cout, cin_w, kh, kw = w_oihw.shape
    assert cin_w == cin  # TODO(synk): grouped convolution (groups > 1) not implemented.
    ho = (h + 2 * padding - kh) // stride + 1
    wo = (w + 2 * padding - kw) // stride + 1
    qh = (kh - 1) // stride + 1
    qw = (kw - 1) // stride + 1
    nt = qh * qw

    # bf16 activations in HBM: half the pass-1 input DMA bytes, no in-kernel cast.
    x_s2d = _space_to_depth(x_nhwc.astype(jnp.bfloat16), stride, padding, ho, wo, qh, qw)
    w2 = _pack_weights(w_oihw, stride, qh, qw)
    _, hq, wq, ck = x_s2d.shape

    bt, blk_bytes = _pick_batch_tile(n, hq, wq, ck, ho, wo, cout)
    steps = n // bt
    rows = n * ho * wo
    row_blk = bt * ho * wo

    # ---- pass 1: conv + global sum / sumsq (sequential "arbitrary" axis) ----
    # TODO(synk): for very large images (v7x 64 MiB VMEM) add a spatial row-tile
    # grid axis; and split the batch across the 2 TCs with (2, Cout) partial sums.
    flops = 2 * rows * nt * ck * cout
    p1_bytes = x_s2d.size * 2 + w2.size * 2 + rows * cout * 2 + 2 * cout * 4
    conv_kernel = functools.partial(_conv_stats_kernel, qh=qh, qw=qw, ho=ho, wo=wo)
    conv, ssum, ssq = pl.pallas_call(
        conv_kernel,
        out_shape=(jax.ShapeDtypeStruct((rows, cout), jnp.bfloat16),
                   jax.ShapeDtypeStruct((1, cout), jnp.float32),
                   jax.ShapeDtypeStruct((1, cout), jnp.float32)),
        grid=(steps,),
        in_specs=[pl.BlockSpec((bt, hq, wq, ck), lambda i: (i, 0, 0, 0)),
                  pl.BlockSpec((nt, ck, cout), lambda i: (0, 0, 0))],
        out_specs=[pl.BlockSpec((row_blk, cout), lambda i: (i, 0)),
                   pl.BlockSpec((1, cout), lambda i: (0, 0)),
                   pl.BlockSpec((1, cout), lambda i: (0, 0))],
        scratch_shapes=[pltpu.VMEM((row_blk, cout), jnp.float32)],
        compiler_params=pltpu.CompilerParams(
            dimension_semantics=("arbitrary",),
            vmem_limit_bytes=_vmem_limit_bytes(blk_bytes + w2.size * 2)),
        cost_estimate=pl.CostEstimate(flops=flops, transcendentals=0,
                                      bytes_accessed=p1_bytes),
    )(x_s2d, w2)

    # ---- pass 2: normalize + residual + ReLU ("parallel" axis) ----
    # TODO(synk): fuse this apply into the next conv's pass 1 (needs a padding-aware
    # mask on the space-to-depth tile) to save one activation HBM round-trip per conv.
    inv_m = 1.0 / float(rows)
    args = [conv, ssum, ssq,
            gamma.reshape(1, cout).astype(jnp.float32),
            beta.reshape(1, cout).astype(jnp.float32)]
    in_specs = [pl.BlockSpec((row_blk, cout), lambda i: (i, 0)),
                pl.BlockSpec((1, cout), lambda i: (0, 0)),
                pl.BlockSpec((1, cout), lambda i: (0, 0)),
                pl.BlockSpec((1, cout), lambda i: (0, 0)),
                pl.BlockSpec((1, cout), lambda i: (0, 0))]
    if residual is not None:
        args.append(residual)
        in_specs.append(pl.BlockSpec((row_blk, cout), lambda i: (i, 0)))

    out_itemsize = jnp.dtype(out_dtype).itemsize
    res_itemsize = jnp.dtype(residual.dtype).itemsize if residual is not None else 0
    p2_bytes = rows * cout * (2 + out_itemsize + res_itemsize) + 4 * cout * 4
    p2_blk_bytes = 2 * row_blk * cout * (2 + out_itemsize + res_itemsize)

    apply_kernel = _make_bn_apply_kernel(relu, residual is not None, inv_m)
    out = pl.pallas_call(
        apply_kernel,
        out_shape=jax.ShapeDtypeStruct((rows, cout), out_dtype),
        grid=(steps,),
        in_specs=in_specs,
        out_specs=pl.BlockSpec((row_blk, cout), lambda i: (i, 0)),
        compiler_params=pltpu.CompilerParams(
            dimension_semantics=("parallel",),
            vmem_limit_bytes=_vmem_limit_bytes(p2_blk_bytes)),
        cost_estimate=pl.CostEstimate(flops=6 * rows * cout, transcendentals=cout,
                                      bytes_accessed=p2_bytes),
    )(*args)
    return out, ho, wo


# ---------------------------------------------------------------------------
# BasicBlock / Encoder
# ---------------------------------------------------------------------------
def basic_block(x_nhwc, p, *, stride, padding, out_dtype=jnp.bfloat16):
    n, h, w, cin = x_nhwc.shape
    cout = p["w1"].shape[0]
    out1, ho, wo = conv_bn(x_nhwc, p["w1"], p["g1"], p["b1"],
                           stride=stride, padding=padding, relu=True,
                           out_dtype=jnp.bfloat16)
    if stride > 1:
        res, _, _ = conv_bn(x_nhwc, p["wd"], p["gd"], p["bd"],
                            stride=stride, padding=0, relu=False,
                            out_dtype=jnp.bfloat16)
    else:
        # identity residual (matches PyTorch broadcast rule)
        assert cin == cout and (h, w) == (ho, wo)
        res = x_nhwc.reshape(n * h * w, cin).astype(jnp.bfloat16)
    # conv2 -> bn2 -> += residual -> relu
    out2, ho2, wo2 = conv_bn(out1.reshape(n, ho, wo, cout),
                             p["w2"], p["g2"], p["b2"],
                             stride=1, padding=padding, relu=True, residual=res,
                             out_dtype=out_dtype)
    return out2.reshape(n, ho2, wo2, cout)


def encoder_forward(x_nchw, params, *, stride, padding):
    x = jnp.transpose(x_nchw, (0, 2, 3, 1))          # NCHW -> NHWC
    x = basic_block(x, params["block1"], stride=stride, padding=padding,
                    out_dtype=jnp.bfloat16)
    x = basic_block(x, params["block2"], stride=1, padding=padding,
                    out_dtype=jnp.float32)           # final output in f32
    return jnp.transpose(x, (0, 3, 1, 2))            # NHWC -> NCHW


# ---------------------------------------------------------------------------
# Deterministic parameter construction
# ---------------------------------------------------------------------------
def _init_block(key, cin, cout, ksize, stride):
    keys = jax.random.split(key, 8)
    p = {
        "w1": 0.1 * jax.random.normal(keys[0], (cout, cin, ksize, ksize), jnp.float32),
        "g1": 1.0 + 0.1 * jax.random.normal(keys[1], (cout,), jnp.float32),
        "b1": 0.1 * jax.random.normal(keys[2], (cout,), jnp.float32),
        "w2": 0.1 * jax.random.normal(keys[3], (cout, cout, ksize, ksize), jnp.float32),
        "g2": 1.0 + 0.1 * jax.random.normal(keys[4], (cout,), jnp.float32),
        "b2": 0.1 * jax.random.normal(keys[5], (cout,), jnp.float32),
    }
    if stride > 1:
        p["wd"] = 0.1 * jax.random.normal(keys[6], (cout, cin, 1, 1), jnp.float32)
        p["gd"] = 1.0 + 0.05 * jax.random.normal(keys[7], (cout,), jnp.float32)
        p["bd"] = jnp.zeros((cout,), jnp.float32)
    return p


def init_encoder(key, cin, cout, ksize, stride):
    k1, k2 = jax.random.split(key)
    return {
        "block1": _init_block(k1, cin, cout, ksize, stride),
        "block2": _init_block(k2, cout, cout, ksize, 1),
    }


if __name__ == "__main__":
    # Encoder(in_planes=4, out_planes=8, kernel_size=3, stride=2, padding=1)
    IN_PLANES, OUT_PLANES, KSIZE, STRIDE, PADDING = 4, 8, 3, 2, 1

    key = jax.random.PRNGKey(0)
    kx, kp = jax.random.split(key)
    x = jax.random.normal(kx, (2, IN_PLANES, 16, 16), jnp.float32)   # NCHW
    params = init_encoder(kp, IN_PLANES, OUT_PLANES, KSIZE, STRIDE)

    fwd = jax.jit(functools.partial(encoder_forward, stride=STRIDE, padding=PADDING))
    y = fwd(x, params)
    jax.block_until_ready(y)

    expected_hw = 16 // STRIDE
    assert y.shape == (2, OUT_PLANES, expected_hw, expected_hw), y.shape
    assert y.dtype == jnp.float32
    assert bool(jnp.all(jnp.isfinite(y)))
    print("KERNEL_OK")
</pallas_src>

<mosaic_0001>
module attributes {stable_mosaic.version = 11 : i64} {
  func.func @_conv_stats_kernel(%arg0: i32, %arg1: memref<2x9x9x16xbf16, #tpu.memory_space<vmem>>, %arg2: memref<4x16x8xbf16, #tpu.memory_space<vmem>>, %arg3: memref<128x8xbf16, #tpu.memory_space<vmem>>, %arg4: memref<1x8xf32, #tpu.memory_space<vmem>>, %arg5: memref<1x8xf32, #tpu.memory_space<vmem>>, %arg6: memref<128x8xf32, #tpu.memory_space<vmem>>) attributes {dimension_semantics = [#tpu.dimension_semantics<arbitrary>], iteration_bounds = array<i64: 1>, scalar_prefetch = 0 : i64, scratch_operands = 1 : i64, tpu.core_type = #tpu.core_type<tc>, window_params = [{transform_indices = @transform_0, window_bounds = array<i64: 2, 9, 9, 16>}, {pipeline_mode = #tpu.pipeline_mode<synchronous>, transform_indices = @transform_1, window_bounds = array<i64: 4, 16, 8>}, {transform_indices = @transform_2, window_bounds = array<i64: 128, 8>}, {pipeline_mode = #tpu.pipeline_mode<synchronous>, transform_indices = @transform_3, window_bounds = array<i64: 1, 8>}, {pipeline_mode = #tpu.pipeline_mode<synchronous>, transform_indices = @transform_4, window_bounds = array<i64: 1, 8>}]} {
    %c0_i32 = arith.constant 0 : i32
    %0 = arith.cmpi eq, %arg0, %c0_i32 : i32
    %1 = arith.extui %0 : i1 to i32
    %c0_i32_0 = arith.constant 0 : i32
    %2 = arith.cmpi ne, %1, %c0_i32_0 : i32
    scf.if %2 {
      %cst_61 = arith.constant 0.000000e+00 : f32
      %51 = vector.broadcast %cst_61 : f32 to vector<1x8xf32>
      %c0_62 = arith.constant 0 : index
      %c0_63 = arith.constant 0 : index
      %52 = vector.load %arg4[%c0_62, %c0_63] : memref<1x8xf32, #tpu.memory_space<vmem>>, vector<1x8xf32>
      tpu.vector_store %arg4[%c0_62, %c0_63], %51 {strides = array<i32>} : memref<1x8xf32, #tpu.memory_space<vmem>>, vector<1x8xf32>,
      %cst_64 = arith.constant 0.000000e+00 : f32
      %53 = vector.broadcast %cst_64 : f32 to vector<1x8xf32>
      %c0_65 = arith.constant 0 : index
      %c0_66 = arith.constant 0 : index
      %54 = vector.load %arg5[%c0_65, %c0_66] : memref<1x8xf32, #tpu.memory_space<vmem>>, vector<1x8xf32>
      tpu.vector_store %arg5[%c0_65, %c0_66], %53 {strides = array<i32>} : memref<1x8xf32, #tpu.memory_space<vmem>>, vector<1x8xf32>,
    } else {
    }
    %cst = arith.constant 0.000000e+00 : f32
    %3 = vector.broadcast %cst : f32 to vector<128x8xf32>
    %c0 = arith.constant 0 : index
    %c0_1 = arith.constant 0 : index
    %4 = vector.load %arg6[%c0, %c0_1] : memref<128x8xf32, #tpu.memory_space<vmem>>, vector<128x8xf32>
    tpu.vector_store %arg6[%c0, %c0_1], %3 {strides = array<i32>} : memref<128x8xf32, #tpu.memory_space<vmem>>, vector<128x8xf32>,
    %c0_2 = arith.constant 0 : index
    %c0_3 = arith.constant 0 : index
    %c0_4 = arith.constant 0 : index
    %c0_5 = arith.constant 0 : index
    %5 = vector.load %arg1[%c0_2, %c0_3, %c0_4, %c0_5] : memref<2x9x9x16xbf16, #tpu.memory_space<vmem>>, vector<2x8x8x16xbf16>
    %6 = vector.shape_cast %5 : vector<2x8x8x16xbf16> to vector<128x16xbf16>
    %c0_6 = arith.constant 0 : index
    %c0_7 = arith.constant 0 : index
    %7 = vector.load %arg6[%c0_6, %c0_7] : memref<128x8xf32, #tpu.memory_space<vmem>>, vector<128x8xf32>
    %c0_8 = arith.constant 0 : index
    %c0_9 = arith.constant 0 : index
    %c0_10 = arith.constant 0 : index
    %8 = vector.load %arg2[%c0_8, %c0_9, %c0_10] : memref<4x16x8xbf16, #tpu.memory_space<vmem>>, vector<1x16x8xbf16>
    %9 = vector.shape_cast %8 : vector<1x16x8xbf16> to vector<16x8xbf16>
    %cst_11 = arith.constant dense<0.000000e+00> : vector<128x8xf32>
    %10 = tpu.matmul %6, %9, %cst_11 {dimension_numbers = #tpu.dot_dimension_numbers<[1], [0], [0], [1], [0, 0, 1, 1], [], []>} : vector<128x16xbf16>, vector<16x8xbf16>, vector<128x8xf32> -> vector<128x8xf32>
    %11 = arith.addf %7, %10 : vector<128x8xf32>
    %c0_12 = arith.constant 0 : index
    %c0_13 = arith.constant 0 : index
    %12 = vector.load %arg6[%c0_12, %c0_13] : memref<128x8xf32, #tpu.memory_space<vmem>>, vector<128x8xf32>
    tpu.vector_store %arg6[%c0_12, %c0_13], %11 {strides = array<i32>} : memref<128x8xf32, #tpu.memory_space<vmem>>, vector<128x8xf32>,
    %c0_14 = arith.constant 0 : index
    %c0_15 = arith.constant 0 : index
    %c1 = arith.constant 1 : index
    %c0_16 = arith.constant 0 : index
    %13 = vector.load %arg1[%c0_14, %c0_15, %c1, %c0_16] : memref<2x9x9x16xbf16, #tpu.memory_space<vmem>>, vector<2x8x8x16xbf16>
    %14 = vector.shape_cast %13 : vector<2x8x8x16xbf16> to vector<128x16xbf16>
    %c0_17 = arith.constant 0 : index
    %c0_18 = arith.constant 0 : index
    %15 = vector.load %arg6[%c0_17, %c0_18] : memref<128x8xf32, #tpu.memory_space<vmem>>, vector<128x8xf32>
    %c1_19 = arith.constant 1 : index
    %c0_20 = arith.constant 0 : index
    %c0_21 = arith.constant 0 : index
    %16 = vector.load %arg2[%c1_19, %c0_20, %c0_21] : memref<4x16x8xbf16, #tpu.memory_space<vmem>>, vector<1x16x8xbf16>
    %17 = vector.shape_cast %16 : vector<1x16x8xbf16> to vector<16x8xbf16>
    %cst_22 = arith.constant dense<0.000000e+00> : vector<128x8xf32>
    %18 = tpu.matmul %14, %17, %cst_22 {dimension_numbers = #tpu.dot_dimension_numbers<[1], [0], [0], [1], [0, 0, 1, 1], [], []>} : vector<128x16xbf16>, vector<16x8xbf16>, vector<128x8xf32> -> vector<128x8xf32>
    %19 = arith.addf %15, %18 : vector<128x8xf32>
    %c0_23 = arith.constant 0 : index
    %c0_24 = arith.constant 0 : index
    %20 = vector.load %arg6[%c0_23, %c0_24] : memref<128x8xf32, #tpu.memory_space<vmem>>, vector<128x8xf32>
    tpu.vector_store %arg6[%c0_23, %c0_24], %19 {strides = array<i32>} : memref<128x8xf32, #tpu.memory_space<vmem>>, vector<128x8xf32>,
    %c0_25 = arith.constant 0 : index
    %c1_26 = arith.constant 1 : index
    %c0_27 = arith.constant 0 : index
    %c0_28 = arith.constant 0 : index
    %21 = vector.load %arg1[%c0_25, %c1_26, %c0_27, %c0_28] : memref<2x9x9x16xbf16, #tpu.memory_space<vmem>>, vector<2x8x8x16xbf16>
    %22 = vector.shape_cast %21 : vector<2x8x8x16xbf16> to vector<128x16xbf16>
    %c0_29 = arith.constant 0 : index
    %c0_30 = arith.constant 0 : index
    %23 = vector.load %arg6[%c0_29, %c0_30] : memref<128x8xf32, #tpu.memory_space<vmem>>, vector<128x8xf32>
    %c2 = arith.constant 2 : index
    %c0_31 = arith.constant 0 : index
    %c0_32 = arith.constant 0 : index
    %24 = vector.load %arg2[%c2, %c0_31, %c0_32] : memref<4x16x8xbf16, #tpu.memory_space<vmem>>, vector<1x16x8xbf16>
    %25 = vector.shape_cast %24 : vector<1x16x8xbf16> to vector<16x8xbf16>
    %cst_33 = arith.constant dense<0.000000e+00> : vector<128x8xf32>
    %26 = tpu.matmul %22, %25, %cst_33 {dimension_numbers = #tpu.dot_dimension_numbers<[1], [0], [0], [1], [0, 0, 1, 1], [], []>} : vector<128x16xbf16>, vector<16x8xbf16>, vector<128x8xf32> -> vector<128x8xf32>
    %27 = arith.addf %23, %26 : vector<128x8xf32>
    %c0_34 = arith.constant 0 : index
    %c0_35 = arith.constant 0 : index
    %28 = vector.load %arg6[%c0_34, %c0_35] : memref<128x8xf32, #tpu.memory_space<vmem>>, vector<128x8xf32>
    tpu.vector_store %arg6[%c0_34, %c0_35], %27 {strides = array<i32>} : memref<128x8xf32, #tpu.memory_space<vmem>>, vector<128x8xf32>,
    %c0_36 = arith.constant 0 : index
    %c1_37 = arith.constant 1 : index
    %c1_38 = arith.constant 1 : index
    %c0_39 = arith.constant 0 : index
    %29 = vector.load %arg1[%c0_36, %c1_37, %c1_38, %c0_39] : memref<2x9x9x16xbf16, #tpu.memory_space<vmem>>, vector<2x8x8x16xbf16>
    %30 = vector.shape_cast %29 : vector<2x8x8x16xbf16> to vector<128x16xbf16>
    %c0_40 = arith.constant 0 : index
    %c0_41 = arith.constant 0 : index
    %31 = vector.load %arg6[%c0_40, %c0_41] : memref<128x8xf32, #tpu.memory_space<vmem>>, vector<128x8xf32>
    %c3 = arith.constant 3 : index
    %c0_42 = arith.constant 0 : index
    %c0_43 = arith.constant 0 : index
    %32 = vector.load %arg2[%c3, %c0_42, %c0_43] : memref<4x16x8xbf16, #tpu.memory_space<vmem>>, vector<1x16x8xbf16>
    %33 = vector.shape_cast %32 : vector<1x16x8xbf16> to vector<16x8xbf16>
    %cst_44 = arith.constant dense<0.000000e+00> : vector<128x8xf32>
    %34 = tpu.matmul %30, %33, %cst_44 {dimension_numbers = #tpu.dot_dimension_numbers<[1], [0], [0], [1], [0, 0, 1, 1], [], []>} : vector<128x16xbf16>, vector<16x8xbf16>, vector<128x8xf32> -> vector<128x8xf32>
    %35 = arith.addf %31, %34 : vector<128x8xf32>
    %c0_45 = arith.constant 0 : index
    %c0_46 = arith.constant 0 : index
    %36 = vector.load %arg6[%c0_45, %c0_46] : memref<128x8xf32, #tpu.memory_space<vmem>>, vector<128x8xf32>
    tpu.vector_store %arg6[%c0_45, %c0_46], %35 {strides = array<i32>} : memref<128x8xf32, #tpu.memory_space<vmem>>, vector<128x8xf32>,
    %c0_47 = arith.constant 0 : index
    %c0_48 = arith.constant 0 : index
    %37 = vector.load %arg6[%c0_47, %c0_48] : memref<128x8xf32, #tpu.memory_space<vmem>>, vector<128x8xf32>
    %38 = arith.truncf %37 : vector<128x8xf32> to vector<128x8xbf16>
    %c0_49 = arith.constant 0 : index
    %c0_50 = arith.constant 0 : index
    %39 = vector.load %arg3[%c0_49, %c0_50] : memref<128x8xbf16, #tpu.memory_space<vmem>>, vector<128x8xbf16>
    tpu.vector_store %arg3[%c0_49, %c0_50], %38 {strides = array<i32>} : memref<128x8xbf16, #tpu.memory_space<vmem>>, vector<128x8xbf16>,
    %c0_51 = arith.constant 0 : index
    %c0_52 = arith.constant 0 : index
    %40 = vector.load %arg4[%c0_51, %c0_52] : memref<1x8xf32, #tpu.memory_space<vmem>>, vector<1x8xf32>
    %cst_53 = arith.constant dense<0.000000e+00> : vector<8xf32>
    %41 = vector.multi_reduction <add>, %37, %cst_53 [0] : vector<128x8xf32> to vector<8xf32>
    %42 = vector.shape_cast %41 : vector<8xf32> to vector<1x8xf32>
    %43 = arith.addf %40, %42 : vector<1x8xf32>
    %c0_54 = arith.constant 0 : index
    %c0_55 = arith.constant 0 : index
    %44 = vector.load %arg4[%c0_54, %c0_55] : memref<1x8xf32, #tpu.memory_space<vmem>>, vector<1x8xf32>
    tpu.vector_store %arg4[%c0_54, %c0_55], %43 {strides = array<i32>} : memref<1x8xf32, #tpu.memory_space<vmem>>, vector<1x8xf32>,
    %c0_56 = arith.constant 0 : index
    %c0_57 = arith.constant 0 : index
    %45 = vector.load %arg5[%c0_56, %c0_57] : memref<1x8xf32, #tpu.memory_space<vmem>>, vector<1x8xf32>
    %46 = arith.mulf %37, %37 : vector<128x8xf32>
    %cst_58 = arith.constant dense<0.000000e+00> : vector<8xf32>
    %47 = vector.multi_reduction <add>, %46, %cst_58 [0] : vector<128x8xf32> to vector<8xf32>
    %48 = vector.shape_cast %47 : vector<8xf32> to vector<1x8xf32>
    %49 = arith.addf %45, %48 : vector<1x8xf32>
    %c0_59 = arith.constant 0 : index
    %c0_60 = arith.constant 0 : index
    %50 = vector.load %arg5[%c0_59, %c0_60] : memref<1x8xf32, #tpu.memory_space<vmem>>, vector<1x8xf32>
    tpu.vector_store %arg5[%c0_59, %c0_60], %49 {strides = array<i32>} : memref<1x8xf32, #tpu.memory_space<vmem>>, vector<1x8xf32>,
    return
  }
  func.func @transform_0(%arg0: i32) -> (i32, i32, i32, i32) {
    %c0_i32 = arith.constant 0 : i32
    %c0_i32_0 = arith.constant 0 : i32
    %c0_i32_1 = arith.constant 0 : i32
    %c0_i32_2 = arith.constant 0 : i32
    return %arg0, %c0_i32, %c0_i32_0, %c0_i32_1 : i32, i32, i32, i32
  }
  func.func @transform_1(%arg0: i32) -> (i32, i32, i32) {
    %c0_i32 = arith.constant 0 : i32
    %c0_i32_0 = arith.constant 0 : i32
    %c0_i32_1 = arith.constant 0 : i32
    %c0_i32_2 = arith.constant 0 : i32
    return %c0_i32, %c0_i32_0, %c0_i32_1 : i32, i32, i32
  }
  func.func @transform_2(%arg0: i32) -> (i32, i32) {
    %c0_i32 = arith.constant 0 : i32
    %c0_i32_0 = arith.constant 0 : i32
    return %arg0, %c0_i32 : i32, i32
  }
  func.func @transform_3(%arg0: i32) -> (i32, i32) {
    %c0_i32 = arith.constant 0 : i32
    %c0_i32_0 = arith.constant 0 : i32
    %c0_i32_1 = arith.constant 0 : i32
    return %c0_i32, %c0_i32_0 : i32, i32
  }
  func.func @transform_4(%arg0: i32) -> (i32, i32) {
    %c0_i32 = arith.constant 0 : i32
    %c0_i32_0 = arith.constant 0 : i32
    %c0_i32_1 = arith.constant 0 : i32
    return %c0_i32, %c0_i32_0 : i32, i32
  }
}

module attributes {stable_mosaic.version = 11 : i64} {
  func.func @kernel(%arg0: i32, %arg1: memref<128x8xbf16, #tpu.memory_space<vmem>>, %arg2: memref<1x8xf32, #tpu.memory_space<vmem>>, %arg3: memref<1x8xf32, #tpu.memory_space<vmem>>, %arg4: memref<1x8xf32, #tpu.memory_space<vmem>>, %arg5: memref<1x8xf32, #tpu.memory_space<vmem>>, %arg6: memref<128x8xbf16, #tpu.memory_space<vmem>>) attributes {dimension_semantics = [#tpu.dimension_semantics<parallel>], iteration_bounds = array<i64: 1>, scalar_prefetch = 0 : i64, scratch_operands = 0 : i64, tpu.core_type = #tpu.core_type<tc>, window_params = [{transform_indices = @transform_0, window_bounds = array<i64: 128, 8>}, {pipeline_mode = #tpu.pipeline_mode<synchronous>, transform_indices = @transform_1, window_bounds = array<i64: 1, 8>}, {pipeline_mode = #tpu.pipeline_mode<synchronous>, transform_indices = @transform_2, window_bounds = array<i64: 1, 8>}, {pipeline_mode = #tpu.pipeline_mode<synchronous>, transform_indices = @transform_3, window_bounds = array<i64: 1, 8>}, {pipeline_mode = #tpu.pipeline_mode<synchronous>, transform_indices = @transform_4, window_bounds = array<i64: 1, 8>}, {transform_indices = @transform_5, window_bounds = array<i64: 128, 8>}]} {
    %c0 = arith.constant 0 : index
    %c0_0 = arith.constant 0 : index
    %0 = vector.load %arg2[%c0, %c0_0] : memref<1x8xf32, #tpu.memory_space<vmem>>, vector<1x8xf32>
    %cst = arith.constant 7.812500e-03 : f32
    %1 = vector.broadcast %cst : f32 to vector<1x8xf32>
    %2 = arith.mulf %0, %1 : vector<1x8xf32>
    %c0_1 = arith.constant 0 : index
    %c0_2 = arith.constant 0 : index
    %3 = vector.load %arg3[%c0_1, %c0_2] : memref<1x8xf32, #tpu.memory_space<vmem>>, vector<1x8xf32>
    %cst_3 = arith.constant 7.812500e-03 : f32
    %4 = vector.broadcast %cst_3 : f32 to vector<1x8xf32>
    %5 = arith.mulf %3, %4 : vector<1x8xf32>
    %6 = arith.mulf %2, %2 : vector<1x8xf32>
    %7 = arith.subf %5, %6 : vector<1x8xf32>
    %cst_4 = arith.constant 0.000000e+00 : f32
    %8 = vector.broadcast %cst_4 : f32 to vector<1x8xf32>
    %9 = arith.maximumf %7, %8 : vector<1x8xf32>
    %c0_5 = arith.constant 0 : index
    %c0_6 = arith.constant 0 : index
    %10 = vector.load %arg4[%c0_5, %c0_6] : memref<1x8xf32, #tpu.memory_space<vmem>>, vector<1x8xf32>
    %cst_7 = arith.constant 9.99999974E-6 : f32
    %11 = vector.broadcast %cst_7 : f32 to vector<1x8xf32>
    %12 = arith.addf %9, %11 : vector<1x8xf32>
    %13 = math.rsqrt %12 : vector<1x8xf32>
    %14 = arith.mulf %10, %13 : vector<1x8xf32>
    %c0_8 = arith.constant 0 : index
    %c0_9 = arith.constant 0 : index
    %15 = vector.load %arg5[%c0_8, %c0_9] : memref<1x8xf32, #tpu.memory_space<vmem>>, vector<1x8xf32>
    %16 = arith.mulf %2, %14 : vector<1x8xf32>
    %17 = arith.subf %15, %16 : vector<1x8xf32>
    %c0_10 = arith.constant 0 : index
    %c0_11 = arith.constant 0 : index
    %18 = vector.load %arg1[%c0_10, %c0_11] : memref<128x8xbf16, #tpu.memory_space<vmem>>, vector<128x8xbf16>
    %19 = arith.extf %18 : vector<128x8xbf16> to vector<128x8xf32>
    %20 = vector.broadcast %14 : vector<1x8xf32> to vector<128x8xf32>
    %21 = arith.mulf %19, %20 : vector<128x8xf32>
    %22 = vector.broadcast %17 : vector<1x8xf32> to vector<128x8xf32>
    %23 = arith.addf %21, %22 : vector<128x8xf32>
    %cst_12 = arith.constant 0.000000e+00 : f32
    %24 = vector.broadcast %cst_12 : f32 to vector<128x8xf32>
    %25 = arith.maximumf %23, %24 : vector<128x8xf32>
    %26 = arith.truncf %25 : vector<128x8xf32> to vector<128x8xbf16>
    %c0_13 = arith.constant 0 : index
    %c0_14 = arith.constant 0 : index
    %27 = vector.load %arg6[%c0_13, %c0_14] : memref<128x8xbf16, #tpu.memory_space<vmem>>, vector<128x8xbf16>
    tpu.vector_store %arg6[%c0_13, %c0_14], %26 {strides = array<i32>} : memref<128x8xbf16, #tpu.memory_space<vmem>>, vector<128x8xbf16>,
    return
  }
  func.func @transform_0(%arg0: i32) -> (i32, i32) {
    %c0_i32 = arith.constant 0 : i32
    %c0_i32_0 = arith.constant 0 : i32
    return %arg0, %c0_i32 : i32, i32
  }
  func.func @transform_1(%arg0: i32) -> (i32, i32) {
    %c0_i32 = arith.constant 0 : i32
    %c0_i32_0 = arith.constant 0 : i32
    %c0_i32_1 = arith.constant 0 : i32
    return %c0_i32, %c0_i32_0 : i32, i32
  }
  func.func @transform_2(%arg0: i32) -> (i32, i32) {
    %c0_i32 = arith.constant 0 : i32
    %c0_i32_0 = arith.constant 0 : i32
    %c0_i32_1 = arith.constant 0 : i32
    return %c0_i32, %c0_i32_0 : i32, i32
  }
  func.func @transform_3(%arg0: i32) -> (i32, i32) {
    %c0_i32 = arith.constant 0 : i32
    %c0_i32_0 = arith.constant 0 : i32
    %c0_i32_1 = arith.constant 0 : i32
    return %c0_i32, %c0_i32_0 : i32, i32
  }
  func.func @transform_4(%arg0: i32) -> (i32, i32) {
    %c0_i32 = arith.constant 0 : i32
    %c0_i32_0 = arith.constant 0 : i32
    %c0_i32_1 = arith.constant 0 : i32
    return %c0_i32, %c0_i32_0 : i32, i32
  }
  func.func @transform_5(%arg0: i32) -> (i32, i32) {
    %c0_i32 = arith.constant 0 : i32
    %c0_i32_0 = arith.constant 0 : i32
    return %arg0, %c0_i32 : i32, i32
  }
}

module attributes {stable_mosaic.version = 11 : i64} {
  func.func @_conv_stats_kernel(%arg0: i32, %arg1: memref<2x10x10x8xbf16, #tpu.memory_space<vmem>>, %arg2: memref<9x8x8xbf16, #tpu.memory_space<vmem>>, %arg3: memref<128x8xbf16, #tpu.memory_space<vmem>>, %arg4: memref<1x8xf32, #tpu.memory_space<vmem>>, %arg5: memref<1x8xf32, #tpu.memory_space<vmem>>, %arg6: memref<128x8xf32, #tpu.memory_space<vmem>>) attributes {dimension_semantics = [#tpu.dimension_semantics<arbitrary>], iteration_bounds = array<i64: 1>, scalar_prefetch = 0 : i64, scratch_operands = 1 : i64, tpu.core_type = #tpu.core_type<tc>, window_params = [{transform_indices = @transform_0, window_bounds = array<i64: 2, 10, 10, 8>}, {pipeline_mode = #tpu.pipeline_mode<synchronous>, transform_indices = @transform_1, window_bounds = array<i64: 9, 8, 8>}, {transform_indices = @transform_2, window_bounds = array<i64: 128, 8>}, {pipeline_mode = #tpu.pipeline_mode<synchronous>, transform_indices = @transform_3, window_bounds = array<i64: 1, 8>}, {pipeline_mode = #tpu.pipeline_mode<synchronous>, transform_indices = @transform_4, window_bounds = array<i64: 1, 8>}]} {
    %c0_i32 = arith.constant 0 : i32
    %0 = arith.cmpi eq, %arg0, %c0_i32 : i32
    %1 = arith.extui %0 : i1 to i32
    %c0_i32_0 = arith.constant 0 : i32
    %2 = arith.cmpi ne, %1, %c0_i32_0 : i32
    scf.if %2 {
      %cst_116 = arith.constant 0.000000e+00 : f32
      %91 = vector.broadcast %cst_116 : f32 to vector<1x8xf32>
      %c0_117 = arith.constant 0 : index
      %c0_118 = arith.constant 0 : index
      %92 = vector.load %arg4[%c0_117, %c0_118] : memref<1x8xf32, #tpu.memory_space<vmem>>, vector<1x8xf32>
      tpu.vector_store %arg4[%c0_117, %c0_118], %91 {strides = array<i32>} : memref<1x8xf32, #tpu.memory_space<vmem>>, vector<1x8xf32>,
      %cst_119 = arith.constant 0.000000e+00 : f32
      %93 = vector.broadcast %cst_119 : f32 to vector<1x8xf32>
      %c0_120 = arith.constant 0 : index
      %c0_121 = arith.constant 0 : index
      %94 = vector.load %arg5[%c0_120, %c0_121] : memref<1x8xf32, #tpu.memory_space<vmem>>, vector<1x8xf32>
      tpu.vector_store %arg5[%c0_120, %c0_121], %93 {strides = array<i32>} : memref<1x8xf32, #tpu.memory_space<vmem>>, vector<1x8xf32>,
    } else {
    }
    %cst = arith.constant 0.000000e+00 : f32
    %3 = vector.broadcast %cst : f32 to vector<128x8xf32>
    %c0 = arith.constant 0 : index
    %c0_1 = arith.constant 0 : index
    %4 = vector.load %arg6[%c0, %c0_1] : memref<128x8xf32, #tpu.memory_space<vmem>>, vector<128x8xf32>
    tpu.vector_store %arg6[%c0, %c0_1], %3 {strides = array<i32>} : memref<128x8xf32, #tpu.memory_space<vmem>>, vector<128x8xf32>,
    %c0_2 = arith.constant 0 : index
    %c0_3 = arith.constant 0 : index
    %c0_4 = arith.constant 0 : index
    %c0_5 = arith.constant 0 : index
    %5 = vector.load %arg1[%c0_2, %c0_3, %c0_4, %c0_5] : memref<2x10x10x8xbf16, #tpu.memory_space<vmem>>, vector<2x8x8x8xbf16>
    %6 = vector.shape_cast %5 : vector<2x8x8x8xbf16> to vector<128x8xbf16>
    %c0_6 = arith.constant 0 : index
    %c0_7 = arith.constant 0 : index
    %7 = vector.load %arg6[%c0_6, %c0_7] : memref<128x8xf32, #tpu.memory_space<vmem>>, vector<128x8xf32>
    %c0_8 = arith.constant 0 : index
    %c0_9 = arith.constant 0 : index
    %c0_10 = arith.constant 0 : index
    %8 = vector.load %arg2[%c0_8, %c0_9, %c0_10] : memref<9x8x8xbf16, #tpu.memory_space<vmem>>, vector<1x8x8xbf16>
    %9 = vector.shape_cast %8 : vector<1x8x8xbf16> to vector<8x8xbf16>
    %cst_11 = arith.constant dense<0.000000e+00> : vector<128x8xf32>
    %10 = tpu.matmul %6, %9, %cst_11 {dimension_numbers = #tpu.dot_dimension_numbers<[1], [0], [0], [1], [0, 0, 1, 1], [], []>} : vector<128x8xbf16>, vector<8x8xbf16>, vector<128x8xf32> -> vector<128x8xf32>
    %11 = arith.addf %7, %10 : vector<128x8xf32>
    %c0_12 = arith.constant 0 : index
    %c0_13 = arith.constant 0 : index
    %12 = vector.load %arg6[%c0_12, %c0_13] : memref<128x8xf32, #tpu.memory_space<vmem>>, vector<128x8xf32>
    tpu.vector_store %arg6[%c0_12, %c0_13], %11 {strides = array<i32>} : memref<128x8xf32, #tpu.memory_space<vmem>>, vector<128x8xf32>,
    %c0_14 = arith.constant 0 : index
    %c0_15 = arith.constant 0 : index
    %c1 = arith.constant 1 : index
    %c0_16 = arith.constant 0 : index
    %13 = vector.load %arg1[%c0_14, %c0_15, %c1, %c0_16] : memref<2x10x10x8xbf16, #tpu.memory_space<vmem>>, vector<2x8x8x8xbf16>
    %14 = vector.shape_cast %13 : vector<2x8x8x8xbf16> to vector<128x8xbf16>
    %c0_17 = arith.constant 0 : index
    %c0_18 = arith.constant 0 : index
    %15 = vector.load %arg6[%c0_17, %c0_18] : memref<128x8xf32, #tpu.memory_space<vmem>>, vector<128x8xf32>
    %c1_19 = arith.constant 1 : index
    %c0_20 = arith.constant 0 : index
    %c0_21 = arith.constant 0 : index
    %16 = vector.load %arg2[%c1_19, %c0_20, %c0_21] : memref<9x8x8xbf16, #tpu.memory_space<vmem>>, vector<1x8x8xbf16>
    %17 = vector.shape_cast %16 : vector<1x8x8xbf16> to vector<8x8xbf16>
    %cst_22 = arith.constant dense<0.000000e+00> : vector<128x8xf32>
    %18 = tpu.matmul %14, %17, %cst_22 {dimension_numbers = #tpu.dot_dimension_numbers<[1], [0], [0], [1], [0, 0, 1, 1], [], []>} : vector<128x8xbf16>, vector<8x8xbf16>, vector<128x8xf32> -> vector<128x8xf32>
    %19 = arith.addf %15, %18 : vector<128x8xf32>
    %c0_23 = arith.constant 0 : index
    %c0_24 = arith.constant 0 : index
    %20 = vector.load %arg6[%c0_23, %c0_24] : memref<128x8xf32, #tpu.memory_space<vmem>>, vector<128x8xf32>
    tpu.vector_store %arg6[%c0_23, %c0_24], %19 {strides = array<i32>} : memref<128x8xf32, #tpu.memory_space<vmem>>, vector<128x8xf32>,
    %c0_25 = arith.constant 0 : index
    %c0_26 = arith.constant 0 : index
    %c2 = arith.constant 2 : index
    %c0_27 = arith.constant 0 : index
    %21 = vector.load %arg1[%c0_25, %c0_26, %c2, %c0_27] : memref<2x10x10x8xbf16, #tpu.memory_space<vmem>>, vector<2x8x8x8xbf16>
    %22 = vector.shape_cast %21 : vector<2x8x8x8xbf16> to vector<128x8xbf16>
    %c0_28 = arith.constant 0 : index
    %c0_29 = arith.constant 0 : index
    %23 = vector.load %arg6[%c0_28, %c0_29] : memref<128x8xf32, #tpu.memory_space<vmem>>, vector<128x8xf32>
    %c2_30 = arith.constant 2 : index
    %c0_31 = arith.constant 0 : index
    %c0_32 = arith.constant 0 : index
    %24 = vector.load %arg2[%c2_30, %c0_31, %c0_32] : memref<9x8x8xbf16, #tpu.memory_space<vmem>>, vector<1x8x8xbf16>
    %25 = vector.shape_cast %24 : vector<1x8x8xbf16> to vector<8x8xbf16>
    %cst_33 = arith.constant dense<0.000000e+00> : vector<128x8xf32>
    %26 = tpu.matmul %22, %25, %cst_33 {dimension_numbers = #tpu.dot_dimension_numbers<[1], [0], [0], [1], [0, 0, 1, 1], [], []>} : vector<128x8xbf16>, vector<8x8xbf16>, vector<128x8xf32> -> vector<128x8xf32>
    %27 = arith.addf %23, %26 : vector<128x8xf32>
    %c0_34 = arith.constant 0 : index
    %c0_35 = arith.constant 0 : index
    %28 = vector.load %arg6[%c0_34, %c0_35] : memref<128x8xf32, #tpu.memory_space<vmem>>, vector<128x8xf32>
    tpu.vector_store %arg6[%c0_34, %c0_35], %27 {strides = array<i32>} : memref<128x8xf32, #tpu.memory_space<vmem>>, vector<128x8xf32>,
    %c0_36 = arith.constant 0 : index
    %c1_37 = arith.constant 1 : index
    %c0_38 = arith.constant 0 : index
    %c0_39 = arith.constant 0 : index
    %29 = vector.load %arg1[%c0_36, %c1_37, %c0_38, %c0_39] : memref<2x10x10x8xbf16, #tpu.memory_space<vmem>>, vector<2x8x8x8xbf16>
    %30 = vector.shape_cast %29 : vector<2x8x8x8xbf16> to vector<128x8xbf16>
    %c0_40 = arith.constant 0 : index
    %c0_41 = arith.constant 0 : index
    %31 = vector.load %arg6[%c0_40, %c0_41] : memref<128x8xf32, #tpu.memory_space<vmem>>, vector<128x8xf32>
    %c3 = arith.constant 3 : index
    %c0_42 = arith.constant 0 : index
    %c0_43 = arith.constant 0 : index
    %32 = vector.load %arg2[%c3, %c0_42, %c0_43] : memref<9x8x8xbf16, #tpu.memory_space<vmem>>, vector<1x8x8xbf16>
    %33 = vector.shape_cast %32 : vector<1x8x8xbf16> to vector<8x8xbf16>
    %cst_44 = arith.constant dense<0.000000e+00> : vector<128x8xf32>
    %34 = tpu.matmul %30, %33, %cst_44 {dimension_numbers = #tpu.dot_dimension_numbers<[1], [0], [0], [1], [0, 0, 1, 1], [], []>} : vector<128x8xbf16>, vector<8x8xbf16>, vector<128x8xf32> -> vector<128x8xf32>
    %35 = arith.addf %31, %34 : vector<128x8xf32>
    %c0_45 = arith.constant 0 : index
    %c0_46 = arith.constant 0 : index
    %36 = vector.load %arg6[%c0_45, %c0_46] : memref<128x8xf32, #tpu.memory_space<vmem>>, vector<128x8xf32>
    tpu.vector_store %arg6[%c0_45, %c0_46], %35 {strides = array<i32>} : memref<128x8xf32, #tpu.memory_space<vmem>>, vector<128x8xf32>,
    %c0_47 = arith.constant 0 : index
    %c1_48 = arith.constant 1 : index
    %c1_49 = arith.constant 1 : index
    %c0_50 = arith.constant 0 : index
    %37 = vector.load %arg1[%c0_47, %c1_48, %c1_49, %c0_50] : memref<2x10x10x8xbf16, #tpu.memory_space<vmem>>, vector<2x8x8x8xbf16>
    %38 = vector.shape_cast %37 : vector<2x8x8x8xbf16> to vector<128x8xbf16>
    %c0_51 = arith.constant 0 : index
    %c0_52 = arith.constant 0 : index
    %39 = vector.load %arg6[%c0_51, %c0_52] : memref<128x8xf32, #tpu.memory_space<vmem>>, vector<128x8xf32>
    %c4 = arith.constant 4 : index
    %c0_53 = arith.constant 0 : index
    %c0_54 = arith.constant 0 : index
    %40 = vector.load %arg2[%c4, %c0_53, %c0_54] : memref<9x8x8xbf16, #tpu.memory_space<vmem>>, vector<1x8x8xbf16>
    %41 = vector.shape_cast %40 : vector<1x8x8xbf16> to vector<8x8xbf16>
    %cst_55 = arith.constant dense<0.000000e+00> : vector<128x8xf32>
    %42 = tpu.matmul %38, %41, %cst_55 {dimension_numbers = #tpu.dot_dimension_numbers<[1], [0], [0], [1], [0, 0, 1, 1], [], []>} : vector<128x8xbf16>, vector<8x8xbf16>, vector<128x8xf32> -> vector<128x8xf32>
    %43 = arith.addf %39, %42 : vector<128x8xf32>
    %c0_56 = arith.constant 0 : index
    %c0_57 = arith.constant 0 : index
    %44 = vector.load %arg6[%c0_56, %c0_57] : memref<128x8xf32, #tpu.memory_space<vmem>>, vector<128x8xf32>
    tpu.vector_store %arg6[%c0_56, %c0_57], %43 {strides = array<i32>} : memref<128x8xf32, #tpu.memory_space<vmem>>, vector<128x8xf32>,
    %c0_58 = arith.constant 0 : index
    %c1_59 = arith.constant 1 : index
    %c2_60 = arith.constant 2 : index
    %c0_61 = arith.constant 0 : index
    %45 = vector.load %arg1[%c0_58, %c1_59, %c2_60, %c0_61] : memref<2x10x10x8xbf16, #tpu.memory_space<vmem>>, vector<2x8x8x8xbf16>
    %46 = vector.shape_cast %45 : vector<2x8x8x8xbf16> to vector<128x8xbf16>
    %c0_62 = arith.constant 0 : index
    %c0_63 = arith.constant 0 : index
    %47 = vector.load %arg6[%c0_62, %c0_63] : memref<128x8xf32, #tpu.memory_space<vmem>>, vector<128x8xf32>
    %c5 = arith.constant 5 : index
    %c0_64 = arith.constant 0 : index
    %c0_65 = arith.constant 0 : index
    %48 = vector.load %arg2[%c5, %c0_64, %c0_65] : memref<9x8x8xbf16, #tpu.memory_space<vmem>>, vector<1x8x8xbf16>
    %49 = vector.shape_cast %48 : vector<1x8x8xbf16> to vector<8x8xbf16>
    %cst_66 = arith.constant dense<0.000000e+00> : vector<128x8xf32>
    %50 = tpu.matmul %46, %49, %cst_66 {dimension_numbers = #tpu.dot_dimension_numbers<[1], [0], [0], [1], [0, 0, 1, 1], [], []>} : vector<128x8xbf16>, vector<8x8xbf16>, vector<128x8xf32> -> vector<128x8xf32>
    %51 = arith.addf %47, %50 : vector<128x8xf32>
    %c0_67 = arith.constant 0 : index
    %c0_68 = arith.constant 0 : index
    %52 = vector.load %arg6[%c0_67, %c0_68] : memref<128x8xf32, #tpu.memory_space<vmem>>, vector<128x8xf32>
    tpu.vector_store %arg6[%c0_67, %c0_68], %51 {strides = array<i32>} : memref<128x8xf32, #tpu.memory_space<vmem>>, vector<128x8xf32>,
    %c0_69 = arith.constant 0 : index
    %c2_70 = arith.constant 2 : index
    %c0_71 = arith.constant 0 : index
    %c0_72 = arith.constant 0 : index
    %53 = vector.load %arg1[%c0_69, %c2_70, %c0_71, %c0_72] : memref<2x10x10x8xbf16, #tpu.memory_space<vmem>>, vector<2x8x8x8xbf16>
    %54 = vector.shape_cast %53 : vector<2x8x8x8xbf16> to vector<128x8xbf16>
    %c0_73 = arith.constant 0 : index
    %c0_74 = arith.constant 0 : index
    %55 = vector.load %arg6[%c0_73, %c0_74] : memref<128x8xf32, #tpu.memory_space<vmem>>, vector<128x8xf32>
    %c6 = arith.constant 6 : index
    %c0_75 = arith.constant 0 : index
    %c0_76 = arith.constant 0 : index
    %56 = vector.load %arg2[%c6, %c0_75, %c0_76] : memref<9x8x8xbf16, #tpu.memory_space<vmem>>, vector<1x8x8xbf16>
    %57 = vector.shape_cast %56 : vector<1x8x8xbf16> to vector<8x8xbf16>
    %cst_77 = arith.constant dense<0.000000e+00> : vector<128x8xf32>
    %58 = tpu.matmul %54, %57, %cst_77 {dimension_numbers = #tpu.dot_dimension_numbers<[1], [0], [0], [1], [0, 0, 1, 1], [], []>} : vector<128x8xbf16>, vector<8x8xbf16>, vector<128x8xf32> -> vector<128x8xf32>
    %59 = arith.addf %55, %58 : vector<128x8xf32>
    %c0_78 = arith.constant 0 : index
    %c0_79 = arith.constant 0 : index
    %60 = vector.load %arg6[%c0_78, %c0_79] : memref<128x8xf32, #tpu.memory_space<vmem>>, vector<128x8xf32>
    tpu.vector_store %arg6[%c0_78, %c0_79], %59 {strides = array<i32>} : memref<128x8xf32, #tpu.memory_space<vmem>>, vector<128x8xf32>,
    %c0_80 = arith.constant 0 : index
    %c2_81 = arith.constant 2 : index
    %c1_82 = arith.constant 1 : index
    %c0_83 = arith.constant 0 : index
    %61 = vector.load %arg1[%c0_80, %c2_81, %c1_82, %c0_83] : memref<2x10x10x8xbf16, #tpu.memory_space<vmem>>, vector<2x8x8x8xbf16>
    %62 = vector.shape_cast %61 : vector<2x8x8x8xbf16> to vector<128x8xbf16>
    %c0_84 = arith.constant 0 : index
    %c0_85 = arith.constant 0 : index
    %63 = vector.load %arg6[%c0_84, %c0_85] : memref<128x8xf32, #tpu.memory_space<vmem>>, vector<128x8xf32>
    %c7 = arith.constant 7 : index
    %c0_86 = arith.constant 0 : index
    %c0_87 = arith.constant 0 : index
    %64 = vector.load %arg2[%c7, %c0_86, %c0_87] : memref<9x8x8xbf16, #tpu.memory_space<vmem>>, vector<1x8x8xbf16>
    %65 = vector.shape_cast %64 : vector<1x8x8xbf16> to vector<8x8xbf16>
    %cst_88 = arith.constant dense<0.000000e+00> : vector<128x8xf32>
    %66 = tpu.matmul %62, %65, %cst_88 {dimension_numbers = #tpu.dot_dimension_numbers<[1], [0], [0], [1], [0, 0, 1, 1], [], []>} : vector<128x8xbf16>, vector<8x8xbf16>, vector<128x8xf32> -> vector<128x8xf32>
    %67 = arith.addf %63, %66 : vector<128x8xf32>
    %c0_89 = arith.constant 0 : index
    %c0_90 = arith.constant 0 : index
    %68 = vector.load %arg6[%c0_89, %c0_90] : memref<128x8xf32, #tpu.memory_space<vmem>>, vector<128x8xf32>
    tpu.vector_store %arg6[%c0_89, %c0_90], %67 {strides = array<i32>} : memref<128x8xf32, #tpu.memory_space<vmem>>, vector<128x8xf32>,
    %c0_91 = arith.constant 0 : index
    %c2_92 = arith.constant 2 : index
    %c2_93 = arith.constant 2 : index
    %c0_94 = arith.constant 0 : index
    %69 = vector.load %arg1[%c0_91, %c2_92, %c2_93, %c0_94] : memref<2x10x10x8xbf16, #tpu.memory_space<vmem>>, vector<2x8x8x8xbf16>
    %70 = vector.shape_cast %69 : vector<2x8x8x8xbf16> to vector<128x8xbf16>
    %c0_95 = arith.constant 0 : index
    %c0_96 = arith.constant 0 : index
    %71 = vector.load %arg6[%c0_95, %c0_96] : memref<128x8xf32, #tpu.memory_space<vmem>>, vector<128x8xf32>
    %c8 = arith.constant 8 : index
    %c0_97 = arith.constant 0 : index
    %c0_98 = arith.constant 0 : index
    %72 = vector.load %arg2[%c8, %c0_97, %c0_98] : memref<9x8x8xbf16, #tpu.memory_space<vmem>>, vector<1x8x8xbf16>
    %73 = vector.shape_cast %72 : vector<1x8x8xbf16> to vector<8x8xbf16>
    %cst_99 = arith.constant dense<0.000000e+00> : vector<128x8xf32>
    %74 = tpu.matmul %70, %73, %cst_99 {dimension_numbers = #tpu.dot_dimension_numbers<[1], [0], [0], [1], [0, 0, 1, 1], [], []>} : vector<128x8xbf16>, vector<8x8xbf16>, vector<128x8xf32> -> vector<128x8xf32>
    %75 = arith.addf %71, %74 : vector<128x8xf32>
    %c0_100 = arith.constant 0 : index
    %c0_101 = arith.constant 0 : index
    %76 = vector.load %arg6[%c0_100, %c0_101] : memref<128x8xf32, #tpu.memory_space<vmem>>, vector<128x8xf32>
    tpu.vector_store %arg6[%c0_100, %c0_101], %75 {strides = array<i32>} : memref<128x8xf32, #tpu.memory_space<vmem>>, vector<128x8xf32>,
    %c0_102 = arith.constant 0 : index
    %c0_103 = arith.constant 0 : index
    %77 = vector.load %arg6[%c0_102, %c0_103] : memref<128x8xf32, #tpu.memory_space<vmem>>, vector<128x8xf32>
    %78 = arith.truncf %77 : vector<128x8xf32> to vector<128x8xbf16>
    %c0_104 = arith.constant 0 : index
    %c0_105 = arith.constant 0 : index
    %79 = vector.load %arg3[%c0_104, %c0_105] : memref<128x8xbf16, #tpu.memory_space<vmem>>, vector<128x8xbf16>
    tpu.vector_store %arg3[%c0_104, %c0_105], %78 {strides = array<i32>} : memref<128x8xbf16, #tpu.memory_space<vmem>>, vector<128x8xbf16>,
    %c0_106 = arith.constant 0 : index
    %c0_107 = arith.constant 0 : index
    %80 = vector.load %arg4[%c0_106, %c0_107] : memref<1x8xf32, #tpu.memory_space<vmem>>, vector<1x8xf32>
    %cst_108 = arith.constant dense<0.000000e+00> : vector<8xf32>
    %81 = vector.multi_reduction <add>, %77, %cst_108 [0] : vector<128x8xf32> to vector<8xf32>
    %82 = vector.shape_cast %81 : vector<8xf32> to vector<1x8xf32>
    %83 = arith.addf %80, %82 : vector<1x8xf32>
    %c0_109 = arith.constant 0 : index
    %c0_110 = arith.constant 0 : index
    %84 = vector.load %arg4[%c0_109, %c0_110] : memref<1x8xf32, #tpu.memory_space<vmem>>, vector<1x8xf32>
    tpu.vector_store %arg4[%c0_109, %c0_110], %83 {strides = array<i32>} : memref<1x8xf32, #tpu.memory_space<vmem>>, vector<1x8xf32>,
    %c0_111 = arith.constant 0 : index
    %c0_112 = arith.constant 0 : index
    %85 = vector.load %arg5[%c0_111, %c0_112] : memref<1x8xf32, #tpu.memory_space<vmem>>, vector<1x8xf32>
    %86 = arith.mulf %77, %77 : vector<128x8xf32>
    %cst_113 = arith.constant dense<0.000000e+00> : vector<8xf32>
    %87 = vector.multi_reduction <add>, %86, %cst_113 [0] : vector<128x8xf32> to vector<8xf32>
    %88 = vector.shape_cast %87 : vector<8xf32> to vector<1x8xf32>
    %89 = arith.addf %85, %88 : vector<1x8xf32>
    %c0_114 = arith.constant 0 : index
    %c0_115 = arith.constant 0 : index
    %90 = vector.load %arg5[%c0_114, %c0_115] : memref<1x8xf32, #tpu.memory_space<vmem>>, vector<1x8xf32>
    tpu.vector_store %arg5[%c0_114, %c0_115], %89 {strides = array<i32>} : memref<1x8xf32, #tpu.memory_space<vmem>>, vector<1x8xf32>,
    return
  }
  func.func @transform_0(%arg0: i32) -> (i32, i32, i32, i32) {
    %c0_i32 = arith.constant 0 : i32
    %c0_i32_0 = arith.constant 0 : i32
    %c0_i32_1 = arith.constant 0 : i32
    %c0_i32_2 = arith.constant 0 : i32
    return %arg0, %c0_i32, %c0_i32_0, %c0_i32_1 : i32, i32, i32, i32
  }
  func.func @transform_1(%arg0: i32) -> (i32, i32, i32) {
    %c0_i32 = arith.constant 0 : i32
    %c0_i32_0 = arith.constant 0 : i32
    %c0_i32_1 = arith.constant 0 : i32
    %c0_i32_2 = arith.constant 0 : i32
    return %c0_i32, %c0_i32_0, %c0_i32_1 : i32, i32, i32
  }
  func.func @transform_2(%arg0: i32) -> (i32, i32) {
    %c0_i32 = arith.constant 0 : i32
    %c0_i32_0 = arith.constant 0 : i32
    return %arg0, %c0_i32 : i32, i32
  }
  func.func @transform_3(%arg0: i32) -> (i32, i32) {
    %c0_i32 = arith.constant 0 : i32
    %c0_i32_0 = arith.constant 0 : i32
    %c0_i32_1 = arith.constant 0 : i32
    return %c0_i32, %c0_i32_0 : i32, i32
  }
  func.func @transform_4(%arg0: i32) -> (i32, i32) {
    %c0_i32 = arith.constant 0 : i32
    %c0_i32_0 = arith.constant 0 : i32
    %c0_i32_1 = arith.constant 0 : i32
    return %c0_i32, %c0_i32_0 : i32, i32
  }
}

module attributes {stable_mosaic.version = 11 : i64} {
  func.func @_conv_stats_kernel(%arg0: i32, %arg1: memref<2x8x8x16xbf16, #tpu.memory_space<vmem>>, %arg2: memref<1x16x8xbf16, #tpu.memory_space<vmem>>, %arg3: memref<128x8xbf16, #tpu.memory_space<vmem>>, %arg4: memref<1x8xf32, #tpu.memory_space<vmem>>, %arg5: memref<1x8xf32, #tpu.memory_space<vmem>>, %arg6: memref<128x8xf32, #tpu.memory_space<vmem>>) attributes {dimension_semantics = [#tpu.dimension_semantics<arbitrary>], iteration_bounds = array<i64: 1>, scalar_prefetch = 0 : i64, scratch_operands = 1 : i64, tpu.core_type = #tpu.core_type<tc>, window_params = [{transform_indices = @transform_0, window_bounds = array<i64: 2, 8, 8, 16>}, {pipeline_mode = #tpu.pipeline_mode<synchronous>, transform_indices = @transform_1, window_bounds = array<i64: 1, 16, 8>}, {transform_indices = @transform_2, window_bounds = array<i64: 128, 8>}, {pipeline_mode = #tpu.pipeline_mode<synchronous>, transform_indices = @transform_3, window_bounds = array<i64: 1, 8>}, {pipeline_mode = #tpu.pipeline_mode<synchronous>, transform_indices = @transform_4, window_bounds = array<i64: 1, 8>}]} {
    %c0_i32 = arith.constant 0 : i32
    %0 = arith.cmpi eq, %arg0, %c0_i32 : i32
    %1 = arith.extui %0 : i1 to i32
    %c0_i32_0 = arith.constant 0 : i32
    %2 = arith.cmpi ne, %1, %c0_i32_0 : i32
    scf.if %2 {
      %cst_28 = arith.constant 0.000000e+00 : f32
      %27 = vector.broadcast %cst_28 : f32 to vector<1x8xf32>
      %c0_29 = arith.constant 0 : index
      %c0_30 = arith.constant 0 : index
      %28 = vector.load %arg4[%c0_29, %c0_30] : memref<1x8xf32, #tpu.memory_space<vmem>>, vector<1x8xf32>
      tpu.vector_store %arg4[%c0_29, %c0_30], %27 {strides = array<i32>} : memref<1x8xf32, #tpu.memory_space<vmem>>, vector<1x8xf32>,
      %cst_31 = arith.constant 0.000000e+00 : f32
      %29 = vector.broadcast %cst_31 : f32 to vector<1x8xf32>
      %c0_32 = arith.constant 0 : index
      %c0_33 = arith.constant 0 : index
      %30 = vector.load %arg5[%c0_32, %c0_33] : memref<1x8xf32, #tpu.memory_space<vmem>>, vector<1x8xf32>
      tpu.vector_store %arg5[%c0_32, %c0_33], %29 {strides = array<i32>} : memref<1x8xf32, #tpu.memory_space<vmem>>, vector<1x8xf32>,
    } else {
    }
    %cst = arith.constant 0.000000e+00 : f32
    %3 = vector.broadcast %cst : f32 to vector<128x8xf32>
    %c0 = arith.constant 0 : index
    %c0_1 = arith.constant 0 : index
    %4 = vector.load %arg6[%c0, %c0_1] : memref<128x8xf32, #tpu.memory_space<vmem>>, vector<128x8xf32>
    tpu.vector_store %arg6[%c0, %c0_1], %3 {strides = array<i32>} : memref<128x8xf32, #tpu.memory_space<vmem>>, vector<128x8xf32>,
    %c0_2 = arith.constant 0 : index
    %c0_3 = arith.constant 0 : index
    %c0_4 = arith.constant 0 : index
    %c0_5 = arith.constant 0 : index
    %5 = vector.load %arg1[%c0_2, %c0_3, %c0_4, %c0_5] : memref<2x8x8x16xbf16, #tpu.memory_space<vmem>>, vector<2x8x8x16xbf16>
    %6 = vector.shape_cast %5 : vector<2x8x8x16xbf16> to vector<128x16xbf16>
    %c0_6 = arith.constant 0 : index
    %c0_7 = arith.constant 0 : index
    %7 = vector.load %arg6[%c0_6, %c0_7] : memref<128x8xf32, #tpu.memory_space<vmem>>, vector<128x8xf32>
    %c0_8 = arith.constant 0 : index
    %c0_9 = arith.constant 0 : index
    %c0_10 = arith.constant 0 : index
    %8 = vector.load %arg2[%c0_8, %c0_9, %c0_10] : memref<1x16x8xbf16, #tpu.memory_space<vmem>>, vector<1x16x8xbf16>
    %9 = vector.shape_cast %8 : vector<1x16x8xbf16> to vector<16x8xbf16>
    %cst_11 = arith.constant dense<0.000000e+00> : vector<128x8xf32>
    %10 = tpu.matmul %6, %9, %cst_11 {dimension_numbers = #tpu.dot_dimension_numbers<[1], [0], [0], [1], [0, 0, 1, 1], [], []>} : vector<128x16xbf16>, vector<16x8xbf16>, vector<128x8xf32> -> vector<128x8xf32>
    %11 = arith.addf %7, %10 : vector<128x8xf32>
    %c0_12 = arith.constant 0 : index
    %c0_13 = arith.constant 0 : index
    %12 = vector.load %arg6[%c0_12, %c0_13] : memref<128x8xf32, #tpu.memory_space<vmem>>, vector<128x8xf32>
    tpu.vector_store %arg6[%c0_12, %c0_13], %11 {strides = array<i32>} : memref<128x8xf32, #tpu.memory_space<vmem>>, vector<128x8xf32>,
    %c0_14 = arith.constant 0 : index
    %c0_15 = arith.constant 0 : index
    %13 = vector.load %arg6[%c0_14, %c0_15] : memref<128x8xf32, #tpu.memory_space<vmem>>, vector<128x8xf32>
    %14 = arith.truncf %13 : vector<128x8xf32> to vector<128x8xbf16>
    %c0_16 = arith.constant 0 : index
    %c0_17 = arith.constant 0 : index
    %15 = vector.load %arg3[%c0_16, %c0_17] : memref<128x8xbf16, #tpu.memory_space<vmem>>, vector<128x8xbf16>
    tpu.vector_store %arg3[%c0_16, %c0_17], %14 {strides = array<i32>} : memref<128x8xbf16, #tpu.memory_space<vmem>>, vector<128x8xbf16>,
    %c0_18 = arith.constant 0 : index
    %c0_19 = arith.constant 0 : index
    %16 = vector.load %arg4[%c0_18, %c0_19] : memref<1x8xf32, #tpu.memory_space<vmem>>, vector<1x8xf32>
    %cst_20 = arith.constant dense<0.000000e+00> : vector<8xf32>
    %17 = vector.multi_reduction <add>, %13, %cst_20 [0] : vector<128x8xf32> to vector<8xf32>
    %18 = vector.shape_cast %17 : vector<8xf32> to vector<1x8xf32>
    %19 = arith.addf %16, %18 : vector<1x8xf32>
    %c0_21 = arith.constant 0 : index
    %c0_22 = arith.constant 0 : index
    %20 = vector.load %arg4[%c0_21, %c0_22] : memref<1x8xf32, #tpu.memory_space<vmem>>, vector<1x8xf32>
    tpu.vector_store %arg4[%c0_21, %c0_22], %19 {strides = array<i32>} : memref<1x8xf32, #tpu.memory_space<vmem>>, vector<1x8xf32>,
    %c0_23 = arith.constant 0 : index
    %c0_24 = arith.constant 0 : index
    %21 = vector.load %arg5[%c0_23, %c0_24] : memref<1x8xf32, #tpu.memory_space<vmem>>, vector<1x8xf32>
    %22 = arith.mulf %13, %13 : vector<128x8xf32>
    %cst_25 = arith.constant dense<0.000000e+00> : vector<8xf32>
    %23 = vector.multi_reduction <add>, %22, %cst_25 [0] : vector<128x8xf32> to vector<8xf32>
    %24 = vector.shape_cast %23 : vector<8xf32> to vector<1x8xf32>
    %25 = arith.addf %21, %24 : vector<1x8xf32>
    %c0_26 = arith.constant 0 : index
    %c0_27 = arith.constant 0 : index
    %26 = vector.load %arg5[%c0_26, %c0_27] : memref<1x8xf32, #tpu.memory_space<vmem>>, vector<1x8xf32>
    tpu.vector_store %arg5[%c0_26, %c0_27], %25 {strides = array<i32>} : memref<1x8xf32, #tpu.memory_space<vmem>>, vector<1x8xf32>,
    return
  }
  func.func @transform_0(%arg0: i32) -> (i32, i32, i32, i32) {
    %c0_i32 = arith.constant 0 : i32
    %c0_i32_0 = arith.constant 0 : i32
    %c0_i32_1 = arith.constant 0 : i32
    %c0_i32_2 = arith.constant 0 : i32
    return %arg0, %c0_i32, %c0_i32_0, %c0_i32_1 : i32, i32, i32, i32
  }
  func.func @transform_1(%arg0: i32) -> (i32, i32, i32) {
    %c0_i32 = arith.constant 0 : i32
    %c0_i32_0 = arith.constant 0 : i32
    %c0_i32_1 = arith.constant 0 : i32
    %c0_i32_2 = arith.constant 0 : i32
    return %c0_i32, %c0_i32_0, %c0_i32_1 : i32, i32, i32
  }
  func.func @transform_2(%arg0: i32) -> (i32, i32) {
    %c0_i32 = arith.constant 0 : i32
    %c0_i32_0 = arith.constant 0 : i32
    return %arg0, %c0_i32 : i32, i32
  }
  func.func @transform_3(%arg0: i32) -> (i32, i32) {
    %c0_i32 = arith.constant 0 : i32
    %c0_i32_0 = arith.constant 0 : i32
    %c0_i32_1 = arith.constant 0 : i32
    return %c0_i32, %c0_i32_0 : i32, i32
  }
  func.func @transform_4(%arg0: i32) -> (i32, i32) {
    %c0_i32 = arith.constant 0 : i32
    %c0_i32_0 = arith.constant 0 : i32
    %c0_i32_1 = arith.constant 0 : i32
    return %c0_i32, %c0_i32_0 : i32, i32
  }
}

module attributes {stable_mosaic.version = 11 : i64} {
  func.func @kernel(%arg0: i32, %arg1: memref<128x8xbf16, #tpu.memory_space<vmem>>, %arg2: memref<1x8xf32, #tpu.memory_space<vmem>>, %arg3: memref<1x8xf32, #tpu.memory_space<vmem>>, %arg4: memref<1x8xf32, #tpu.memory_space<vmem>>, %arg5: memref<1x8xf32, #tpu.memory_space<vmem>>, %arg6: memref<128x8xbf16, #tpu.memory_space<vmem>>) attributes {dimension_semantics = [#tpu.dimension_semantics<parallel>], iteration_bounds = array<i64: 1>, scalar_prefetch = 0 : i64, scratch_operands = 0 : i64, tpu.core_type = #tpu.core_type<tc>, window_params = [{transform_indices = @transform_0, window_bounds = array<i64: 128, 8>}, {pipeline_mode = #tpu.pipeline_mode<synchronous>, transform_indices = @transform_1, window_bounds = array<i64: 1, 8>}, {pipeline_mode = #tpu.pipeline_mode<synchronous>, transform_indices = @transform_2, window_bounds = array<i64: 1, 8>}, {pipeline_mode = #tpu.pipeline_mode<synchronous>, transform_indices = @transform_3, window_bounds = array<i64: 1, 8>}, {pipeline_mode = #tpu.pipeline_mode<synchronous>, transform_indices = @transform_4, window_bounds = array<i64: 1, 8>}, {transform_indices = @transform_5, window_bounds = array<i64: 128, 8>}]} {
    %c0 = arith.constant 0 : index
    %c0_0 = arith.constant 0 : index
    %0 = vector.load %arg2[%c0, %c0_0] : memref<1x8xf32, #tpu.memory_space<vmem>>, vector<1x8xf32>
    %cst = arith.constant 7.812500e-03 : f32
    %1 = vector.broadcast %cst : f32 to vector<1x8xf32>
    %2 = arith.mulf %0, %1 : vector<1x8xf32>
    %c0_1 = arith.constant 0 : index
    %c0_2 = arith.constant 0 : index
    %3 = vector.load %arg3[%c0_1, %c0_2] : memref<1x8xf32, #tpu.memory_space<vmem>>, vector<1x8xf32>
    %cst_3 = arith.constant 7.812500e-03 : f32
    %4 = vector.broadcast %cst_3 : f32 to vector<1x8xf32>
    %5 = arith.mulf %3, %4 : vector<1x8xf32>
    %6 = arith.mulf %2, %2 : vector<1x8xf32>
    %7 = arith.subf %5, %6 : vector<1x8xf32>
    %cst_4 = arith.constant 0.000000e+00 : f32
    %8 = vector.broadcast %cst_4 : f32 to vector<1x8xf32>
    %9 = arith.maximumf %7, %8 : vector<1x8xf32>
    %c0_5 = arith.constant 0 : index
    %c0_6 = arith.constant 0 : index
    %10 = vector.load %arg4[%c0_5, %c0_6] : memref<1x8xf32, #tpu.memory_space<vmem>>, vector<1x8xf32>
    %cst_7 = arith.constant 9.99999974E-6 : f32
    %11 = vector.broadcast %cst_7 : f32 to vector<1x8xf32>
    %12 = arith.addf %9, %11 : vector<1x8xf32>
    %13 = math.rsqrt %12 : vector<1x8xf32>
    %14 = arith.mulf %10, %13 : vector<1x8xf32>
    %c0_8 = arith.constant 0 : index
    %c0_9 = arith.constant 0 : index
    %15 = vector.load %arg5[%c0_8, %c0_9] : memref<1x8xf32, #tpu.memory_space<vmem>>, vector<1x8xf32>
    %16 = arith.mulf %2, %14 : vector<1x8xf32>
    %17 = arith.subf %15, %16 : vector<1x8xf32>
    %c0_10 = arith.constant 0 : index
    %c0_11 = arith.constant 0 : index
    %18 = vector.load %arg1[%c0_10, %c0_11] : memref<128x8xbf16, #tpu.memory_space<vmem>>, vector<128x8xbf16>
    %19 = arith.extf %18 : vector<128x8xbf16> to vector<128x8xf32>
    %20 = vector.broadcast %14 : vector<1x8xf32> to vector<128x8xf32>
    %21 = arith.mulf %19, %20 : vector<128x8xf32>
    %22 = vector.broadcast %17 : vector<1x8xf32> to vector<128x8xf32>
    %23 = arith.addf %21, %22 : vector<128x8xf32>
    %24 = arith.truncf %23 : vector<128x8xf32> to vector<128x8xbf16>
    %c0_12 = arith.constant 0 : index
    %c0_13 = arith.constant 0 : index
    %25 = vector.load %arg6[%c0_12, %c0_13] : memref<128x8xbf16, #tpu.memory_space<vmem>>, vector<128x8xbf16>
    tpu.vector_store %arg6[%c0_12, %c0_13], %24 {strides = array<i32>} : memref<128x8xbf16, #tpu.memory_space<vmem>>, vector<128x8xbf16>,
    return
  }
  func.func @transform_0(%arg0: i32) -> (i32, i32) {
    %c0_i32 = arith.constant 0 : i32
    %c0_i32_0 = arith.constant 0 : i32
    return %arg0, %c0_i32 : i32, i32
  }
  func.func @transform_1(%arg0: i32) -> (i32, i32) {
    %c0_i32 = arith.constant 0 : i32
    %c0_i32_0 = arith.constant 0 : i32
    %c0_i32_1 = arith.constant 0 : i32
    return %c0_i32, %c0_i32_0 : i32, i32
  }
  func.func @transform_2(%arg0: i32) -> (i32, i32) {
    %c0_i32 = arith.constant 0 : i32
    %c0_i32_0 = arith.constant 0 : i32
    %c0_i32_1 = arith.constant 0 : i32
    return %c0_i32, %c0_i32_0 : i32, i32
  }
  func.func @transform_3(%arg0: i32) -> (i32, i32) {
    %c0_i32 = arith.constant 0 : i32
    %c0_i32_0 = arith.constant 0 : i32
    %c0_i32_1 = arith.constant 0 : i32
    return %c0_i32, %c0_i32_0 : i32, i32
  }
  func.func @transform_4(%arg0: i32) -> (i32, i32) {
    %c0_i32 = arith.constant 0 : i32
    %c0_i32_0 = arith.constant 0 : i32
    %c0_i32_1 = arith.constant 0 : i32
    return %c0_i32, %c0_i32_0 : i32, i32
  }
  func.func @transform_5(%arg0: i32) -> (i32, i32) {
    %c0_i32 = arith.constant 0 : i32
    %c0_i32_0 = arith.constant 0 : i32
    return %arg0, %c0_i32 : i32, i32
  }
}

module attributes {stable_mosaic.version = 11 : i64} {
  func.func @kernel(%arg0: i32, %arg1: memref<128x8xbf16, #tpu.memory_space<vmem>>, %arg2: memref<1x8xf32, #tpu.memory_space<vmem>>, %arg3: memref<1x8xf32, #tpu.memory_space<vmem>>, %arg4: memref<1x8xf32, #tpu.memory_space<vmem>>, %arg5: memref<1x8xf32, #tpu.memory_space<vmem>>, %arg6: memref<128x8xbf16, #tpu.memory_space<vmem>>, %arg7: memref<128x8xbf16, #tpu.memory_space<vmem>>) attributes {dimension_semantics = [#tpu.dimension_semantics<parallel>], iteration_bounds = array<i64: 1>, scalar_prefetch = 0 : i64, scratch_operands = 0 : i64, tpu.core_type = #tpu.core_type<tc>, window_params = [{transform_indices = @transform_0, window_bounds = array<i64: 128, 8>}, {pipeline_mode = #tpu.pipeline_mode<synchronous>, transform_indices = @transform_1, window_bounds = array<i64: 1, 8>}, {pipeline_mode = #tpu.pipeline_mode<synchronous>, transform_indices = @transform_2, window_bounds = array<i64: 1, 8>}, {pipeline_mode = #tpu.pipeline_mode<synchronous>, transform_indices = @transform_3, window_bounds = array<i64: 1, 8>}, {pipeline_mode = #tpu.pipeline_mode<synchronous>, transform_indices = @transform_4, window_bounds = array<i64: 1, 8>}, {transform_indices = @transform_5, window_bounds = array<i64: 128, 8>}, {transform_indices = @transform_6, window_bounds = array<i64: 128, 8>}]} {
    %c0 = arith.constant 0 : index
    %c0_0 = arith.constant 0 : index
    %0 = vector.load %arg2[%c0, %c0_0] : memref<1x8xf32, #tpu.memory_space<vmem>>, vector<1x8xf32>
    %cst = arith.constant 7.812500e-03 : f32
    %1 = vector.broadcast %cst : f32 to vector<1x8xf32>
    %2 = arith.mulf %0, %1 : vector<1x8xf32>
    %c0_1 = arith.constant 0 : index
    %c0_2 = arith.constant 0 : index
    %3 = vector.load %arg3[%c0_1, %c0_2] : memref<1x8xf32, #tpu.memory_space<vmem>>, vector<1x8xf32>
    %cst_3 = arith.constant 7.812500e-03 : f32
    %4 = vector.broadcast %cst_3 : f32 to vector<1x8xf32>
    %5 = arith.mulf %3, %4 : vector<1x8xf32>
    %6 = arith.mulf %2, %2 : vector<1x8xf32>
    %7 = arith.subf %5, %6 : vector<1x8xf32>
    %cst_4 = arith.constant 0.000000e+00 : f32
    %8 = vector.broadcast %cst_4 : f32 to vector<1x8xf32>
    %9 = arith.maximumf %7, %8 : vector<1x8xf32>
    %c0_5 = arith.constant 0 : index
    %c0_6 = arith.constant 0 : index
    %10 = vector.load %arg4[%c0_5, %c0_6] : memref<1x8xf32, #tpu.memory_space<vmem>>, vector<1x8xf32>
    %cst_7 = arith.constant 9.99999974E-6 : f32
    %11 = vector.broadcast %cst_7 : f32 to vector<1x8xf32>
    %12 = arith.addf %9, %11 : vector<1x8xf32>
    %13 = math.rsqrt %12 : vector<1x8xf32>
    %14 = arith.mulf %10, %13 : vector<1x8xf32>
    %c0_8 = arith.constant 0 : index
    %c0_9 = arith.constant 0 : index
    %15 = vector.load %arg5[%c0_8, %c0_9] : memref<1x8xf32, #tpu.memory_space<vmem>>, vector<1x8xf32>
    %16 = arith.mulf %2, %14 : vector<1x8xf32>
    %17 = arith.subf %15, %16 : vector<1x8xf32>
    %c0_10 = arith.constant 0 : index
    %c0_11 = arith.constant 0 : index
    %18 = vector.load %arg1[%c0_10, %c0_11] : memref<128x8xbf16, #tpu.memory_space<vmem>>, vector<128x8xbf16>
    %19 = arith.extf %18 : vector<128x8xbf16> to vector<128x8xf32>
    %20 = vector.broadcast %14 : vector<1x8xf32> to vector<128x8xf32>
    %21 = arith.mulf %19, %20 : vector<128x8xf32>
    %22 = vector.broadcast %17 : vector<1x8xf32> to vector<128x8xf32>
    %23 = arith.addf %21, %22 : vector<128x8xf32>
    %c0_12 = arith.constant 0 : index
    %c0_13 = arith.constant 0 : index
    %24 = vector.load %arg6[%c0_12, %c0_13] : memref<128x8xbf16, #tpu.memory_space<vmem>>, vector<128x8xbf16>
    %25 = arith.extf %24 : vector<128x8xbf16> to vector<128x8xf32>
    %26 = arith.addf %23, %25 : vector<128x8xf32>
    %cst_14 = arith.constant 0.000000e+00 : f32
    %27 = vector.broadcast %cst_14 : f32 to vector<128x8xf32>
    %28 = arith.maximumf %26, %27 : vector<128x8xf32>
    %29 = arith.truncf %28 : vector<128x8xf32> to vector<128x8xbf16>
    %c0_15 = arith.constant 0 : index
    %c0_16 = arith.constant 0 : index
    %30 = vector.load %arg7[%c0_15, %c0_16] : memref<128x8xbf16, #tpu.memory_space<vmem>>, vector<128x8xbf16>
    tpu.vector_store %arg7[%c0_15, %c0_16], %29 {strides = array<i32>} : memref<128x8xbf16, #tpu.memory_space<vmem>>, vector<128x8xbf16>,
    return
  }
  func.func @transform_0(%arg0: i32) -> (i32, i32) {
    %c0_i32 = arith.constant 0 : i32
    %c0_i32_0 = arith.constant 0 : i32
    return %arg0, %c0_i32 : i32, i32
  }
  func.func @transform_1(%arg0: i32) -> (i32, i32) {
    %c0_i32 = arith.constant 0 : i32
    %c0_i32_0 = arith.constant 0 : i32
    %c0_i32_1 = arith.constant 0 : i32
    return %c0_i32, %c0_i32_0 : i32, i32
  }
  func.func @transform_2(%arg0: i32) -> (i32, i32) {
    %c0_i32 = arith.constant 0 : i32
    %c0_i32_0 = arith.constant 0 : i32
    %c0_i32_1 = arith.constant 0 : i32
    return %c0_i32, %c0_i32_0 : i32, i32
  }
  func.func @transform_3(%arg0: i32) -> (i32, i32) {
    %c0_i32 = arith.constant 0 : i32
    %c0_i32_0 = arith.constant 0 : i32
    %c0_i32_1 = arith.constant 0 : i32
    return %c0_i32, %c0_i32_0 : i32, i32
  }
  func.func @transform_4(%arg0: i32) -> (i32, i32) {
    %c0_i32 = arith.constant 0 : i32
    %c0_i32_0 = arith.constant 0 : i32
    %c0_i32_1 = arith.constant 0 : i32
    return %c0_i32, %c0_i32_0 : i32, i32
  }
  func.func @transform_5(%arg0: i32) -> (i32, i32) {
    %c0_i32 = arith.constant 0 : i32
    %c0_i32_0 = arith.constant 0 : i32
    return %arg0, %c0_i32 : i32, i32
  }
  func.func @transform_6(%arg0: i32) -> (i32, i32) {
    %c0_i32 = arith.constant 0 : i32
    %c0_i32_0 = arith.constant 0 : i32
    return %arg0, %c0_i32 : i32, i32
  }
}

module attributes {stable_mosaic.version = 11 : i64} {
  func.func @kernel(%arg0: i32, %arg1: memref<128x8xbf16, #tpu.memory_space<vmem>>, %arg2: memref<1x8xf32, #tpu.memory_space<vmem>>, %arg3: memref<1x8xf32, #tpu.memory_space<vmem>>, %arg4: memref<1x8xf32, #tpu.memory_space<vmem>>, %arg5: memref<1x8xf32, #tpu.memory_space<vmem>>, %arg6: memref<128x8xbf16, #tpu.memory_space<vmem>>, %arg7: memref<128x8xf32, #tpu.memory_space<vmem>>) attributes {dimension_semantics = [#tpu.dimension_semantics<parallel>], iteration_bounds = array<i64: 1>, scalar_prefetch = 0 : i64, scratch_operands = 0 : i64, tpu.core_type = #tpu.core_type<tc>, window_params = [{transform_indices = @transform_0, window_bounds = array<i64: 128, 8>}, {pipeline_mode = #tpu.pipeline_mode<synchronous>, transform_indices = @transform_1, window_bounds = array<i64: 1, 8>}, {pipeline_mode = #tpu.pipeline_mode<synchronous>, transform_indices = @transform_2, window_bounds = array<i64: 1, 8>}, {pipeline_mode = #tpu.pipeline_mode<synchronous>, transform_indices = @transform_3, window_bounds = array<i64: 1, 8>}, {pipeline_mode = #tpu.pipeline_mode<synchronous>, transform_indices = @transform_4, window_bounds = array<i64: 1, 8>}, {transform_indices = @transform_5, window_bounds = array<i64: 128, 8>}, {transform_indices = @transform_6, window_bounds = array<i64: 128, 8>}]} {
    %c0 = arith.constant 0 : index
    %c0_0 = arith.constant 0 : index
    %0 = vector.load %arg2[%c0, %c0_0] : memref<1x8xf32, #tpu.memory_space<vmem>>, vector<1x8xf32>
    %cst = arith.constant 7.812500e-03 : f32
    %1 = vector.broadcast %cst : f32 to vector<1x8xf32>
    %2 = arith.mulf %0, %1 : vector<1x8xf32>
    %c0_1 = arith.constant 0 : index
    %c0_2 = arith.constant 0 : index
    %3 = vector.load %arg3[%c0_1, %c0_2] : memref<1x8xf32, #tpu.memory_space<vmem>>, vector<1x8xf32>
    %cst_3 = arith.constant 7.812500e-03 : f32
    %4 = vector.broadcast %cst_3 : f32 to vector<1x8xf32>
    %5 = arith.mulf %3, %4 : vector<1x8xf32>
    %6 = arith.mulf %2, %2 : vector<1x8xf32>
    %7 = arith.subf %5, %6 : vector<1x8xf32>
    %cst_4 = arith.constant 0.000000e+00 : f32
    %8 = vector.broadcast %cst_4 : f32 to vector<1x8xf32>
    %9 = arith.maximumf %7, %8 : vector<1x8xf32>
    %c0_5 = arith.constant 0 : index
    %c0_6 = arith.constant 0 : index
    %10 = vector.load %arg4[%c0_5, %c0_6] : memref<1x8xf32, #tpu.memory_space<vmem>>, vector<1x8xf32>
    %cst_7 = arith.constant 9.99999974E-6 : f32
    %11 = vector.broadcast %cst_7 : f32 to vector<1x8xf32>
    %12 = arith.addf %9, %11 : vector<1x8xf32>
    %13 = math.rsqrt %12 : vector<1x8xf32>
    %14 = arith.mulf %10, %13 : vector<1x8xf32>
    %c0_8 = arith.constant 0 : index
    %c0_9 = arith.constant 0 : index
    %15 = vector.load %arg5[%c0_8, %c0_9] : memref<1x8xf32, #tpu.memory_space<vmem>>, vector<1x8xf32>
    %16 = arith.mulf %2, %14 : vector<1x8xf32>
    %17 = arith.subf %15, %16 : vector<1x8xf32>
    %c0_10 = arith.constant 0 : index
    %c0_11 = arith.constant 0 : index
    %18 = vector.load %arg1[%c0_10, %c0_11] : memref<128x8xbf16, #tpu.memory_space<vmem>>, vector<128x8xbf16>
    %19 = arith.extf %18 : vector<128x8xbf16> to vector<128x8xf32>
    %20 = vector.broadcast %14 : vector<1x8xf32> to vector<128x8xf32>
    %21 = arith.mulf %19, %20 : vector<128x8xf32>
    %22 = vector.broadcast %17 : vector<1x8xf32> to vector<128x8xf32>
    %23 = arith.addf %21, %22 : vector<128x8xf32>
    %c0_12 = arith.constant 0 : index
    %c0_13 = arith.constant 0 : index
    %24 = vector.load %arg6[%c0_12, %c0_13] : memref<128x8xbf16, #tpu.memory_space<vmem>>, vector<128x8xbf16>
    %25 = arith.extf %24 : vector<128x8xbf16> to vector<128x8xf32>
    %26 = arith.addf %23, %25 : vector<128x8xf32>
    %cst_14 = arith.constant 0.000000e+00 : f32
    %27 = vector.broadcast %cst_14 : f32 to vector<128x8xf32>
    %28 = arith.maximumf %26, %27 : vector<128x8xf32>
    %c0_15 = arith.constant 0 : index
    %c0_16 = arith.constant 0 : index
    %29 = vector.load %arg7[%c0_15, %c0_16] : memref<128x8xf32, #tpu.memory_space<vmem>>, vector<128x8xf32>
    tpu.vector_store %arg7[%c0_15, %c0_16], %28 {strides = array<i32>} : memref<128x8xf32, #tpu.memory_space<vmem>>, vector<128x8xf32>,
    return
  }
  func.func @transform_0(%arg0: i32) -> (i32, i32) {
    %c0_i32 = arith.constant 0 : i32
    %c0_i32_0 = arith.constant 0 : i32
    return %arg0, %c0_i32 : i32, i32
  }
  func.func @transform_1(%arg0: i32) -> (i32, i32) {
    %c0_i32 = arith.constant 0 : i32
    %c0_i32_0 = arith.constant 0 : i32
    %c0_i32_1 = arith.constant 0 : i32
    return %c0_i32, %c0_i32_0 : i32, i32
  }
  func.func @transform_2(%arg0: i32) -> (i32, i32) {
    %c0_i32 = arith.constant 0 : i32
    %c0_i32_0 = arith.constant 0 : i32
    %c0_i32_1 = arith.constant 0 : i32
    return %c0_i32, %c0_i32_0 : i32, i32
  }
  func.func @transform_3(%arg0: i32) -> (i32, i32) {
    %c0_i32 = arith.constant 0 : i32
    %c0_i32_0 = arith.constant 0 : i32
    %c0_i32_1 = arith.constant 0 : i32
    return %c0_i32, %c0_i32_0 : i32, i32
  }
  func.func @transform_4(%arg0: i32) -> (i32, i32) {
    %c0_i32 = arith.constant 0 : i32
    %c0_i32_0 = arith.constant 0 : i32
    %c0_i32_1 = arith.constant 0 : i32
    return %c0_i32, %c0_i32_0 : i32, i32
  }
  func.func @transform_5(%arg0: i32) -> (i32, i32) {
    %c0_i32 = arith.constant 0 : i32
    %c0_i32_0 = arith.constant 0 : i32
    return %arg0, %c0_i32 : i32, i32
  }
  func.func @transform_6(%arg0: i32) -> (i32, i32) {
    %c0_i32 = arith.constant 0 : i32
    %c0_i32_0 = arith.constant 0 : i32
    return %arg0, %c0_i32 : i32, i32
  }
}

</mosaic_0001>

<bundles_post_ra>
// kernel: encoder_forward.11
= control target key start
LH: loop header
LB: loop body
LE: loop exit
PB: predicated region body
PF: predicated region fallthrough
CT: control target
= control target key end

     0   :  { %vm145_vm3 = vcmask 60416   ;;  %s337_s1 = inlined_call_operand.vmem [shape: f32[1,8], index: 1, kind: input, shape index: {}]   ;;  %s338_s2 = inlined_call_operand.vmem [shape: f32[1,8], index: 2, kind: input, shape index: {}]   ;;  %s339_s0 = inlined_call_operand.vmem [shape: bf16[128,8], index: 0, kind: input, shape index: {}]   ;;  %s340_s3 = inlined_call_operand.vmem [shape: f32[1,8], index: 3, kind: input, shape index: {}]   ;;  %s341_s4 = inlined_call_operand.vmem [shape: f32[1,8], index: 4, kind: input, shape index: {}]   ;;  %s342_s5 = inlined_call_operand.vmem [shape: bf16[128,8], index: 5, kind: output, shape index: {}]  }
   0x1   :  { %v20_v0 = vld [vmem:[%s337_s1] sm:$0x1]  ;;  %v198_v16 = vld [vmem:[%s339_s0 + $0x8] sm:$0xff]   ;;  %v199_v17 = vld [vmem:[%s339_s0 + $0x10] sm:$0xff]  }
   0x2   :  { %v22_v1 = vld [vmem:[%s338_s2] sm:$0x1]  ;;  %v21_v2 = vmul.f32 0.0078125, %v20_v0  ;;  %v200_v18 = vld [vmem:[%s339_s0 + $0x18] sm:$0xff]   ;;  %v172_v24 = vunpack.c.l.bf16 %v198_v16  ;;  %v173_v25 = vunpack.c.h.bf16 %v198_v16  ;;  %v202_v26 = vld [vmem:[%s339_s0 + $0x28] sm:$0xff]   ;;  %v176_v29 = vunpack.c.l.bf16 %v199_v17 }
   0x3   :  { %v23_v3 = vmul.f32 0.0078125, %v22_v1  ;;  %v167_v13 = vld [vmem:[%s339_s0] sm:$0xff]   ;;  %v203_v27 = vld [vmem:[%s339_s0 + $0x30] sm:$0xff]   ;;  %v177_v30 = vunpack.c.h.bf16 %v199_v17  ;;  %v180_v31 = vunpack.c.l.bf16 %v200_v18  ;;  %v181_v32 = vunpack.c.h.bf16 %v200_v18  ;;  %v204_v41 = vld [vmem:[%s339_s0 + $0x38] sm:$0xff]  }
   0x4   :  { %v24_v4 = vmul.f32 %v21_v2, %v21_v2  ;;  %v27_v14 = vld [vmem:[%s340_s3] sm:$0x1]  ;;  %v168_v20 = vunpack.c.l.bf16 %v167_v13  ;;  %v169_v23 = vunpack.c.h.bf16 %v167_v13  ;;  %v188_v37 = vunpack.c.l.bf16 %v202_v26 }
   0x5   :  { %v201_v21 = vld [vmem:[%s339_s0 + $0x20] sm:$0xff]   ;;  %v189_v38 = vunpack.c.h.bf16 %v202_v26  ;;  %v192_v39 = vunpack.c.l.bf16 %v203_v27  ;;  %v193_v40 = vunpack.c.h.bf16 %v203_v27  ;;  %v196_v52 = vunpack.c.l.bf16 %v204_v41 }
   0x6   :  { %v25_v5 = vsub.f32 %v23_v3, %v24_v4  ;;  %v40_v28 = vld [vmem:[%s341_s4] sm:$0x1]  ;;  %v184_v35 = vunpack.c.l.bf16 %v201_v21  ;;  %v185_v36 = vunpack.c.h.bf16 %v201_v21  ;;  %v197_v53 = vunpack.c.h.bf16 %v204_v41 }
   0x8   :  { %v26_v6 = vmax.f32 %v25_v5, 0.0 }
   0xa   :  { %v28_v7 = vadd.f32 1e-05, %v26_v6 }
   0xc   :  { %205 = vrsqrt.f32 %v28_v7  ;;  %vm35_vm0 = vweird.f32 %v28_v7 }
  0x12   :  { %v206_v8 = vpop.eup %205 }
  0x13   :  { %v30_v9 = vmul.f32 %v206_v8, %v28_v7  ;;  %vm36_vm1 = vweird.f32 %v206_v8 }
  0x14   :  { %vm37_vm2 = vmor %vm35_vm0, %vm36_vm1 }
  0x15   :  { %v31_v10 = vmul.f32 %v206_v8, %v30_v9 }
  0x17   :  { %v32_v11 = vmul.f32 0.5, %v31_v10 }
  0x19   :  { %v33_v12 = vsub.f32 1.5, %v32_v11 }
  0x1b   :  { %v34_v15 = vmul.f32 %v206_v8, %v33_v12 }
  0x1d   :  { %v38_v19 = vsel %vm37_vm2, %v206_v8, %v34_v15 }
  0x1e   :  { %v39_v22 = vmul.f32 %v38_v19, %v27_v14 }
  0x20   :  { %v41_v33 = vmul.f32 %v39_v22, %v21_v2  ;;  %v76_v34 = vperm.slane %v39_v22, 0 }
  0x22   :  { %v42_v42 = vsub.f32 %v40_v28, %v41_v33  ;;  %v78_v43 = vmul.f32 %v168_v20, %v76_v34  ;;  %v79_v44 = vmul.f32 %v169_v23, %v76_v34  ;;  %v80_v45 = vmul.f32 %v172_v24, %v76_v34 }
  0x23   :  { %v81_v46 = vmul.f32 %v173_v25, %v76_v34  ;;  %v82_v47 = vmul.f32 %v176_v29, %v76_v34  ;;  %v83_v48 = vmul.f32 %v177_v30, %v76_v34  ;;  %v84_v49 = vmul.f32 %v180_v31, %v76_v34 }
  0x24   :  { %v95_v50 = vperm.slane %v42_v42, 0  ;;  %v85_v51 = vmul.f32 %v181_v32, %v76_v34  ;;  %v86_v54 = vmul.f32 %v184_v35, %v76_v34  ;;  %v87_v55 = vmul.f32 %v185_v36, %v76_v34 }
  0x25   :  { %v88_v56 = vmul.f32 %v188_v37, %v76_v34  ;;  %v89_v57 = vmul.f32 %v189_v38, %v76_v34  ;;  %v90_v8 = vmul.f32 %v192_v39, %v76_v34  ;;  %v91_v9 = vmul.f32 %v193_v40, %v76_v34 }
  0x26   :  { %v97_v58 = vadd.f32 %v95_v50, %v78_v43  ;;  %v98_v59 = vadd.f32 %v95_v50, %v79_v44  ;;  %v99_v60 = vadd.f32 %v95_v50, %v80_v45  ;;  %v100_v61 = vadd.f32 %v95_v50, %v81_v46 }
  0x27   :  { %v101_v62 = vadd.f32 %v95_v50, %v82_v47  ;;  %v102_v63 = vadd.f32 %v95_v50, %v83_v48  ;;  %v103_v0 = vadd.f32 %v95_v50, %v84_v49  ;;  %v104_v1 = vadd.f32 %v95_v50, %v85_v51 }
  0x28   :  { %v113_v2 = vmax.f32 %v97_v58, 0.0  ;;  %v114_v3 = vmax.f32 %v98_v59, 0.0  ;;  %v115_v4 = vmax.f32 %v99_v60, 0.0  ;;  %v116_v5 = vmax.f32 %v100_v61, 0.0 }
  0x29   :  { %v117_v6 = vmax.f32 %v101_v62, 0.0  ;;  %v118_v7 = vmax.f32 %v102_v63, 0.0  ;;  %v119_v13 = vmax.f32 %v103_v0, 0.0  ;;  %v120_v17 = vmax.f32 %v104_v1, 0.0 }
  0x2a   :  { %v129_v10 = vpack.c.bf16 %v113_v2, %v113_v2  ;;  %v130_v11 = vpack.c.bf16 %v114_v3, %v114_v3  ;;  %v131_v12 = vpack.c.bf16 %v115_v4, %v115_v4  ;;  %v132_v14 = vpack.c.bf16 %v116_v5, %v116_v5 }
  0x2b   :  { %v133_v15 = vpack.c.bf16 %v117_v6, %v117_v6  ;;  %v134_v16 = vpack.c.bf16 %v118_v7, %v118_v7  ;;  %v105_v18 = vadd.f32 %v95_v50, %v86_v54  ;;  %v106_v19 = vadd.f32 %v95_v50, %v87_v55 }
  0x2c   :  { %146 = vst.msk [vmem:[%s342_s5] sm:$0xf] %vm145_vm3, %v129_v10  ;;  %v107_v20 = vadd.f32 %v95_v50, %v88_v56  ;;  %v108_v21 = vadd.f32 %v95_v50, %v89_v57  ;;  %v109_v22 = vadd.f32 %v95_v50, %v90_v8  ;;  %v110_v23 = vadd.f32 %v95_v50, %v91_v9 }
  0x2d   :  { %147 = vst.msk [vmem:[%s342_s5 + $0x4] sm:$0xf] %vm145_vm3, %v130_v11  ;;  %v92_v24 = vmul.f32 %v196_v52, %v76_v34  ;;  %v93_v25 = vmul.f32 %v197_v53, %v76_v34  ;;  %v135_v26 = vpack.c.bf16 %v119_v13, %v119_v13  ;;  %v121_v27 = vmax.f32 %v105_v18, 0.0 }
  0x2e   :  { %148 = vst.msk [vmem:[%s342_s5 + $0x8] sm:$0xf] %vm145_vm3, %v131_v12  ;;  %v122_v28 = vmax.f32 %v106_v19, 0.0  ;;  %v123_v29 = vmax.f32 %v107_v20, 0.0  ;;  %v136_v30 = vpack.c.bf16 %v120_v17, %v120_v17  ;;  %v124_v31 = vmax.f32 %v108_v21, 0.0 }
  0x2f   :  { %149 = vst.msk [vmem:[%s342_s5 + $0xc] sm:$0xf] %vm145_vm3, %v132_v14  ;;  %v111_v32 = vadd.f32 %v95_v50, %v92_v24  ;;  %v112_v33 = vadd.f32 %v95_v50, %v93_v25  ;;  %v137_v34 = vpack.c.bf16 %v121_v27, %v121_v27  ;;  %v125_v35 = vmax.f32 %v109_v22, 0.0 }
  0x30   :  { %150 = vst.msk [vmem:[%s342_s5 + $0x10] sm:$0xf] %vm145_vm3, %v133_v15  ;;  %v138_v36 = vpack.c.bf16 %v122_v28, %v122_v28  ;;  %v126_v37 = vmax.f32 %v110_v23, 0.0  ;;  %v139_v38 = vpack.c.bf16 %v123_v29, %v123_v29  ;;  %v140_v40 = vpack.c.bf16 %v124_v31, %v124_v31 }
  0x31   :  { %151 = vst.msk [vmem:[%s342_s5 + $0x14] sm:$0xf] %vm145_vm3, %v134_v16  ;;  %v127_v39 = vmax.f32 %v111_v32, 0.0  ;;  %v128_v41 = vmax.f32 %v112_v33, 0.0  ;;  %v141_v42 = vpack.c.bf16 %v125_v35, %v125_v35 }
  0x32   :  { %152 = vst.msk [vmem:[%s342_s5 + $0x18] sm:$0xf] %vm145_vm3, %v135_v26  ;;  %v142_v43 = vpack.c.bf16 %v126_v37, %v126_v37 }
  0x33   :  { %153 = vst.msk [vmem:[%s342_s5 + $0x1c] sm:$0xf] %vm145_vm3, %v136_v30  ;;  %v143_v44 = vpack.c.bf16 %v127_v39, %v127_v39  ;;  %v144_v45 = vpack.c.bf16 %v128_v41, %v128_v41 }
  0x34   :  { %154 = vst.msk [vmem:[%s342_s5 + $0x20] sm:$0xf] %vm145_vm3, %v137_v34 }
  0x35   :  { %155 = vst.msk [vmem:[%s342_s5 + $0x24] sm:$0xf] %vm145_vm3, %v138_v36 }
  0x36   :  { %156 = vst.msk [vmem:[%s342_s5 + $0x28] sm:$0xf] %vm145_vm3, %v139_v38 }
  0x37   :  { %157 = vst.msk [vmem:[%s342_s5 + $0x2c] sm:$0xf] %vm145_vm3, %v140_v40 }
  0x38   :  { %158 = vst.msk [vmem:[%s342_s5 + $0x30] sm:$0xf] %vm145_vm3, %v141_v42 }
  0x39   :  { %159 = vst.msk [vmem:[%s342_s5 + $0x34] sm:$0xf] %vm145_vm3, %v142_v43 }
  0x3a   :  { %160 = vst.msk [vmem:[%s342_s5 + $0x38] sm:$0xf] %vm145_vm3, %v143_v44 }
  0x3b   :  { %161 = vst.msk [vmem:[%s342_s5 + $0x3c] sm:$0xf] %vm145_vm3, %v144_v45 }

// kernel: encoder_forward.10
= control target key start
LH: loop header
LB: loop body
LE: loop exit
PB: predicated region body
PF: predicated region fallthrough
CT: control target
= control target key end

     0   :  { %vm257_vm0 = vsmask.f32 3328  ;;  %vm119_vm1 = vcmask 130048   ;;  %vm258_vm2 = vsmask.f32 7440  ;;  %vm22_vm4 = vcmask 64512   ;;  %s2278_s1 = inlined_call_operand.vmem [shape: bf16[4,16,8], index: 1, kind: input, shape index: {}]   ;;  %s2279_s0 = inlined_call_operand.vmem [shape: bf16[2,9,9,16], index: 0, kind: input, shape index: {}]   ;;  %s2280_s2 = inlined_call_operand.vmem [shape: bf16[128,8], index: 2, kind: output, shape index: {0}]   ;;  %s2281_s3 = inlined_call_operand.vmem [shape: f32[1,8], index: 3, kind: output, shape index: {1}]   ;;  %s2282_s4 = inlined_call_operand.vmem [shape: f32[1,8], index: 4, kind: output, shape index: {2}]  }
   0x1   :  { %v1567_v0 = vld [vmem:[%s2278_s1] sm:$0xff]  ;;  %v1559_v2 = vld [vmem:[%s2279_s0 + $0x4] sm:$0xf0]  ;;  %v1577_v4 = vld [vmem:[%s2278_s1 + $0x10] sm:$0xff]  ;;  %vm1267_vm5 = vcmask 60416   ;;  %vm19_vm6 = vcmask 57344  }
   0x2   :  { %v1395_v1 = vld [vmem:[%s2279_s0] sm:$0xf]  ;;  %v1568_v5 = vld [vmem:[%s2278_s1 + $0x8] sm:$0xff]  ;;  %151 = vmatpush.bf16.msra.mxu0 %v1567_v0  ;;  %v1569_v7 = vld [vmem:[%s2279_s0 + $0xc] sm:$0xf0]  ;;  %751 = vmatpush.bf16.msra.mxu2 %v1577_v4 }
   0x3   :  { %v1396_v3 = vor.u32 %v1559_v2, %v1395_v1  ;;  %v1471_v6 = vld [vmem:[%s2279_s0 + $0x8] sm:$0xf]  ;;  %v225_v8 = vld [vmem:[%s2279_s0] sm:$0xf]  ;;  %v226_v9 = vld [vmem:[%s2279_s0 + $0x4] sm:$0x1]  ;;  %564 = vmatpush.bf16.msra.mxu1 %v1568_v5 }
   0x4   :  { %v1472_v10 = vor.u32 %v1569_v7, %v1471_v6  ;;  %v227_v11 = vld [vmem:[%s2279_s0 + $0x8] sm:$0xf]  ;;  %v228_v12 = vld [vmem:[%s2279_s0 + $0xc] sm:$0x1]  ;;  %v261_v13 = vshrl.u32 %v225_v8, 16  ;;  %v264_v14 = vshll.u32 %v225_v8, 16  ;;  %vm1668_vm3 = vmor %vm257_vm0, %vm258_vm2 }
   0x5   :  { %v270_v15 = vshll.u32 %v226_v9, 16  ;;  %v275_v16 = vshrl.u32 %v227_v11, 16  ;;  %v278_v17 = vshll.u32 %v227_v11, 16  ;;  %v284_v18 = vshll.u32 %v228_v12, 16  ;;  %v1578_v19 = vld [vmem:[%s2278_s1 + $0x18] sm:$0xff]  ;;  %1429 = vmatmul.msk.bf16.vlgmr.msra.gmra.mxu0 %vm119_vm1, %v1396_v3 }
   0x6   :  { %v263_v20 = vrot.slane %v261_v13, 4  ;;  %v266_v21 = vrot.slane %v264_v14, 5  ;;  %v1646_v22 = vld [vmem:[%s2279_s0 + $0x10] sm:$0xf]  ;;  %v1651_v23 = vld [vmem:[%s2279_s0 + $0x14] sm:$0xf0]  ;;  %1505 = vmatmul.msk.bf16.vlgmr.msra.gmra.mxu2 %vm119_vm1, %v1472_v10  ;;  %1161 = vmatpush.bf16.msra.mxu3 %v1578_v19 }
   0x7   :  { %v272_v24 = vrot.slane %v270_v15, 5  ;;  %v277_v25 = vrot.slane %v275_v16, 4  ;;  %v280_v26 = vrot.slane %v278_v17, 5  ;;  %v286_v27 = vrot.slane %v284_v18, 5  ;;  %v1513_v28 = vld [vmem:[%s2279_s0 + $0x8] sm:$0xf] }
   0x8   :  { %v267_v29 = vor.u32 %v266_v21, %v263_v20  ;;  %v1514_v30 = vld [vmem:[%s2279_s0 + $0xc] sm:$0x1]  ;;  %v1515_v31 = vld [vmem:[%s2279_s0 + $0x10] sm:$0xf]  ;;  %v1516_v32 = vld [vmem:[%s2279_s0 + $0x14] sm:$0x1]  ;;  %v1400_v43 = vor.u32 %v1651_v23, %v1646_v22 }
   0x9   :  { %v281_v34 = vor.u32 %v280_v26, %v277_v25  ;;  %v858_v35 = vshrl.u32 %v1513_v28, 16  ;;  %v861_v36 = vshll.u32 %v1513_v28, 16  ;;  %v867_v37 = vshll.u32 %v1514_v30, 16  ;;  %v229_v46 = vld [vmem:[%s2279_s0 + $0x10] sm:$0xf] }
   0xa   :  { %v268_v38 = vrot.slane %v267_v29, 4  ;;  %v872_v39 = vshrl.u32 %v1515_v31, 16  ;;  %v875_v40 = vshll.u32 %v1515_v31, 16  ;;  %v881_v41 = vshll.u32 %v1516_v32, 16  ;;  %v230_v51 = vld [vmem:[%s2279_s0 + $0x14] sm:$0x1] }
   0xb   :  { %v282_v42 = vrot.slane %v281_v34, 4  ;;  %v860_v44 = vrot.slane %v858_v35, 4  ;;  %v863_v45 = vrot.slane %v861_v36, 5  ;;  %v869_v48 = vrot.slane %v867_v37, 5  ;;  %v231_v56 = vld [vmem:[%s2279_s0 + $0x18] sm:$0xf] }
   0xc   :  { %v273_v47 = vsel %vm1668_vm3, %v268_v38, %v272_v24  ;;  %v874_v49 = vrot.slane %v872_v39, 4  ;;  %v877_v50 = vrot.slane %v875_v40, 5  ;;  %v883_v55 = vrot.slane %v881_v41, 5  ;;  %v1475_v59 = vld [vmem:[%s2279_s0 + $0x18] sm:$0xf] }
   0xd   :  { %v287_v52 = vsel %vm1668_vm3, %v282_v42, %v286_v27  ;;  %v503_v53 = vunpack.c.l.b16 %v273_v47  ;;  %v864_v54 = vor.u32 %v863_v45, %v860_v44  ;;  %v1570_v60 = vld [vmem:[%s2279_s0 + $0x1c] sm:$0xf0]  ;;  %v289_v61 = vshrl.u32 %v229_v46, 16  ;;  %v232_v0 = vld [vmem:[%s2279_s0 + $0x1c] sm:$0x1] }
   0xe   :  { %v504_v57 = vunpack.c.l.b16 %v287_v52  ;;  %v878_v58 = vor.u32 %v877_v50, %v874_v49  ;;  %v292_v62 = vshll.u32 %v229_v46, 16  ;;  %v298_v1 = vshll.u32 %v230_v51, 16  ;;  %v1517_v8 = vld [vmem:[%s2279_s0 + $0x18] sm:$0xf]  ;;  %v1518_v13 = vld [vmem:[%s2279_s0 + $0x1c] sm:$0x1] }
   0xf   :  { %v865_v63 = vrot.slane %v864_v54, 4  ;;  %v303_v2 = vshrl.u32 %v231_v56, 16  ;;  %v306_v3 = vshll.u32 %v231_v56, 16  ;;  %v291_v6 = vrot.slane %v289_v61, 4  ;;  %v1519_v18 = vld [vmem:[%s2279_s0 + $0x20] sm:$0xf] }
  0x10   :  { %v519_v4 = vpack.c.b16 %v504_v57, %v503_v53  ;;  %v879_v5 = vrot.slane %v878_v58, 4  ;;  %v294_v7 = vrot.slane %v292_v62, 5  ;;  %v300_v10 = vrot.slane %v298_v1, 5  ;;  %v1520_v25 = vld [vmem:[%s2279_s0 + $0x24] sm:$0x1] }
  0x11   :  { %v870_v9 = vsel %vm1668_vm3, %v865_v63, %v869_v48  ;;  %v305_v11 = vrot.slane %v303_v2, 4  ;;  %v308_v12 = vrot.slane %v306_v3, 5  ;;  %v312_v17 = vshll.u32 %v232_v0, 16  ;;  %v233_v36 = vld [vmem:[%s2279_s0 + $0x20] sm:$0xf] }
  0x12   :  { %1443 = vmatmul.msk.bf16.vlgmr.msra.gmra.mxu1 %vm119_vm1, %v519_v4  ;;  %v884_v14 = vsel %vm1668_vm3, %v879_v5, %v883_v55  ;;  %v1100_v15 = vunpack.c.l.b16 %v870_v9  ;;  %v295_v16 = vor.u32 %v294_v7, %v291_v6  ;;  %v1476_v20 = vor.u32 %v1570_v60, %v1475_v59  ;;  %v235_v40 = vld [vmem:[%s2279_s0 + $0x28] sm:$0xf]  ;;  %v234_v46 = vld [vmem:[%s2279_s0 + $0x24] sm:$0x1]  ;;  %v236_v52 = vld [vmem:[%s2279_s0 + $0x2c] sm:$0x1] }
  0x13   :  { %v1101_v19 = vunpack.c.l.b16 %v884_v14  ;;  %v309_v21 = vor.u32 %v308_v12, %v305_v11  ;;  %v886_v22 = vshrl.u32 %v1517_v8, 16  ;;  %v314_v24 = vrot.slane %v312_v17, 5  ;;  %v1521_v57 = vld [vmem:[%s2279_s0 + $0x28] sm:$0xf]  ;;  %v1403_v58 = vld [vmem:[%s2279_s0 + $0x20] sm:$0xf] }
  0x14   :  { %v296_v23 = vrot.slane %v295_v16, 4  ;;  %v889_v26 = vshll.u32 %v1517_v8, 16  ;;  %v895_v27 = vshll.u32 %v1518_v13, 16  ;;  %v900_v31 = vshrl.u32 %v1519_v18, 16  ;;  %v1561_v59 = vld [vmem:[%s2279_s0 + $0x24] sm:$0xf0] }
  0x15   :  { %v1116_v28 = vpack.c.b16 %v1101_v19, %v1100_v15  ;;  %v310_v29 = vrot.slane %v309_v21, 4  ;;  %v888_v30 = vrot.slane %v886_v22, 4  ;;  %1430 = vmatmul.msk.bf16.gmra.mxu0 %vm119_vm1, %v1400_v43  ;;  %v903_v35 = vshll.u32 %v1519_v18, 16  ;;  %v1523_v3 = vld [vmem:[%s2279_s0 + $0x30] sm:$0xf] }
  0x16   :  { %v301_v32 = vsel %vm1668_vm3, %v296_v23, %v300_v10  ;;  %v891_v34 = vrot.slane %v889_v26, 5  ;;  %1506 = vmatmul.msk.bf16.gmra.mxu2 %vm119_vm1, %v1476_v20  ;;  %v902_v38 = vrot.slane %v900_v31, 4  ;;  %v909_v39 = vshll.u32 %v1520_v25, 16  ;;  %v1522_v6 = vld [vmem:[%s2279_s0 + $0x2c] sm:$0x1] }
  0x17   :  { %1551 = vmatmul.msk.bf16.vlgmr.msra.gmra.mxu3 %vm119_vm1, %v1116_v28  ;;  %v315_v37 = vsel %vm1668_vm3, %v310_v29, %v314_v24  ;;  %v897_v42 = vrot.slane %v895_v27, 5  ;;  %v905_v43 = vrot.slane %v903_v35, 5  ;;  %v505_v44 = vunpack.c.l.b16 %v301_v32  ;;  %v1479_v12 = vld [vmem:[%s2279_s0 + $0x28] sm:$0xf]  ;;  %v1571_v13 = vld [vmem:[%s2279_s0 + $0x2c] sm:$0xf0] }
  0x18   :  { %v892_v41 = vor.u32 %v891_v34, %v888_v30  ;;  %v506_v45 = vunpack.c.l.b16 %v315_v37  ;;  %v317_v47 = vshrl.u32 %v233_v36, 16  ;;  %v320_v48 = vshll.u32 %v233_v36, 16  ;;  %v1524_v15 = vld [vmem:[%s2279_s0 + $0x34] sm:$0x1]  ;;  %v237_v31 = vld [vmem:[%s2279_s0 + $0x30] sm:$0xf] }
  0x19   :  { %v906_v50 = vor.u32 %v905_v43, %v902_v38  ;;  %v911_v51 = vrot.slane %v909_v39, 5  ;;  %v331_v53 = vshrl.u32 %v235_v40, 16  ;;  %v334_v56 = vshll.u32 %v235_v40, 16  ;;  %v239_v34 = vld [vmem:[%s2279_s0 + $0x38] sm:$0xf] }
  0x1a   :  { %v893_v49 = vrot.slane %v892_v41, 4  ;;  %v319_v54 = vrot.slane %v317_v47, 4  ;;  %v322_v55 = vrot.slane %v320_v48, 5  ;;  %v326_v0 = vshll.u32 %v234_v46, 16  ;;  %v1527_v46 = vld [vmem:[%s2279_s0 + $0x40] sm:$0xf] }
  0x1b   :  { %v907_v61 = vrot.slane %v906_v50, 4  ;;  %v333_v62 = vrot.slane %v331_v53, 4  ;;  %v336_v1 = vrot.slane %v334_v56, 5  ;;  %v340_v2 = vshll.u32 %v236_v52, 16  ;;  %v238_v52 = vld [vmem:[%s2279_s0 + $0x34] sm:$0x1] }
  0x1c   :  { %v898_v60 = vsel %vm1668_vm3, %v893_v49, %v897_v42  ;;  %v323_v63 = vor.u32 %v322_v55, %v319_v54  ;;  %v520_v4 = vpack.c.b16 %v506_v45, %v505_v44  ;;  %v914_v7 = vshrl.u32 %v1521_v57, 16  ;;  %v1525_v45 = vld [vmem:[%s2279_s0 + $0x38] sm:$0xf]  ;;  %v240_v56 = vld [vmem:[%s2279_s0 + $0x3c] sm:$0x1] }
  0x1d   :  { %v912_v5 = vsel %vm1668_vm3, %v907_v61, %v911_v51  ;;  %v917_v8 = vshll.u32 %v1521_v57, 16  ;;  %v1404_v9 = vor.u32 %v1561_v59, %v1403_v58  ;;  %v1102_v10 = vunpack.c.l.b16 %v898_v60 }
  0x1e   :  { %v1103_v11 = vunpack.c.l.b16 %v912_v5  ;;  %v337_v14 = vor.u32 %v336_v1, %v333_v62  ;;  %v916_v16 = vrot.slane %v914_v7, 4  ;;  %v928_v18 = vshrl.u32 %v1523_v3, 16  ;;  %v1407_v62 = vld [vmem:[%s2279_s0 + $0x30] sm:$0xf] }
  0x1f   :  { %v919_v17 = vrot.slane %v917_v8, 5  ;;  %v931_v19 = vshll.u32 %v1523_v3, 16  ;;  %v324_v20 = vrot.slane %v323_v63, 4  ;;  %v328_v21 = vrot.slane %v326_v0, 5  ;;  %v1562_v63 = vld [vmem:[%s2279_s0 + $0x34] sm:$0xf0] }
  0x20   :  { %v342_v22 = vrot.slane %v340_v2, 5  ;;  %v923_v23 = vshll.u32 %v1522_v6, 16  ;;  %v338_v24 = vrot.slane %v337_v14, 4  ;;  %v930_v26 = vrot.slane %v928_v18, 4  ;;  %v1483_v3 = vld [vmem:[%s2279_s0 + $0x38] sm:$0xf] }
  0x21   :  { %v920_v25 = vor.u32 %v919_v17, %v916_v16  ;;  %v933_v27 = vrot.slane %v931_v19, 5  ;;  %v1117_v28 = vpack.c.b16 %v1103_v11, %v1102_v10  ;;  %v1480_v29 = vor.u32 %v1571_v13, %v1479_v12  ;;  %v1526_v12 = vld [vmem:[%s2279_s0 + $0x3c] sm:$0x1]  ;;  %v1528_v13 = vld [vmem:[%s2279_s0 + $0x44] sm:$0x1] }
  0x22   :  { %1444 = vmatmul.msk.bf16.gmra.mxu1 %vm119_vm1, %v520_v4  ;;  %v937_v30 = vshll.u32 %v1524_v15, 16  ;;  %v329_v35 = vsel %vm1668_vm3, %v324_v20, %v328_v21  ;;  %v925_v36 = vrot.slane %v923_v23, 5  ;;  %v343_v37 = vsel %vm1668_vm3, %v338_v24, %v342_v22  ;;  %v1572_v4 = vld [vmem:[%s2279_s0 + $0x3c] sm:$0xf0]  ;;  %v241_v17 = vld [vmem:[%s2279_s0 + $0x48] sm:$0xf] }
  0x23   :  { %v934_v32 = vor.u32 %v933_v27, %v930_v26  ;;  %v921_v38 = vrot.slane %v920_v25, 4  ;;  %v345_v39 = vshrl.u32 %v237_v31, 16  ;;  %v348_v40 = vshll.u32 %v237_v31, 16  ;;  %v243_v22 = vld [vmem:[%s2279_s0 + $0x50] sm:$0xf] }
  0x24   :  { %v939_v42 = vrot.slane %v937_v30, 5  ;;  %v359_v43 = vshrl.u32 %v239_v34, 16  ;;  %v362_v44 = vshll.u32 %v239_v34, 16  ;;  %v507_v47 = vunpack.c.l.b16 %v329_v35 }
  0x25   :  { %1431 = vmatmul.msk.bf16.gmra.mxu0 %vm119_vm1, %v1404_v9  ;;  %v935_v41 = vrot.slane %v934_v32, 4  ;;  %v508_v48 = vunpack.c.l.b16 %v343_v37  ;;  %v926_v49 = vsel %vm1668_vm3, %v921_v38, %v925_v36  ;;  %v347_v50 = vrot.slane %v345_v39, 4  ;;  %v1529_v38 = vld [vmem:[%s2279_s0 + $0x50] sm:$0xf] }
  0x26   :  { %1507 = vmatmul.msk.bf16.gmra.mxu2 %vm119_vm1, %v1480_v29  ;;  %v350_v53 = vrot.slane %v348_v40, 5  ;;  %v361_v54 = vrot.slane %v359_v43, 4  ;;  %v364_v55 = vrot.slane %v362_v44, 5  ;;  %v942_v57 = vshrl.u32 %v1525_v45, 16  ;;  %v242_v44 = vld [vmem:[%s2279_s0 + $0x4c] sm:$0x1] }
  0x27   :  { %1552 = vmatmul.msk.bf16.gmra.mxu3 %vm119_vm1, %v1117_v28  ;;  %v940_v51 = vsel %vm1668_vm3, %v935_v41, %v939_v42  ;;  %v945_v58 = vshll.u32 %v1525_v45, 16  ;;  %v956_v59 = vshrl.u32 %v1527_v46, 16  ;;  %v959_v60 = vshll.u32 %v1527_v46, 16  ;;  %v1531_v41 = vld [vmem:[%s2279_s0 + $0x58] sm:$0xf] }
  0x28   :  { %v521_v61 = vpack.c.b16 %v508_v48, %v507_v47  ;;  %v1104_v0 = vunpack.c.l.b16 %v926_v49  ;;  %v354_v1 = vshll.u32 %v238_v52, 16  ;;  %v1105_v2 = vunpack.c.l.b16 %v940_v51  ;;  %v244_v45 = vld [vmem:[%s2279_s0 + $0x54] sm:$0x1] }
  0x29   :  { %v351_v5 = vor.u32 %v350_v53, %v347_v50  ;;  %v365_v6 = vor.u32 %v364_v55, %v361_v54  ;;  %v368_v7 = vshll.u32 %v240_v56, 16  ;;  %v944_v8 = vrot.slane %v942_v57, 4  ;;  %v1411_v54 = vld [vmem:[%s2279_s0 + $0x48] sm:$0xf]  ;;  %v1563_v55 = vld [vmem:[%s2279_s0 + $0x4c] sm:$0xf0] }
  0x2a   :  { %v947_v9 = vrot.slane %v945_v58, 5  ;;  %v958_v10 = vrot.slane %v956_v59, 4  ;;  %v961_v11 = vrot.slane %v959_v60, 5  ;;  %v1408_v14 = vor.u32 %v1562_v63, %v1407_v62  ;;  %v1487_v60 = vld [vmem:[%s2279_s0 + $0x50] sm:$0xf] }
  0x2b   :  { %v1484_v15 = vor.u32 %v1572_v4, %v1483_v3  ;;  %v356_v16 = vrot.slane %v354_v1, 5  ;;  %v1118_v18 = vpack.c.b16 %v1105_v2, %v1104_v0  ;;  %v352_v19 = vrot.slane %v351_v5, 4  ;;  %v1530_v1 = vld [vmem:[%s2279_s0 + $0x54] sm:$0x1]  ;;  %v245_v4 = vld [vmem:[%s2279_s0 + $0x58] sm:$0xf] }
  0x2c   :  { %v366_v20 = vrot.slane %v365_v6, 4  ;;  %v370_v21 = vrot.slane %v368_v7, 5  ;;  %v948_v23 = vor.u32 %v947_v9, %v944_v8  ;;  %v951_v24 = vshll.u32 %v1526_v12, 16  ;;  %v247_v8 = vld [vmem:[%s2279_s0 + $0x60] sm:$0xf] }
  0x2d   :  { %v962_v25 = vor.u32 %v961_v11, %v958_v10  ;;  %v965_v26 = vshll.u32 %v1528_v13, 16  ;;  %v373_v27 = vshrl.u32 %v241_v17, 16  ;;  %v376_v28 = vshll.u32 %v241_v17, 16  ;;  %v1532_v13 = vld [vmem:[%s2279_s0 + $0x5c] sm:$0x1] }
  0x2e   :  { %v387_v29 = vshrl.u32 %v243_v22, 16  ;;  %v390_v30 = vshll.u32 %v243_v22, 16  ;;  %v357_v31 = vsel %vm1668_vm3, %v352_v19, %v356_v16  ;;  %v371_v32 = vsel %vm1668_vm3, %v366_v20, %v370_v21 }
  0x2f   :  { %v949_v34 = vrot.slane %v948_v23, 4  ;;  %v953_v35 = vrot.slane %v951_v24, 5  ;;  %v963_v36 = vrot.slane %v962_v25, 4  ;;  %v967_v37 = vrot.slane %v965_v26, 5  ;;  %v246_v26 = vld [vmem:[%s2279_s0 + $0x5c] sm:$0x1] }
  0x30   :  { %v375_v39 = vrot.slane %v373_v27, 4  ;;  %v378_v40 = vrot.slane %v376_v28, 5  ;;  %v509_v42 = vunpack.c.l.b16 %v357_v31  ;;  %v510_v43 = vunpack.c.l.b16 %v371_v32  ;;  %v248_v31 = vld [vmem:[%s2279_s0 + $0x64] sm:$0x1] }
  0x31   :  { %v389_v46 = vrot.slane %v387_v29, 4  ;;  %v392_v47 = vrot.slane %v390_v30, 5  ;;  %v970_v48 = vshrl.u32 %v1529_v38, 16  ;;  %v973_v49 = vshll.u32 %v1529_v38, 16 }
  0x32   :  { %1445 = vmatmul.msk.bf16.gmra.mxu1 %vm119_vm1, %v521_v61  ;;  %v954_v50 = vsel %vm1668_vm3, %v949_v34, %v953_v35  ;;  %v968_v51 = vsel %vm1668_vm3, %v963_v36, %v967_v37  ;;  %v984_v52 = vshrl.u32 %v1531_v41, 16  ;;  %v987_v53 = vshll.u32 %v1531_v41, 16  ;;  %v1573_v61 = vld [vmem:[%s2279_s0 + $0x54] sm:$0xf0]  ;;  %v1533_v37 = vld [vmem:[%s2279_s0 + $0x60] sm:$0xf] }
  0x33   :  { %v379_v56 = vor.u32 %v378_v40, %v375_v39  ;;  %v382_v57 = vshll.u32 %v242_v44, 16  ;;  %v396_v58 = vshll.u32 %v244_v45, 16  ;;  %v522_v59 = vpack.c.b16 %v510_v43, %v509_v42  ;;  %v1535_v40 = vld [vmem:[%s2279_s0 + $0x68] sm:$0xf] }
  0x34   :  { %v393_v62 = vor.u32 %v392_v47, %v389_v46  ;;  %v1106_v63 = vunpack.c.l.b16 %v954_v50  ;;  %v1107_v0 = vunpack.c.l.b16 %v968_v51  ;;  %v972_v2 = vrot.slane %v970_v48, 4 }
  0x35   :  { %1432 = vmatmul.msk.bf16.gmra.mxu0 %vm119_vm1, %v1408_v14  ;;  %v975_v3 = vrot.slane %v973_v49, 5  ;;  %v1412_v5 = vor.u32 %v1563_v55, %v1411_v54  ;;  %v986_v6 = vrot.slane %v984_v52, 4  ;;  %v989_v7 = vrot.slane %v987_v53, 5  ;;  %v1415_v52 = vld [vmem:[%s2279_s0 + $0x58] sm:$0xf] }
  0x36   :  { %1508 = vmatmul.msk.bf16.gmra.mxu2 %vm119_vm1, %v1484_v15  ;;  %v1488_v9 = vor.u32 %v1573_v61, %v1487_v60  ;;  %v380_v10 = vrot.slane %v379_v56, 4  ;;  %v384_v11 = vrot.slane %v382_v57, 5  ;;  %v398_v12 = vrot.slane %v396_v58, 5  ;;  %v1564_v53 = vld [vmem:[%s2279_s0 + $0x5c] sm:$0xf0] }
  0x37   :  { %1553 = vmatmul.msk.bf16.gmra.mxu3 %vm119_vm1, %v1118_v18  ;;  %v394_v14 = vrot.slane %v393_v62, 4  ;;  %v979_v15 = vshll.u32 %v1530_v1, 16  ;;  %v401_v16 = vshrl.u32 %v245_v4, 16  ;;  %v404_v17 = vshll.u32 %v245_v4, 16  ;;  %v1491_v55 = vld [vmem:[%s2279_s0 + $0x60] sm:$0xf] }
  0x38   :  { %v1119_v18 = vpack.c.b16 %v1107_v0, %v1106_v63  ;;  %v976_v19 = vor.u32 %v975_v3, %v972_v2  ;;  %v415_v20 = vshrl.u32 %v247_v8, 16  ;;  %v418_v21 = vshll.u32 %v247_v8, 16  ;;  %v1574_v60 = vld [vmem:[%s2279_s0 + $0x64] sm:$0xf0]  ;;  %v1534_v0 = vld [vmem:[%s2279_s0 + $0x64] sm:$0x1] }
  0x39   :  { %v990_v22 = vor.u32 %v989_v7, %v986_v6  ;;  %v993_v23 = vshll.u32 %v1532_v13, 16  ;;  %v385_v24 = vsel %vm1668_vm3, %v380_v10, %v384_v11  ;;  %v399_v25 = vsel %vm1668_vm3, %v394_v14, %v398_v12  ;;  %v1536_v3 = vld [vmem:[%s2279_s0 + $0x6c] sm:$0x1]  ;;  %v249_v4 = vld [vmem:[%s2279_s0 + $0x68] sm:$0xf] }
  0x3a   :  { %v403_v27 = vrot.slane %v401_v16, 4  ;;  %v406_v28 = vrot.slane %v404_v17, 5  ;;  %v977_v29 = vrot.slane %v976_v19, 4  ;;  %v981_v30 = vrot.slane %v979_v15, 5  ;;  %v251_v8 = vld [vmem:[%s2279_s0 + $0x70] sm:$0xf] }
  0x3b   :  { %v417_v32 = vrot.slane %v415_v20, 4  ;;  %v420_v34 = vrot.slane %v418_v21, 5  ;;  %v991_v35 = vrot.slane %v990_v22, 4  ;;  %v995_v36 = vrot.slane %v993_v23, 5  ;;  %v1537_v19 = vld [vmem:[%s2279_s0 + $0x70] sm:$0xf] }
  0x3c   :  { %v511_v38 = vunpack.c.l.b16 %v385_v24  ;;  %v512_v39 = vunpack.c.l.b16 %v399_v25  ;;  %v407_v41 = vor.u32 %v406_v28, %v403_v27  ;;  %v410_v42 = vshll.u32 %v246_v26, 16  ;;  %v1539_v24 = vld [vmem:[%s2279_s0 + $0x78] sm:$0xf]  ;;  %v250_v27 = vld [vmem:[%s2279_s0 + $0x6c] sm:$0x1] }
  0x3d   :  { %v424_v43 = vshll.u32 %v248_v31, 16  ;;  %v982_v44 = vsel %vm1668_vm3, %v977_v29, %v981_v30  ;;  %v421_v45 = vor.u32 %v420_v34, %v417_v32  ;;  %v998_v46 = vshrl.u32 %v1533_v37, 16  ;;  %v252_v30 = vld [vmem:[%s2279_s0 + $0x74] sm:$0x1] }
  0x3e   :  { %v1001_v47 = vshll.u32 %v1533_v37, 16  ;;  %v996_v48 = vsel %vm1668_vm3, %v991_v35, %v995_v36  ;;  %v1012_v49 = vshrl.u32 %v1535_v40, 16  ;;  %v1015_v50 = vshll.u32 %v1535_v40, 16 }
  0x3f   :  { %v523_v51 = vpack.c.b16 %v512_v39, %v511_v38  ;;  %v1108_v54 = vunpack.c.l.b16 %v982_v44  ;;  %v408_v56 = vrot.slane %v407_v41, 4  ;;  %v412_v57 = vrot.slane %v410_v42, 5  ;;  %v1565_v44 = vld [vmem:[%s2279_s0 + $0x6c] sm:$0xf0] }
  0x40   :  { %v426_v58 = vrot.slane %v424_v43, 5  ;;  %v422_v61 = vrot.slane %v421_v45, 4  ;;  %v1000_v62 = vrot.slane %v998_v46, 4  ;;  %v1003_v63 = vrot.slane %v1001_v47, 5  ;;  %v1419_v43 = vld [vmem:[%s2279_s0 + $0x68] sm:$0xf] }
  0x41   :  { %v1014_v1 = vrot.slane %v1012_v49, 4  ;;  %v1017_v2 = vrot.slane %v1015_v50, 5  ;;  %v1492_v6 = vor.u32 %v1574_v60, %v1491_v55  ;;  %v413_v7 = vsel %vm1668_vm3, %v408_v56, %v412_v57  ;;  %v1495_v57 = vld [vmem:[%s2279_s0 + $0x70] sm:$0xf] }
  0x42   :  { %1446 = vmatmul.msk.bf16.gmra.mxu1 %vm119_vm1, %v522_v59  ;;  %v1109_v59 = vunpack.c.l.b16 %v996_v48  ;;  %v427_v10 = vsel %vm1668_vm3, %v422_v61, %v426_v58  ;;  %v1004_v11 = vor.u32 %v1003_v63, %v1000_v62  ;;  %v1007_v12 = vshll.u32 %v1534_v0, 16  ;;  %v1575_v58 = vld [vmem:[%s2279_s0 + $0x74] sm:$0xf0] }
  0x43   :  { %v1018_v13 = vor.u32 %v1017_v2, %v1014_v1  ;;  %v1021_v14 = vshll.u32 %v1536_v3, 16  ;;  %v429_v15 = vshrl.u32 %v249_v4, 16  ;;  %v432_v16 = vshll.u32 %v249_v4, 16 }
  0x44   :  { %v443_v17 = vshrl.u32 %v251_v8, 16  ;;  %v513_v20 = vunpack.c.l.b16 %v413_v7  ;;  %v514_v21 = vunpack.c.l.b16 %v427_v10  ;;  %v1005_v22 = vrot.slane %v1004_v11, 4 }
  0x45   :  { %1433 = vmatmul.msk.bf16.gmra.mxu0 %vm119_vm1, %v1412_v5  ;;  %v1416_v5 = vor.u32 %v1564_v53, %v1415_v52  ;;  %v1009_v23 = vrot.slane %v1007_v12, 5  ;;  %v1019_v25 = vrot.slane %v1018_v13, 4  ;;  %v1023_v26 = vrot.slane %v1021_v14, 5  ;;  %v1538_v53 = vld [vmem:[%s2279_s0 + $0x74] sm:$0x1] }
  0x46   :  { %1509 = vmatmul.msk.bf16.gmra.mxu2 %vm119_vm1, %v1488_v9  ;;  %v1120_v9 = vpack.c.b16 %v1109_v59, %v1108_v54  ;;  %v431_v28 = vrot.slane %v429_v15, 4  ;;  %v434_v29 = vrot.slane %v432_v16, 5  ;;  %v445_v31 = vrot.slane %v443_v17, 4  ;;  %v1540_v54 = vld [vmem:[%s2279_s0 + $0x7c] sm:$0x1] }
  0x47   :  { %1554 = vmatmul.msk.bf16.gmra.mxu3 %vm119_vm1, %v1119_v18  ;;  %v446_v18 = vshll.u32 %v251_v8, 16  ;;  %v1026_v34 = vshrl.u32 %v1537_v19, 16  ;;  %v1029_v35 = vshll.u32 %v1537_v19, 16  ;;  %v1040_v36 = vshrl.u32 %v1539_v24, 16  ;;  %v1541_v17 = vld [vmem:[%s2279_s0 + $0x80] sm:$0xf] }
  0x48   :  { %v1043_v37 = vshll.u32 %v1539_v24, 16  ;;  %v524_v38 = vpack.c.b16 %v514_v21, %v513_v20  ;;  %v1010_v39 = vsel %vm1668_vm3, %v1005_v22, %v1009_v23  ;;  %v1024_v40 = vsel %vm1668_vm3, %v1019_v25, %v1023_v26  ;;  %v254_v23 = vld [vmem:[%s2279_s0 + $0x7c] sm:$0x1]  ;;  %v256_v24 = vld [vmem:[%s2279_s0 + $0x84] sm:$0x1] }
  0x49   :  { %v448_v32 = vrot.slane %v446_v18, 5  ;;  %v438_v41 = vshll.u32 %v250_v27, 16  ;;  %v452_v42 = vshll.u32 %v252_v30, 16  ;;  %v435_v45 = vor.u32 %v434_v29, %v431_v28  ;;  %v1543_v18 = vld [vmem:[%s2279_s0 + $0x88] sm:$0xf] }
  0x4a   :  { %v1028_v47 = vrot.slane %v1026_v34, 4  ;;  %v1031_v48 = vrot.slane %v1029_v35, 5  ;;  %v1042_v49 = vrot.slane %v1040_v36, 4  ;;  %v1045_v50 = vrot.slane %v1043_v37, 5  ;;  %v1423_v35 = vld [vmem:[%s2279_s0 + $0x78] sm:$0xf] }
  0x4b   :  { %v449_v46 = vor.u32 %v448_v32, %v445_v31  ;;  %v1111_v52 = vunpack.c.l.b16 %v1024_v40  ;;  %v1580_v55 = vmov 0.0   ;;  %v1420_v56 = vor.u32 %v1565_v44, %v1419_v43  ;;  %v1566_v36 = vld [vmem:[%s2279_s0 + $0x7c] sm:$0xf0]  ;;  %v1576_v40 = vld [vmem:[%s2279_s0 + $0x84] sm:$0xf0] }
  0x4c   :  { %23 = vst.msk [vmem:[#allocation2] sm:$0xff] %vm22_vm4, %v1580_v55  ;;  %v436_v59 = vrot.slane %v435_v45, 4  ;;  %v440_v60 = vrot.slane %v438_v41, 5  ;;  %v454_v62 = vrot.slane %v452_v42, 5  ;;  %v1032_v63 = vor.u32 %v1031_v48, %v1028_v47 }
  0x4d   :  { %24 = vst.msk [vmem:[#allocation2 + $0x8] sm:$0xff] %vm22_vm4, %v1580_v55  ;;  %v450_v61 = vrot.slane %v449_v46, 4  ;;  %v1035_v0 = vshll.u32 %v1538_v53, 16  ;;  %v1046_v1 = vor.u32 %v1045_v50, %v1042_v49  ;;  %v1049_v2 = vshll.u32 %v1540_v54, 16  ;;  %v1542_v49 = vld [vmem:[%s2279_s0 + $0x84] sm:$0x1] }
  0x4e   :  { %25 = vst.msk [vmem:[#allocation2 + $0x10] sm:$0xff] %vm22_vm4, %v1580_v55  ;;  %v1496_v4 = vor.u32 %v1575_v58, %v1495_v57  ;;  %v441_v7 = vsel %vm1668_vm3, %v436_v59, %v440_v60  ;;  %v1054_v29 = vshrl.u32 %v1541_v17, 16  ;;  %v1057_v30 = vshll.u32 %v1541_v17, 16  ;;  %v1544_v50 = vld [vmem:[%s2279_s0 + $0x8c] sm:$0x1] }
  0x4f   :  { %26 = vst.msk [vmem:[#allocation2 + $0x18] sm:$0xff] %vm22_vm4, %v1580_v55  ;;  %v455_v8 = vsel %vm1668_vm3, %v450_v61, %v454_v62  ;;  %v1037_v10 = vrot.slane %v1035_v0, 5  ;;  %v1047_v11 = vrot.slane %v1046_v1, 4  ;;  %v1051_v12 = vrot.slane %v1049_v2, 5 }
  0x50   :  { %27 = vst.msk [vmem:[#allocation2 + $0x20] sm:$0xff] %vm22_vm4, %v1580_v55  ;;  %v515_v19 = vunpack.c.l.b16 %v441_v7  ;;  %v516_v20 = vunpack.c.l.b16 %v455_v8  ;;  %v1068_v31 = vshrl.u32 %v1543_v18, 16  ;;  %v1071_v32 = vshll.u32 %v1543_v18, 16 }
  0x51   :  { %28 = vst.msk [vmem:[#allocation2 + $0x28] sm:$0xff] %vm22_vm4, %v1580_v55  ;;  %v1052_v22 = vsel %vm1668_vm3, %v1047_v11, %v1051_v12  ;;  %v466_v42 = vshll.u32 %v254_v23, 16  ;;  %v480_v44 = vshll.u32 %v256_v24, 16  ;;  %v1056_v45 = vrot.slane %v1054_v29, 4 }
  0x52   :  { %1447 = vmatmul.msk.bf16.gmra.mxu1 %vm119_vm1, %v523_v51  ;;  %v1110_v51 = vunpack.c.l.b16 %v1010_v39  ;;  %29 = vst.msk [vmem:[#allocation2 + $0x30] sm:$0xff] %vm22_vm4, %v1580_v55  ;;  %v525_v34 = vpack.c.b16 %v516_v20, %v515_v19  ;;  %v1499_v39 = vld [vmem:[%s2279_s0 + $0x80] sm:$0xf]  ;;  %v1059_v46 = vrot.slane %v1057_v30, 5  ;;  %v1070_v47 = vrot.slane %v1068_v31, 4 }
  0x53   :  { %30 = vst.msk [vmem:[#allocation2 + $0x38] sm:$0xff] %vm22_vm4, %v1580_v55  ;;  %v1073_v48 = vrot.slane %v1071_v32, 5  ;;  %v1500_v53 = vor.u32 %v1576_v40, %v1499_v39  ;;  %v482_v58 = vrot.slane %v480_v44, 5  ;;  %v1063_v60 = vshll.u32 %v1542_v49, 16  ;;  %v55_v12 = vld [vmem:[#allocation2] sm:$0xff] }
  0x54   :  { %v1121_v3 = vpack.c.b16 %v1111_v52, %v1110_v51  ;;  %31 = vst.msk [vmem:[#allocation2 + $0x40] sm:$0xff] %vm22_vm4, %v1580_v55  ;;  %v1424_v51 = vor.u32 %v1566_v36, %v1423_v35  ;;  %v1060_v59 = vor.u32 %v1059_v46, %v1056_v45  ;;  %v1077_v62 = vshll.u32 %v1544_v50, 16 }
  0x55   :  { %1434 = vmatmul.msk.bf16.gmra.mxu0 %vm119_vm1, %v1416_v5  ;;  %v253_v5 = vld [vmem:[%s2279_s0 + $0x78] sm:$0xf]  ;;  %32 = vst.msk [vmem:[#allocation2 + $0x48] sm:$0xff] %vm22_vm4, %v1580_v55  ;;  %v1074_v61 = vor.u32 %v1073_v48, %v1070_v47  ;;  %v1065_v2 = vrot.slane %v1063_v60, 5 }
  0x56   :  { %1510 = vmatmul.msk.bf16.gmra.mxu2 %vm119_vm1, %v1492_v6  ;;  %v255_v6 = vld [vmem:[%s2279_s0 + $0x80] sm:$0xf]  ;;  %v457_v13 = vshrl.u32 %v253_v5, 16  ;;  %v460_v14 = vshll.u32 %v253_v5, 16  ;;  %33 = vst.msk [vmem:[#allocation2 + $0x50] sm:$0xff] %vm22_vm4, %v1580_v55  ;;  %v1061_v1 = vrot.slane %v1060_v59, 4 }
  0x57   :  { %1555 = vmatmul.msk.bf16.gmra.mxu3 %vm119_vm1, %v1120_v9  ;;  %v1033_v9 = vrot.slane %v1032_v63, 4  ;;  %v471_v15 = vshrl.u32 %v255_v6, 16  ;;  %v474_v16 = vshll.u32 %v255_v6, 16  ;;  %34 = vst.msk [vmem:[#allocation2 + $0x58] sm:$0xff] %vm22_vm4, %v1580_v55  ;;  %v58_v30 = vld [vmem:[#allocation2 + $0x18] sm:$0xff] }
  0x58   :  { %v459_v25 = vrot.slane %v457_v13, 4  ;;  %v462_v26 = vrot.slane %v460_v14, 5  ;;  %35 = vst.msk [vmem:[#allocation2 + $0x60] sm:$0xff] %vm22_vm4, %v1580_v55  ;;  %v1066_v7 = vsel %vm1668_vm3, %v1061_v1, %v1065_v2 }
  0x59   :  { %v1038_v21 = vsel %vm1668_vm3, %v1033_v9, %v1037_v10  ;;  %v473_v27 = vrot.slane %v471_v15, 4  ;;  %v476_v28 = vrot.slane %v474_v16, 5  ;;  %36 = vst.msk [vmem:[#allocation2 + $0x68] sm:$0xff] %vm22_vm4, %v1580_v55  ;;  %v1114_v10 = vunpack.c.l.b16 %v1066_v7  ;;  %v56_v16 = vld [vmem:[#allocation2 + $0x8] sm:$0xff] }
  0x5a   :  { %37 = vst.msk [vmem:[#allocation2 + $0x70] sm:$0xff] %vm22_vm4, %v1580_v55  ;;  %v1112_v37 = vunpack.c.l.b16 %v1038_v21  ;;  %v463_v41 = vor.u32 %v462_v26, %v459_v25 }
  0x5b   :  { %38 = vst.msk [vmem:[#allocation2 + $0x78] sm:$0xff] %vm22_vm4, %v1580_v55  ;;  %v477_v43 = vor.u32 %v476_v28, %v473_v27 }
  0x5c   :  { %v464_v54 = vrot.slane %v463_v41, 4  ;;  %v59_v41 = vld [vmem:[#allocation2 + $0x20] sm:$0xff]  ;;  %20 = vst.msk [vmem:[%s2281_s3] sm:$0x1] %vm19_vm6, %v1580_v55 }
  0x5d   :  { %v478_v57 = vrot.slane %v477_v43, 4  ;;  %21 = vst.msk [vmem:[%s2282_s4] sm:$0x1] %vm19_vm6, %v1580_v55 }
  0x5f   :  { %v483_v0 = vsel %vm1668_vm3, %v478_v57, %v482_v58 }
  0x60   :  { %v518_v6 = vunpack.c.l.b16 %v483_v0 }
  0x62   :  { %1448 = vmatmul.msk.bf16.gmra.mxu1 %vm119_vm1, %v524_v38  ;;  %v1113_v38 = vunpack.c.l.b16 %v1052_v22  ;;  %v57_v22 = vld [vmem:[#allocation2 + $0x10] sm:$0xff] }
  0x64   :  { %v1122_v52 = vpack.c.b16 %v1113_v38, %v1112_v37 }
  0x65   :  { %1435 = vmatmul.msk.bf16.gmra.mxu0 %vm119_vm1, %v1420_v56  ;;  %v468_v56 = vrot.slane %v466_v42, 5 }
  0x66   :  { %1511 = vmatmul.msk.bf16.gmra.mxu2 %vm119_vm1, %v1496_v4  ;;  %v1079_v4 = vrot.slane %v1077_v62, 5 }
  0x67   :  { %1556 = vmatmul.msk.bf16.gmra.mxu3 %vm119_vm1, %v1121_v3  ;;  %v469_v63 = vsel %vm1668_vm3, %v464_v54, %v468_v56  ;;  %v1075_v3 = vrot.slane %v1074_v61, 4 }
  0x68   :  { %v517_v5 = vunpack.c.l.b16 %v469_v63 }
  0x69   :  { %v1080_v8 = vsel %vm1668_vm3, %v1075_v3, %v1079_v4  ;;  %v61_v4 = vld [vmem:[#allocation2 + $0x30] sm:$0xff] }
  0x6a   :  { %v526_v9 = vpack.c.b16 %v518_v6, %v517_v5  ;;  %v1115_v11 = vunpack.c.l.b16 %v1080_v8 }
  0x6c   :  { %v1123_v14 = vpack.c.b16 %v1115_v11, %v1114_v10 }
  0x72   :  { %1449 = vmatmul.msk.bf16.gmra.mxu1 %vm119_vm1, %v525_v34 }
  0x75   :  { %1436 = vmatmul.msk.bf16.gmra.mxu0 %vm119_vm1, %v1424_v51 }
  0x76   :  { %1512 = vmatmul.msk.bf16.gmra.mxu2 %vm119_vm1, %v1500_v53  ;;  %v60_v53 = vld [vmem:[#allocation2 + $0x28] sm:$0xff] }
  0x77   :  { %1557 = vmatmul.msk.bf16.gmra.mxu3 %vm119_vm1, %v1122_v52 }
  0x82   :  { %1450 = vmatmul.msk.bf16.gmra.mxu1 %vm119_vm1, %v526_v9  ;;  %v153_v13 = vpop.f32.mrf.mxu0 }
  0x83   :  { %v193_v15 = vadd.f32 %v153_v13, %v55_v12 }
  0x85   :  { %209 = vst.msk [vmem:[#allocation2] sm:$0xff] %vm22_vm4, %v193_v15 }
  0x87   :  { %1558 = vmatmul.msk.bf16.gmra.mxu3 %vm119_vm1, %v1123_v14 }
  0x89   :  { %v753_v17 = vpop.f32.mrf.mxu2 }
  0x8a   :  { %v155_v18 = vpop.f32.mrf.mxu0 }
  0x8b   :  { %v194_v19 = vadd.f32 %v155_v18, %v56_v16 }
  0x8c   :  { %v484_v20 = vld [vmem:[#allocation2] sm:$0xff] }
  0x8d   :  { %210 = vst.msk [vmem:[#allocation2 + $0x8] sm:$0xff] %vm22_vm4, %v194_v19 }
  0x8f   :  { %v566_v33 = vpop.f32.mrf.mxu1 }
  0x90   :  { %v606_v21 = vadd.f32 %v566_v33, %v484_v20 }
  0x91   :  { %v755_v23 = vpop.f32.mrf.mxu2 }
  0x92   :  { %622 = vst.msk [vmem:[#allocation2] sm:$0xff] %vm22_vm4, %v606_v21  ;;  %v158_v24 = vpop.f32.mrf.mxu0 }
  0x93   :  { %v195_v25 = vadd.f32 %v158_v24, %v57_v22 }
  0x94   :  { %v485_v26 = vld [vmem:[#allocation2 + $0x8] sm:$0xff] }
  0x95   :  { %211 = vst.msk [vmem:[#allocation2 + $0x10] sm:$0xff] %vm22_vm4, %v195_v25  ;;  %v62_v25 = vld [vmem:[#allocation2 + $0x38] sm:$0xff] }
  0x97   :  { %v568_v27 = vpop.f32.mrf.mxu1 }
  0x98   :  { %v607_v28 = vadd.f32 %v568_v27, %v485_v26 }
  0x99   :  { %v655_v29 = vld [vmem:[#allocation2] sm:$0xff]  ;;  %v758_v34 = vpop.f32.mrf.mxu2 }
  0x9a   :  { %v793_v31 = vadd.f32 %v753_v17, %v655_v29  ;;  %623 = vst.msk [vmem:[#allocation2 + $0x8] sm:$0xff] %vm22_vm4, %v607_v28  ;;  %v1163_v32 = vpop.f32.mrf.mxu3  ;;  %v160_v35 = vpop.f32.mrf.mxu0 }
  0x9b   :  { %v196_v36 = vadd.f32 %v160_v35, %v58_v30 }
  0x9c   :  { %809 = vst.msk [vmem:[#allocation2] sm:$0xff] %vm22_vm4, %v793_v31  ;;  %v486_v37 = vld [vmem:[#allocation2 + $0x10] sm:$0xff] }
  0x9d   :  { %212 = vst.msk [vmem:[#allocation2 + $0x18] sm:$0xff] %vm22_vm4, %v196_v36 }
  0x9f   :  { %v571_v38 = vpop.f32.mrf.mxu1 }
  0xa0   :  { %v608_v39 = vadd.f32 %v571_v38, %v486_v37 }
  0xa1   :  { %v656_v40 = vld [vmem:[#allocation2 + $0x8] sm:$0xff]  ;;  %v760_v44 = vpop.f32.mrf.mxu2 }
  0xa2   :  { %v794_v42 = vadd.f32 %v755_v23, %v656_v40  ;;  %624 = vst.msk [vmem:[#allocation2 + $0x10] sm:$0xff] %vm22_vm4, %v608_v39  ;;  %v1165_v43 = vpop.f32.mrf.mxu3  ;;  %v163_v46 = vpop.f32.mrf.mxu0 }
  0xa3   :  { %v1081_v45 = vld [vmem:[#allocation2] sm:$0xff]  ;;  %v197_v48 = vadd.f32 %v163_v46, %v59_v41 }
  0xa4   :  { %810 = vst.msk [vmem:[#allocation2 + $0x8] sm:$0xff] %vm22_vm4, %v794_v42  ;;  %v1203_v47 = vadd.f32 %v1163_v32, %v1081_v45  ;;  %v487_v49 = vld [vmem:[#allocation2 + $0x18] sm:$0xff]  ;;  %v63_v45 = vld [vmem:[#allocation2 + $0x40] sm:$0xff] }
  0xa5   :  { %213 = vst.msk [vmem:[#allocation2 + $0x20] sm:$0xff] %vm22_vm4, %v197_v48 }
  0xa6   :  { %1219 = vst.msk [vmem:[#allocation2] sm:$0xff] %vm22_vm4, %v1203_v47 }
  0xa7   :  { %v573_v50 = vpop.f32.mrf.mxu1 }
  0xa8   :  { %v609_v51 = vadd.f32 %v573_v50, %v487_v49 }
  0xa9   :  { %v657_v52 = vld [vmem:[#allocation2 + $0x10] sm:$0xff]  ;;  %v763_v57 = vpop.f32.mrf.mxu2 }
  0xaa   :  { %v795_v54 = vadd.f32 %v758_v34, %v657_v52  ;;  %625 = vst.msk [vmem:[#allocation2 + $0x18] sm:$0xff] %vm22_vm4, %v609_v51  ;;  %v1168_v56 = vpop.f32.mrf.mxu3  ;;  %v165_v59 = vpop.f32.mrf.mxu0 }
  0xab   :  { %v1082_v58 = vld [vmem:[#allocation2 + $0x8] sm:$0xff]  ;;  %v198_v61 = vadd.f32 %v165_v59, %v60_v53 }
  0xac   :  { %811 = vst.msk [vmem:[#allocation2 + $0x10] sm:$0xff] %vm22_vm4, %v795_v54  ;;  %v1204_v60 = vadd.f32 %v1165_v43, %v1082_v58  ;;  %v488_v0 = vld [vmem:[#allocation2 + $0x20] sm:$0xff] }
  0xad   :  { %v1235_v62 = vld [vmem:[#allocation2] sm:$0xff]  ;;  %214 = vst.msk [vmem:[#allocation2 + $0x28] sm:$0xff] %vm22_vm4, %v198_v61 }
  0xae   :  { %v1251_v63 = vpack.c.bf16 %v1235_v62, %v1235_v62  ;;  %1220 = vst.msk [vmem:[#allocation2 + $0x8] sm:$0xff] %vm22_vm4, %v1204_v60  ;;  %v1326_v10 = vmul.f32 %v1235_v62, %v1235_v62  ;;  %v1285_v14 = vsel %vm22_vm4, %v1235_v62, 0.0 }
  0xaf   :  { %v576_v1 = vpop.f32.mrf.mxu1 }
  0xb0   :  { %1268 = vst.msk [vmem:[%s2280_s2] sm:$0xf] %vm1267_vm5, %v1251_v63  ;;  %v610_v2 = vadd.f32 %v576_v1, %v488_v0  ;;  %v1342_v33 = vsel %vm22_vm4, %v1326_v10, 0.0  ;;  %v64_v1 = vld [vmem:[#allocation2 + $0x48] sm:$0xff] }
  0xb1   :  { %v658_v3 = vld [vmem:[#allocation2 + $0x18] sm:$0xff]  ;;  %v765_v7 = vpop.f32.mrf.mxu2 }
  0xb2   :  { %v796_v5 = vadd.f32 %v760_v44, %v658_v3  ;;  %626 = vst.msk [vmem:[#allocation2 + $0x20] sm:$0xff] %vm22_vm4, %v610_v2  ;;  %v1170_v6 = vpop.f32.mrf.mxu3  ;;  %v168_v9 = vpop.f32.mrf.mxu0 }
  0xb3   :  { %v1083_v8 = vld [vmem:[#allocation2 + $0x10] sm:$0xff]  ;;  %v199_v12 = vadd.f32 %v168_v9, %v61_v4 }
  0xb4   :  { %812 = vst.msk [vmem:[#allocation2 + $0x18] sm:$0xff] %vm22_vm4, %v796_v5  ;;  %v1205_v11 = vadd.f32 %v1168_v56, %v1083_v8  ;;  %v489_v18 = vld [vmem:[#allocation2 + $0x28] sm:$0xff] }
  0xb5   :  { %v1236_v13 = vld [vmem:[#allocation2 + $0x8] sm:$0xff]  ;;  %215 = vst.msk [vmem:[#allocation2 + $0x30] sm:$0xff] %vm22_vm4, %v199_v12 }
  0xb6   :  { %v1252_v15 = vpack.c.bf16 %v1236_v13, %v1236_v13  ;;  %v1286_v16 = vsel %vm22_vm4, %v1236_v13, 0.0  ;;  %v1327_v17 = vmul.f32 %v1236_v13, %v1236_v13  ;;  %1221 = vst.msk [vmem:[#allocation2 + $0x10] sm:$0xff] %vm22_vm4, %v1205_v11 }
  0xb7   :  { %v1287_v19 = vadd.f32 %v1286_v16, %v1285_v14  ;;  %v578_v20 = vpop.f32.mrf.mxu1 }
  0xb8   :  { %1269 = vst.msk [vmem:[%s2280_s2 + $0x4] sm:$0xf] %vm1267_vm5, %v1252_v15  ;;  %v1343_v21 = vsel %vm22_vm4, %v1327_v17, 0.0  ;;  %v611_v22 = vadd.f32 %v578_v20, %v489_v18  ;;  %v65_v20 = vld [vmem:[#allocation2 + $0x50] sm:$0xff] }
  0xb9   :  { %v1344_v23 = vadd.f32 %v1343_v21, %v1342_v33  ;;  %v659_v24 = vld [vmem:[#allocation2 + $0x20] sm:$0xff]  ;;  %v768_v28 = vpop.f32.mrf.mxu2 }
  0xba   :  { %v797_v26 = vadd.f32 %v763_v57, %v659_v24  ;;  %627 = vst.msk [vmem:[#allocation2 + $0x28] sm:$0xff] %vm22_vm4, %v611_v22  ;;  %v1173_v27 = vpop.f32.mrf.mxu3  ;;  %v170_v30 = vpop.f32.mrf.mxu0 }
  0xbb   :  { %v1084_v29 = vld [vmem:[#allocation2 + $0x18] sm:$0xff]  ;;  %v200_v32 = vadd.f32 %v170_v30, %v62_v25 }
  0xbc   :  { %813 = vst.msk [vmem:[#allocation2 + $0x20] sm:$0xff] %vm22_vm4, %v797_v26  ;;  %v1206_v31 = vadd.f32 %v1170_v6, %v1084_v29  ;;  %v490_v38 = vld [vmem:[#allocation2 + $0x30] sm:$0xff] }
  0xbd   :  { %v1237_v34 = vld [vmem:[#allocation2 + $0x10] sm:$0xff]  ;;  %216 = vst.msk [vmem:[#allocation2 + $0x38] sm:$0xff] %vm22_vm4, %v200_v32 }
  0xbe   :  { %v1253_v35 = vpack.c.bf16 %v1237_v34, %v1237_v34  ;;  %v1288_v36 = vsel %vm22_vm4, %v1237_v34, 0.0  ;;  %v1328_v37 = vmul.f32 %v1237_v34, %v1237_v34  ;;  %1222 = vst.msk [vmem:[#allocation2 + $0x18] sm:$0xff] %vm22_vm4, %v1206_v31  ;;  %v66_v34 = vld [vmem:[#allocation2 + $0x58] sm:$0xff] }
  0xbf   :  { %v1289_v39 = vadd.f32 %v1288_v36, %v1287_v19  ;;  %v581_v40 = vpop.f32.mrf.mxu1 }
  0xc0   :  { %1270 = vst.msk [vmem:[%s2280_s2 + $0x8] sm:$0xf] %vm1267_vm5, %v1253_v35  ;;  %v1345_v41 = vsel %vm22_vm4, %v1328_v37, 0.0  ;;  %v612_v42 = vadd.f32 %v581_v40, %v490_v38 }
  0xc1   :  { %v1346_v43 = vadd.f32 %v1345_v41, %v1344_v23  ;;  %v660_v44 = vld [vmem:[#allocation2 + $0x28] sm:$0xff]  ;;  %v770_v48 = vpop.f32.mrf.mxu2 }
  0xc2   :  { %v798_v46 = vadd.f32 %v765_v7, %v660_v44  ;;  %628 = vst.msk [vmem:[#allocation2 + $0x30] sm:$0xff] %vm22_vm4, %v612_v42  ;;  %v1175_v47 = vpop.f32.mrf.mxu3  ;;  %v173_v50 = vpop.f32.mrf.mxu0 }
  0xc3   :  { %v1085_v49 = vld [vmem:[#allocation2 + $0x20] sm:$0xff]  ;;  %v201_v52 = vadd.f32 %v173_v50, %v63_v45 }
  0xc4   :  { %814 = vst.msk [vmem:[#allocation2 + $0x28] sm:$0xff] %vm22_vm4, %v798_v46  ;;  %v1207_v51 = vadd.f32 %v1173_v27, %v1085_v49  ;;  %v491_v58 = vld [vmem:[#allocation2 + $0x38] sm:$0xff] }
  0xc5   :  { %v1238_v53 = vld [vmem:[#allocation2 + $0x18] sm:$0xff]  ;;  %217 = vst.msk [vmem:[#allocation2 + $0x40] sm:$0xff] %vm22_vm4, %v201_v52 }
  0xc6   :  { %v1254_v54 = vpack.c.bf16 %v1238_v53, %v1238_v53  ;;  %v1290_v56 = vsel %vm22_vm4, %v1238_v53, 0.0  ;;  %v1329_v57 = vmul.f32 %v1238_v53, %v1238_v53  ;;  %1223 = vst.msk [vmem:[#allocation2 + $0x20] sm:$0xff] %vm22_vm4, %v1207_v51 }
  0xc7   :  { %v1291_v59 = vadd.f32 %v1290_v56, %v1289_v39  ;;  %v583_v60 = vpop.f32.mrf.mxu1 }
  0xc8   :  { %1271 = vst.msk [vmem:[%s2280_s2 + $0xc] sm:$0xf] %vm1267_vm5, %v1254_v54  ;;  %v1347_v61 = vsel %vm22_vm4, %v1329_v57, 0.0  ;;  %v613_v62 = vadd.f32 %v583_v60, %v491_v58 }
  0xc9   :  { %v1348_v63 = vadd.f32 %v1347_v61, %v1346_v43  ;;  %v661_v0 = vld [vmem:[#allocation2 + $0x30] sm:$0xff]  ;;  %v773_v4 = vpop.f32.mrf.mxu2 }
  0xca   :  { %v799_v2 = vadd.f32 %v768_v28, %v661_v0  ;;  %629 = vst.msk [vmem:[#allocation2 + $0x38] sm:$0xff] %vm22_vm4, %v613_v62  ;;  %v1178_v3 = vpop.f32.mrf.mxu3  ;;  %v175_v6 = vpop.f32.mrf.mxu0 }
  0xcb   :  { %v1086_v5 = vld [vmem:[#allocation2 + $0x28] sm:$0xff]  ;;  %v202_v8 = vadd.f32 %v175_v6, %v64_v1 }
  0xcc   :  { %815 = vst.msk [vmem:[#allocation2 + $0x30] sm:$0xff] %vm22_vm4, %v799_v2  ;;  %v1208_v7 = vadd.f32 %v1175_v47, %v1086_v5  ;;  %v492_v13 = vld [vmem:[#allocation2 + $0x40] sm:$0xff] }
  0xcd   :  { %v1239_v9 = vld [vmem:[#allocation2 + $0x20] sm:$0xff]  ;;  %218 = vst.msk [vmem:[#allocation2 + $0x48] sm:$0xff] %vm22_vm4, %v202_v8 }
  0xce   :  { %v1255_v10 = vpack.c.bf16 %v1239_v9, %v1239_v9  ;;  %v1292_v11 = vsel %vm22_vm4, %v1239_v9, 0.0  ;;  %v1330_v12 = vmul.f32 %v1239_v9, %v1239_v9  ;;  %1224 = vst.msk [vmem:[#allocation2 + $0x28] sm:$0xff] %vm22_vm4, %v1208_v7 }
  0xcf   :  { %v2101_v14 = vadd.f32 %v1292_v11, %v1291_v59  ;;  %v586_v15 = vpop.f32.mrf.mxu1 }
  0xd0   :  { %1272 = vst.msk [vmem:[%s2280_s2 + $0x10] sm:$0xf] %vm1267_vm5, %v1255_v10  ;;  %v1349_v16 = vsel %vm22_vm4, %v1330_v12, 0.0  ;;  %v614_v17 = vadd.f32 %v586_v15, %v492_v13  ;;  %v69_v12 = vld [vmem:[#allocation2 + $0x70] sm:$0xff] }
  0xd1   :  { %v2109_v18 = vadd.f32 %v1349_v16, %v1348_v63  ;;  %v662_v19 = vld [vmem:[#allocation2 + $0x38] sm:$0xff]  ;;  %v775_v26 = vpop.f32.mrf.mxu2  ;;  %v68_v63 = vld [vmem:[#allocation2 + $0x68] sm:$0xff] }
  0xd2   :  { %v800_v33 = vadd.f32 %v770_v48, %v662_v19  ;;  %630 = vst.msk [vmem:[#allocation2 + $0x40] sm:$0xff] %vm22_vm4, %v614_v17  ;;  %v1180_v21 = vpop.f32.mrf.mxu3  ;;  %v178_v23 = vpop.f32.mrf.mxu0  ;;  %v67_v48 = vld [vmem:[#allocation2 + $0x60] sm:$0xff] }
  0xd3   :  { %v1087_v22 = vld [vmem:[#allocation2 + $0x30] sm:$0xff]  ;;  %v203_v25 = vadd.f32 %v178_v23, %v65_v20 }
  0xd4   :  { %816 = vst.msk [vmem:[#allocation2 + $0x38] sm:$0xff] %vm22_vm4, %v800_v33  ;;  %v1209_v24 = vadd.f32 %v1178_v3, %v1087_v22  ;;  %v493_v29 = vld [vmem:[#allocation2 + $0x48] sm:$0xff] }
  0xd5   :  { %v2113_v27 = vld [vmem:[#allocation2 + $0x28] sm:$0xff]  ;;  %219 = vst.msk [vmem:[#allocation2 + $0x50] sm:$0xff] %vm22_vm4, %v203_v25 }
  0xd6   :  { %v1256_v28 = vpack.c.bf16 %v2113_v27, %v2113_v27  ;;  %1225 = vst.msk [vmem:[#allocation2 + $0x30] sm:$0xff] %vm22_vm4, %v1209_v24 }
  0xd7   :  { %v588_v30 = vpop.f32.mrf.mxu1 }
  0xd8   :  { %1273 = vst.msk [vmem:[%s2280_s2 + $0x14] sm:$0xf] %vm1267_vm5, %v1256_v28  ;;  %v615_v31 = vadd.f32 %v588_v30, %v493_v29  ;;  %v70_v28 = vld [vmem:[#allocation2 + $0x78] sm:$0xff] }
  0xd9   :  { %v663_v32 = vld [vmem:[#allocation2 + $0x40] sm:$0xff]  ;;  %v778_v44 = vpop.f32.mrf.mxu2 }
  0xda   :  { %v801_v35 = vadd.f32 %v773_v4, %v663_v32  ;;  %631 = vst.msk [vmem:[#allocation2 + $0x48] sm:$0xff] %vm22_vm4, %v615_v31  ;;  %v1183_v36 = vpop.f32.mrf.mxu3  ;;  %v180_v38 = vpop.f32.mrf.mxu0 }
  0xdb   :  { %v1088_v37 = vld [vmem:[#allocation2 + $0x38] sm:$0xff]  ;;  %v204_v40 = vadd.f32 %v180_v38, %v66_v34 }
  0xdc   :  { %817 = vst.msk [vmem:[#allocation2 + $0x40] sm:$0xff] %vm22_vm4, %v801_v35  ;;  %v1210_v39 = vadd.f32 %v1180_v21, %v1088_v37  ;;  %v494_v43 = vld [vmem:[#allocation2 + $0x50] sm:$0xff] }
  0xdd   :  { %v2125_v41 = vld [vmem:[#allocation2 + $0x30] sm:$0xff]  ;;  %220 = vst.msk [vmem:[#allocation2 + $0x58] sm:$0xff] %vm22_vm4, %v204_v40 }
  0xde   :  { %v1257_v42 = vpack.c.bf16 %v2125_v41, %v2125_v41  ;;  %1226 = vst.msk [vmem:[#allocation2 + $0x38] sm:$0xff] %vm22_vm4, %v1210_v39 }
  0xdf   :  { %v591_v45 = vpop.f32.mrf.mxu1 }
  0xe0   :  { %1274 = vst.msk [vmem:[%s2280_s2 + $0x18] sm:$0xf] %vm1267_vm5, %v1257_v42  ;;  %v616_v46 = vadd.f32 %v591_v45, %v494_v43 }
  0xe1   :  { %v664_v47 = vld [vmem:[#allocation2 + $0x48] sm:$0xff]  ;;  %v780_v61 = vpop.f32.mrf.mxu2 }
  0xe2   :  { %v802_v49 = vadd.f32 %v775_v26, %v664_v47  ;;  %632 = vst.msk [vmem:[#allocation2 + $0x50] sm:$0xff] %vm22_vm4, %v616_v46  ;;  %v1185_v50 = vpop.f32.mrf.mxu3  ;;  %v183_v52 = vpop.f32.mrf.mxu0 }
  0xe3   :  { %v1089_v51 = vld [vmem:[#allocation2 + $0x40] sm:$0xff]  ;;  %v205_v54 = vadd.f32 %v183_v52, %v67_v48 }
  0xe4   :  { %818 = vst.msk [vmem:[#allocation2 + $0x48] sm:$0xff] %vm22_vm4, %v802_v49  ;;  %v1211_v53 = vadd.f32 %v1183_v36, %v1089_v51  ;;  %v495_v58 = vld [vmem:[#allocation2 + $0x58] sm:$0xff] }
  0xe5   :  { %v2137_v56 = vld [vmem:[#allocation2 + $0x38] sm:$0xff]  ;;  %221 = vst.msk [vmem:[#allocation2 + $0x60] sm:$0xff] %vm22_vm4, %v205_v54 }
  0xe6   :  { %v1258_v57 = vpack.c.bf16 %v2137_v56, %v2137_v56  ;;  %1227 = vst.msk [vmem:[#allocation2 + $0x40] sm:$0xff] %vm22_vm4, %v1211_v53 }
  0xe7   :  { %v593_v59 = vpop.f32.mrf.mxu1 }
  0xe8   :  { %1275 = vst.msk [vmem:[%s2280_s2 + $0x1c] sm:$0xf] %vm1267_vm5, %v1258_v57  ;;  %v617_v60 = vadd.f32 %v593_v59, %v495_v58 }
  0xe9   :  { %v665_v62 = vld [vmem:[#allocation2 + $0x50] sm:$0xff]  ;;  %v783_v15 = vpop.f32.mrf.mxu2 }
  0xea   :  { %v803_v0 = vadd.f32 %v778_v44, %v665_v62  ;;  %633 = vst.msk [vmem:[#allocation2 + $0x58] sm:$0xff] %vm22_vm4, %v617_v60  ;;  %v1188_v1 = vpop.f32.mrf.mxu3  ;;  %v185_v3 = vpop.f32.mrf.mxu0  ;;  %v1331_v60 = vmul.f32 %v2113_v27, %v2113_v27  ;;  %v1294_v62 = vsel %vm22_vm4, %v2113_v27, 0.0 }
  0xeb   :  { %v1090_v2 = vld [vmem:[#allocation2 + $0x48] sm:$0xff]  ;;  %v206_v5 = vadd.f32 %v185_v3, %v68_v63  ;;  %v1332_v63 = vmul.f32 %v2125_v41, %v2125_v41 }
  0xec   :  { %819 = vst.msk [vmem:[#allocation2 + $0x50] sm:$0xff] %vm22_vm4, %v803_v0  ;;  %v1212_v4 = vadd.f32 %v1185_v50, %v1090_v2  ;;  %v496_v8 = vld [vmem:[#allocation2 + $0x60] sm:$0xff]  ;;  %v1351_v3 = vsel %vm22_vm4, %v1331_v60, 0.0 }
  0xed   :  { %v2149_v6 = vld [vmem:[#allocation2 + $0x40] sm:$0xff]  ;;  %222 = vst.msk [vmem:[#allocation2 + $0x68] sm:$0xff] %vm22_vm4, %v206_v5  ;;  %v1333_v5 = vmul.f32 %v2137_v56, %v2137_v56 }
  0xee   :  { %v1259_v7 = vpack.c.bf16 %v2149_v6, %v2149_v6  ;;  %1228 = vst.msk [vmem:[#allocation2 + $0x48] sm:$0xff] %vm22_vm4, %v1212_v4  ;;  %v1296_v4 = vsel %vm22_vm4, %v2125_v41, 0.0  ;;  %v1352_v41 = vadd.f32 %v1351_v3, %v2109_v18 }
  0xef   :  { %v596_v9 = vpop.f32.mrf.mxu1 }
  0xf0   :  { %1276 = vst.msk [vmem:[%s2280_s2 + $0x20] sm:$0xf] %vm1267_vm5, %v1259_v7  ;;  %v618_v10 = vadd.f32 %v596_v9, %v496_v8  ;;  %v1295_v7 = vadd.f32 %v1294_v62, %v2101_v14  ;;  %v1353_v9 = vsel %vm22_vm4, %v1332_v63, 0.0  ;;  %v1300_v14 = vsel %vm22_vm4, %v2149_v6, 0.0 }
  0xf1   :  { %v666_v11 = vld [vmem:[#allocation2 + $0x58] sm:$0xff]  ;;  %v785_v34 = vpop.f32.mrf.mxu2 }
  0xf2   :  { %v804_v13 = vadd.f32 %v780_v61, %v666_v11  ;;  %634 = vst.msk [vmem:[#allocation2 + $0x60] sm:$0xff] %vm22_vm4, %v618_v10  ;;  %v1190_v17 = vpop.f32.mrf.mxu3  ;;  %v188_v19 = vpop.f32.mrf.mxu0  ;;  %v1298_v10 = vsel %vm22_vm4, %v2137_v56, 0.0  ;;  %v1334_v11 = vmul.f32 %v2149_v6, %v2149_v6  ;;  %v1354_v56 = vadd.f32 %v1353_v9, %v1352_v41 }
  0xf3   :  { %v1091_v16 = vld [vmem:[#allocation2 + $0x50] sm:$0xff]  ;;  %v207_v33 = vadd.f32 %v188_v19, %v69_v12 }
  0xf4   :  { %820 = vst.msk [vmem:[#allocation2 + $0x58] sm:$0xff] %vm22_vm4, %v804_v13  ;;  %v1213_v20 = vadd.f32 %v1188_v1, %v1091_v16  ;;  %v497_v23 = vld [vmem:[#allocation2 + $0x68] sm:$0xff]  ;;  %v1297_v13 = vadd.f32 %v1296_v4, %v1295_v7  ;;  %v1355_v16 = vsel %vm22_vm4, %v1333_v5, 0.0 }
  0xf5   :  { %v2161_v21 = vld [vmem:[#allocation2 + $0x48] sm:$0xff]  ;;  %223 = vst.msk [vmem:[#allocation2 + $0x70] sm:$0xff] %vm22_vm4, %v207_v33  ;;  %v1357_v33 = vsel %vm22_vm4, %v1334_v11, 0.0  ;;  %v1356_v6 = vadd.f32 %v1355_v16, %v1354_v56 }
  0xf6   :  { %v1260_v22 = vpack.c.bf16 %v2161_v21, %v2161_v21  ;;  %1229 = vst.msk [vmem:[#allocation2 + $0x50] sm:$0xff] %vm22_vm4, %v1213_v20  ;;  %v1299_v20 = vadd.f32 %v1298_v10, %v1297_v13  ;;  %v1302_v18 = vsel %vm22_vm4, %v2161_v21, 0.0 }
  0xf7   :  { %v598_v24 = vpop.f32.mrf.mxu1 }
  0xf8   :  { %1277 = vst.msk [vmem:[%s2280_s2 + $0x24] sm:$0xf] %vm1267_vm5, %v1260_v22  ;;  %v619_v25 = vadd.f32 %v598_v24, %v497_v23  ;;  %v1301_v23 = vadd.f32 %v1300_v14, %v1299_v20 }
  0xf9   :  { %v667_v26 = vld [vmem:[#allocation2 + $0x60] sm:$0xff]  ;;  %v788_v49 = vpop.f32.mrf.mxu2 }
  0xfa   :  { %v805_v29 = vadd.f32 %v783_v15, %v667_v26  ;;  %635 = vst.msk [vmem:[#allocation2 + $0x68] sm:$0xff] %vm22_vm4, %v619_v25  ;;  %v190_v31 = vpop.f32.mrf.mxu0  ;;  %v1193_v37 = vpop.f32.mrf.mxu3 }
  0xfb   :  { %v1092_v30 = vld [vmem:[#allocation2 + $0x58] sm:$0xff]  ;;  %v208_v35 = vadd.f32 %v190_v31, %v70_v28  ;;  %v1358_v28 = vadd.f32 %v1357_v33, %v1356_v6 }
  0xfc   :  { %821 = vst.msk [vmem:[#allocation2 + $0x60] sm:$0xff] %vm22_vm4, %v805_v29  ;;  %v1214_v32 = vadd.f32 %v1190_v17, %v1092_v30  ;;  %v498_v39 = vld [vmem:[#allocation2 + $0x70] sm:$0xff]  ;;  %v1335_v17 = vmul.f32 %v2161_v21, %v2161_v21  ;;  %v1303_v29 = vadd.f32 %v1302_v18, %v1301_v23 }
  0xfd   :  { %v2173_v36 = vld [vmem:[#allocation2 + $0x50] sm:$0xff]  ;;  %224 = vst.msk [vmem:[#allocation2 + $0x78] sm:$0xff] %vm22_vm4, %v208_v35 }
  0xfe   :  { %v1261_v38 = vpack.c.bf16 %v2173_v36, %v2173_v36  ;;  %1230 = vst.msk [vmem:[#allocation2 + $0x58] sm:$0xff] %vm22_vm4, %v1214_v32  ;;  %v1336_v22 = vmul.f32 %v2173_v36, %v2173_v36  ;;  %v1359_v24 = vsel %vm22_vm4, %v1335_v17, 0.0  ;;  %v1304_v25 = vsel %vm22_vm4, %v2173_v36, 0.0 }
  0xff   :  { %v601_v40 = vpop.f32.mrf.mxu1 }
 0x100   :  { %1278 = vst.msk [vmem:[%s2280_s2 + $0x28] sm:$0xf] %vm1267_vm5, %v1261_v38  ;;  %v620_v42 = vadd.f32 %v601_v40, %v498_v39  ;;  %v1361_v31 = vsel %vm22_vm4, %v1336_v22, 0.0  ;;  %v1305_v38 = vadd.f32 %v1304_v25, %v1303_v29 }
 0x101   :  { %v668_v43 = vld [vmem:[#allocation2 + $0x68] sm:$0xff]  ;;  %v790_v1 = vpop.f32.mrf.mxu2 }
 0x102   :  { %v806_v44 = vadd.f32 %v785_v34, %v668_v43  ;;  %636 = vst.msk [vmem:[#allocation2 + $0x70] sm:$0xff] %vm22_vm4, %v620_v42  ;;  %v1195_v51 = vpop.f32.mrf.mxu3 }
 0x103   :  { %v1093_v45 = vld [vmem:[#allocation2 + $0x60] sm:$0xff] }
 0x104   :  { %822 = vst.msk [vmem:[#allocation2 + $0x68] sm:$0xff] %vm22_vm4, %v806_v44  ;;  %v1215_v46 = vadd.f32 %v1193_v37, %v1093_v45  ;;  %v499_v50 = vld [vmem:[#allocation2 + $0x78] sm:$0xff]  ;;  %v1360_v37 = vadd.f32 %v1359_v24, %v1358_v28 }
 0x105   :  { %v1246_v47 = vld [vmem:[#allocation2 + $0x58] sm:$0xff] }
 0x106   :  { %v1262_v48 = vpack.c.bf16 %v1246_v47, %v1246_v47  ;;  %1231 = vst.msk [vmem:[#allocation2 + $0x60] sm:$0xff] %vm22_vm4, %v1215_v46  ;;  %v1337_v26 = vmul.f32 %v1246_v47, %v1246_v47  ;;  %v1306_v32 = vsel %vm22_vm4, %v1246_v47, 0.0  ;;  %v1362_v44 = vadd.f32 %v1361_v31, %v1360_v37 }
 0x107   :  { %v603_v52 = vpop.f32.mrf.mxu1  ;;  %v1307_v45 = vadd.f32 %v1306_v32, %v1305_v38 }
 0x108   :  { %1279 = vst.msk [vmem:[%s2280_s2 + $0x2c] sm:$0xf] %vm1267_vm5, %v1262_v48  ;;  %v621_v53 = vadd.f32 %v603_v52, %v499_v50  ;;  %v1363_v40 = vsel %vm22_vm4, %v1337_v26, 0.0 }
 0x109   :  { %v669_v54 = vld [vmem:[#allocation2 + $0x70] sm:$0xff] }
 0x10a   :  { %v807_v57 = vadd.f32 %v788_v49, %v669_v54  ;;  %637 = vst.msk [vmem:[#allocation2 + $0x78] sm:$0xff] %vm22_vm4, %v621_v53  ;;  %v1198_v2 = vpop.f32.mrf.mxu3  ;;  %v1364_v49 = vadd.f32 %v1363_v40, %v1362_v44 }
 0x10b   :  { %v1094_v58 = vld [vmem:[#allocation2 + $0x68] sm:$0xff] }
 0x10c   :  { %823 = vst.msk [vmem:[#allocation2 + $0x70] sm:$0xff] %vm22_vm4, %v807_v57  ;;  %v1216_v55 = vadd.f32 %v1195_v51, %v1094_v58 }
 0x10d   :  { %v1247_v59 = vld [vmem:[#allocation2 + $0x60] sm:$0xff] }
 0x10e   :  { %v1263_v61 = vpack.c.bf16 %v1247_v59, %v1247_v59  ;;  %1232 = vst.msk [vmem:[#allocation2 + $0x68] sm:$0xff] %vm22_vm4, %v1216_v55  ;;  %v1338_v34 = vmul.f32 %v1247_v59, %v1247_v59  ;;  %v1308_v42 = vsel %vm22_vm4, %v1247_v59, 0.0 }
 0x10f   :  { %v1309_v50 = vadd.f32 %v1308_v42, %v1307_v45 }
 0x110   :  { %1280 = vst.msk [vmem:[%s2280_s2 + $0x30] sm:$0xf] %vm1267_vm5, %v1263_v61  ;;  %v1365_v46 = vsel %vm22_vm4, %v1338_v34, 0.0 }
 0x111   :  { %v670_v0 = vld [vmem:[#allocation2 + $0x78] sm:$0xff]  ;;  %v1366_v53 = vadd.f32 %v1365_v46, %v1364_v49 }
 0x112   :  { %v808_v27 = vadd.f32 %v790_v1, %v670_v0  ;;  %v1200_v21 = vpop.f32.mrf.mxu3 }
 0x113   :  { %v1095_v8 = vld [vmem:[#allocation2 + $0x70] sm:$0xff] }
 0x114   :  { %824 = vst.msk [vmem:[#allocation2 + $0x78] sm:$0xff] %vm22_vm4, %v808_v27  ;;  %v1217_v12 = vadd.f32 %v1198_v2, %v1095_v8 }
 0x115   :  { %v1248_v15 = vld [vmem:[#allocation2 + $0x68] sm:$0xff] }
 0x116   :  { %v1264_v19 = vpack.c.bf16 %v1248_v15, %v1248_v15  ;;  %1233 = vst.msk [vmem:[#allocation2 + $0x70] sm:$0xff] %vm22_vm4, %v1217_v12  ;;  %v1339_v43 = vmul.f32 %v1248_v15, %v1248_v15  ;;  %v1310_v48 = vsel %vm22_vm4, %v1248_v15, 0.0  ;;  %v1284_v12 = vld [vmem:[%s2281_s3] sm:$0x1] }
 0x117   :  { %v1311_v54 = vadd.f32 %v1310_v48, %v1309_v50  ;;  %v1325_v15 = vld [vmem:[%s2282_s4] sm:$0x1] }
 0x118   :  { %1281 = vst.msk [vmem:[%s2280_s2 + $0x34] sm:$0xf] %vm1267_vm5, %v1264_v19  ;;  %v1367_v51 = vsel %vm22_vm4, %v1339_v43, 0.0 }
 0x119   :  { %v1368_v58 = vadd.f32 %v1367_v51, %v1366_v53 }
 0x11b   :  { %v1096_v30 = vld [vmem:[#allocation2 + $0x78] sm:$0xff] }
 0x11c   :  { %v1218_v35 = vadd.f32 %v1200_v21, %v1096_v30 }
 0x11d   :  { %v1249_v39 = vld [vmem:[#allocation2 + $0x70] sm:$0xff] }
 0x11e   :  { %v1265_v36 = vpack.c.bf16 %v1249_v39, %v1249_v39  ;;  %1234 = vst.msk [vmem:[#allocation2 + $0x78] sm:$0xff] %vm22_vm4, %v1218_v35  ;;  %v1340_v47 = vmul.f32 %v1249_v39, %v1249_v39  ;;  %v1312_v52 = vsel %vm22_vm4, %v1249_v39, 0.0 }
 0x11f   :  { %v1313_v55 = vadd.f32 %v1312_v52, %v1311_v54 }
 0x120   :  { %1282 = vst.msk [vmem:[%s2280_s2 + $0x38] sm:$0xf] %vm1267_vm5, %v1265_v36  ;;  %v1369_v57 = vsel %vm22_vm4, %v1340_v47, 0.0 }
 0x121   :  { %v1370_v63 = vadd.f32 %v1369_v57, %v1368_v58 }
 0x125   :  { %v1250_v59 = vld [vmem:[#allocation2 + $0x78] sm:$0xff] }
 0x126   :  { %v1266_v60 = vpack.c.bf16 %v1250_v59, %v1250_v59  ;;  %v1314_v61 = vsel %vm22_vm4, %v1250_v59, 0.0  ;;  %v1341_v62 = vmul.f32 %v1250_v59, %v1250_v59 }
 0x127   :  { %v1315_v0 = vadd.f32 %v1314_v61, %v1313_v55 }
 0x128   :  { %1283 = vst.msk [vmem:[%s2280_s2 + $0x3c] sm:$0xf] %vm1267_vm5, %v1266_v60  ;;  %v1371_v1 = vsel %vm22_vm4, %v1341_v62, 0.0 }
 0x129   :  { %v1316_v2 = vrot.slane %v1315_v0, 4  ;;  %v1372_v3 = vadd.f32 %v1371_v1, %v1370_v63 }
 0x12b   :  { %v1317_v4 = vadd.f32 %v1316_v2, %v1315_v0  ;;  %v1373_v5 = vrot.slane %v1372_v3, 4 }
 0x12d   :  { %v1318_v27 = vrot.slane %v1317_v4, 2  ;;  %v1374_v7 = vadd.f32 %v1373_v5, %v1372_v3 }
 0x12f   :  { %v1319_v8 = vadd.f32 %v1318_v27, %v1317_v4  ;;  %v1375_v9 = vrot.slane %v1374_v7, 2 }
 0x131   :  { %v1320_v10 = vrot.slane %v1319_v8, 1  ;;  %v1376_v11 = vadd.f32 %v1375_v9, %v1374_v7 }
 0x133   :  { %v1321_v41 = vadd.f32 %v1320_v10, %v1319_v8  ;;  %v1377_v13 = vrot.slane %v1376_v11, 1 }
 0x135   :  { %v1322_v16 = vadd.f32 %v1321_v41, %v1284_v12  ;;  %v1378_v14 = vadd.f32 %v1377_v13, %v1376_v11 }
 0x137   :  { %1324 = vst.msk [vmem:[%s2281_s3] sm:$0x1] %vm19_vm6, %v1322_v16  ;;  %v1379_v17 = vadd.f32 %v1378_v14, %v1325_v15 }
 0x139   :  { %1380 = vst.msk [vmem:[%s2282_s4] sm:$0x1] %vm19_vm6, %v1379_v17 }

// kernel: encoder_forward.13
= control target key start
LH: loop header
LB: loop body
LE: loop exit
PB: predicated region body
PF: predicated region fallthrough
CT: control target
= control target key end

     0   :  { %vm129_vm3 = vcmask 60416   ;;  %s321_s1 = inlined_call_operand.vmem [shape: f32[1,8], index: 1, kind: input, shape index: {}]   ;;  %s322_s2 = inlined_call_operand.vmem [shape: f32[1,8], index: 2, kind: input, shape index: {}]   ;;  %s323_s0 = inlined_call_operand.vmem [shape: bf16[128,8], index: 0, kind: input, shape index: {}]   ;;  %s324_s3 = inlined_call_operand.vmem [shape: f32[1,8], index: 3, kind: input, shape index: {}]   ;;  %s325_s4 = inlined_call_operand.vmem [shape: f32[1,8], index: 4, kind: input, shape index: {}]   ;;  %s326_s5 = inlined_call_operand.vmem [shape: bf16[128,8], index: 5, kind: output, shape index: {}]  }
   0x1   :  { %v20_v0 = vld [vmem:[%s321_s1] sm:$0x1]  ;;  %v182_v16 = vld [vmem:[%s323_s0 + $0x8] sm:$0xff]   ;;  %v183_v17 = vld [vmem:[%s323_s0 + $0x10] sm:$0xff]  }
   0x2   :  { %v22_v1 = vld [vmem:[%s322_s2] sm:$0x1]  ;;  %v21_v2 = vmul.f32 0.0078125, %v20_v0  ;;  %v184_v19 = vld [vmem:[%s323_s0 + $0x18] sm:$0xff]   ;;  %v156_v23 = vunpack.c.l.bf16 %v182_v16  ;;  %v157_v26 = vunpack.c.h.bf16 %v182_v16  ;;  %v160_v27 = vunpack.c.l.bf16 %v183_v17  ;;  %v186_v32 = vld [vmem:[%s323_s0 + $0x28] sm:$0xff]  }
   0x3   :  { %v23_v3 = vmul.f32 0.0078125, %v22_v1  ;;  %v27_v13 = vld [vmem:[%s324_s3] sm:$0x1]  ;;  %v161_v28 = vunpack.c.h.bf16 %v183_v17  ;;  %v164_v31 = vunpack.c.l.bf16 %v184_v19  ;;  %v165_v33 = vunpack.c.h.bf16 %v184_v19  ;;  %v187_v36 = vld [vmem:[%s323_s0 + $0x30] sm:$0xff]   ;;  %v188_v41 = vld [vmem:[%s323_s0 + $0x38] sm:$0xff]  }
   0x4   :  { %v24_v4 = vmul.f32 %v21_v2, %v21_v2  ;;  %v151_v15 = vld [vmem:[%s323_s0] sm:$0xff]   ;;  %v172_v45 = vunpack.c.l.bf16 %v186_v32  ;;  %v173_v48 = vunpack.c.h.bf16 %v186_v32  ;;  %v176_v49 = vunpack.c.l.bf16 %v187_v36 }
   0x5   :  { %v152_v21 = vunpack.c.l.bf16 %v151_v15  ;;  %v153_v22 = vunpack.c.h.bf16 %v151_v15  ;;  %v185_v24 = vld [vmem:[%s323_s0 + $0x20] sm:$0xff]   ;;  %v177_v52 = vunpack.c.h.bf16 %v187_v36  ;;  %v180_v53 = vunpack.c.l.bf16 %v188_v41 }
   0x6   :  { %v25_v5 = vsub.f32 %v23_v3, %v24_v4  ;;  %v40_v25 = vld [vmem:[%s325_s4] sm:$0x1]  ;;  %v168_v34 = vunpack.c.l.bf16 %v185_v24  ;;  %v169_v35 = vunpack.c.h.bf16 %v185_v24 }
   0x8   :  { %v26_v6 = vmax.f32 %v25_v5, 0.0  ;;  %v181_v5 = vunpack.c.h.bf16 %v188_v41 }
   0xa   :  { %v28_v7 = vadd.f32 1e-05, %v26_v6 }
   0xc   :  { %189 = vrsqrt.f32 %v28_v7  ;;  %vm35_vm0 = vweird.f32 %v28_v7 }
  0x12   :  { %v190_v8 = vpop.eup %189 }
  0x13   :  { %v30_v9 = vmul.f32 %v190_v8, %v28_v7  ;;  %vm36_vm1 = vweird.f32 %v190_v8 }
  0x14   :  { %vm37_vm2 = vmor %vm35_vm0, %vm36_vm1 }
  0x15   :  { %v31_v10 = vmul.f32 %v190_v8, %v30_v9 }
  0x17   :  { %v32_v11 = vmul.f32 0.5, %v31_v10 }
  0x19   :  { %v33_v12 = vsub.f32 1.5, %v32_v11 }
  0x1b   :  { %v34_v14 = vmul.f32 %v190_v8, %v33_v12 }
  0x1d   :  { %v38_v18 = vsel %vm37_vm2, %v190_v8, %v34_v14 }
  0x1e   :  { %v39_v20 = vmul.f32 %v38_v18, %v27_v13 }
  0x20   :  { %v41_v29 = vmul.f32 %v39_v20, %v21_v2  ;;  %v76_v30 = vperm.slane %v39_v20, 0 }
  0x22   :  { %v42_v37 = vsub.f32 %v40_v25, %v41_v29  ;;  %v78_v38 = vmul.f32 %v152_v21, %v76_v30  ;;  %v79_v39 = vmul.f32 %v153_v22, %v76_v30  ;;  %v80_v40 = vmul.f32 %v156_v23, %v76_v30 }
  0x23   :  { %v81_v42 = vmul.f32 %v157_v26, %v76_v30  ;;  %v82_v43 = vmul.f32 %v160_v27, %v76_v30  ;;  %v83_v44 = vmul.f32 %v161_v28, %v76_v30  ;;  %v84_v47 = vmul.f32 %v164_v31, %v76_v30 }
  0x24   :  { %v95_v46 = vperm.slane %v42_v37, 0  ;;  %v85_v50 = vmul.f32 %v165_v33, %v76_v30  ;;  %v86_v51 = vmul.f32 %v168_v34, %v76_v30  ;;  %v87_v60 = vmul.f32 %v169_v35, %v76_v30 }
  0x25   :  { %v88_v61 = vmul.f32 %v172_v45, %v76_v30  ;;  %v89_v4 = vmul.f32 %v173_v48, %v76_v30  ;;  %v90_v8 = vmul.f32 %v176_v49, %v76_v30  ;;  %v91_v11 = vmul.f32 %v177_v52, %v76_v30 }
  0x26   :  { %v97_v54 = vadd.f32 %v95_v46, %v78_v38  ;;  %v98_v55 = vadd.f32 %v95_v46, %v79_v39  ;;  %v99_v56 = vadd.f32 %v95_v46, %v80_v40  ;;  %v100_v57 = vadd.f32 %v95_v46, %v81_v42 }
  0x27   :  { %v101_v58 = vadd.f32 %v95_v46, %v82_v43  ;;  %v102_v59 = vadd.f32 %v95_v46, %v83_v44  ;;  %v103_v1 = vadd.f32 %v95_v46, %v84_v47  ;;  %v104_v3 = vadd.f32 %v95_v46, %v85_v50 }
  0x28   :  { %v113_v62 = vpack.c.bf16 %v97_v54, %v97_v54  ;;  %v114_v63 = vpack.c.bf16 %v98_v55, %v98_v55  ;;  %v115_v0 = vpack.c.bf16 %v99_v56, %v99_v56  ;;  %v116_v2 = vpack.c.bf16 %v100_v57, %v100_v57 }
  0x29   :  { %v117_v6 = vpack.c.bf16 %v101_v58, %v101_v58  ;;  %v105_v7 = vadd.f32 %v95_v46, %v86_v51  ;;  %v118_v9 = vpack.c.bf16 %v102_v59, %v102_v59  ;;  %v106_v10 = vadd.f32 %v95_v46, %v87_v60 }
  0x2a   :  { %130 = vst.msk [vmem:[%s326_s5] sm:$0xf] %vm129_vm3, %v113_v62  ;;  %v119_v12 = vpack.c.bf16 %v103_v1, %v103_v1  ;;  %v107_v13 = vadd.f32 %v95_v46, %v88_v61  ;;  %v92_v14 = vmul.f32 %v180_v53, %v76_v30  ;;  %v120_v15 = vpack.c.bf16 %v104_v3, %v104_v3 }
  0x2b   :  { %131 = vst.msk [vmem:[%s326_s5 + $0x4] sm:$0xf] %vm129_vm3, %v114_v63  ;;  %v108_v16 = vadd.f32 %v95_v46, %v89_v4  ;;  %v93_v17 = vmul.f32 %v181_v5, %v76_v30  ;;  %v121_v18 = vpack.c.bf16 %v105_v7, %v105_v7  ;;  %v109_v19 = vadd.f32 %v95_v46, %v90_v8 }
  0x2c   :  { %132 = vst.msk [vmem:[%s326_s5 + $0x8] sm:$0xf] %vm129_vm3, %v115_v0  ;;  %v122_v20 = vpack.c.bf16 %v106_v10, %v106_v10  ;;  %v110_v21 = vadd.f32 %v95_v46, %v91_v11  ;;  %v123_v22 = vpack.c.bf16 %v107_v13, %v107_v13  ;;  %v111_v23 = vadd.f32 %v95_v46, %v92_v14 }
  0x2d   :  { %133 = vst.msk [vmem:[%s326_s5 + $0xc] sm:$0xf] %vm129_vm3, %v116_v2  ;;  %v124_v24 = vpack.c.bf16 %v108_v16, %v108_v16  ;;  %v112_v25 = vadd.f32 %v95_v46, %v93_v17  ;;  %v125_v26 = vpack.c.bf16 %v109_v19, %v109_v19 }
  0x2e   :  { %134 = vst.msk [vmem:[%s326_s5 + $0x10] sm:$0xf] %vm129_vm3, %v117_v6  ;;  %v126_v27 = vpack.c.bf16 %v110_v21, %v110_v21  ;;  %v127_v28 = vpack.c.bf16 %v111_v23, %v111_v23 }
  0x2f   :  { %135 = vst.msk [vmem:[%s326_s5 + $0x14] sm:$0xf] %vm129_vm3, %v118_v9  ;;  %v128_v29 = vpack.c.bf16 %v112_v25, %v112_v25 }
  0x30   :  { %136 = vst.msk [vmem:[%s326_s5 + $0x18] sm:$0xf] %vm129_vm3, %v119_v12 }
  0x31   :  { %137 = vst.msk [vmem:[%s326_s5 + $0x1c] sm:$0xf] %vm129_vm3, %v120_v15 }
  0x32   :  { %138 = vst.msk [vmem:[%s326_s5 + $0x20] sm:$0xf] %vm129_vm3, %v121_v18 }
  0x33   :  { %139 = vst.msk [vmem:[%s326_s5 + $0x24] sm:$0xf] %vm129_vm3, %v122_v20 }
  0x34   :  { %140 = vst.msk [vmem:[%s326_s5 + $0x28] sm:$0xf] %vm129_vm3, %v123_v22 }
  0x35   :  { %141 = vst.msk [vmem:[%s326_s5 + $0x2c] sm:$0xf] %vm129_vm3, %v124_v24 }
  0x36   :  { %142 = vst.msk [vmem:[%s326_s5 + $0x30] sm:$0xf] %vm129_vm3, %v125_v26 }
  0x37   :  { %143 = vst.msk [vmem:[%s326_s5 + $0x34] sm:$0xf] %vm129_vm3, %v126_v27 }
  0x38   :  { %144 = vst.msk [vmem:[%s326_s5 + $0x38] sm:$0xf] %vm129_vm3, %v127_v28 }
  0x39   :  { %145 = vst.msk [vmem:[%s326_s5 + $0x3c] sm:$0xf] %vm129_vm3, %v128_v29 }

// kernel: encoder_forward.12
= control target key start
LH: loop header
LB: loop body
LE: loop exit
PB: predicated region body
PF: predicated region fallthrough
CT: control target
= control target key end

     0   :  { %vm22_vm0 = vcmask 64512   ;;  %v440_v1 = vmov 0.0   ;;  %vm119_vm1 = vcmask 130048   ;;  %vm257_vm2 = vcmask 60416   ;;  %s718_s1 = inlined_call_operand.vmem [shape: bf16[1,16,8], index: 1, kind: input, shape index: {}]   ;;  %s719_s0 = inlined_call_operand.vmem [shape: bf16[2,8,8,16], index: 0, kind: input, shape index: {}]   ;;  %s720_s2 = inlined_call_operand.vmem [shape: bf16[128,8], index: 2, kind: output, shape index: {0}]   ;;  %s721_s3 = inlined_call_operand.vmem [shape: f32[1,8], index: 3, kind: output, shape index: {1}]   ;;  %s722_s4 = inlined_call_operand.vmem [shape: f32[1,8], index: 4, kind: output, shape index: {2}]  }
   0x1   :  { %v435_v0 = vld [vmem:[%s718_s1] sm:$0xff]  ;;  %23 = vst.msk [vmem:[#allocation2] sm:$0xff] %vm22_vm0, %v440_v1  ;;  %v429_v3 = vld [vmem:[%s719_s0 + $0x10] sm:$0xff]  ;;  %v428_v6 = vld [vmem:[%s719_s0 + $0x8] sm:$0xff]  ;;  %vm19_vm3 = vcmask 57344  }
   0x2   :  { %v427_v2 = vld [vmem:[%s719_s0] sm:$0xff]  ;;  %24 = vst.msk [vmem:[#allocation2 + $0x8] sm:$0xff] %vm22_vm0, %v440_v1  ;;  %151 = vmatpush.bf16.msra.mxu0 %v435_v0  ;;  %436 = vmatpush.bf16.msra.mxu1 %v435_v0  ;;  %v433_v5 = vld [vmem:[%s719_s0 + $0x30] sm:$0xff]  ;;  %v430_v7 = vld [vmem:[%s719_s0 + $0x18] sm:$0xff] }
   0x3   :  { %v431_v4 = vld [vmem:[%s719_s0 + $0x20] sm:$0xff]  ;;  %25 = vst.msk [vmem:[#allocation2 + $0x10] sm:$0xff] %vm22_vm0, %v440_v1  ;;  %437 = vmatpush.bf16.msra.mxu2 %v435_v0  ;;  %438 = vmatpush.bf16.msra.mxu3 %v435_v0  ;;  %v432_v8 = vld [vmem:[%s719_s0 + $0x28] sm:$0xff]  ;;  %v434_v9 = vld [vmem:[%s719_s0 + $0x38] sm:$0xff] }
   0x4   :  { %26 = vst.msk [vmem:[#allocation2 + $0x18] sm:$0xff] %vm22_vm0, %v440_v1 }
   0x5   :  { %27 = vst.msk [vmem:[#allocation2 + $0x20] sm:$0xff] %vm22_vm0, %v440_v1  ;;  %419 = vmatmul.msk.bf16.vlgmr.msra.gmra.mxu0 %vm119_vm1, %v427_v2  ;;  %421 = vmatmul.msk.bf16.vlgmr.msra.gmra.mxu1 %vm119_vm1, %v429_v3 }
   0x6   :  { %28 = vst.msk [vmem:[#allocation2 + $0x28] sm:$0xff] %vm22_vm0, %v440_v1  ;;  %423 = vmatmul.msk.bf16.vlgmr.msra.gmra.mxu2 %vm119_vm1, %v431_v4  ;;  %425 = vmatmul.msk.bf16.vlgmr.msra.gmra.mxu3 %vm119_vm1, %v433_v5 }
   0x7   :  { %29 = vst.msk [vmem:[#allocation2 + $0x30] sm:$0xff] %vm22_vm0, %v440_v1 }
   0x8   :  { %30 = vst.msk [vmem:[#allocation2 + $0x38] sm:$0xff] %vm22_vm0, %v440_v1  ;;  %v55_v10 = vld [vmem:[#allocation2] sm:$0xff] }
   0x9   :  { %31 = vst.msk [vmem:[#allocation2 + $0x40] sm:$0xff] %vm22_vm0, %v440_v1  ;;  %v56_v17 = vld [vmem:[#allocation2 + $0x8] sm:$0xff] }
   0xa   :  { %32 = vst.msk [vmem:[#allocation2 + $0x48] sm:$0xff] %vm22_vm0, %v440_v1  ;;  %v57_v33 = vld [vmem:[#allocation2 + $0x10] sm:$0xff] }
   0xb   :  { %33 = vst.msk [vmem:[#allocation2 + $0x50] sm:$0xff] %vm22_vm0, %v440_v1  ;;  %v58_v52 = vld [vmem:[#allocation2 + $0x18] sm:$0xff] }
   0xc   :  { %34 = vst.msk [vmem:[#allocation2 + $0x58] sm:$0xff] %vm22_vm0, %v440_v1  ;;  %v59_v11 = vld [vmem:[#allocation2 + $0x20] sm:$0xff] }
   0xd   :  { %35 = vst.msk [vmem:[#allocation2 + $0x60] sm:$0xff] %vm22_vm0, %v440_v1  ;;  %v60_v18 = vld [vmem:[#allocation2 + $0x28] sm:$0xff] }
   0xe   :  { %36 = vst.msk [vmem:[#allocation2 + $0x68] sm:$0xff] %vm22_vm0, %v440_v1  ;;  %v61_v37 = vld [vmem:[#allocation2 + $0x30] sm:$0xff] }
   0xf   :  { %37 = vst.msk [vmem:[#allocation2 + $0x70] sm:$0xff] %vm22_vm0, %v440_v1  ;;  %v62_v54 = vld [vmem:[#allocation2 + $0x38] sm:$0xff] }
  0x10   :  { %38 = vst.msk [vmem:[#allocation2 + $0x78] sm:$0xff] %vm22_vm0, %v440_v1  ;;  %v63_v16 = vld [vmem:[#allocation2 + $0x40] sm:$0xff] }
  0x11   :  { %v64_v32 = vld [vmem:[#allocation2 + $0x48] sm:$0xff]  ;;  %20 = vst.msk [vmem:[%s721_s3] sm:$0x1] %vm19_vm3, %v440_v1 }
  0x12   :  { %v65_v50 = vld [vmem:[#allocation2 + $0x50] sm:$0xff]  ;;  %21 = vst.msk [vmem:[%s722_s4] sm:$0x1] %vm19_vm3, %v440_v1 }
  0x14   :  { %v67_v24 = vld [vmem:[#allocation2 + $0x60] sm:$0xff] }
  0x15   :  { %420 = vmatmul.msk.bf16.gmra.mxu0 %vm119_vm1, %v428_v6  ;;  %422 = vmatmul.msk.bf16.gmra.mxu1 %vm119_vm1, %v430_v7  ;;  %v68_v42 = vld [vmem:[#allocation2 + $0x68] sm:$0xff] }
  0x16   :  { %424 = vmatmul.msk.bf16.gmra.mxu2 %vm119_vm1, %v432_v8  ;;  %426 = vmatmul.msk.bf16.gmra.mxu3 %vm119_vm1, %v434_v9  ;;  %v69_v60 = vld [vmem:[#allocation2 + $0x70] sm:$0xff]  ;;  %v66_v9 = vld [vmem:[#allocation2 + $0x58] sm:$0xff] }
  0x82   :  { %v153_v12 = vpop.f32.mrf.mxu0  ;;  %v163_v13 = vpop.f32.mrf.mxu1 }
  0x83   :  { %v193_v14 = vadd.f32 %v153_v12, %v55_v10  ;;  %v197_v15 = vadd.f32 %v163_v13, %v59_v11 }
  0x85   :  { %209 = vst.msk [vmem:[#allocation2] sm:$0xff] %vm22_vm0, %v193_v14 }
  0x86   :  { %213 = vst.msk [vmem:[#allocation2 + $0x20] sm:$0xff] %vm22_vm0, %v197_v15 }
  0x89   :  { %v173_v19 = vpop.f32.mrf.mxu2  ;;  %v183_v20 = vpop.f32.mrf.mxu3 }
  0x8a   :  { %v155_v21 = vpop.f32.mrf.mxu0  ;;  %v165_v22 = vpop.f32.mrf.mxu1  ;;  %v201_v23 = vadd.f32 %v173_v19, %v63_v16  ;;  %v205_v30 = vadd.f32 %v183_v20, %v67_v24  ;;  %v70_v20 = vld [vmem:[#allocation2 + $0x78] sm:$0xff] }
  0x8b   :  { %v194_v25 = vadd.f32 %v155_v21, %v56_v17  ;;  %v198_v26 = vadd.f32 %v165_v22, %v60_v18 }
  0x8c   :  { %v535_v27 = vld [vmem:[#allocation2] sm:$0xff]  ;;  %217 = vst.msk [vmem:[#allocation2 + $0x40] sm:$0xff] %vm22_vm0, %v201_v23 }
  0x8d   :  { %v241_v28 = vpack.c.bf16 %v535_v27, %v535_v27  ;;  %v540_v29 = vld [vmem:[#allocation2 + $0x20] sm:$0xff]  ;;  %210 = vst.msk [vmem:[#allocation2 + $0x8] sm:$0xff] %vm22_vm0, %v194_v25  ;;  %v316_v6 = vmul.f32 %v535_v27, %v535_v27  ;;  %v275_v11 = vsel %vm22_vm0, %v535_v27, 0.0 }
  0x8e   :  { %v245_v31 = vpack.c.bf16 %v540_v29, %v540_v29  ;;  %214 = vst.msk [vmem:[#allocation2 + $0x28] sm:$0xff] %vm22_vm0, %v198_v26  ;;  %v320_v25 = vmul.f32 %v540_v29, %v540_v29 }
  0x8f   :  { %258 = vst.msk [vmem:[%s720_s2] sm:$0xf] %vm257_vm2, %v241_v28  ;;  %v332_v22 = vsel %vm22_vm0, %v316_v6, 0.0 }
  0x90   :  { %262 = vst.msk [vmem:[%s720_s2 + $0x10] sm:$0xf] %vm257_vm2, %v245_v31 }
  0x91   :  { %v175_v34 = vpop.f32.mrf.mxu2  ;;  %221 = vst.msk [vmem:[#allocation2 + $0x60] sm:$0xff] %vm22_vm0, %v205_v30  ;;  %v185_v35 = vpop.f32.mrf.mxu3 }
  0x92   :  { %v158_v36 = vpop.f32.mrf.mxu0  ;;  %v168_v38 = vpop.f32.mrf.mxu1  ;;  %v202_v39 = vadd.f32 %v175_v34, %v64_v32  ;;  %v206_v49 = vadd.f32 %v185_v35, %v68_v42 }
  0x93   :  { %v555_v40 = vld [vmem:[#allocation2 + $0x40] sm:$0xff]  ;;  %v195_v41 = vadd.f32 %v158_v36, %v57_v33  ;;  %v199_v47 = vadd.f32 %v168_v38, %v61_v37  ;;  %v282_v37 = vsel %vm22_vm0, %v540_v29, 0.0  ;;  %v339_v29 = vsel %vm22_vm0, %v320_v25, 0.0 }
  0x94   :  { %v226_v43 = vld [vmem:[#allocation2 + $0x8] sm:$0xff]  ;;  %v249_v44 = vpack.c.bf16 %v555_v40, %v555_v40  ;;  %218 = vst.msk [vmem:[#allocation2 + $0x48] sm:$0xff] %vm22_vm0, %v202_v39 }
  0x95   :  { %v242_v45 = vpack.c.bf16 %v226_v43, %v226_v43  ;;  %v560_v46 = vld [vmem:[#allocation2 + $0x28] sm:$0xff]  ;;  %211 = vst.msk [vmem:[#allocation2 + $0x10] sm:$0xff] %vm22_vm0, %v195_v41  ;;  %v317_v3 = vmul.f32 %v226_v43, %v226_v43  ;;  %v276_v7 = vsel %vm22_vm0, %v226_v43, 0.0 }
  0x96   :  { %v246_v48 = vpack.c.bf16 %v560_v46, %v560_v46  ;;  %266 = vst.msk [vmem:[%s720_s2 + $0x20] sm:$0xf] %vm257_vm2, %v249_v44  ;;  %v277_v17 = vadd.f32 %v276_v7, %v275_v11  ;;  %v321_v38 = vmul.f32 %v560_v46, %v560_v46 }
  0x97   :  { %259 = vst.msk [vmem:[%s720_s2 + $0x4] sm:$0xf] %vm257_vm2, %v242_v45  ;;  %v333_v12 = vsel %vm22_vm0, %v317_v3, 0.0 }
  0x98   :  { %263 = vst.msk [vmem:[%s720_s2 + $0x14] sm:$0xf] %vm257_vm2, %v246_v48  ;;  %v577_v51 = vld [vmem:[#allocation2 + $0x60] sm:$0xff]  ;;  %v334_v26 = vadd.f32 %v333_v12, %v332_v22 }
  0x99   :  { %215 = vst.msk [vmem:[#allocation2 + $0x30] sm:$0xff] %vm22_vm0, %v199_v47  ;;  %v253_v53 = vpack.c.bf16 %v577_v51, %v577_v51  ;;  %v178_v55 = vpop.f32.mrf.mxu2  ;;  %v188_v56 = vpop.f32.mrf.mxu3  ;;  %v284_v47 = vsel %vm22_vm0, %v560_v46, 0.0  ;;  %v298_v22 = vsel %vm22_vm0, %v577_v51, 0.0 }
  0x9a   :  { %v160_v57 = vpop.f32.mrf.mxu0  ;;  %v170_v58 = vpop.f32.mrf.mxu1  ;;  %v203_v59 = vadd.f32 %v178_v55, %v65_v50  ;;  %222 = vst.msk [vmem:[#allocation2 + $0x68] sm:$0xff] %vm22_vm0, %v206_v49  ;;  %v207_v5 = vadd.f32 %v188_v56, %v69_v60 }
  0x9b   :  { %v583_v61 = vld [vmem:[#allocation2 + $0x48] sm:$0xff]  ;;  %270 = vst.msk [vmem:[%s720_s2 + $0x30] sm:$0xf] %vm257_vm2, %v253_v53  ;;  %v196_v62 = vadd.f32 %v160_v57, %v58_v52  ;;  %v200_v2 = vadd.f32 %v170_v58, %v62_v54  ;;  %v341_v53 = vsel %vm22_vm0, %v321_v38, 0.0  ;;  %v324_v57 = vmul.f32 %v555_v40, %v555_v40 }
  0x9c   :  { %v227_v63 = vld [vmem:[#allocation2 + $0x10] sm:$0xff]  ;;  %v250_v0 = vpack.c.bf16 %v583_v61, %v583_v61  ;;  %219 = vst.msk [vmem:[#allocation2 + $0x50] sm:$0xff] %vm22_vm0, %v203_v59 }
  0x9d   :  { %v243_v4 = vpack.c.bf16 %v227_v63, %v227_v63  ;;  %212 = vst.msk [vmem:[#allocation2 + $0x18] sm:$0xff] %vm22_vm0, %v196_v62  ;;  %v318_v8 = vmul.f32 %v227_v63, %v227_v63  ;;  %v278_v13 = vsel %vm22_vm0, %v227_v63, 0.0  ;;  %v347_v7 = vsel %vm22_vm0, %v324_v57, 0.0 }
  0x9e   :  { %267 = vst.msk [vmem:[%s720_s2 + $0x24] sm:$0xf] %vm257_vm2, %v250_v0  ;;  %v279_v27 = vadd.f32 %v278_v13, %v277_v17  ;;  %v290_v0 = vsel %vm22_vm0, %v555_v40, 0.0 }
  0x9f   :  { %260 = vst.msk [vmem:[%s720_s2 + $0x8] sm:$0xf] %vm257_vm2, %v243_v4  ;;  %v335_v23 = vsel %vm22_vm0, %v318_v8, 0.0  ;;  %v292_v8 = vsel %vm22_vm0, %v583_v61, 0.0 }
  0xa0   :  { %v231_v10 = vld [vmem:[#allocation2 + $0x30] sm:$0xff]  ;;  %216 = vst.msk [vmem:[#allocation2 + $0x38] sm:$0xff] %vm22_vm0, %v200_v2  ;;  %v336_v35 = vadd.f32 %v335_v23, %v334_v26  ;;  %v325_v2 = vmul.f32 %v583_v61, %v583_v61 }
  0xa1   :  { %v247_v14 = vpack.c.bf16 %v231_v10, %v231_v10  ;;  %v609_v15 = vld [vmem:[#allocation2 + $0x68] sm:$0xff]  ;;  %v180_v16 = vpop.f32.mrf.mxu2  ;;  %223 = vst.msk [vmem:[#allocation2 + $0x70] sm:$0xff] %vm22_vm0, %v207_v5  ;;  %v190_v21 = vpop.f32.mrf.mxu3  ;;  %v322_v48 = vmul.f32 %v231_v10, %v231_v10  ;;  %v286_v1 = vsel %vm22_vm0, %v231_v10, 0.0 }
  0xa2   :  { %v254_v18 = vpack.c.bf16 %v609_v15, %v609_v15  ;;  %v204_v19 = vadd.f32 %v180_v16, %v66_v9  ;;  %v208_v34 = vadd.f32 %v190_v21, %v70_v20  ;;  %v349_v12 = vsel %vm22_vm0, %v325_v2, 0.0 }
  0xa3   :  { %264 = vst.msk [vmem:[%s720_s2 + $0x18] sm:$0xf] %vm257_vm2, %v247_v14  ;;  %v235_v24 = vld [vmem:[#allocation2 + $0x50] sm:$0xff]  ;;  %v343_v58 = vsel %vm22_vm0, %v322_v48, 0.0  ;;  %v329_v23 = vmul.f32 %v609_v15, %v609_v15 }
  0xa4   :  { %v228_v28 = vld [vmem:[#allocation2 + $0x18] sm:$0xff]  ;;  %v251_v30 = vpack.c.bf16 %v235_v24, %v235_v24  ;;  %271 = vst.msk [vmem:[%s720_s2 + $0x34] sm:$0xf] %vm257_vm2, %v254_v18  ;;  %v326_v9 = vmul.f32 %v235_v24, %v235_v24  ;;  %v294_v13 = vsel %vm22_vm0, %v235_v24, 0.0  ;;  %v328_v18 = vmul.f32 %v577_v51, %v577_v51 }
  0xa5   :  { %v244_v31 = vpack.c.bf16 %v228_v28, %v228_v28  ;;  %v280_v32 = vsel %vm22_vm0, %v228_v28, 0.0  ;;  %v319_v33 = vmul.f32 %v228_v28, %v228_v28  ;;  %220 = vst.msk [vmem:[#allocation2 + $0x58] sm:$0xff] %vm22_vm0, %v204_v19  ;;  %v300_v28 = vsel %vm22_vm0, %v609_v15, 0.0 }
  0xa6   :  { %v281_v36 = vadd.f32 %v280_v32, %v279_v27  ;;  %268 = vst.msk [vmem:[%s720_s2 + $0x28] sm:$0xf] %vm257_vm2, %v251_v30  ;;  %v351_v61 = vsel %vm22_vm0, %v326_v9, 0.0  ;;  %v355_v27 = vsel %vm22_vm0, %v328_v18, 0.0 }
  0xa7   :  { %261 = vst.msk [vmem:[%s720_s2 + $0xc] sm:$0xf] %vm257_vm2, %v244_v31  ;;  %v337_v39 = vsel %vm22_vm0, %v319_v33, 0.0  ;;  %v232_v41 = vld [vmem:[#allocation2 + $0x38] sm:$0xff]  ;;  %v357_v33 = vsel %vm22_vm0, %v329_v23, 0.0 }
  0xa8   :  { %v283_v42 = vadd.f32 %v282_v37, %v281_v36  ;;  %v338_v43 = vadd.f32 %v337_v39, %v336_v35  ;;  %v248_v44 = vpack.c.bf16 %v232_v41, %v232_v41  ;;  %v239_v45 = vld [vmem:[#allocation2 + $0x70] sm:$0xff]  ;;  %224 = vst.msk [vmem:[#allocation2 + $0x78] sm:$0xff] %vm22_vm0, %v208_v34  ;;  %v323_v54 = vmul.f32 %v232_v41, %v232_v41 }
  0xa9   :  { %v255_v49 = vpack.c.bf16 %v239_v45, %v239_v45  ;;  %v288_v59 = vsel %vm22_vm0, %v232_v41, 0.0  ;;  %v330_v30 = vmul.f32 %v239_v45, %v239_v45  ;;  %v302_v34 = vsel %vm22_vm0, %v239_v45, 0.0 }
  0xaa   :  { %v340_v50 = vadd.f32 %v339_v29, %v338_v43  ;;  %265 = vst.msk [vmem:[%s720_s2 + $0x1c] sm:$0xf] %vm257_vm2, %v248_v44  ;;  %v285_v52 = vadd.f32 %v284_v47, %v283_v42  ;;  %v345_v3 = vsel %vm22_vm0, %v323_v54, 0.0 }
  0xab   :  { %272 = vst.msk [vmem:[%s720_s2 + $0x38] sm:$0xf] %vm257_vm2, %v255_v49  ;;  %v359_v37 = vsel %vm22_vm0, %v330_v30, 0.0 }
  0xac   :  { %v287_v46 = vadd.f32 %v286_v1, %v285_v52  ;;  %v342_v55 = vadd.f32 %v341_v53, %v340_v50  ;;  %v236_v56 = vld [vmem:[#allocation2 + $0x58] sm:$0xff]  ;;  %v274_v53 = vld [vmem:[%s721_s3] sm:$0x1] }
  0xad   :  { %v252_v60 = vpack.c.bf16 %v236_v56, %v236_v56  ;;  %v327_v14 = vmul.f32 %v236_v56, %v236_v56  ;;  %v296_v19 = vsel %vm22_vm0, %v236_v56, 0.0 }
  0xae   :  { %v289_v62 = vadd.f32 %v288_v59, %v287_v46  ;;  %v344_v63 = vadd.f32 %v343_v58, %v342_v55  ;;  %v315_v46 = vld [vmem:[%s722_s4] sm:$0x1] }
  0xaf   :  { %269 = vst.msk [vmem:[%s720_s2 + $0x2c] sm:$0xf] %vm257_vm2, %v252_v60  ;;  %v240_v6 = vld [vmem:[#allocation2 + $0x78] sm:$0xff]  ;;  %v353_v24 = vsel %vm22_vm0, %v327_v14, 0.0 }
  0xb0   :  { %v291_v4 = vadd.f32 %v290_v0, %v289_v62  ;;  %v346_v5 = vadd.f32 %v345_v3, %v344_v63  ;;  %v256_v40 = vpack.c.bf16 %v240_v6, %v240_v6  ;;  %v331_v51 = vmul.f32 %v240_v6, %v240_v6 }
  0xb1   :  { %v304_v38 = vsel %vm22_vm0, %v240_v6, 0.0 }
  0xb2   :  { %v348_v10 = vadd.f32 %v347_v7, %v346_v5  ;;  %v293_v11 = vadd.f32 %v292_v8, %v291_v4  ;;  %273 = vst.msk [vmem:[%s720_s2 + $0x3c] sm:$0xf] %vm257_vm2, %v256_v40  ;;  %v361_v42 = vsel %vm22_vm0, %v331_v51, 0.0 }
  0xb4   :  { %v295_v16 = vadd.f32 %v294_v13, %v293_v11  ;;  %v350_v17 = vadd.f32 %v349_v12, %v348_v10 }
  0xb6   :  { %v352_v20 = vadd.f32 %v351_v61, %v350_v17  ;;  %v297_v21 = vadd.f32 %v296_v19, %v295_v16 }
  0xb8   :  { %v299_v25 = vadd.f32 %v298_v22, %v297_v21  ;;  %v354_v26 = vadd.f32 %v353_v24, %v352_v20 }
  0xba   :  { %v356_v31 = vadd.f32 %v355_v27, %v354_v26  ;;  %v301_v32 = vadd.f32 %v300_v28, %v299_v25 }
  0xbc   :  { %v303_v35 = vadd.f32 %v302_v34, %v301_v32  ;;  %v358_v36 = vadd.f32 %v357_v33, %v356_v31 }
  0xbe   :  { %v360_v39 = vadd.f32 %v359_v37, %v358_v36  ;;  %v305_v41 = vadd.f32 %v304_v38, %v303_v35 }
  0xc0   :  { %v306_v43 = vrot.slane %v305_v41, 4  ;;  %v362_v15 = vadd.f32 %v361_v42, %v360_v39 }
  0xc2   :  { %v307_v44 = vadd.f32 %v306_v43, %v305_v41  ;;  %v363_v29 = vrot.slane %v362_v15, 4 }
  0xc4   :  { %v308_v47 = vrot.slane %v307_v44, 2  ;;  %v364_v48 = vadd.f32 %v363_v29, %v362_v15 }
  0xc6   :  { %v309_v49 = vadd.f32 %v308_v47, %v307_v44  ;;  %v365_v50 = vrot.slane %v364_v48, 2 }
  0xc8   :  { %v310_v45 = vrot.slane %v309_v49, 1  ;;  %v366_v52 = vadd.f32 %v365_v50, %v364_v48 }
  0xca   :  { %v311_v1 = vadd.f32 %v310_v45, %v309_v49  ;;  %v367_v54 = vrot.slane %v366_v52, 1 }
  0xcc   :  { %v312_v55 = vadd.f32 %v311_v1, %v274_v53  ;;  %v368_v56 = vadd.f32 %v367_v54, %v366_v52 }
  0xce   :  { %314 = vst.msk [vmem:[%s721_s3] sm:$0x1] %vm19_vm3, %v312_v55  ;;  %v369_v57 = vadd.f32 %v368_v56, %v315_v46 }
  0xd0   :  { %370 = vst.msk [vmem:[%s722_s4] sm:$0x1] %vm19_vm3, %v369_v57 }

// kernel: encoder_forward.15
= control target key start
LH: loop header
LB: loop body
LE: loop exit
PB: predicated region body
PF: predicated region fallthrough
CT: control target
= control target key end

     0   :  { %vm196_vm3 = vcmask 60416   ;;  %s561_s1 = inlined_call_operand.vmem [shape: f32[1,8], index: 1, kind: input, shape index: {}]   ;;  %s562_s2 = inlined_call_operand.vmem [shape: f32[1,8], index: 2, kind: input, shape index: {}]   ;;  %s563_s0 = inlined_call_operand.vmem [shape: bf16[128,8], index: 0, kind: input, shape index: {}]   ;;  %s564_s5 = inlined_call_operand.vmem [shape: bf16[128,8], index: 5, kind: input, shape index: {}]   ;;  %s565_s3 = inlined_call_operand.vmem [shape: f32[1,8], index: 3, kind: input, shape index: {}]   ;;  %s566_s4 = inlined_call_operand.vmem [shape: f32[1,8], index: 4, kind: input, shape index: {}]   ;;  %s567_s6 = inlined_call_operand.vmem [shape: bf16[128,8], index: 6, kind: output, shape index: {}]  }
   0x1   :  { %v23_v0 = vld [vmem:[%s561_s1] sm:$0x1]  ;;  %v350_v12 = vld [vmem:[%s563_s0 + $0x8] sm:$0xff]   ;;  %v355_v13 = vld [vmem:[%s563_s0 + $0x10] sm:$0xff]  }
   0x2   :  { %v25_v1 = vld [vmem:[%s562_s2] sm:$0x1]  ;;  %v338_v2 = vmul.f32 0.0078125, %v23_v0  ;;  %v365_v16 = vld [vmem:[%s564_s5 + $0x8] sm:$0xff]   ;;  %v283_v19 = vld [vmem:[%s563_s0 + $0x18] sm:$0xff]   ;;  %v223_v21 = vunpack.c.l.bf16 %v350_v12  ;;  %v224_v22 = vunpack.c.h.bf16 %v350_v12  ;;  %v227_v23 = vunpack.c.l.bf16 %v355_v13 }
   0x3   :  { %v26_v3 = vmul.f32 0.0078125, %v25_v1  ;;  %v345_v11 = vld [vmem:[%s563_s0] sm:$0xff]   ;;  %v378_v24 = vld [vmem:[%s564_s5 + $0x10] sm:$0xff]   ;;  %v255_v29 = vunpack.c.l.bf16 %v365_v16  ;;  %v228_v30 = vunpack.c.h.bf16 %v355_v13  ;;  %v394_v31 = vld [vmem:[%s564_s5 + $0x18] sm:$0xff]   ;;  %v256_v35 = vunpack.c.h.bf16 %v365_v16 }
   0x4   :  { %v27_v4 = vmul.f32 %v338_v2, %v338_v2  ;;  %v360_v15 = vld [vmem:[%s564_s5] sm:$0xff]   ;;  %v219_v17 = vunpack.c.l.bf16 %v345_v11  ;;  %v220_v18 = vunpack.c.h.bf16 %v345_v11  ;;  %v285_v32 = vld [vmem:[%s563_s0 + $0x28] sm:$0xff]   ;;  %v231_v36 = vunpack.c.l.bf16 %v283_v19  ;;  %v286_v39 = vld [vmem:[%s563_s0 + $0x30] sm:$0xff]  }
   0x5   :  { %v284_v25 = vld [vmem:[%s563_s0 + $0x20] sm:$0xff]   ;;  %v251_v27 = vunpack.c.l.bf16 %v360_v15  ;;  %v252_v28 = vunpack.c.h.bf16 %v360_v15  ;;  %v232_v37 = vunpack.c.h.bf16 %v283_v19  ;;  %v259_v40 = vunpack.c.l.bf16 %v378_v24  ;;  %v416_v44 = vld [vmem:[%s564_s5 + $0x28] sm:$0xff]   ;;  %v421_v45 = vld [vmem:[%s563_s0 + $0x38] sm:$0xff]  }
   0x6   :  { %v28_v5 = vsub.f32 %v26_v3, %v27_v4  ;;  %v30_v33 = vld [vmem:[%s565_s3] sm:$0x1]  ;;  %v260_v41 = vunpack.c.h.bf16 %v378_v24  ;;  %v235_v42 = vunpack.c.l.bf16 %v284_v25  ;;  %v236_v43 = vunpack.c.h.bf16 %v284_v25  ;;  %v431_v54 = vld [vmem:[%s564_s5 + $0x30] sm:$0xff]   ;;  %v436_v55 = vld [vmem:[%s564_s5 + $0x38] sm:$0xff]  }
   0x7   :  { %v406_v38 = vld [vmem:[%s564_s5 + $0x20] sm:$0xff]   ;;  %v263_v47 = vunpack.c.l.bf16 %v394_v31  ;;  %v264_v48 = vunpack.c.h.bf16 %v394_v31  ;;  %v239_v49 = vunpack.c.l.bf16 %v285_v32  ;;  %v240_v52 = vunpack.c.h.bf16 %v285_v32 }
   0x8   :  { %v29_v6 = vmax.f32 %v28_v5, 0.0  ;;  %v267_v51 = vunpack.c.l.bf16 %v406_v38  ;;  %v243_v53 = vunpack.c.l.bf16 %v286_v39  ;;  %v43_v56 = vld [vmem:[%s566_s4] sm:$0x1]  ;;  %v268_v57 = vunpack.c.h.bf16 %v406_v38 }
   0x9   :  { %v271_v58 = vunpack.c.l.bf16 %v416_v44  ;;  %v244_v59 = vunpack.c.h.bf16 %v286_v39  ;;  %v247_v60 = vunpack.c.l.bf16 %v421_v45  ;;  %v272_v63 = vunpack.c.h.bf16 %v416_v44 }
   0xa   :  { %v31_v7 = vadd.f32 1e-05, %v29_v6  ;;  %v248_v0 = vunpack.c.h.bf16 %v421_v45  ;;  %v275_v1 = vunpack.c.l.bf16 %v431_v54  ;;  %v276_v3 = vunpack.c.h.bf16 %v431_v54 }
   0xb   :  { %v279_v4 = vunpack.c.l.bf16 %v436_v55  ;;  %v280_v5 = vunpack.c.h.bf16 %v436_v55 }
   0xc   :  { %295 = vrsqrt.f32 %v31_v7  ;;  %vm38_vm0 = vweird.f32 %v31_v7 }
  0x12   :  { %v296_v8 = vpop.eup %295 }
  0x13   :  { %v33_v9 = vmul.f32 %v296_v8, %v31_v7  ;;  %vm39_vm1 = vweird.f32 %v296_v8 }
  0x14   :  { %vm383_vm2 = vmor %vm38_vm0, %vm39_vm1 }
  0x15   :  { %v34_v10 = vmul.f32 %v296_v8, %v33_v9 }
  0x17   :  { %v35_v14 = vmul.f32 0.5, %v34_v10 }
  0x19   :  { %v36_v20 = vsub.f32 1.5, %v35_v14 }
  0x1b   :  { %v37_v34 = vmul.f32 %v296_v8, %v36_v20 }
  0x1d   :  { %v41_v46 = vsel %vm383_vm2, %v296_v8, %v37_v34 }
  0x1e   :  { %v42_v50 = vmul.f32 %v41_v46, %v30_v33 }
  0x20   :  { %v44_v61 = vmul.f32 %v42_v50, %v338_v2  ;;  %v445_v62 = vperm.slane %v42_v50, 0 }
  0x22   :  { %v45_v6 = vsub.f32 %v43_v56, %v44_v61  ;;  %v81_v7 = vmul.f32 %v219_v17, %v445_v62  ;;  %v82_v8 = vmul.f32 %v220_v18, %v445_v62  ;;  %v83_v2 = vmul.f32 %v223_v21, %v445_v62 }
  0x23   :  { %v84_v9 = vmul.f32 %v224_v22, %v445_v62  ;;  %v85_v10 = vmul.f32 %v227_v23, %v445_v62  ;;  %v86_v11 = vmul.f32 %v228_v30, %v445_v62  ;;  %v87_v12 = vmul.f32 %v231_v36, %v445_v62 }
  0x24   :  { %v98_v13 = vperm.slane %v45_v6, 0  ;;  %v88_v14 = vmul.f32 %v232_v37, %v445_v62  ;;  %v89_v19 = vmul.f32 %v235_v42, %v445_v62  ;;  %v90_v17 = vmul.f32 %v236_v43, %v445_v62 }
  0x25   :  { %v91_v18 = vmul.f32 %v239_v49, %v445_v62  ;;  %v92_v20 = vmul.f32 %v240_v52, %v445_v62  ;;  %v93_v21 = vmul.f32 %v243_v53, %v445_v62  ;;  %v94_v22 = vmul.f32 %v244_v59, %v445_v62 }
  0x26   :  { %v100_v23 = vadd.f32 %v98_v13, %v81_v7  ;;  %v101_v24 = vadd.f32 %v98_v13, %v82_v8  ;;  %v102_v25 = vadd.f32 %v98_v13, %v83_v2  ;;  %v103_v26 = vadd.f32 %v98_v13, %v84_v9 }
  0x27   :  { %v104_v30 = vadd.f32 %v98_v13, %v85_v10  ;;  %v105_v31 = vadd.f32 %v98_v13, %v86_v11  ;;  %v106_v32 = vadd.f32 %v98_v13, %v87_v12  ;;  %v107_v33 = vadd.f32 %v98_v13, %v88_v14 }
  0x28   :  { %v148_v34 = vadd.f32 %v251_v27, %v100_v23  ;;  %v149_v36 = vadd.f32 %v252_v28, %v101_v24  ;;  %v150_v37 = vadd.f32 %v255_v29, %v102_v25  ;;  %v151_v39 = vadd.f32 %v256_v35, %v103_v26 }
  0x29   :  { %v152_v42 = vadd.f32 %v259_v40, %v104_v30  ;;  %v153_v43 = vadd.f32 %v260_v41, %v105_v31  ;;  %v154_v46 = vadd.f32 %v263_v47, %v106_v32  ;;  %v155_v49 = vadd.f32 %v264_v48, %v107_v33 }
  0x2a   :  { %v164_v50 = vmax.f32 %v148_v34, 0.0  ;;  %v165_v52 = vmax.f32 %v149_v36, 0.0  ;;  %v166_v53 = vmax.f32 %v150_v37, 0.0  ;;  %v167_v56 = vmax.f32 %v151_v39, 0.0 }
  0x2b   :  { %v168_v59 = vmax.f32 %v152_v42, 0.0  ;;  %v169_v61 = vmax.f32 %v153_v43, 0.0  ;;  %v170_v27 = vmax.f32 %v154_v46, 0.0  ;;  %v171_v6 = vmax.f32 %v155_v49, 0.0 }
  0x2c   :  { %v180_v15 = vpack.c.bf16 %v164_v50, %v164_v50  ;;  %v181_v28 = vpack.c.bf16 %v165_v52, %v165_v52  ;;  %v182_v7 = vpack.c.bf16 %v166_v53, %v166_v53  ;;  %v183_v8 = vpack.c.bf16 %v167_v56, %v167_v56 }
  0x2d   :  { %v184_v29 = vpack.c.bf16 %v168_v59, %v168_v59  ;;  %v185_v2 = vpack.c.bf16 %v169_v61, %v169_v61  ;;  %v186_v16 = vpack.c.bf16 %v170_v27, %v170_v27  ;;  %v187_v35 = vpack.c.bf16 %v171_v6, %v171_v6 }
  0x2e   :  { %197 = vst.msk [vmem:[%s567_s6] sm:$0xf] %vm196_vm3, %v180_v15  ;;  %v108_v40 = vadd.f32 %v98_v13, %v89_v19  ;;  %v109_v41 = vadd.f32 %v98_v13, %v90_v17  ;;  %v110_v47 = vadd.f32 %v98_v13, %v91_v18  ;;  %v111_v48 = vadd.f32 %v98_v13, %v92_v20 }
  0x2f   :  { %198 = vst.msk [vmem:[%s567_s6 + $0x4] sm:$0xf] %vm196_vm3, %v181_v28  ;;  %v112_v9 = vadd.f32 %v98_v13, %v93_v21  ;;  %v113_v10 = vadd.f32 %v98_v13, %v94_v22  ;;  %v95_v11 = vmul.f32 %v247_v60, %v445_v62  ;;  %v96_v12 = vmul.f32 %v248_v0, %v445_v62 }
  0x30   :  { %199 = vst.msk [vmem:[%s567_s6 + $0x8] sm:$0xf] %vm196_vm3, %v182_v7  ;;  %v156_v14 = vadd.f32 %v267_v51, %v108_v40  ;;  %v157_v19 = vadd.f32 %v268_v57, %v109_v41  ;;  %v158_v17 = vadd.f32 %v271_v58, %v110_v47  ;;  %v159_v60 = vadd.f32 %v272_v63, %v111_v48 }
  0x31   :  { %200 = vst.msk [vmem:[%s567_s6 + $0xc] sm:$0xf] %vm196_vm3, %v183_v8  ;;  %v160_v45 = vadd.f32 %v275_v1, %v112_v9  ;;  %v161_v51 = vadd.f32 %v276_v3, %v113_v10  ;;  %v114_v62 = vadd.f32 %v98_v13, %v95_v11  ;;  %v115_v38 = vadd.f32 %v98_v13, %v96_v12 }
  0x32   :  { %201 = vst.msk [vmem:[%s567_s6 + $0x10] sm:$0xf] %vm196_vm3, %v184_v29  ;;  %v172_v44 = vmax.f32 %v156_v14, 0.0  ;;  %v173_v57 = vmax.f32 %v157_v19, 0.0  ;;  %v174_v58 = vmax.f32 %v158_v17, 0.0  ;;  %v175_v63 = vmax.f32 %v159_v60, 0.0 }
  0x33   :  { %202 = vst.msk [vmem:[%s567_s6 + $0x14] sm:$0xf] %vm196_vm3, %v185_v2  ;;  %v176_v0 = vmax.f32 %v160_v45, 0.0  ;;  %v177_v1 = vmax.f32 %v161_v51, 0.0  ;;  %v162_v54 = vadd.f32 %v279_v4, %v114_v62  ;;  %v163_v3 = vadd.f32 %v280_v5, %v115_v38 }
  0x34   :  { %203 = vst.msk [vmem:[%s567_s6 + $0x18] sm:$0xf] %vm196_vm3, %v186_v16  ;;  %v188_v13 = vpack.c.bf16 %v172_v44, %v172_v44  ;;  %v189_v18 = vpack.c.bf16 %v173_v57, %v173_v57  ;;  %v190_v20 = vpack.c.bf16 %v174_v58, %v174_v58  ;;  %v191_v21 = vpack.c.bf16 %v175_v63, %v175_v63 }
  0x35   :  { %204 = vst.msk [vmem:[%s567_s6 + $0x1c] sm:$0xf] %vm196_vm3, %v187_v35  ;;  %v178_v22 = vmax.f32 %v162_v54, 0.0  ;;  %v179_v23 = vmax.f32 %v163_v3, 0.0  ;;  %v192_v55 = vpack.c.bf16 %v176_v0, %v176_v0  ;;  %v193_v4 = vpack.c.bf16 %v177_v1, %v177_v1 }
  0x36   :  { %205 = vst.msk [vmem:[%s567_s6 + $0x20] sm:$0xf] %vm196_vm3, %v188_v13 }
  0x37   :  { %206 = vst.msk [vmem:[%s567_s6 + $0x24] sm:$0xf] %vm196_vm3, %v189_v18  ;;  %v194_v5 = vpack.c.bf16 %v178_v22, %v178_v22  ;;  %v195_v24 = vpack.c.bf16 %v179_v23, %v179_v23 }
  0x38   :  { %207 = vst.msk [vmem:[%s567_s6 + $0x28] sm:$0xf] %vm196_vm3, %v190_v20 }
  0x39   :  { %208 = vst.msk [vmem:[%s567_s6 + $0x2c] sm:$0xf] %vm196_vm3, %v191_v21 }
  0x3a   :  { %209 = vst.msk [vmem:[%s567_s6 + $0x30] sm:$0xf] %vm196_vm3, %v192_v55 }
  0x3b   :  { %210 = vst.msk [vmem:[%s567_s6 + $0x34] sm:$0xf] %vm196_vm3, %v193_v4 }
  0x3c   :  { %211 = vst.msk [vmem:[%s567_s6 + $0x38] sm:$0xf] %vm196_vm3, %v194_v5 }
  0x3d   :  { %212 = vst.msk [vmem:[%s567_s6 + $0x3c] sm:$0xf] %vm196_vm3, %v195_v24 }

// kernel: encoder_forward.14
= control target key start
LH: loop header
LB: loop body
LE: loop exit
PB: predicated region body
PF: predicated region fallthrough
CT: control target
= control target key end

     0   :  { %vm136_vm0 = vcmask 1043456   ;;  %vm22_vm1 = vcmask 64512   ;;  %vm694_vm2 = vcmask 1042432   ;;  %vm695_vm3 = vcmask 1046532   ;;  %s4714_s1 = inlined_call_operand.vmem [shape: bf16[9,8,8], index: 1, kind: input, shape index: {}]   ;;  %s4715_s0 = inlined_call_operand.vmem [shape: bf16[2,10,10,8], index: 0, kind: input, shape index: {}]   ;;  %s4716_s2 = inlined_call_operand.vmem [shape: bf16[128,8], index: 2, kind: output, shape index: {0}]   ;;  %s4717_s3 = inlined_call_operand.vmem [shape: f32[1,8], index: 3, kind: output, shape index: {1}]   ;;  %s4718_s4 = inlined_call_operand.vmem [shape: f32[1,8], index: 4, kind: output, shape index: {2}]  }
   0x1   :  { %v71_v0 = vld [vmem:[%s4714_s1] sm:$0xf]  ;;  %v3189_v2 = vld [vmem:[%s4715_s0 + $0x24] sm:$0xf0]  ;;  %v2821_v5 = vld [vmem:[%s4715_s0 + $0x50] sm:$0xf] }
   0x2   :  { %v2813_v1 = vld [vmem:[%s4715_s0 + $0x20] sm:$0xf]  ;;  %v138_v3 = vsel %vm136_vm0, %v71_v0, 0  ;;  %v3191_v6 = vld [vmem:[%s4715_s0 + $0x54] sm:$0xf0]  ;;  %vm3345_vm4 = vmor %vm694_vm2, %vm695_vm3  ;;  %vm2677_vm8 = vcmask 60416  }
   0x3   :  { %v2814_v4 = vor.u32 %v3189_v2, %v2813_v1  ;;  %3211 = vmatpush.bf16.msra.mxu1 %v138_v3  ;;  %3212 = vmatpush.bf16.msra.mxu2 %v138_v3  ;;  %v2822_v7 = vor.u32 %v3191_v6, %v2821_v5  ;;  %v2843_v8 = vld [vmem:[%s4714_s1 + $0x4] sm:$0xf]  ;;  %v2868_v9 = vld [vmem:[%s4714_s1 + $0x8] sm:$0xf]  ;;  %v2829_v10 = vld [vmem:[%s4715_s0 + $0x70] sm:$0xf] }
   0x4   :  { %v547_v11 = vsel %vm136_vm0, %v2843_v8, 0  ;;  %3213 = vmatpush.bf16.msra.mxu3 %v138_v3  ;;  %v828_v12 = vsel %vm136_vm0, %v2868_v9, 0  ;;  %v3193_v13 = vld [vmem:[%s4715_s0 + $0x74] sm:$0xf0]  ;;  %v2893_v14 = vld [vmem:[%s4714_s1 + $0xc] sm:$0xf]  ;;  %147 = vmatpush.bf16.msra.mxu0 %v138_v3 }
   0x5   :  { %v2830_v15 = vor.u32 %v3193_v13, %v2829_v10  ;;  %v1011_v16 = vsel %vm136_vm0, %v2893_v14, 0  ;;  %v2805_v17 = vld [vmem:[%s4715_s0] sm:$0xf]  ;;  %v3187_v18 = vld [vmem:[%s4715_s0 + $0x4] sm:$0xf0]  ;;  %vm19_vm9 = vcmask 57344  }
   0x6   :  { %2837 = vmatmul.msk.bf16.vlgmr.msra.gmra.mxu1 %vm22_vm1, %v2814_v4  ;;  %2839 = vmatmul.msk.bf16.vlgmr.msra.gmra.mxu2 %vm22_vm1, %v2822_v7  ;;  %v2806_v19 = vor.u32 %v3187_v18, %v2805_v17  ;;  %v2966_v20 = vld [vmem:[%s4714_s1 + $0x10] sm:$0xf]  ;;  %v221_v21 = vld [vmem:[%s4715_s0] sm:$0xf]  ;;  %v223_v23 = vld [vmem:[%s4715_s0 + $0x8] sm:$0xf] }
   0x7   :  { %556 = vmatpush.bf16.msrb.mxu1 %v547_v11  ;;  %837 = vmatpush.bf16.msrb.mxu2 %v828_v12  ;;  %v1417_v22 = vsel %vm136_vm0, %v2966_v20, 0  ;;  %v257_v24 = vshrl.u32 %v221_v21, 16  ;;  %v260_v25 = vshll.u32 %v221_v21, 16  ;;  %v271_v26 = vshrl.u32 %v223_v23, 16  ;;  %v2817_v28 = vld [vmem:[%s4715_s0 + $0x30] sm:$0xf] }
   0x8   :  { %2841 = vmatmul.msk.bf16.vlgmr.msra.gmra.mxu3 %vm22_vm1, %v2830_v15  ;;  %2835 = vmatmul.msk.bf16.vlgmr.msra.gmra.mxu0 %vm22_vm1, %v2806_v19  ;;  %v274_v27 = vshll.u32 %v223_v23, 16  ;;  %v3190_v29 = vld [vmem:[%s4715_s0 + $0x34] sm:$0xf0]  ;;  %v2825_v30 = vld [vmem:[%s4715_s0 + $0x60] sm:$0xf] }
   0x9   :  { %1020 = vmatpush.bf16.msrb.mxu3 %v1011_v16  ;;  %1426 = vmatpush.bf16.msrb.mxu0 %v1417_v22  ;;  %v3192_v31 = vld [vmem:[%s4715_s0 + $0x64] sm:$0xf0]  ;;  %v222_v32 = vld [vmem:[%s4715_s0 + $0x4] sm:$0x1]  ;;  %v224_v33 = vld [vmem:[%s4715_s0 + $0xc] sm:$0x1]  ;;  %v2818_v46 = vor.u32 %v3190_v29, %v2817_v28 }
   0xa   :  { %v259_v34 = vrot.slane %v257_v24, 4  ;;  %v3023_v35 = vld [vmem:[%s4714_s1 + $0x14] sm:$0xf]  ;;  %v2833_v36 = vld [vmem:[%s4715_s0 + $0x80] sm:$0xf]  ;;  %v262_v38 = vrot.slane %v260_v25, 5  ;;  %v2826_v50 = vor.u32 %v3192_v31, %v2825_v30 }
   0xb   :  { %v3194_v37 = vld [vmem:[%s4715_s0 + $0x84] sm:$0xf0]  ;;  %v273_v39 = vrot.slane %v271_v26, 4  ;;  %v276_v40 = vrot.slane %v274_v27, 5  ;;  %v1695_v41 = vsel %vm136_vm0, %v3023_v35, 0  ;;  %v266_v51 = vshll.u32 %v222_v32, 16 }
   0xc   :  { %v3048_v42 = vld [vmem:[%s4714_s1 + $0x18] sm:$0xf]  ;;  %v630_v43 = vld [vmem:[%s4715_s0] sm:$0xe]  ;;  %v631_v44 = vld [vmem:[%s4715_s0 + $0x4] sm:$0x1]  ;;  %1704 = vmatpush.bf16.msra.mxu1 %v1695_v41  ;;  %v263_v54 = vor.u32 %v262_v38, %v259_v34  ;;  %v2834_v58 = vor.u32 %v3194_v37, %v2833_v36 }
   0xd   :  { %v1878_v45 = vsel %vm136_vm0, %v3048_v42, 0  ;;  %v632_v47 = vld [vmem:[%s4715_s0 + $0x8] sm:$0xe]  ;;  %v633_v48 = vld [vmem:[%s4715_s0 + $0xc] sm:$0x1]  ;;  %v280_v52 = vshll.u32 %v224_v33, 16  ;;  %v277_v55 = vor.u32 %v276_v40, %v273_v39 }
   0xe   :  { %1887 = vmatpush.bf16.msra.mxu2 %v1878_v45  ;;  %v3121_v49 = vld [vmem:[%s4714_s1 + $0x1c] sm:$0xf]  ;;  %v2852_v56 = vrot.slane %v630_v43, 9  ;;  %v699_v57 = vrot.slane %v631_v44, 5  ;;  %v2853_v60 = vrot.slane %v632_v47, 9  ;;  %v703_v61 = vrot.slane %v633_v48, 5 }
   0xf   :  { %v2284_v53 = vsel %vm136_vm0, %v3121_v49, 0  ;;  %v2809_v62 = vld [vmem:[%s4715_s0 + $0x10] sm:$0xf]  ;;  %v3188_v63 = vld [vmem:[%s4715_s0 + $0x14] sm:$0xf0]  ;;  %v268_v1 = vrot.slane %v266_v51, 5 }
  0x10   :  { %2293 = vmatpush.bf16.msra.mxu3 %v2284_v53  ;;  %vm253_vm5 = vsmask.f32 3328  ;;  %vm254_vm6 = vsmask.f32 7440  ;;  %v225_v0 = vld [vmem:[%s4715_s0 + $0x10] sm:$0xf]  ;;  %v700_v6 = vsel %vm3345_vm4, %v2852_v56, %v699_v57  ;;  %v2810_v7 = vor.u32 %v3188_v63, %v2809_v62 }
  0x11   :  { %v282_v2 = vrot.slane %v280_v52, 5  ;;  %v227_v3 = vld [vmem:[%s4715_s0 + $0x18] sm:$0xf]  ;;  %v264_v4 = vrot.slane %v263_v54, 4  ;;  %v278_v5 = vrot.slane %v277_v55, 4  ;;  %vm3366_vm7 = vmor %vm253_vm5, %vm254_vm6  ;;  %v704_v9 = vsel %vm3345_vm4, %v2853_v60, %v703_v61 }
  0x12   :  { %v285_v10 = vshrl.u32 %v225_v0, 16  ;;  %v288_v11 = vshll.u32 %v225_v0, 16  ;;  %v299_v12 = vshrl.u32 %v227_v3, 16  ;;  %v302_v13 = vshll.u32 %v227_v3, 16  ;;  %v2934_v14 = vld [vmem:[%s4715_s0 + $0x8] sm:$0xf] }
  0x13   :  { %v2935_v15 = vld [vmem:[%s4715_s0 + $0xc] sm:$0x1]  ;;  %v779_v16 = vunpack.c.l.b16 %v700_v6  ;;  %v2936_v17 = vld [vmem:[%s4715_s0 + $0x10] sm:$0xf]  ;;  %v1127_v18 = vshrl.u32 %v2934_v14, 16  ;;  %v1130_v19 = vshll.u32 %v2934_v14, 16  ;;  %v269_v20 = vsel %vm3366_vm7, %v264_v4, %v268_v1 }
  0x14   :  { %v283_v21 = vsel %vm3366_vm7, %v278_v5, %v282_v2  ;;  %v780_v22 = vunpack.c.l.b16 %v704_v9  ;;  %v2937_v23 = vld [vmem:[%s4715_s0 + $0x14] sm:$0x1]  ;;  %v1136_v24 = vshll.u32 %v2935_v15, 16  ;;  %v287_v25 = vrot.slane %v285_v10, 4  ;;  %v3178_v29 = vld [vmem:[%s4714_s1 + $0x20] sm:$0xf] }
  0x15   :  { %v1129_v26 = vrot.slane %v1127_v18, 4  ;;  %v1132_v27 = vrot.slane %v1130_v19, 5  ;;  %v1141_v28 = vshrl.u32 %v2936_v17, 16  ;;  %v226_v30 = vld [vmem:[%s4715_s0 + $0x14] sm:$0x1]  ;;  %v290_v31 = vrot.slane %v288_v11, 5 }
  0x16   :  { %2838 = vmatmul.msk.bf16.gmra.mxu1 %vm22_vm1, %v2818_v46  ;;  %2840 = vmatmul.msk.bf16.gmra.mxu2 %vm22_vm1, %v2826_v50  ;;  %v301_v32 = vrot.slane %v299_v12, 4  ;;  %v304_v33 = vrot.slane %v302_v13, 5  ;;  %v1144_v34 = vshll.u32 %v2936_v17, 16  ;;  %v228_v35 = vld [vmem:[%s4715_s0 + $0x1c] sm:$0x1]  ;;  %v1138_v37 = vrot.slane %v1136_v24, 5 }
  0x17   :  { %v1133_v36 = vor.u32 %v1132_v27, %v1129_v26  ;;  %v1143_v38 = vrot.slane %v1141_v28, 4  ;;  %v1150_v39 = vshll.u32 %v2937_v23, 16  ;;  %v498_v40 = vunpack.c.l.b16 %v269_v20  ;;  %v2896_v42 = vld [vmem:[%s4715_s0 + $0x8] sm:$0xf]  ;;  %v3195_v43 = vld [vmem:[%s4715_s0 + $0xc] sm:$0xf0] }
  0x18   :  { %2842 = vmatmul.msk.bf16.gmra.mxu3 %vm22_vm1, %v2834_v58  ;;  %2836 = vmatmul.msk.bf16.gmra.mxu0 %vm22_vm1, %v2810_v7  ;;  %v499_v41 = vunpack.c.l.b16 %v283_v21  ;;  %v1146_v44 = vrot.slane %v1144_v34, 5  ;;  %v2562_v45 = vsel %vm136_vm0, %v3178_v29, 0  ;;  %v294_v46 = vshll.u32 %v226_v30, 16  ;;  %v634_v47 = vld [vmem:[%s4715_s0 + $0x10] sm:$0xe] }
  0x19   :  { %v635_v48 = vld [vmem:[%s4715_s0 + $0x14] sm:$0x1]  ;;  %v1134_v49 = vrot.slane %v1133_v36, 4  ;;  %2571 = vmatpush.bf16.msra.mxu0 %v2562_v45  ;;  %v308_v50 = vshll.u32 %v228_v35, 16  ;;  %v636_v51 = vld [vmem:[%s4715_s0 + $0x18] sm:$0xe]  ;;  %v2897_v55 = vor.u32 %v3195_v43, %v2896_v42  ;;  %v291_v56 = vor.u32 %v290_v31, %v287_v25 }
  0x1a   :  { %v637_v52 = vld [vmem:[%s4715_s0 + $0x1c] sm:$0x1]  ;;  %v1147_v53 = vor.u32 %v1146_v44, %v1143_v38  ;;  %v1152_v54 = vrot.slane %v1150_v39, 5  ;;  %v305_v57 = vor.u32 %v304_v33, %v301_v32  ;;  %v514_v60 = vpack.c.b16 %v499_v41, %v498_v40  ;;  %v2938_v0 = vld [vmem:[%s4715_s0 + $0x18] sm:$0xf] }
  0x1b   :  { %v1139_v58 = vsel %vm3366_vm7, %v1134_v49, %v1138_v37  ;;  %v795_v61 = vpack.c.b16 %v780_v22, %v779_v16  ;;  %v2854_v62 = vrot.slane %v634_v47, 9  ;;  %v707_v1 = vrot.slane %v635_v48, 5  ;;  %v229_v9 = vld [vmem:[%s4715_s0 + $0x20] sm:$0xf]  ;;  %v2939_v13 = vld [vmem:[%s4715_s0 + $0x1c] sm:$0x1] }
  0x1c   :  { %v1148_v63 = vrot.slane %v1147_v53, 4  ;;  %v2855_v2 = vrot.slane %v636_v51, 9  ;;  %v711_v3 = vrot.slane %v637_v52, 5  ;;  %v1368_v4 = vunpack.c.l.b16 %v1139_v58  ;;  %v2940_v15 = vld [vmem:[%s4715_s0 + $0x20] sm:$0xf] }
  0x1d   :  { %v296_v5 = vrot.slane %v294_v46, 5  ;;  %v310_v6 = vrot.slane %v308_v50, 5  ;;  %v292_v10 = vrot.slane %v291_v56, 4  ;;  %v306_v11 = vrot.slane %v305_v57, 4  ;;  %v231_v20 = vld [vmem:[%s4715_s0 + $0x28] sm:$0xf] }
  0x1e   :  { %v1153_v7 = vsel %vm3366_vm7, %v1148_v63, %v1152_v54  ;;  %v1155_v14 = vshrl.u32 %v2938_v0, 16  ;;  %v1158_v16 = vshll.u32 %v2938_v0, 16  ;;  %v708_v17 = vsel %vm3345_vm4, %v2854_v62, %v707_v1  ;;  %v2941_v22 = vld [vmem:[%s4715_s0 + $0x24] sm:$0x1]  ;;  %v232_v41 = vld [vmem:[%s4715_s0 + $0x2c] sm:$0x1] }
  0x1f   :  { %v1369_v12 = vunpack.c.l.b16 %v1153_v7  ;;  %v712_v18 = vsel %vm3345_vm4, %v2855_v2, %v711_v3  ;;  %v313_v21 = vshrl.u32 %v229_v9, 16  ;;  %v316_v23 = vshll.u32 %v229_v9, 16  ;;  %v230_v36 = vld [vmem:[%s4715_s0 + $0x24] sm:$0x1]  ;;  %v2900_v47 = vld [vmem:[%s4715_s0 + $0x18] sm:$0xf] }
  0x20   :  { %v1157_v24 = vrot.slane %v1155_v14, 4  ;;  %v1160_v25 = vrot.slane %v1158_v16, 5  ;;  %v1164_v26 = vshll.u32 %v2939_v13, 16  ;;  %v297_v27 = vsel %vm3366_vm7, %v292_v10, %v296_v5  ;;  %v3196_v50 = vld [vmem:[%s4715_s0 + $0x1c] sm:$0xf0] }
  0x21   :  { %v1384_v19 = vpack.c.b16 %v1369_v12, %v1368_v4  ;;  %v311_v28 = vsel %vm3366_vm7, %v306_v11, %v310_v6  ;;  %v1169_v29 = vshrl.u32 %v2940_v15, 16  ;;  %v1172_v30 = vshll.u32 %v2940_v15, 16  ;;  %v638_v58 = vld [vmem:[%s4715_s0 + $0x20] sm:$0xe]  ;;  %v640_v0 = vld [vmem:[%s4715_s0 + $0x28] sm:$0xe] }
  0x22   :  { %v327_v31 = vshrl.u32 %v231_v20, 16  ;;  %v330_v32 = vshll.u32 %v231_v20, 16  ;;  %v1161_v33 = vor.u32 %v1160_v25, %v1157_v24  ;;  %v1178_v34 = vshll.u32 %v2941_v22, 16  ;;  %v2942_v2 = vld [vmem:[%s4715_s0 + $0x28] sm:$0xf] }
  0x23   :  { %v781_v35 = vunpack.c.l.b16 %v708_v17  ;;  %v1166_v37 = vrot.slane %v1164_v26, 5  ;;  %v1171_v38 = vrot.slane %v1169_v29, 4  ;;  %v1174_v39 = vrot.slane %v1172_v30, 5  ;;  %v641_v5 = vld [vmem:[%s4715_s0 + $0x2c] sm:$0x1] }
  0x24   :  { %v782_v40 = vunpack.c.l.b16 %v712_v18  ;;  %v315_v42 = vrot.slane %v313_v21, 4  ;;  %v318_v43 = vrot.slane %v316_v23, 5  ;;  %v1162_v44 = vrot.slane %v1161_v33, 4  ;;  %v2944_v9 = vld [vmem:[%s4715_s0 + $0x30] sm:$0xf] }
  0x25   :  { %v500_v45 = vunpack.c.l.b16 %v297_v27  ;;  %v501_v46 = vunpack.c.l.b16 %v311_v28  ;;  %v1175_v48 = vor.u32 %v1174_v39, %v1171_v38  ;;  %v1180_v49 = vrot.slane %v1178_v34, 5  ;;  %v233_v13 = vld [vmem:[%s4715_s0 + $0x30] sm:$0xf]  ;;  %v2943_v17 = vld [vmem:[%s4715_s0 + $0x2c] sm:$0x1] }
  0x26   :  { %2844 = vmatmul.msk.bf16.vlgmr.msrb.gmra.mxu1 %vm22_vm1, %v514_v60  ;;  %2869 = vmatmul.msk.bf16.vlgmr.msrb.gmra.mxu2 %vm22_vm1, %v795_v61  ;;  %v322_v51 = vshll.u32 %v230_v36, 16  ;;  %v329_v52 = vrot.slane %v327_v31, 4  ;;  %v332_v53 = vrot.slane %v330_v32, 5  ;;  %v336_v54 = vshll.u32 %v232_v41, 16  ;;  %v639_v60 = vld [vmem:[%s4715_s0 + $0x24] sm:$0x1] }
  0x27   :  { %v1176_v56 = vrot.slane %v1175_v48, 4  ;;  %v319_v57 = vor.u32 %v318_v43, %v315_v42  ;;  %v515_v61 = vpack.c.b16 %v501_v46, %v500_v45  ;;  %v796_v62 = vpack.c.b16 %v782_v40, %v781_v35  ;;  %v2945_v18 = vld [vmem:[%s4715_s0 + $0x34] sm:$0x1]  ;;  %v235_v25 = vld [vmem:[%s4715_s0 + $0x38] sm:$0xf] }
  0x28   :  { %2926 = vmatmul.msk.bf16.vlgmr.msrb.gmra.mxu3 %vm22_vm1, %v2897_v55  ;;  %2967 = vmatmul.msk.bf16.vlgmr.msrb.gmra.mxu0 %vm22_vm1, %v1384_v19  ;;  %v1167_v55 = vsel %vm3366_vm7, %v1162_v44, %v1166_v37  ;;  %v2901_v63 = vor.u32 %v3196_v50, %v2900_v47  ;;  %v324_v3 = vrot.slane %v322_v51, 5  ;;  %v333_v4 = vor.u32 %v332_v53, %v329_v52  ;;  %v234_v41 = vld [vmem:[%s4715_s0 + $0x34] sm:$0x1]  ;;  %v236_v44 = vld [vmem:[%s4715_s0 + $0x3c] sm:$0x1] }
  0x29   :  { %v1181_v1 = vsel %vm3366_vm7, %v1176_v56, %v1180_v49  ;;  %v1370_v6 = vunpack.c.l.b16 %v1167_v55  ;;  %v338_v10 = vrot.slane %v336_v54, 5  ;;  %v2856_v11 = vrot.slane %v638_v58, 9  ;;  %v2904_v52 = vld [vmem:[%s4715_s0 + $0x28] sm:$0xf]  ;;  %v3197_v55 = vld [vmem:[%s4715_s0 + $0x2c] sm:$0xf0] }
  0x2a   :  { %v1371_v7 = vunpack.c.l.b16 %v1181_v1  ;;  %v715_v12 = vrot.slane %v639_v60, 5  ;;  %v1183_v14 = vshrl.u32 %v2942_v2, 16  ;;  %v320_v15 = vrot.slane %v319_v57, 4 }
  0x2b   :  { %v2857_v16 = vrot.slane %v640_v0, 9  ;;  %v719_v19 = vrot.slane %v641_v5, 5  ;;  %v1186_v21 = vshll.u32 %v2942_v2, 16  ;;  %v1197_v22 = vshrl.u32 %v2944_v9, 16 }
  0x2c   :  { %v1185_v20 = vrot.slane %v1183_v14, 4  ;;  %v334_v23 = vrot.slane %v333_v4, 4  ;;  %v1385_v24 = vpack.c.b16 %v1371_v7, %v1370_v6  ;;  %v341_v26 = vshrl.u32 %v233_v13, 16  ;;  %v2946_v4 = vld [vmem:[%s4715_s0 + $0x38] sm:$0xf] }
  0x2d   :  { %v1200_v27 = vshll.u32 %v2944_v9, 16  ;;  %v344_v28 = vshll.u32 %v233_v13, 16  ;;  %v1188_v29 = vrot.slane %v1186_v21, 5  ;;  %v1192_v30 = vshll.u32 %v2943_v17, 16  ;;  %v2948_v9 = vld [vmem:[%s4715_s0 + $0x40] sm:$0xf] }
  0x2e   :  { %v1206_v31 = vshll.u32 %v2945_v18, 16  ;;  %v325_v32 = vsel %vm3366_vm7, %v320_v15, %v324_v3  ;;  %v716_v33 = vsel %vm3345_vm4, %v2856_v11, %v715_v12  ;;  %v1199_v34 = vrot.slane %v1197_v22, 4  ;;  %v643_v3 = vld [vmem:[%s4715_s0 + $0x34] sm:$0x1]  ;;  %v644_v12 = vld [vmem:[%s4715_s0 + $0x38] sm:$0xe] }
  0x2f   :  { %v1202_v35 = vrot.slane %v1200_v27, 5  ;;  %v720_v36 = vsel %vm3345_vm4, %v2857_v16, %v719_v19  ;;  %v355_v37 = vshrl.u32 %v235_v25, 16  ;;  %v358_v38 = vshll.u32 %v235_v25, 16  ;;  %v645_v13 = vld [vmem:[%s4715_s0 + $0x3c] sm:$0x1] }
  0x30   :  { %v1189_v39 = vor.u32 %v1188_v29, %v1185_v20  ;;  %v339_v40 = vsel %vm3366_vm7, %v334_v23, %v338_v10  ;;  %v343_v42 = vrot.slane %v341_v26, 4  ;;  %v346_v45 = vrot.slane %v344_v28, 5  ;;  %v237_v19 = vld [vmem:[%s4715_s0 + $0x50] sm:$0xf]  ;;  %v2947_v22 = vld [vmem:[%s4715_s0 + $0x3c] sm:$0x1] }
  0x31   :  { %v1203_v43 = vor.u32 %v1202_v35, %v1199_v34  ;;  %v1194_v47 = vrot.slane %v1192_v30, 5  ;;  %v1208_v48 = vrot.slane %v1206_v31, 5  ;;  %v502_v49 = vunpack.c.l.b16 %v325_v32  ;;  %v2949_v23 = vld [vmem:[%s4715_s0 + $0x44] sm:$0x1]  ;;  %v239_v31 = vld [vmem:[%s4715_s0 + $0x58] sm:$0xf] }
  0x32   :  { %v1190_v46 = vrot.slane %v1189_v39, 4  ;;  %v783_v50 = vunpack.c.l.b16 %v716_v33  ;;  %v784_v51 = vunpack.c.l.b16 %v720_v36  ;;  %v503_v54 = vunpack.c.l.b16 %v339_v40  ;;  %v238_v35 = vld [vmem:[%s4715_s0 + $0x54] sm:$0x1] }
  0x33   :  { %v1204_v53 = vrot.slane %v1203_v43, 4  ;;  %v350_v56 = vshll.u32 %v234_v41, 16  ;;  %v357_v57 = vrot.slane %v355_v37, 4  ;;  %v360_v58 = vrot.slane %v358_v38, 5 }
  0x34   :  { %v364_v60 = vshll.u32 %v236_v44, 16  ;;  %v797_v1 = vpack.c.b16 %v784_v51, %v783_v50  ;;  %v2905_v2 = vor.u32 %v3197_v55, %v2904_v52  ;;  %v516_v5 = vpack.c.b16 %v503_v54, %v502_v49 }
  0x35   :  { %v1209_v0 = vsel %vm3366_vm7, %v1204_v53, %v1208_v48  ;;  %v352_v6 = vrot.slane %v350_v56, 5  ;;  %v361_v7 = vor.u32 %v360_v58, %v357_v57  ;;  %v1211_v10 = vshrl.u32 %v2946_v4, 16  ;;  %v2908_v58 = vld [vmem:[%s4715_s0 + $0x38] sm:$0xf] }
  0x36   :  { %2845 = vmatmul.msk.bf16.gmra.mxu1 %vm22_vm1, %v515_v61  ;;  %2870 = vmatmul.msk.bf16.gmra.mxu2 %vm22_vm1, %v796_v62  ;;  %v347_v61 = vor.u32 %v346_v45, %v343_v42  ;;  %v642_v62 = vld [vmem:[%s4715_s0 + $0x30] sm:$0xe]  ;;  %v366_v11 = vrot.slane %v364_v60, 5  ;;  %v1373_v16 = vunpack.c.l.b16 %v1209_v0  ;;  %v723_v18 = vrot.slane %v643_v3, 5 }
  0x37   :  { %v2858_v14 = vrot.slane %v642_v62, 9  ;;  %v1213_v20 = vrot.slane %v1211_v10, 4  ;;  %v1214_v21 = vshll.u32 %v2946_v4, 16  ;;  %v1228_v25 = vshll.u32 %v2948_v9, 16  ;;  %v646_v3 = vld [vmem:[%s4715_s0 + $0x50] sm:$0xe] }
  0x38   :  { %2927 = vmatmul.msk.bf16.gmra.mxu3 %vm22_vm1, %v2901_v63  ;;  %2968 = vmatmul.msk.bf16.gmra.mxu0 %vm22_vm1, %v1385_v24  ;;  %v1195_v63 = vsel %vm3366_vm7, %v1190_v46, %v1194_v47  ;;  %v348_v17 = vrot.slane %v347_v61, 4  ;;  %v1225_v24 = vshrl.u32 %v2948_v9, 16  ;;  %v362_v26 = vrot.slane %v361_v7, 4  ;;  %v240_v47 = vld [vmem:[%s4715_s0 + $0x5c] sm:$0x1] }
  0x39   :  { %v1372_v15 = vunpack.c.l.b16 %v1195_v63  ;;  %v2859_v27 = vrot.slane %v644_v12, 9  ;;  %v727_v28 = vrot.slane %v645_v13, 5  ;;  %v1216_v29 = vrot.slane %v1214_v21, 5  ;;  %v3198_v61 = vld [vmem:[%s4715_s0 + $0x3c] sm:$0xf0] }
  0x3a   :  { %v369_v32 = vshrl.u32 %v237_v19, 16  ;;  %v372_v33 = vshll.u32 %v237_v19, 16  ;;  %v1227_v34 = vrot.slane %v1225_v24, 4  ;;  %v1220_v37 = vshll.u32 %v2947_v22, 16  ;;  %v241_v9 = vld [vmem:[%s4715_s0 + $0x60] sm:$0xf] }
  0x3b   :  { %v1386_v30 = vpack.c.b16 %v1373_v16, %v1372_v15  ;;  %v1217_v36 = vor.u32 %v1216_v29, %v1213_v20  ;;  %v1230_v38 = vrot.slane %v1228_v25, 5  ;;  %v1234_v39 = vshll.u32 %v2949_v23, 16  ;;  %v2950_v10 = vld [vmem:[%s4715_s0 + $0x58] sm:$0xf]  ;;  %v647_v15 = vld [vmem:[%s4715_s0 + $0x54] sm:$0x1] }
  0x3c   :  { %v353_v40 = vsel %vm3366_vm7, %v348_v17, %v352_v6  ;;  %v724_v41 = vsel %vm3345_vm4, %v2858_v14, %v723_v18  ;;  %v728_v42 = vsel %vm3345_vm4, %v2859_v27, %v727_v28  ;;  %v383_v43 = vshrl.u32 %v239_v31, 16  ;;  %v648_v16 = vld [vmem:[%s4715_s0 + $0x58] sm:$0xe]  ;;  %v649_v18 = vld [vmem:[%s4715_s0 + $0x5c] sm:$0x1] }
  0x3d   :  { %v386_v44 = vshll.u32 %v239_v31, 16  ;;  %v1231_v45 = vor.u32 %v1230_v38, %v1227_v34  ;;  %v367_v46 = vsel %vm3366_vm7, %v362_v26, %v366_v11  ;;  %v371_v48 = vrot.slane %v369_v32, 4  ;;  %v2952_v11 = vld [vmem:[%s4715_s0 + $0x60] sm:$0xf]  ;;  %v243_v21 = vld [vmem:[%s4715_s0 + $0x68] sm:$0xf] }
  0x3e   :  { %v374_v49 = vrot.slane %v372_v33, 5  ;;  %v378_v50 = vshll.u32 %v238_v35, 16  ;;  %v1218_v51 = vrot.slane %v1217_v36, 4  ;;  %v1222_v52 = vrot.slane %v1220_v37, 5  ;;  %v2951_v27 = vld [vmem:[%s4715_s0 + $0x5c] sm:$0x1] }
  0x3f   :  { %v1232_v53 = vrot.slane %v1231_v45, 4  ;;  %v1236_v54 = vrot.slane %v1234_v39, 5  ;;  %v504_v55 = vunpack.c.l.b16 %v353_v40  ;;  %v785_v56 = vunpack.c.l.b16 %v724_v41  ;;  %v242_v45 = vld [vmem:[%s4715_s0 + $0x64] sm:$0x1] }
  0x40   :  { %v786_v57 = vunpack.c.l.b16 %v728_v42  ;;  %v505_v60 = vunpack.c.l.b16 %v367_v46  ;;  %v385_v62 = vrot.slane %v383_v43, 4  ;;  %v388_v63 = vrot.slane %v386_v44, 5 }
  0x41   :  { %v392_v0 = vshll.u32 %v240_v47, 16  ;;  %v1223_v4 = vsel %vm3366_vm7, %v1218_v51, %v1222_v52  ;;  %v2909_v7 = vor.u32 %v3198_v61, %v2908_v58  ;;  %v1239_v17 = vshrl.u32 %v2950_v10, 16  ;;  %v244_v51 = vld [vmem:[%s4715_s0 + $0x6c] sm:$0x1] }
  0x42   :  { %v798_v6 = vpack.c.b16 %v786_v57, %v785_v56  ;;  %v517_v12 = vpack.c.b16 %v505_v60, %v504_v55  ;;  %v389_v13 = vor.u32 %v388_v63, %v385_v62  ;;  %v1374_v19 = vunpack.c.l.b16 %v1223_v4 }
  0x43   :  { %v394_v14 = vrot.slane %v392_v0, 5  ;;  %v1242_v22 = vshll.u32 %v2950_v10, 16  ;;  %v1253_v23 = vshrl.u32 %v2952_v11, 16  ;;  %v2860_v25 = vrot.slane %v646_v3, 9  ;;  %v3199_v10 = vld [vmem:[%s4715_s0 + $0x5c] sm:$0xf0] }
  0x44   :  { %v397_v26 = vshrl.u32 %v241_v9, 16  ;;  %v1241_v28 = vrot.slane %v1239_v17, 4  ;;  %v400_v29 = vshll.u32 %v241_v9, 16  ;;  %v1256_v33 = vshll.u32 %v2952_v11, 16  ;;  %v651_v9 = vld [vmem:[%s4715_s0 + $0x64] sm:$0x1] }
  0x45   :  { %v1244_v31 = vrot.slane %v1242_v22, 5  ;;  %v1255_v32 = vrot.slane %v1253_v23, 4  ;;  %v390_v34 = vrot.slane %v389_v13, 4  ;;  %v731_v35 = vrot.slane %v647_v15, 5  ;;  %v652_v11 = vld [vmem:[%s4715_s0 + $0x68] sm:$0xe] }
  0x46   :  { %2846 = vmatmul.msk.bf16.gmra.mxu1 %vm22_vm1, %v516_v5  ;;  %2871 = vmatmul.msk.bf16.gmra.mxu2 %vm22_vm1, %v797_v1  ;;  %v375_v1 = vor.u32 %v374_v49, %v371_v48  ;;  %v1237_v5 = vsel %vm3366_vm7, %v1232_v53, %v1236_v54  ;;  %v411_v36 = vshrl.u32 %v243_v21, 16  ;;  %v414_v37 = vshll.u32 %v243_v21, 16  ;;  %v653_v17 = vld [vmem:[%s4715_s0 + $0x6c] sm:$0x1]  ;;  %v2954_v22 = vld [vmem:[%s4715_s0 + $0x68] sm:$0xf] }
  0x47   :  { %v1375_v20 = vunpack.c.l.b16 %v1237_v5  ;;  %v2861_v38 = vrot.slane %v648_v16, 9  ;;  %v735_v39 = vrot.slane %v649_v18, 5  ;;  %v1258_v41 = vrot.slane %v1256_v33, 5 }
  0x48   :  { %2928 = vmatmul.msk.bf16.gmra.mxu3 %vm22_vm1, %v2905_v2  ;;  %2969 = vmatmul.msk.bf16.gmra.mxu0 %vm22_vm1, %v1386_v30  ;;  %v3579_v2 = vrot.slane %v378_v50, 5  ;;  %v376_v24 = vrot.slane %v375_v1, 4  ;;  %v2953_v30 = vld [vmem:[%s4715_s0 + $0x64] sm:$0x1]  ;;  %v1245_v42 = vor.u32 %v1244_v31, %v1241_v28  ;;  %v1248_v43 = vshll.u32 %v2951_v27, 16 }
  0x49   :  { %v1387_v40 = vpack.c.b16 %v1375_v20, %v1374_v19  ;;  %v1262_v44 = vshll.u32 %v2953_v30, 16  ;;  %v399_v46 = vrot.slane %v397_v26, 4  ;;  %v402_v47 = vrot.slane %v400_v29, 5  ;;  %v245_v27 = vld [vmem:[%s4715_s0 + $0x70] sm:$0xf] }
  0x4a   :  { %v1259_v48 = vor.u32 %v1258_v41, %v1255_v32  ;;  %v3215_v49 = vmov 0.0   ;;  %v381_v50 = vsel %vm3366_vm7, %v376_v24, %v3579_v2  ;;  %v413_v52 = vrot.slane %v411_v36, 4  ;;  %v2956_v28 = vld [vmem:[%s4715_s0 + $0x70] sm:$0xf]  ;;  %v247_v31 = vld [vmem:[%s4715_s0 + $0x78] sm:$0xf] }
  0x4b   :  { %27 = vst.msk [vmem:[#allocation2 + $0x20] sm:$0xff] %vm22_vm1, %v3215_v49  ;;  %v416_v53 = vrot.slane %v414_v37, 5  ;;  %v395_v54 = vsel %vm3366_vm7, %v390_v34, %v394_v14  ;;  %v732_v55 = vsel %vm3345_vm4, %v2860_v25, %v731_v35  ;;  %v736_v56 = vsel %vm3345_vm4, %v2861_v38, %v735_v39  ;;  %v2955_v34 = vld [vmem:[%s4715_s0 + $0x6c] sm:$0x1]  ;;  %v2957_v35 = vld [vmem:[%s4715_s0 + $0x74] sm:$0x1] }
  0x4c   :  { %23 = vst.msk [vmem:[#allocation2] sm:$0xff] %vm22_vm1, %v3215_v49  ;;  %v1246_v57 = vrot.slane %v1245_v42, 4  ;;  %v1250_v58 = vrot.slane %v1248_v43, 5  ;;  %v1260_v60 = vrot.slane %v1259_v48, 4  ;;  %v1264_v61 = vrot.slane %v1262_v44, 5 }
  0x4d   :  { %24 = vst.msk [vmem:[#allocation2 + $0x8] sm:$0xff] %vm22_vm1, %v3215_v49  ;;  %v403_v62 = vor.u32 %v402_v47, %v399_v46  ;;  %v406_v63 = vshll.u32 %v242_v45, 16  ;;  %v420_v0 = vshll.u32 %v244_v51, 16  ;;  %v506_v1 = vunpack.c.l.b16 %v381_v50 }
  0x4e   :  { %25 = vst.msk [vmem:[#allocation2 + $0x10] sm:$0xff] %vm22_vm1, %v3215_v49  ;;  %v507_v2 = vunpack.c.l.b16 %v395_v54  ;;  %v417_v3 = vor.u32 %v416_v53, %v413_v52  ;;  %v787_v4 = vunpack.c.l.b16 %v732_v55  ;;  %v788_v5 = vunpack.c.l.b16 %v736_v56 }
  0x4f   :  { %26 = vst.msk [vmem:[#allocation2 + $0x18] sm:$0xff] %vm22_vm1, %v3215_v49  ;;  %v1265_v13 = vsel %vm3366_vm7, %v1260_v60, %v1264_v61  ;;  %v404_v14 = vrot.slane %v403_v62, 4  ;;  %v408_v15 = vrot.slane %v406_v63, 5  ;;  %v3669_v16 = vrot.slane %v420_v0, 5 }
  0x50   :  { %28 = vst.msk [vmem:[#allocation2 + $0x28] sm:$0xff] %vm22_vm1, %v3215_v49  ;;  %v518_v18 = vpack.c.b16 %v507_v2, %v506_v1  ;;  %v418_v19 = vrot.slane %v417_v3, 4  ;;  %v739_v21 = vrot.slane %v651_v9, 5  ;;  %v799_v23 = vpack.c.b16 %v788_v5, %v787_v4  ;;  %v248_v3 = vld [vmem:[%s4715_s0 + $0x7c] sm:$0x1] }
  0x51   :  { %29 = vst.msk [vmem:[#allocation2 + $0x30] sm:$0xff] %vm22_vm1, %v3215_v49  ;;  %v2863_v24 = vrot.slane %v652_v11, 9  ;;  %v1377_v26 = vunpack.c.l.b16 %v1265_v13  ;;  %v743_v30 = vrot.slane %v653_v17, 5  ;;  %v1267_v32 = vshrl.u32 %v2954_v22, 16  ;;  %v655_v17 = vld [vmem:[%s4715_s0 + $0x74] sm:$0x1] }
  0x52   :  { %30 = vst.msk [vmem:[#allocation2 + $0x38] sm:$0xff] %vm22_vm1, %v3215_v49  ;;  %v1270_v33 = vshll.u32 %v2954_v22, 16  ;;  %v1281_v36 = vshrl.u32 %v2956_v28, 16  ;;  %v425_v37 = vshrl.u32 %v245_v27, 16  ;;  %v428_v38 = vshll.u32 %v245_v27, 16 }
  0x53   :  { %31 = vst.msk [vmem:[#allocation2 + $0x40] sm:$0xff] %vm22_vm1, %v3215_v49  ;;  %v1269_v39 = vrot.slane %v1267_v32, 4  ;;  %v439_v42 = vshrl.u32 %v247_v31, 16  ;;  %v1284_v44 = vshll.u32 %v2956_v28, 16  ;;  %v442_v45 = vshll.u32 %v247_v31, 16 }
  0x54   :  { %32 = vst.msk [vmem:[#allocation2 + $0x48] sm:$0xff] %vm22_vm1, %v3215_v49  ;;  %v1283_v43 = vrot.slane %v1281_v36, 4  ;;  %v1276_v47 = vshll.u32 %v2955_v34, 16  ;;  %v1290_v48 = vshll.u32 %v2957_v35, 16  ;;  %v409_v51 = vsel %vm3366_vm7, %v404_v14, %v408_v15  ;;  %v3200_v15 = vld [vmem:[%s4715_s0 + $0x6c] sm:$0xf0] }
  0x55   :  { %33 = vst.msk [vmem:[#allocation2 + $0x50] sm:$0xff] %vm22_vm1, %v3215_v49  ;;  %v1286_v50 = vrot.slane %v1284_v44, 5  ;;  %v427_v53 = vrot.slane %v425_v37, 4  ;;  %v430_v54 = vrot.slane %v428_v38, 5  ;;  %v423_v55 = vsel %vm3366_vm7, %v418_v19, %v3669_v16  ;;  %v654_v16 = vld [vmem:[%s4715_s0 + $0x70] sm:$0xe] }
  0x56   :  { %2847 = vmatmul.msk.bf16.gmra.mxu1 %vm22_vm1, %v517_v12  ;;  %2872 = vmatmul.msk.bf16.gmra.mxu2 %vm22_vm1, %v798_v6  ;;  %v2912_v6 = vld [vmem:[%s4715_s0 + $0x58] sm:$0xf]  ;;  %v1251_v12 = vsel %vm3366_vm7, %v1246_v57, %v1250_v58  ;;  %34 = vst.msk [vmem:[#allocation2 + $0x58] sm:$0xff] %vm22_vm1, %v3215_v49  ;;  %v744_v56 = vsel %vm3345_vm4, %v2863_v24, %v743_v30  ;;  %v246_v57 = vld [vmem:[%s4715_s0 + $0x74] sm:$0x1]  ;;  %v441_v58 = vrot.slane %v439_v42, 4  ;;  %v508_v1 = vunpack.c.l.b16 %v409_v51 }
  0x57   :  { %v1376_v25 = vunpack.c.l.b16 %v1251_v12  ;;  %v2913_v29 = vor.u32 %v3199_v10, %v2912_v6  ;;  %35 = vst.msk [vmem:[#allocation2 + $0x60] sm:$0xff] %vm22_vm1, %v3215_v49  ;;  %v1287_v60 = vor.u32 %v1286_v50, %v1283_v43  ;;  %v444_v61 = vrot.slane %v442_v45, 5  ;;  %v2916_v10 = vld [vmem:[%s4715_s0 + $0x68] sm:$0xf]  ;;  %v656_v22 = vld [vmem:[%s4715_s0 + $0x78] sm:$0xe] }
  0x58   :  { %2929 = vmatmul.msk.bf16.gmra.mxu3 %vm22_vm1, %v2909_v7  ;;  %2970 = vmatmul.msk.bf16.gmra.mxu0 %vm22_vm1, %v1387_v40  ;;  %v650_v7 = vld [vmem:[%s4715_s0 + $0x60] sm:$0xe]  ;;  %36 = vst.msk [vmem:[#allocation2 + $0x68] sm:$0xff] %vm22_vm1, %v3215_v49  ;;  %v1272_v40 = vrot.slane %v1270_v33, 5  ;;  %v1278_v63 = vrot.slane %v1276_v47, 5  ;;  %v1292_v0 = vrot.slane %v1290_v48, 5  ;;  %v509_v5 = vunpack.c.l.b16 %v423_v55 }
  0x59   :  { %v2862_v20 = vrot.slane %v650_v7, 9  ;;  %v1388_v41 = vpack.c.b16 %v1377_v26, %v1376_v25  ;;  %37 = vst.msk [vmem:[#allocation2 + $0x70] sm:$0xff] %vm22_vm1, %v3215_v49  ;;  %v1288_v4 = vrot.slane %v1287_v60, 4  ;;  %v790_v6 = vunpack.c.l.b16 %v744_v56  ;;  %v657_v24 = vld [vmem:[%s4715_s0 + $0x7c] sm:$0x1] }
  0x5a   :  { %38 = vst.msk [vmem:[#allocation2 + $0x78] sm:$0xff] %vm22_vm1, %v3215_v49  ;;  %v1273_v46 = vor.u32 %v1272_v40, %v1269_v39  ;;  %v431_v7 = vor.u32 %v430_v54, %v427_v53  ;;  %v434_v9 = vshll.u32 %v246_v57, 16  ;;  %v445_v11 = vor.u32 %v444_v61, %v441_v58  ;;  %v2960_v27 = vld [vmem:[%s4715_s0 + $0x80] sm:$0xf]  ;;  %v2959_v34 = vld [vmem:[%s4715_s0 + $0x7c] sm:$0x1] }
  0x5b   :  { %v740_v52 = vsel %vm3345_vm4, %v2862_v20, %v739_v21  ;;  %v448_v12 = vshll.u32 %v248_v3, 16  ;;  %v1293_v14 = vsel %vm3366_vm7, %v1288_v4, %v1292_v0  ;;  %v2917_v30 = vor.u32 %v3200_v15, %v2916_v10  ;;  %v249_v33 = vld [vmem:[%s4715_s0 + $0x80] sm:$0xf]  ;;  %v2961_v37 = vld [vmem:[%s4715_s0 + $0x84] sm:$0x1] }
  0x5c   :  { %v1274_v62 = vrot.slane %v1273_v46, 4  ;;  %v789_v2 = vunpack.c.l.b16 %v740_v52  ;;  %v432_v20 = vrot.slane %v431_v7, 4  ;;  %v436_v21 = vrot.slane %v434_v9, 5  ;;  %v251_v42 = vld [vmem:[%s4715_s0 + $0x88] sm:$0xf] }
  0x5d   :  { %v1379_v26 = vunpack.c.l.b16 %v1293_v14  ;;  %v446_v31 = vrot.slane %v445_v11, 4  ;;  %v450_v32 = vrot.slane %v448_v12, 5  ;;  %v2864_v35 = vrot.slane %v654_v16, 9  ;;  %v250_v58 = vld [vmem:[%s4715_s0 + $0x84] sm:$0x1] }
  0x5e   :  { %v1279_v13 = vsel %vm3366_vm7, %v1274_v62, %v1278_v63  ;;  %v800_v19 = vpack.c.b16 %v790_v6, %v789_v2  ;;  %v747_v36 = vrot.slane %v655_v17, 5  ;;  %v2865_v40 = vrot.slane %v656_v22, 9  ;;  %v252_v60 = vld [vmem:[%s4715_s0 + $0x8c] sm:$0x1]  ;;  %v2920_v15 = vld [vmem:[%s4715_s0 + $0x78] sm:$0xf] }
  0x5f   :  { %v1378_v25 = vunpack.c.l.b16 %v1279_v13  ;;  %v1309_v43 = vshrl.u32 %v2960_v27, 16  ;;  %v1312_v44 = vshll.u32 %v2960_v27, 16  ;;  %v453_v46 = vshrl.u32 %v249_v33, 16  ;;  %v3201_v16 = vld [vmem:[%s4715_s0 + $0x7c] sm:$0xf0] }
  0x60   :  { %v456_v47 = vshll.u32 %v249_v33, 16  ;;  %v1304_v48 = vshll.u32 %v2959_v34, 16  ;;  %v1318_v53 = vshll.u32 %v2961_v37, 16  ;;  %v467_v54 = vshrl.u32 %v251_v42, 16  ;;  %v59_v17 = vld [vmem:[#allocation2 + $0x20] sm:$0xff] }
  0x61   :  { %v1389_v45 = vpack.c.b16 %v1379_v26, %v1378_v25  ;;  %v1311_v51 = vrot.slane %v1309_v43, 4  ;;  %v1314_v52 = vrot.slane %v1312_v44, 5  ;;  %v470_v55 = vshll.u32 %v251_v42, 16  ;;  %v659_v25 = vld [vmem:[%s4715_s0 + $0x84] sm:$0x1] }
  0x62   :  { %v437_v56 = vsel %vm3366_vm7, %v432_v20, %v436_v21  ;;  %v451_v57 = vsel %vm3366_vm7, %v446_v31, %v450_v32  ;;  %v748_v62 = vsel %vm3345_vm4, %v2864_v35, %v747_v36  ;;  %v455_v0 = vrot.slane %v453_v46, 4  ;;  %v2964_v31 = vld [vmem:[%s4715_s0 + $0x90] sm:$0xf]  ;;  %v661_v32 = vld [vmem:[%s4715_s0 + $0x8c] sm:$0x1] }
  0x63   :  { %v1315_v61 = vor.u32 %v1314_v52, %v1311_v51  ;;  %v1306_v3 = vrot.slane %v1304_v48, 5  ;;  %v462_v6 = vshll.u32 %v250_v58, 16  ;;  %v469_v7 = vrot.slane %v467_v54, 4  ;;  %v2965_v46 = vld [vmem:[%s4715_s0 + $0x94] sm:$0x1]  ;;  %v63_v58 = vld [vmem:[#allocation2 + $0x40] sm:$0xff] }
  0x64   :  { %v472_v9 = vrot.slane %v470_v55, 5  ;;  %v476_v10 = vshll.u32 %v252_v60, 16  ;;  %v510_v11 = vunpack.c.l.b16 %v437_v56  ;;  %v511_v12 = vunpack.c.l.b16 %v451_v57  ;;  %v3089_v56 = vld [vmem:[%s4715_s0 + $0x10] sm:$0xf]  ;;  %v3091_v57 = vld [vmem:[%s4715_s0 + $0x18] sm:$0xf] }
  0x65   :  { %v1316_v4 = vrot.slane %v1315_v61, 4  ;;  %v791_v13 = vunpack.c.l.b16 %v748_v62  ;;  %v3795_v21 = vrot.slane %v462_v6, 5  ;;  %v1337_v42 = vshrl.u32 %v2964_v31, 16  ;;  %v60_v6 = vld [vmem:[#allocation2 + $0x28] sm:$0xff]  ;;  %20 = vst.msk [vmem:[%s4717_s3] sm:$0x1] %vm19_vm9, %v3215_v49 }
  0x66   :  { %2848 = vmatmul.msk.bf16.gmra.mxu1 %vm22_vm1, %v518_v18  ;;  %2873 = vmatmul.msk.bf16.gmra.mxu2 %vm22_vm1, %v799_v23  ;;  %v519_v18 = vpack.c.b16 %v509_v5, %v508_v1  ;;  %v2958_v23 = vld [vmem:[%s4715_s0 + $0x78] sm:$0xf]  ;;  %v458_v1 = vrot.slane %v456_v47, 5  ;;  %v1320_v5 = vrot.slane %v1318_v53, 5  ;;  %v473_v22 = vor.u32 %v472_v9, %v469_v7  ;;  %21 = vst.msk [vmem:[%s4718_s4] sm:$0x1] %vm19_vm9, %v3215_v49 }
  0x67   :  { %v1295_v28 = vshrl.u32 %v2958_v23, 16  ;;  %v520_v26 = vpack.c.b16 %v511_v12, %v510_v11  ;;  %v759_v48 = vrot.slane %v661_v32, 5  ;;  %v1339_v52 = vrot.slane %v1337_v42, 4  ;;  %v3202_v42 = vld [vmem:[%s4715_s0 + $0x8c] sm:$0xf0] }
  0x68   :  { %2930 = vmatmul.msk.bf16.gmra.mxu3 %vm22_vm1, %v2913_v29  ;;  %2971 = vmatmul.msk.bf16.gmra.mxu0 %vm22_vm1, %v1388_v41  ;;  %v1298_v29 = vshll.u32 %v2958_v23, 16  ;;  %v751_v41 = vrot.slane %v657_v24, 5  ;;  %v1321_v20 = vsel %vm3366_vm7, %v1316_v4, %v1320_v5  ;;  %v3797_v23 = vrot.slane %v476_v10, 5  ;;  %v658_v24 = vld [vmem:[%s4715_s0 + $0x80] sm:$0xe] }
  0x69   :  { %v1297_v38 = vrot.slane %v1295_v28, 4  ;;  %v2921_v28 = vor.u32 %v3201_v16, %v2920_v15  ;;  %v1381_v34 = vunpack.c.l.b16 %v1321_v20  ;;  %v474_v44 = vrot.slane %v473_v22, 4 }
  0x6a   :  { %v1300_v39 = vrot.slane %v1298_v29, 5  ;;  %v752_v63 = vsel %vm3345_vm4, %v2865_v40, %v751_v41  ;;  %v660_v29 = vld [vmem:[%s4715_s0 + $0x88] sm:$0xe]  ;;  %v755_v40 = vrot.slane %v659_v25, 5  ;;  %v2963_v41 = vld [vmem:[%s4715_s0 + $0x8c] sm:$0x1] }
  0x6b   :  { %v792_v14 = vunpack.c.l.b16 %v752_v63  ;;  %v1340_v53 = vshll.u32 %v2964_v31, 16  ;;  %v1332_v55 = vshll.u32 %v2963_v41, 16  ;;  %v1346_v63 = vshll.u32 %v2965_v46, 16  ;;  %v56_v25 = vld [vmem:[#allocation2 + $0x8] sm:$0xff] }
  0x6c   :  { %v1301_v50 = vor.u32 %v1300_v39, %v1297_v38  ;;  %v2866_v39 = vrot.slane %v658_v24, 9  ;;  %v1994_v9 = vshrl.u32 %v3089_v56, 16  ;;  %v1997_v10 = vshll.u32 %v3089_v56, 16 }
  0x6d   :  { %v801_v27 = vpack.c.b16 %v792_v14, %v791_v13  ;;  %v1342_v62 = vrot.slane %v1340_v53, 5  ;;  %v2008_v11 = vshrl.u32 %v3091_v57, 16  ;;  %v1334_v15 = vrot.slane %v1332_v55, 5 }
  0x6e   :  { %v1302_v2 = vrot.slane %v1301_v50, 4  ;;  %v55_v50 = vld [vmem:[#allocation2] sm:$0xff]  ;;  %v2011_v16 = vshll.u32 %v3091_v57, 16 }
  0x6f   :  { %v1343_v7 = vor.u32 %v1342_v62, %v1339_v52 }
  0x71   :  { %v1344_v20 = vrot.slane %v1343_v7, 4 }
  0x76   :  { %2849 = vmatmul.msk.bf16.gmra.mxu1 %vm22_vm1, %v519_v18  ;;  %2874 = vmatmul.msk.bf16.gmra.mxu2 %vm22_vm1, %v800_v19  ;;  %v459_v18 = vor.u32 %v458_v1, %v455_v0  ;;  %v1307_v19 = vsel %vm3366_vm7, %v1302_v2, %v1306_v3  ;;  %v67_v0 = vld [vmem:[#allocation2 + $0x60] sm:$0xff]  ;;  %v479_v2 = vsel %vm3366_vm7, %v474_v44, %v3797_v23  ;;  %v2975_v44 = vld [vmem:[%s4715_s0 + $0x8] sm:$0xe] }
  0x77   :  { %v1380_v33 = vunpack.c.l.b16 %v1307_v19  ;;  %v756_v3 = vsel %vm3345_vm4, %v2866_v39, %v755_v40  ;;  %v513_v24 = vunpack.c.l.b16 %v479_v2 }
  0x78   :  { %2931 = vmatmul.msk.bf16.gmra.mxu3 %vm22_vm1, %v2917_v30  ;;  %2972 = vmatmul.msk.bf16.gmra.mxu0 %vm22_vm1, %v1389_v45  ;;  %v2962_v30 = vld [vmem:[%s4715_s0 + $0x88] sm:$0xf]  ;;  %v460_v38 = vrot.slane %v459_v18, 4  ;;  %v2867_v45 = vrot.slane %v660_v29, 9  ;;  %v2013_v29 = vrot.slane %v2011_v16, 5  ;;  %v793_v31 = vunpack.c.l.b16 %v756_v3 }
  0x79   :  { %v1323_v35 = vshrl.u32 %v2962_v30, 16  ;;  %v1326_v36 = vshll.u32 %v2962_v30, 16  ;;  %v1390_v54 = vpack.c.b16 %v1381_v34, %v1380_v33  ;;  %v64_v30 = vld [vmem:[#allocation2 + $0x48] sm:$0xff]  ;;  %v3090_v33 = vld [vmem:[%s4715_s0 + $0x14] sm:$0x1] }
  0x7a   :  { %v465_v1 = vsel %vm3366_vm7, %v460_v38, %v3795_v21  ;;  %v760_v14 = vsel %vm3345_vm4, %v2867_v45, %v759_v48  ;;  %v1348_v21 = vrot.slane %v1346_v63, 5  ;;  %v3092_v34 = vld [vmem:[%s4715_s0 + $0x1c] sm:$0x1]  ;;  %v2976_v45 = vld [vmem:[%s4715_s0 + $0xc] sm:$0x1]  ;;  %v3007_v63 = vrot.slane %v2975_v44, 9 }
  0x7b   :  { %v1325_v47 = vrot.slane %v1323_v35, 4  ;;  %v1328_v51 = vrot.slane %v1326_v36, 5  ;;  %v512_v23 = vunpack.c.l.b16 %v465_v1  ;;  %v794_v32 = vunpack.c.l.b16 %v760_v14  ;;  %v61_v35 = vld [vmem:[#allocation2 + $0x30] sm:$0xff]  ;;  %v68_v36 = vld [vmem:[#allocation2 + $0x68] sm:$0xff]  ;;  %v58_v44 = vld [vmem:[#allocation2 + $0x18] sm:$0xff] }
  0x7c   :  { %v1349_v40 = vsel %vm3366_vm7, %v1344_v20, %v1348_v21  ;;  %v2978_v48 = vld [vmem:[%s4715_s0 + $0x14] sm:$0x1]  ;;  %v2017_v53 = vshll.u32 %v3092_v34, 16  ;;  %v1566_v1 = vrot.slane %v2976_v45, 5  ;;  %v3130_v16 = vld [vmem:[%s4715_s0 + $0x10] sm:$0xe] }
  0x7d   :  { %v1329_v61 = vor.u32 %v1328_v51, %v1325_v47  ;;  %v521_v41 = vpack.c.b16 %v513_v24, %v512_v23  ;;  %v2977_v47 = vld [vmem:[%s4715_s0 + $0x10] sm:$0xe]  ;;  %v2003_v51 = vshll.u32 %v3090_v33, 16  ;;  %v802_v55 = vpack.c.b16 %v794_v32, %v793_v31  ;;  %v3131_v20 = vld [vmem:[%s4715_s0 + $0x14] sm:$0x1]  ;;  %v62_v24 = vld [vmem:[#allocation2 + $0x38] sm:$0xff] }
  0x7e   :  { %v3008_v2 = vrot.slane %v2977_v47, 9  ;;  %v1570_v3 = vrot.slane %v2978_v48, 5  ;;  %v3132_v21 = vld [vmem:[%s4715_s0 + $0x18] sm:$0xe]  ;;  %v3162_v33 = vrot.slane %v3130_v16, 9 }
  0x7f   :  { %v1330_v19 = vrot.slane %v1329_v61, 4  ;;  %v3094_v47 = vld [vmem:[%s4715_s0 + $0x24] sm:$0x1] }
  0x81   :  { %v1335_v39 = vsel %vm3366_vm7, %v1330_v19, %v1334_v15  ;;  %v3095_v15 = vld [vmem:[%s4715_s0 + $0x28] sm:$0xf] }
  0x82   :  { %v1382_v57 = vunpack.c.l.b16 %v1335_v39  ;;  %v2036_v31 = vshrl.u32 %v3095_v15, 16  ;;  %v2039_v32 = vshll.u32 %v3095_v15, 16 }
  0x83   :  { %v159_v37 = vpop.f32.mrf.mxu1 }
  0x84   :  { %v193_v43 = vadd.f32 %v159_v37, %v59_v17  ;;  %v2924_v37 = vld [vmem:[%s4715_s0 + $0x88] sm:$0xf] }
  0x85   :  { %v149_v60 = vpop.f32.mrf.mxu0  ;;  %v2925_v62 = vor.u32 %v3202_v42, %v2924_v37  ;;  %v3163_v37 = vrot.slane %v3132_v21, 9  ;;  %v3051_v42 = vld [vmem:[%s4715_s0 + $0x10] sm:$0xf] }
  0x86   :  { %209 = vst.msk [vmem:[#allocation2 + $0x20] sm:$0xff] %vm22_vm1, %v193_v43  ;;  %2850 = vmatmul.msk.bf16.gmra.mxu1 %vm22_vm1, %v520_v26  ;;  %2875 = vmatmul.msk.bf16.gmra.mxu2 %vm22_vm1, %v801_v27  ;;  %v189_v4 = vadd.f32 %v149_v60, %v55_v50  ;;  %v1996_v26 = vrot.slane %v1994_v9, 4  ;;  %v1999_v27 = vrot.slane %v1997_v10, 5  ;;  %v2019_v9 = vrot.slane %v2017_v53, 5  ;;  %v65_v10 = vld [vmem:[#allocation2 + $0x50] sm:$0xff] }
  0x87   :  { %v2038_v53 = vrot.slane %v2036_v31, 4  ;;  %v3136_v31 = vld [vmem:[%s4715_s0 + $0x28] sm:$0xe] }
  0x88   :  { %2932 = vmatmul.msk.bf16.gmra.mxu3 %vm22_vm1, %v2921_v28  ;;  %205 = vst.msk [vmem:[#allocation2] sm:$0xff] %vm22_vm1, %v189_v4  ;;  %2973 = vmatmul.msk.bf16.gmra.mxu0 %vm22_vm1, %v1390_v54  ;;  %v2010_v28 = vrot.slane %v2008_v11, 4  ;;  %v2000_v50 = vor.u32 %v1999_v27, %v1996_v26  ;;  %v57_v4 = vld [vmem:[#allocation2 + $0x10] sm:$0xff] }
  0x89   :  { %v169_v5 = vpop.f32.mrf.mxu2 }
  0x8a   :  { %v197_v12 = vadd.f32 %v169_v5, %v63_v58  ;;  %v2014_v52 = vor.u32 %v2013_v29, %v2010_v28  ;;  %v1383_v58 = vunpack.c.l.b16 %v1349_v40  ;;  %v2001_v5 = vrot.slane %v2000_v50, 4 }
  0x8b   :  { %v179_v13 = vpop.f32.mrf.mxu3  ;;  %v161_v17 = vpop.f32.mrf.mxu1 }
  0x8c   :  { %v201_v18 = vadd.f32 %v179_v13, %v67_v0  ;;  %213 = vst.msk [vmem:[#allocation2 + $0x40] sm:$0xff] %vm22_vm1, %v197_v12  ;;  %v194_v22 = vadd.f32 %v161_v17, %v60_v6  ;;  %v2005_v6 = vrot.slane %v2003_v51, 5  ;;  %v2015_v7 = vrot.slane %v2014_v52, 4  ;;  %v3093_v12 = vld [vmem:[%s4715_s0 + $0x20] sm:$0xf]  ;;  %v69_v13 = vld [vmem:[#allocation2 + $0x70] sm:$0xff] }
  0x8d   :  { %v151_v38 = vpop.f32.mrf.mxu0  ;;  %v1391_v11 = vpack.c.b16 %v1383_v58, %v1382_v57  ;;  %v1567_v17 = vsel %vm3345_vm4, %v3007_v63, %v1566_v1  ;;  %v2022_v27 = vshrl.u32 %v3093_v12, 16  ;;  %v2025_v28 = vshll.u32 %v3093_v12, 16  ;;  %v66_v51 = vld [vmem:[#allocation2 + $0x58] sm:$0xff] }
  0x8e   :  { %217 = vst.msk [vmem:[#allocation2 + $0x60] sm:$0xff] %vm22_vm1, %v201_v18  ;;  %v190_v43 = vadd.f32 %v151_v38, %v56_v25  ;;  %v1571_v18 = vsel %vm3345_vm4, %v3008_v2, %v1570_v3  ;;  %v2006_v25 = vsel %vm3366_vm7, %v2001_v5, %v2005_v6  ;;  %v2020_v26 = vsel %vm3366_vm7, %v2015_v7, %v2019_v9  ;;  %v70_v57 = vld [vmem:[#allocation2 + $0x78] sm:$0xff]  ;;  %v2981_v6 = vld [vmem:[%s4715_s0 + $0x20] sm:$0xe] }
  0x8f   :  { %210 = vst.msk [vmem:[#allocation2 + $0x28] sm:$0xff] %vm22_vm1, %v194_v22  ;;  %v3133_v22 = vld [vmem:[%s4715_s0 + $0x1c] sm:$0x1]  ;;  %v1646_v40 = vunpack.c.l.b16 %v1567_v17  ;;  %v2235_v45 = vunpack.c.l.b16 %v2006_v25  ;;  %v2024_v48 = vrot.slane %v2022_v27, 4  ;;  %v2027_v50 = vrot.slane %v2025_v28, 5 }
  0x90   :  { %206 = vst.msk [vmem:[#allocation2 + $0x8] sm:$0xff] %vm22_vm1, %v190_v43  ;;  %v2437_v38 = vrot.slane %v3133_v22, 5  ;;  %v3203_v43 = vld [vmem:[%s4715_s0 + $0x14] sm:$0xf0]  ;;  %v2031_v2 = vshll.u32 %v3094_v47, 16 }
  0x91   :  { %v171_v46 = vpop.f32.mrf.mxu2  ;;  %v2979_v1 = vld [vmem:[%s4715_s0 + $0x18] sm:$0xe]  ;;  %v2980_v5 = vld [vmem:[%s4715_s0 + $0x1c] sm:$0x1]  ;;  %v2028_v7 = vor.u32 %v2027_v50, %v2024_v48  ;;  %v3097_v28 = vld [vmem:[%s4715_s0 + $0x30] sm:$0xf] }
  0x92   :  { %v198_v54 = vadd.f32 %v171_v46, %v64_v30  ;;  %v2236_v46 = vunpack.c.l.b16 %v2020_v26 }
  0x93   :  { %v181_v56 = vpop.f32.mrf.mxu3  ;;  %v164_v60 = vpop.f32.mrf.mxu1  ;;  %v2029_v22 = vrot.slane %v2028_v7, 4 }
  0x94   :  { %v202_v61 = vadd.f32 %v181_v56, %v68_v36  ;;  %214 = vst.msk [vmem:[#allocation2 + $0x48] sm:$0xff] %vm22_vm1, %v198_v54  ;;  %v195_v0 = vadd.f32 %v164_v60, %v61_v35  ;;  %v2433_v36 = vrot.slane %v3131_v20, 5  ;;  %v2041_v54 = vrot.slane %v2039_v32, 5  ;;  %v3096_v60 = vld [vmem:[%s4715_s0 + $0x2c] sm:$0x1] }
  0x95   :  { %v154_v14 = vpop.f32.mrf.mxu0  ;;  %v2438_v56 = vsel %vm3345_vm4, %v3163_v37, %v2437_v38  ;;  %v2045_v16 = vshll.u32 %v3096_v60, 16  ;;  %v3010_v20 = vrot.slane %v2981_v6, 9  ;;  %v3137_v32 = vld [vmem:[%s4715_s0 + $0x2c] sm:$0x1] }
  0x96   :  { %218 = vst.msk [vmem:[#allocation2 + $0x68] sm:$0xff] %vm22_vm1, %v202_v61  ;;  %2851 = vmatmul.msk.bf16.gmra.mxu1 %vm22_vm1, %v521_v41  ;;  %2876 = vmatmul.msk.bf16.gmra.mxu2 %vm22_vm1, %v802_v55  ;;  %v191_v19 = vadd.f32 %v154_v14, %v57_v4  ;;  %v1647_v41 = vunpack.c.l.b16 %v1571_v18  ;;  %v2434_v55 = vsel %vm3345_vm4, %v3162_v33, %v2433_v36  ;;  %v2982_v14 = vld [vmem:[%s4715_s0 + $0x24] sm:$0x1]  ;;  %v3009_v18 = vrot.slane %v2979_v1, 9  ;;  %v3099_v36 = vld [vmem:[%s4715_s0 + $0x38] sm:$0xf] }
  0x97   :  { %211 = vst.msk [vmem:[#allocation2 + $0x30] sm:$0xff] %vm22_vm1, %v195_v0  ;;  %v3052_v0 = vor.u32 %v3203_v43, %v3051_v42  ;;  %v2513_v9 = vunpack.c.l.b16 %v2434_v55  ;;  %v2042_v15 = vor.u32 %v2041_v54, %v2038_v53  ;;  %v1578_v21 = vrot.slane %v2982_v14, 5  ;;  %v3055_v55 = vld [vmem:[%s4715_s0 + $0x20] sm:$0xf]  ;;  %v2985_v14 = vld [vmem:[%s4715_s0 + $0x30] sm:$0xe] }
  0x98   :  { %2933 = vmatmul.msk.bf16.gmra.mxu3 %vm22_vm1, %v2925_v62  ;;  %207 = vst.msk [vmem:[#allocation2 + $0x10] sm:$0xff] %vm22_vm1, %v191_v19  ;;  %2974 = vmatmul.msk.bf16.gmra.mxu0 %vm22_vm1, %v1391_v11  ;;  %v480_v62 = vld [vmem:[#allocation2] sm:$0xff]  ;;  %v1662_v63 = vpack.c.b16 %v1647_v41, %v1646_v40  ;;  %v1574_v19 = vrot.slane %v2980_v5, 5  ;;  %v2047_v27 = vrot.slane %v2045_v16, 5  ;;  %v2050_v40 = vshrl.u32 %v3097_v28, 16 }
  0x99   :  { %v174_v23 = vpop.f32.mrf.mxu2  ;;  %v2043_v26 = vrot.slane %v2042_v15, 4  ;;  %v1579_v38 = vsel %vm3345_vm4, %v3010_v20, %v1578_v21  ;;  %v2053_v41 = vshll.u32 %v3097_v28, 16  ;;  %v2064_v50 = vshrl.u32 %v3099_v36, 16  ;;  %v2986_v15 = vld [vmem:[%s4715_s0 + $0x34] sm:$0x1] }
  0x9a   :  { %v199_v29 = vadd.f32 %v174_v23, %v65_v10  ;;  %v2514_v10 = vunpack.c.l.b16 %v2438_v56  ;;  %v2033_v23 = vrot.slane %v2031_v2, 5  ;;  %v1649_v54 = vunpack.c.l.b16 %v1579_v38 }
  0x9b   :  { %v184_v30 = vpop.f32.mrf.mxu3  ;;  %v166_v34 = vpop.f32.mrf.mxu1  ;;  %v2048_v48 = vsel %vm3366_vm7, %v2043_v26, %v2047_v27  ;;  %v2055_v60 = vrot.slane %v2053_v41, 5  ;;  %v3139_v41 = vld [vmem:[%s4715_s0 + $0x34] sm:$0x1] }
  0x9c   :  { %v203_v35 = vadd.f32 %v184_v30, %v69_v13  ;;  %215 = vst.msk [vmem:[#allocation2 + $0x50] sm:$0xff] %vm22_vm1, %v199_v29  ;;  %v196_v39 = vadd.f32 %v166_v34, %v62_v24  ;;  %v2251_v13 = vpack.c.b16 %v2236_v46, %v2235_v45  ;;  %v2529_v24 = vpack.c.b16 %v2514_v10, %v2513_v9  ;;  %v3134_v29 = vld [vmem:[%s4715_s0 + $0x20] sm:$0xe]  ;;  %v3135_v30 = vld [vmem:[%s4715_s0 + $0x24] sm:$0x1]  ;;  %v481_v34 = vld [vmem:[#allocation2 + $0x8] sm:$0xff] }
  0x9d   :  { %v156_v52 = vpop.f32.mrf.mxu0  ;;  %v3164_v43 = vrot.slane %v3134_v29, 9  ;;  %v3165_v45 = vrot.slane %v3136_v31, 9  ;;  %v2445_v46 = vrot.slane %v3137_v32, 5  ;;  %v3012_v29 = vrot.slane %v2985_v14, 9 }
  0x9e   :  { %219 = vst.msk [vmem:[#allocation2 + $0x70] sm:$0xff] %vm22_vm1, %v203_v35  ;;  %v192_v58 = vadd.f32 %v156_v52, %v58_v44  ;;  %v1575_v35 = vsel %vm3345_vm4, %v3009_v18, %v1574_v19  ;;  %v2441_v44 = vrot.slane %v3135_v30, 5  ;;  %v1586_v30 = vrot.slane %v2986_v15, 5 }
  0x9f   :  { %212 = vst.msk [vmem:[#allocation2 + $0x38] sm:$0xff] %vm22_vm1, %v196_v39  ;;  %v2034_v39 = vsel %vm3366_vm7, %v2029_v22, %v2033_v23  ;;  %v1648_v53 = vunpack.c.l.b16 %v1575_v35  ;;  %v2446_v2 = vsel %vm3345_vm4, %v3165_v45, %v2445_v46  ;;  %v482_v7 = vld [vmem:[#allocation2 + $0x10] sm:$0xff]  ;;  %v3101_v35 = vld [vmem:[%s4715_s0 + $0x40] sm:$0xf]  ;;  %v3141_v45 = vld [vmem:[%s4715_s0 + $0x3c] sm:$0x1] }
  0xa0   :  { %208 = vst.msk [vmem:[#allocation2 + $0x18] sm:$0xff] %vm22_vm1, %v192_v58  ;;  %v2052_v58 = vrot.slane %v2050_v40, 4  ;;  %v2442_v1 = vsel %vm3345_vm4, %v3164_v43, %v2441_v44  ;;  %v2516_v19 = vunpack.c.l.b16 %v2446_v2  ;;  %v3138_v40 = vld [vmem:[%s4715_s0 + $0x30] sm:$0xe]  ;;  %v3140_v44 = vld [vmem:[%s4715_s0 + $0x38] sm:$0xe] }
  0xa1   :  { %v176_v61 = vpop.f32.mrf.mxu2  ;;  %v1663_v9 = vpack.c.b16 %v1649_v54, %v1648_v53  ;;  %v2515_v18 = vunpack.c.l.b16 %v2442_v1  ;;  %v2078_v53 = vshrl.u32 %v3101_v35, 16  ;;  %v2081_v54 = vshll.u32 %v3101_v35, 16 }
  0xa2   :  { %v200_v3 = vadd.f32 %v176_v61, %v66_v51  ;;  %v2067_v51 = vshll.u32 %v3099_v36, 16  ;;  %v2237_v61 = vunpack.c.l.b16 %v2034_v39  ;;  %v2056_v16 = vor.u32 %v2055_v60, %v2052_v58 }
  0xa3   :  { %v186_v4 = vpop.f32.mrf.mxu3  ;;  %v558_v11 = vpop.f32.mrf.mxu1  ;;  %v3167_v58 = vrot.slane %v3140_v44, 9  ;;  %v2453_v60 = vrot.slane %v3141_v45, 5 }
  0xa4   :  { %v204_v12 = vadd.f32 %v186_v4, %v70_v57  ;;  %216 = vst.msk [vmem:[#allocation2 + $0x58] sm:$0xff] %vm22_vm1, %v200_v3  ;;  %v598_v17 = vadd.f32 %v558_v11, %v480_v62  ;;  %v3204_v57 = vld [vmem:[%s4715_s0 + $0x24] sm:$0xf0]  ;;  %v2238_v62 = vunpack.c.l.b16 %v2048_v48  ;;  %v3100_v3 = vld [vmem:[%s4715_s0 + $0x3c] sm:$0x1]  ;;  %v2066_v4 = vrot.slane %v2064_v50, 4 }
  0xa5   :  { %v3949_v25 = vpop.f32.mrf.mxu0  ;;  %v2069_v5 = vrot.slane %v2067_v51, 5  ;;  %v3056_v10 = vor.u32 %v3204_v57, %v3055_v55  ;;  %v2983_v11 = vld [vmem:[%s4715_s0 + $0x28] sm:$0xe]  ;;  %v2073_v22 = vshll.u32 %v3100_v3, 16  ;;  %v2057_v32 = vrot.slane %v2056_v16, 4 }
  0xa6   :  { %220 = vst.msk [vmem:[#allocation2 + $0x78] sm:$0xff] %vm22_vm1, %v204_v12  ;;  %3024 = vmatmul.msk.bf16.vlgmr.msra.gmra.mxu1 %vm22_vm1, %v1662_v63  ;;  %3081 = vmatmul.msk.bf16.vlgmr.msra.gmra.mxu2 %vm22_vm1, %v3052_v0  ;;  %v3098_v0 = vld [vmem:[%s4715_s0 + $0x34] sm:$0x1]  ;;  %v2984_v12 = vld [vmem:[%s4715_s0 + $0x2c] sm:$0x1]  ;;  %v2252_v21 = vpack.c.b16 %v2238_v62, %v2237_v61  ;;  %v3011_v27 = vrot.slane %v2983_v11, 9  ;;  %v1587_v51 = vsel %vm3345_vm4, %v3012_v29, %v1586_v30 }
  0xa7   :  { %614 = vst.msk [vmem:[#allocation2] sm:$0xff] %vm22_vm1, %v598_v17  ;;  %v2059_v17 = vshll.u32 %v3098_v0, 16  ;;  %v1582_v28 = vrot.slane %v2984_v12, 5  ;;  %v2075_v39 = vrot.slane %v2073_v22, 5  ;;  %v2449_v57 = vrot.slane %v3139_v41, 5 }
  0xa8   :  { %3122 = vmatmul.msk.bf16.vlgmr.msra.gmra.mxu3 %vm22_vm1, %v2251_v13  ;;  %3179 = vmatmul.msk.bf16.vlgmr.msra.gmra.mxu0 %vm22_vm1, %v2529_v24  ;;  %v2070_v24 = vor.u32 %v2069_v5, %v2066_v4  ;;  %v1651_v4 = vunpack.c.l.b16 %v1587_v51  ;;  %v3059_v5 = vld [vmem:[%s4715_s0 + $0x30] sm:$0xf]  ;;  %v2083_v11 = vrot.slane %v2081_v54, 5  ;;  %v3105_v54 = vld [vmem:[%s4715_s0 + $0x60] sm:$0xf] }
  0xa9   :  { %v839_v33 = vpop.f32.mrf.mxu2  ;;  %v1583_v48 = vsel %vm3345_vm4, %v3011_v27, %v1582_v28  ;;  %v2987_v28 = vld [vmem:[%s4715_s0 + $0x38] sm:$0xe] }
  0xaa   :  { %v2071_v43 = vrot.slane %v2070_v24, 4  ;;  %v1650_v3 = vunpack.c.l.b16 %v1583_v48 }
  0xab   :  { %v3971_v37 = vpop.f32.mrf.mxu3  ;;  %v560_v42 = vpop.f32.mrf.mxu1 }
  0xac   :  { %v599_v47 = vadd.f32 %v560_v42, %v481_v34  ;;  %v2530_v34 = vpack.c.b16 %v2516_v19, %v2515_v18  ;;  %v2076_v62 = vsel %vm3366_vm7, %v2071_v43, %v2075_v39  ;;  %v2454_v18 = vsel %vm3345_vm4, %v3167_v58, %v2453_v60  ;;  %v484_v39 = vld [vmem:[#allocation2 + $0x20] sm:$0xff] }
  0xad   :  { %v3987_v63 = vpop.f32.mrf.mxu0  ;;  %v2240_v15 = vunpack.c.l.b16 %v2076_v62  ;;  %v3013_v43 = vrot.slane %v2987_v28, 9  ;;  %v3142_v60 = vld [vmem:[%s4715_s0 + $0x40] sm:$0xe] }
  0xae   :  { %v761_v52 = vld [vmem:[#allocation2] sm:$0xff]  ;;  %615 = vst.msk [vmem:[#allocation2 + $0x8] sm:$0xff] %vm22_vm1, %v599_v47  ;;  %v483_v47 = vld [vmem:[#allocation2 + $0x18] sm:$0xff] }
  0xaf   :  { %v879_v56 = vadd.f32 %v839_v33, %v761_v52  ;;  %v2061_v33 = vrot.slane %v2059_v17, 5 }
  0xb1   :  { %895 = vst.msk [vmem:[#allocation2] sm:$0xff] %vm22_vm1, %v879_v56  ;;  %v841_v6 = vpop.f32.mrf.mxu2  ;;  %v2062_v52 = vsel %vm3366_vm7, %v2057_v32, %v2061_v33  ;;  %v3166_v56 = vrot.slane %v3138_v40, 9  ;;  %v2989_v32 = vld [vmem:[%s4715_s0 + $0x40] sm:$0xe]  ;;  %v2990_v33 = vld [vmem:[%s4715_s0 + $0x44] sm:$0x1] }
  0xb2   :  { %v2239_v14 = vunpack.c.l.b16 %v2062_v52  ;;  %v1594_v48 = vrot.slane %v2990_v33, 5  ;;  %v3108_v33 = vld [vmem:[%s4715_s0 + $0x6c] sm:$0x1] }
  0xb3   :  { %v4006_v13 = vpop.f32.mrf.mxu3  ;;  %v563_v20 = vpop.f32.mrf.mxu1  ;;  %v2450_v17 = vsel %vm3345_vm4, %v3166_v56, %v2449_v57 }
  0xb4   :  { %v600_v23 = vadd.f32 %v563_v20, %v482_v7  ;;  %v3104_v20 = vld [vmem:[%s4715_s0 + $0x4c] sm:$0x1]  ;;  %v2517_v35 = vunpack.c.l.b16 %v2450_v17  ;;  %v2253_v41 = vpack.c.b16 %v2240_v15, %v2239_v14  ;;  %v3168_v17 = vrot.slane %v3142_v60, 9 }
  0xb5   :  { %v762_v26 = vld [vmem:[#allocation2 + $0x8] sm:$0xff]  ;;  %v4021_v38 = vpop.f32.mrf.mxu0 }
  0xb6   :  { %v880_v31 = vadd.f32 %v841_v6, %v762_v26  ;;  %616 = vst.msk [vmem:[#allocation2 + $0x10] sm:$0xff] %vm22_vm1, %v600_v23  ;;  %3025 = vmatmul.msk.bf16.gmra.mxu1 %vm22_vm1, %v1663_v9  ;;  %3082 = vmatmul.msk.bf16.gmra.mxu2 %vm22_vm1, %v3056_v10  ;;  %v3205_v6 = vld [vmem:[%s4715_s0 + $0x34] sm:$0xf0]  ;;  %v3102_v9 = vld [vmem:[%s4715_s0 + $0x44] sm:$0x1]  ;;  %v2080_v10 = vrot.slane %v2078_v53, 4  ;;  %v1664_v26 = vpack.c.b16 %v1651_v4, %v1650_v3 }
  0xb7   :  { %v3060_v27 = vor.u32 %v3205_v6, %v3059_v5  ;;  %v2087_v29 = vshll.u32 %v3102_v9, 16  ;;  %v2106_v6 = vshrl.u32 %v3105_v54, 16  ;;  %v485_v14 = vld [vmem:[#allocation2 + $0x28] sm:$0xff] }
  0xb8   :  { %v928_v36 = vld [vmem:[#allocation2] sm:$0xff]  ;;  %3123 = vmatmul.msk.bf16.gmra.mxu3 %vm22_vm1, %v2252_v21  ;;  %896 = vst.msk [vmem:[#allocation2 + $0x8] sm:$0xff] %vm22_vm1, %v880_v31  ;;  %3180 = vmatmul.msk.bf16.gmra.mxu0 %vm22_vm1, %v2530_v34  ;;  %v2084_v34 = vor.u32 %v2083_v11, %v2080_v10 }
  0xb9   :  { %v1062_v42 = vadd.f32 %v3971_v37, %v928_v36  ;;  %v844_v46 = vpop.f32.mrf.mxu2  ;;  %v3103_v37 = vld [vmem:[%s4715_s0 + $0x48] sm:$0xf]  ;;  %v2518_v36 = vunpack.c.l.b16 %v2454_v18 }
  0xba   :  { %v2092_v0 = vshrl.u32 %v3103_v37, 16  ;;  %v2095_v1 = vshll.u32 %v3103_v37, 16  ;;  %v2089_v37 = vrot.slane %v2087_v29, 5  ;;  %v2085_v52 = vrot.slane %v2084_v34, 4 }
  0xbb   :  { %1078 = vst.msk [vmem:[#allocation2] sm:$0xff] %vm22_vm1, %v1062_v42  ;;  %v4043_v50 = vpop.f32.mrf.mxu3  ;;  %v565_v55 = vpop.f32.mrf.mxu1  ;;  %v2101_v42 = vshll.u32 %v3104_v20, 16  ;;  %v2531_v53 = vpack.c.b16 %v2518_v36, %v2517_v35  ;;  %v2108_v29 = vrot.slane %v2106_v6, 4 }
  0xbc   :  { %v601_v61 = vadd.f32 %v565_v55, %v483_v47  ;;  %v2094_v21 = vrot.slane %v2092_v0, 4  ;;  %v2097_v22 = vrot.slane %v2095_v1, 5  ;;  %v3014_v47 = vrot.slane %v2989_v32, 9  ;;  %v3107_v55 = vld [vmem:[%s4715_s0 + $0x68] sm:$0xf] }
  0xbd   :  { %v763_v2 = vld [vmem:[#allocation2 + $0x10] sm:$0xff]  ;;  %v4062_v16 = vpop.f32.mrf.mxu0  ;;  %v2103_v58 = vrot.slane %v2101_v42, 5  ;;  %v3144_v1 = vld [vmem:[%s4715_s0 + $0x48] sm:$0xe]  ;;  %v2120_v11 = vshrl.u32 %v3107_v55, 16 }
  0xbe   :  { %v881_v7 = vadd.f32 %v844_v46, %v763_v2  ;;  %617 = vst.msk [vmem:[#allocation2 + $0x18] sm:$0xff] %vm22_vm1, %v601_v61  ;;  %v2098_v44 = vor.u32 %v2097_v22, %v2094_v21  ;;  %v3143_v61 = vld [vmem:[%s4715_s0 + $0x44] sm:$0x1]  ;;  %v3145_v2 = vld [vmem:[%s4715_s0 + $0x4c] sm:$0x1]  ;;  %v1595_v10 = vsel %vm3345_vm4, %v3014_v47, %v1594_v48 }
  0xbf   :  { %v929_v12 = vld [vmem:[#allocation2 + $0x8] sm:$0xff]  ;;  %v2457_v18 = vrot.slane %v3143_v61, 5  ;;  %v2461_v20 = vrot.slane %v3145_v2, 5  ;;  %v1653_v28 = vunpack.c.l.b16 %v1595_v10  ;;  %v2122_v34 = vrot.slane %v2120_v11, 4 }
  0xc0   :  { %v1063_v19 = vadd.f32 %v4006_v13, %v929_v12  ;;  %897 = vst.msk [vmem:[#allocation2 + $0x10] sm:$0xff] %vm22_vm1, %v881_v7  ;;  %v2988_v13 = vld [vmem:[%s4715_s0 + $0x3c] sm:$0x1]  ;;  %v2099_v0 = vrot.slane %v2098_v44, 4  ;;  %v2109_v7 = vshll.u32 %v3105_v54, 16  ;;  %v2123_v12 = vshll.u32 %v3107_v55, 16 }
  0xc1   :  { %v846_v24 = vpop.f32.mrf.mxu2  ;;  %v1590_v46 = vrot.slane %v2988_v13, 5  ;;  %v3206_v22 = vld [vmem:[%s4715_s0 + $0x44] sm:$0xf0]  ;;  %v3106_v13 = vld [vmem:[%s4715_s0 + $0x64] sm:$0x1]  ;;  %v2458_v42 = vsel %vm3345_vm4, %v3168_v17, %v2457_v18 }
  0xc2   :  { %v1350_v23 = vld [vmem:[#allocation2] sm:$0xff]  ;;  %1079 = vst.msk [vmem:[#allocation2 + $0x8] sm:$0xff] %vm22_vm1, %v1063_v19  ;;  %v3169_v19 = vrot.slane %v3144_v1, 9  ;;  %v2125_v35 = vrot.slane %v2123_v12, 5  ;;  %v2519_v60 = vunpack.c.l.b16 %v2458_v42 }
  0xc3   :  { %v1468_v30 = vadd.f32 %v3949_v25, %v1350_v23  ;;  %v4081_v31 = vpop.f32.mrf.mxu3  ;;  %v568_v40 = vpop.f32.mrf.mxu1  ;;  %v1591_v5 = vsel %vm3345_vm4, %v3013_v43, %v1590_v46  ;;  %v2090_v23 = vsel %vm3366_vm7, %v2085_v52, %v2089_v37  ;;  %v2992_v37 = vld [vmem:[%s4715_s0 + $0x5c] sm:$0x1]  ;;  %v2115_v52 = vshll.u32 %v3106_v13, 16  ;;  %v2993_v55 = vld [vmem:[%s4715_s0 + $0x60] sm:$0xe] }
  0xc4   :  { %v602_v25 = vadd.f32 %v568_v40, %v484_v39  ;;  %v2241_v39 = vunpack.c.l.b16 %v2090_v23 }
  0xc5   :  { %1484 = vst.msk [vmem:[#allocation2] sm:$0xff] %vm22_vm1, %v1468_v30  ;;  %v764_v45 = vld [vmem:[#allocation2 + $0x18] sm:$0xff]  ;;  %v4100_v57 = vpop.f32.mrf.mxu0  ;;  %v2111_v30 = vrot.slane %v2109_v7, 5 }
  0xc6   :  { %v882_v51 = vadd.f32 %v846_v24, %v764_v45  ;;  %618 = vst.msk [vmem:[#allocation2 + $0x20] sm:$0xff] %vm22_vm1, %v602_v25  ;;  %3026 = vmatmul.msk.bf16.gmra.mxu1 %vm22_vm1, %v1664_v26  ;;  %3083 = vmatmul.msk.bf16.gmra.mxu2 %vm22_vm1, %v3060_v27  ;;  %v2104_v24 = vsel %vm3366_vm7, %v2099_v0, %v2103_v58  ;;  %v1652_v27 = vunpack.c.l.b16 %v1591_v5  ;;  %v2991_v45 = vld [vmem:[%s4715_s0 + $0x58] sm:$0xe]  ;;  %v3016_v5 = vrot.slane %v2993_v55, 9 }
  0xc7   :  { %v930_v56 = vld [vmem:[#allocation2 + $0x10] sm:$0xff]  ;;  %v2242_v40 = vunpack.c.l.b16 %v2104_v24  ;;  %v2462_v25 = vsel %vm3345_vm4, %v3169_v19, %v2461_v20  ;;  %v2126_v58 = vor.u32 %v2125_v35, %v2122_v34  ;;  %v3146_v19 = vld [vmem:[%s4715_s0 + $0x60] sm:$0xe]  ;;  %v3147_v20 = vld [vmem:[%s4715_s0 + $0x64] sm:$0x1] }
  0xc8   :  { %3124 = vmatmul.msk.bf16.gmra.mxu3 %vm22_vm1, %v2253_v41  ;;  %v1064_v62 = vadd.f32 %v4043_v50, %v930_v56  ;;  %898 = vst.msk [vmem:[#allocation2 + $0x18] sm:$0xff] %vm22_vm1, %v882_v51  ;;  %3181 = vmatmul.msk.bf16.gmra.mxu0 %vm22_vm1, %v2531_v53  ;;  %v1665_v48 = vpack.c.b16 %v1653_v28, %v1652_v27  ;;  %v2129_v53 = vshll.u32 %v3108_v33, 16  ;;  %v2994_v56 = vld [vmem:[%s4715_s0 + $0x64] sm:$0x1]  ;;  %v2520_v61 = vunpack.c.l.b16 %v2462_v25  ;;  %v3111_v28 = vld [vmem:[%s4715_s0 + $0x78] sm:$0xf] }
  0xc9   :  { %v1351_v3 = vld [vmem:[#allocation2 + $0x8] sm:$0xff]  ;;  %v849_v4 = vpop.f32.mrf.mxu2  ;;  %v2112_v51 = vor.u32 %v2111_v30, %v2108_v29  ;;  %v2254_v1 = vpack.c.b16 %v2242_v40, %v2241_v39  ;;  %v1602_v6 = vrot.slane %v2994_v56, 5  ;;  %v2127_v11 = vrot.slane %v2126_v58, 4  ;;  %v487_v34 = vld [vmem:[#allocation2 + $0x38] sm:$0xff] }
  0xca   :  { %1080 = vst.msk [vmem:[#allocation2 + $0x10] sm:$0xff] %vm22_vm1, %v1064_v62  ;;  %v1469_v50 = vadd.f32 %v3987_v63, %v1351_v3  ;;  %v3063_v63 = vld [vmem:[%s4715_s0 + $0x40] sm:$0xf]  ;;  %v486_v62 = vld [vmem:[#allocation2 + $0x30] sm:$0xff]  ;;  %v1598_v3 = vrot.slane %v2992_v37, 5  ;;  %v2131_v12 = vrot.slane %v2129_v53, 5 }
  0xcb   :  { %v4120_v9 = vpop.f32.mrf.mxu3  ;;  %v570_v15 = vpop.f32.mrf.mxu1  ;;  %v3064_v44 = vor.u32 %v3206_v22, %v3063_v63  ;;  %v2113_v7 = vrot.slane %v2112_v51, 4  ;;  %v3148_v63 = vld [vmem:[%s4715_s0 + $0x68] sm:$0xe]  ;;  %v3149_v22 = vld [vmem:[%s4715_s0 + $0x6c] sm:$0x1]  ;;  %v1603_v27 = vsel %vm3345_vm4, %v3016_v5, %v1602_v6  ;;  %v2465_v39 = vrot.slane %v3147_v20, 5 }
  0xcc   :  { %1485 = vst.msk [vmem:[#allocation2 + $0x8] sm:$0xff] %vm22_vm1, %v1469_v50  ;;  %v603_v21 = vadd.f32 %v570_v15, %v485_v14  ;;  %v2117_v50 = vrot.slane %v2115_v52, 5  ;;  %v2532_v14 = vpack.c.b16 %v2520_v61, %v2519_v60  ;;  %v3109_v15 = vld [vmem:[%s4715_s0 + $0x70] sm:$0xf]  ;;  %v2132_v30 = vsel %vm3366_vm7, %v2127_v11, %v2131_v12  ;;  %v3207_v37 = vld [vmem:[%s4715_s0 + $0x64] sm:$0xf0] }
  0xcd   :  { %v765_v26 = vld [vmem:[#allocation2 + $0x20] sm:$0xff]  ;;  %v4143_v41 = vpop.f32.mrf.mxu0  ;;  %v2137_v33 = vshll.u32 %v3109_v15, 16  ;;  %v3171_v40 = vrot.slane %v3148_v63, 9  ;;  %v2469_v42 = vrot.slane %v3149_v22, 5  ;;  %v2244_v52 = vunpack.c.l.b16 %v2132_v30  ;;  %v3110_v53 = vld [vmem:[%s4715_s0 + $0x74] sm:$0x1] }
  0xce   :  { %v883_v32 = vadd.f32 %v849_v4, %v765_v26  ;;  %619 = vst.msk [vmem:[#allocation2 + $0x28] sm:$0xff] %vm22_vm1, %v603_v21  ;;  %v3112_v56 = vld [vmem:[%s4715_s0 + $0x7c] sm:$0x1]  ;;  %v2995_v6 = vld [vmem:[%s4715_s0 + $0x68] sm:$0xe] }
  0xcf   :  { %v931_v36 = vld [vmem:[#allocation2 + $0x18] sm:$0xff]  ;;  %v2139_v60 = vrot.slane %v2137_v33, 5  ;;  %v2997_v11 = vld [vmem:[%s4715_s0 + $0x70] sm:$0xe]  ;;  %v2998_v12 = vld [vmem:[%s4715_s0 + $0x74] sm:$0x1] }
  0xd0   :  { %v1065_v43 = vadd.f32 %v4081_v31, %v931_v36  ;;  %899 = vst.msk [vmem:[#allocation2 + $0x20] sm:$0xff] %vm22_vm1, %v883_v32  ;;  %v2134_v32 = vshrl.u32 %v3109_v15, 16  ;;  %v3170_v36 = vrot.slane %v3146_v19, 9  ;;  %v488_v19 = vld [vmem:[#allocation2 + $0x40] sm:$0xff]  ;;  %v3017_v22 = vrot.slane %v2995_v6, 9 }
  0xd1   :  { %v1352_v46 = vld [vmem:[#allocation2 + $0x10] sm:$0xff]  ;;  %v851_v47 = vpop.f32.mrf.mxu2  ;;  %v3113_v33 = vld [vmem:[%s4715_s0 + $0x80] sm:$0xf] }
  0xd2   :  { %1081 = vst.msk [vmem:[#allocation2 + $0x18] sm:$0xff] %vm22_vm1, %v1065_v43  ;;  %v1470_v31 = vadd.f32 %v4021_v38, %v1352_v46  ;;  %v3015_v38 = vrot.slane %v2991_v45, 9  ;;  %v2148_v43 = vshrl.u32 %v3111_v28, 16  ;;  %v1655_v46 = vunpack.c.l.b16 %v1603_v27 }
  0xd3   :  { %v4159_v54 = vpop.f32.mrf.mxu3  ;;  %v573_v0 = vpop.f32.mrf.mxu1  ;;  %v2136_v58 = vrot.slane %v2134_v32, 4  ;;  %v2466_v61 = vsel %vm3345_vm4, %v3170_v36, %v2465_v39  ;;  %v3018_v27 = vrot.slane %v2997_v11, 9 }
  0xd4   :  { %1486 = vst.msk [vmem:[#allocation2 + $0x10] sm:$0xff] %vm22_vm1, %v1470_v31  ;;  %v604_v2 = vadd.f32 %v573_v0, %v486_v62  ;;  %v1599_v26 = vsel %vm3345_vm4, %v3015_v38, %v1598_v3  ;;  %v2470_v62 = vsel %vm3345_vm4, %v3171_v40, %v2469_v42  ;;  %v2521_v15 = vunpack.c.l.b16 %v2466_v61  ;;  %v3150_v40 = vld [vmem:[%s4715_s0 + $0x70] sm:$0xe]  ;;  %v3151_v42 = vld [vmem:[%s4715_s0 + $0x74] sm:$0x1] }
  0xd5   :  { %v766_v4 = vld [vmem:[#allocation2 + $0x28] sm:$0xff]  ;;  %v4175_v18 = vpop.f32.mrf.mxu0  ;;  %v1654_v45 = vunpack.c.l.b16 %v1599_v26  ;;  %v2140_v63 = vor.u32 %v2139_v60, %v2136_v58  ;;  %v3172_v60 = vrot.slane %v3150_v40, 9  ;;  %v2473_v61 = vrot.slane %v3151_v42, 5 }
  0xd6   :  { %v884_v10 = vadd.f32 %v851_v47, %v766_v4  ;;  %620 = vst.msk [vmem:[#allocation2 + $0x30] sm:$0xff] %vm22_vm1, %v604_v2  ;;  %3027 = vmatmul.msk.bf16.gmra.mxu1 %vm22_vm1, %v1665_v48  ;;  %3084 = vmatmul.msk.bf16.gmra.mxu2 %vm22_vm1, %v3064_v44  ;;  %v3067_v47 = vld [vmem:[%s4715_s0 + $0x60] sm:$0xf] }
  0xd7   :  { %v932_v17 = vld [vmem:[#allocation2 + $0x20] sm:$0xff]  ;;  %v1666_v4 = vpack.c.b16 %v1655_v46, %v1654_v45  ;;  %v3068_v5 = vor.u32 %v3207_v37, %v3067_v47  ;;  %v2141_v39 = vrot.slane %v2140_v63, 4  ;;  %v2165_v37 = vshll.u32 %v3113_v33, 16 }
  0xd8   :  { %3125 = vmatmul.msk.bf16.gmra.mxu3 %vm22_vm1, %v2254_v1  ;;  %v1066_v21 = vadd.f32 %v4120_v9, %v932_v17  ;;  %900 = vst.msk [vmem:[#allocation2 + $0x28] sm:$0xff] %vm22_vm1, %v884_v10  ;;  %v2118_v9 = vsel %vm3366_vm7, %v2113_v7, %v2117_v50  ;;  %3182 = vmatmul.msk.bf16.gmra.mxu0 %vm22_vm1, %v2532_v14  ;;  %v2150_v1 = vrot.slane %v2148_v43, 4  ;;  %v2996_v7 = vld [vmem:[%s4715_s0 + $0x6c] sm:$0x1]  ;;  %v2143_v50 = vshll.u32 %v3110_v53, 16 }
  0xd9   :  { %v1353_v23 = vld [vmem:[#allocation2 + $0x18] sm:$0xff]  ;;  %v854_v24 = vpop.f32.mrf.mxu2  ;;  %v2243_v51 = vunpack.c.l.b16 %v2118_v9  ;;  %v2157_v14 = vshll.u32 %v3112_v56, 16  ;;  %v2522_v17 = vunpack.c.l.b16 %v2470_v62  ;;  %v1606_v26 = vrot.slane %v2996_v7, 5  ;;  %v489_v56 = vld [vmem:[#allocation2 + $0x48] sm:$0xff]  ;;  %v3114_v7 = vld [vmem:[%s4715_s0 + $0x84] sm:$0x1] }
  0xda   :  { %1082 = vst.msk [vmem:[#allocation2 + $0x20] sm:$0xff] %vm22_vm1, %v1066_v21  ;;  %v1471_v13 = vadd.f32 %v4062_v16, %v1353_v23  ;;  %v2151_v16 = vshll.u32 %v3111_v28, 16  ;;  %v1610_v9 = vrot.slane %v2998_v12, 5  ;;  %v2145_v28 = vrot.slane %v2143_v50, 5  ;;  %v3116_v12 = vld [vmem:[%s4715_s0 + $0x8c] sm:$0x1] }
  0xdb   :  { %v4202_v29 = vpop.f32.mrf.mxu3  ;;  %v575_v35 = vpop.f32.mrf.mxu1  ;;  %v2255_v21 = vpack.c.b16 %v2244_v52, %v2243_v51  ;;  %v2159_v30 = vrot.slane %v2157_v14, 5  ;;  %v2533_v32 = vpack.c.b16 %v2522_v17, %v2521_v15  ;;  %v1607_v47 = vsel %vm3345_vm4, %v3017_v22, %v1606_v26 }
  0xdc   :  { %1487 = vst.msk [vmem:[#allocation2 + $0x18] sm:$0xff] %vm22_vm1, %v1471_v13  ;;  %v605_v25 = vadd.f32 %v575_v35, %v487_v34  ;;  %v2153_v2 = vrot.slane %v2151_v16, 5  ;;  %v3115_v34 = vld [vmem:[%s4715_s0 + $0x88] sm:$0xf]  ;;  %v3152_v16 = vld [vmem:[%s4715_s0 + $0x78] sm:$0xe]  ;;  %v1611_v52 = vsel %vm3345_vm4, %v3018_v27, %v1610_v9  ;;  %v2474_v63 = vsel %vm3345_vm4, %v3172_v60, %v2473_v61 }
  0xdd   :  { %v767_v44 = vld [vmem:[#allocation2 + $0x30] sm:$0xff]  ;;  %v4218_v55 = vpop.f32.mrf.mxu0  ;;  %v2176_v53 = vshrl.u32 %v3115_v34, 16  ;;  %v3173_v62 = vrot.slane %v3152_v16, 9  ;;  %v1657_v6 = vunpack.c.l.b16 %v1611_v52  ;;  %v2523_v40 = vunpack.c.l.b16 %v2474_v63 }
  0xde   :  { %v885_v48 = vadd.f32 %v854_v24, %v767_v44  ;;  %621 = vst.msk [vmem:[#allocation2 + $0x38] sm:$0xff] %vm22_vm1, %v605_v25  ;;  %v2154_v23 = vor.u32 %v2153_v2, %v2150_v1  ;;  %v3153_v44 = vld [vmem:[%s4715_s0 + $0x7c] sm:$0x1]  ;;  %v3208_v2 = vld [vmem:[%s4715_s0 + $0x74] sm:$0xf0] }
  0xdf   :  { %v933_v31 = vld [vmem:[#allocation2 + $0x28] sm:$0xff]  ;;  %v2178_v14 = vrot.slane %v2176_v53, 4 }
  0xe0   :  { %v1067_v0 = vadd.f32 %v4159_v54, %v933_v31  ;;  %901 = vst.msk [vmem:[#allocation2 + $0x30] sm:$0xff] %vm22_vm1, %v885_v48  ;;  %v2155_v43 = vrot.slane %v2154_v23, 4  ;;  %v2162_v48 = vshrl.u32 %v3113_v33, 16  ;;  %v2179_v31 = vshll.u32 %v3115_v34, 16  ;;  %v3001_v34 = vld [vmem:[%s4715_s0 + $0x80] sm:$0xe] }
  0xe1   :  { %v1354_v38 = vld [vmem:[#allocation2 + $0x20] sm:$0xff]  ;;  %v856_v3 = vpop.f32.mrf.mxu2 }
  0xe2   :  { %1083 = vst.msk [vmem:[#allocation2 + $0x28] sm:$0xff] %vm22_vm1, %v1067_v0  ;;  %v1472_v54 = vadd.f32 %v4100_v57, %v1354_v38  ;;  %v2477_v0 = vrot.slane %v3153_v44, 5  ;;  %v2146_v38 = vsel %vm3366_vm7, %v2141_v39, %v2145_v28  ;;  %v2164_v50 = vrot.slane %v2162_v48, 4  ;;  %v3000_v28 = vld [vmem:[%s4715_s0 + $0x7c] sm:$0x1] }
  0xe3   :  { %v4237_v10 = vpop.f32.mrf.mxu3  ;;  %v578_v20 = vpop.f32.mrf.mxu1  ;;  %v2181_v15 = vrot.slane %v2179_v31, 5 }
  0xe4   :  { %1488 = vst.msk [vmem:[#allocation2 + $0x20] sm:$0xff] %vm22_vm1, %v1472_v54  ;;  %v606_v57 = vadd.f32 %v578_v20, %v488_v19  ;;  %v2167_v54 = vrot.slane %v2165_v37, 5  ;;  %v2245_v19 = vunpack.c.l.b16 %v2146_v38 }
  0xe5   :  { %v768_v24 = vld [vmem:[#allocation2 + $0x38] sm:$0xff]  ;;  %v4256_v36 = vpop.f32.mrf.mxu0  ;;  %v2182_v39 = vor.u32 %v2181_v15, %v2178_v14 }
  0xe6   :  { %v886_v13 = vadd.f32 %v856_v3, %v768_v24  ;;  %622 = vst.msk [vmem:[#allocation2 + $0x40] sm:$0xff] %vm22_vm1, %v606_v57  ;;  %3028 = vmatmul.msk.bf16.gmra.mxu1 %vm22_vm1, %v1666_v4  ;;  %3085 = vmatmul.msk.bf16.gmra.mxu2 %vm22_vm1, %v3068_v5  ;;  %v2160_v3 = vsel %vm3366_vm7, %v2155_v43, %v2159_v30  ;;  %v1656_v5 = vunpack.c.l.b16 %v1607_v47  ;;  %v2999_v24 = vld [vmem:[%s4715_s0 + $0x78] sm:$0xe]  ;;  %v2171_v30 = vshll.u32 %v3114_v7, 16 }
  0xe7   :  { %v934_v35 = vld [vmem:[#allocation2 + $0x30] sm:$0xff]  ;;  %v2246_v20 = vunpack.c.l.b16 %v2160_v3  ;;  %v2478_v57 = vsel %vm3345_vm4, %v3173_v62, %v2477_v0  ;;  %v3020_v47 = vrot.slane %v3001_v34, 9  ;;  %v2183_v53 = vrot.slane %v2182_v39, 4  ;;  %v3154_v62 = vld [vmem:[%s4715_s0 + $0x80] sm:$0xe]  ;;  %v491_v14 = vld [vmem:[#allocation2 + $0x58] sm:$0xff] }
  0xe8   :  { %3126 = vmatmul.msk.bf16.gmra.mxu3 %vm22_vm1, %v2255_v21  ;;  %v1068_v25 = vadd.f32 %v4202_v29, %v934_v35  ;;  %902 = vst.msk [vmem:[#allocation2 + $0x38] sm:$0xff] %vm22_vm1, %v886_v13  ;;  %3183 = vmatmul.msk.bf16.gmra.mxu0 %vm22_vm1, %v2533_v32  ;;  %v1667_v9 = vpack.c.b16 %v1657_v6, %v1656_v5  ;;  %v2185_v32 = vshll.u32 %v3116_v12, 16  ;;  %v3002_v35 = vld [vmem:[%s4715_s0 + $0x84] sm:$0x1]  ;;  %v2524_v42 = vunpack.c.l.b16 %v2478_v57  ;;  %v3119_v6 = vld [vmem:[%s4715_s0 + $0x98] sm:$0xf] }
  0xe9   :  { %v1355_v45 = vld [vmem:[#allocation2 + $0x28] sm:$0xff]  ;;  %v859_v46 = vpop.f32.mrf.mxu2  ;;  %v2168_v13 = vor.u32 %v2167_v54, %v2164_v50  ;;  %v2256_v16 = vpack.c.b16 %v2246_v20, %v2245_v19  ;;  %v1618_v48 = vrot.slane %v3002_v35, 5  ;;  %v3155_v0 = vld [vmem:[%s4715_s0 + $0x84] sm:$0x1]  ;;  %v3120_v35 = vld [vmem:[%s4715_s0 + $0x9c] sm:$0x1] }
  0xea   :  { %1084 = vst.msk [vmem:[#allocation2 + $0x30] sm:$0xff] %vm22_vm1, %v1068_v25  ;;  %v1473_v29 = vadd.f32 %v4143_v41, %v1355_v45  ;;  %v3071_v41 = vld [vmem:[%s4715_s0 + $0x70] sm:$0xf]  ;;  %v1614_v45 = vrot.slane %v3000_v28, 5  ;;  %v2187_v31 = vrot.slane %v2185_v32, 5  ;;  %v2481_v19 = vrot.slane %v3155_v0, 5 }
  0xeb   :  { %v4276_v51 = vpop.f32.mrf.mxu3  ;;  %v580_v58 = vpop.f32.mrf.mxu1  ;;  %v3072_v23 = vor.u32 %v3208_v2, %v3071_v41  ;;  %v490_v25 = vld [vmem:[#allocation2 + $0x50] sm:$0xff]  ;;  %v2169_v37 = vrot.slane %v2168_v13, 4  ;;  %v3156_v41 = vld [vmem:[%s4715_s0 + $0x88] sm:$0xe]  ;;  %v3157_v2 = vld [vmem:[%s4715_s0 + $0x8c] sm:$0x1]  ;;  %v1619_v5 = vsel %vm3345_vm4, %v3020_v47, %v1618_v48 }
  0xec   :  { %1489 = vst.msk [vmem:[#allocation2 + $0x28] sm:$0xff] %vm22_vm1, %v1473_v29  ;;  %v607_v1 = vadd.f32 %v580_v58, %v489_v56  ;;  %v2173_v29 = vrot.slane %v2171_v30, 5  ;;  %v2534_v56 = vpack.c.b16 %v2524_v42, %v2523_v40  ;;  %v3117_v58 = vld [vmem:[%s4715_s0 + $0x90] sm:$0xf]  ;;  %v2188_v54 = vsel %vm3366_vm7, %v2183_v53, %v2187_v31  ;;  %v3209_v28 = vld [vmem:[%s4715_s0 + $0x84] sm:$0xf0] }
  0xed   :  { %v769_v4 = vld [vmem:[#allocation2 + $0x40] sm:$0xff]  ;;  %v4299_v21 = vpop.f32.mrf.mxu0  ;;  %v2193_v12 = vshll.u32 %v3117_v58, 16  ;;  %v3175_v20 = vrot.slane %v3156_v41, 9  ;;  %v2485_v63 = vrot.slane %v3157_v2, 5  ;;  %v2248_v30 = vunpack.c.l.b16 %v2188_v54  ;;  %v3118_v32 = vld [vmem:[%s4715_s0 + $0x94] sm:$0x1] }
  0xee   :  { %v887_v11 = vadd.f32 %v859_v46, %v769_v4  ;;  %623 = vst.msk [vmem:[#allocation2 + $0x48] sm:$0xff] %vm22_vm1, %v607_v1  ;;  %v3003_v48 = vld [vmem:[%s4715_s0 + $0x88] sm:$0xe]  ;;  %v3005_v53 = vld [vmem:[%s4715_s0 + $0x90] sm:$0xe] }
  0xef   :  { %v935_v17 = vld [vmem:[#allocation2 + $0x38] sm:$0xff]  ;;  %v2195_v40 = vrot.slane %v2193_v12, 5  ;;  %v3006_v31 = vld [vmem:[%s4715_s0 + $0x94] sm:$0x1] }
  0xf0   :  { %v1069_v22 = vadd.f32 %v4237_v10, %v935_v17  ;;  %903 = vst.msk [vmem:[#allocation2 + $0x40] sm:$0xff] %vm22_vm1, %v887_v11  ;;  %v2190_v11 = vshrl.u32 %v3117_v58, 16  ;;  %v3174_v17 = vrot.slane %v3154_v62, 9  ;;  %v492_v62 = vld [vmem:[#allocation2 + $0x60] sm:$0xff] }
  0xf1   :  { %v1356_v26 = vld [vmem:[#allocation2 + $0x30] sm:$0xff]  ;;  %v861_v27 = vpop.f32.mrf.mxu2 }
  0xf2   :  { %1085 = vst.msk [vmem:[#allocation2 + $0x38] sm:$0xff] %vm22_vm1, %v1069_v22  ;;  %v1474_v10 = vadd.f32 %v4175_v18, %v1356_v26  ;;  %v3019_v18 = vrot.slane %v2999_v24, 9  ;;  %v2204_v22 = vshrl.u32 %v3119_v6, 16  ;;  %v1659_v26 = vunpack.c.l.b16 %v1619_v5 }
  0xf3   :  { %v4315_v33 = vpop.f32.mrf.mxu3  ;;  %v583_v43 = vpop.f32.mrf.mxu1  ;;  %v2192_v39 = vrot.slane %v2190_v11, 4  ;;  %v2482_v42 = vsel %vm3345_vm4, %v3174_v17, %v2481_v19  ;;  %v3022_v5 = vrot.slane %v3005_v53, 9  ;;  %v3158_v17 = vld [vmem:[%s4715_s0 + $0x90] sm:$0xe]  ;;  %v3159_v19 = vld [vmem:[%s4715_s0 + $0x94] sm:$0x1] }
  0xf4   :  { %1490 = vst.msk [vmem:[#allocation2 + $0x30] sm:$0xff] %vm22_vm1, %v1474_v10  ;;  %v608_v44 = vadd.f32 %v583_v43, %v490_v25  ;;  %v1615_v4 = vsel %vm3345_vm4, %v3019_v18, %v1614_v45  ;;  %v2486_v25 = vsel %vm3345_vm4, %v3175_v20, %v2485_v63  ;;  %v2525_v58 = vunpack.c.l.b16 %v2482_v42 }
  0xf5   :  { %v770_v46 = vld [vmem:[#allocation2 + $0x48] sm:$0xff]  ;;  %v4331_v61 = vpop.f32.mrf.mxu0  ;;  %v1658_v24 = vunpack.c.l.b16 %v1615_v4  ;;  %v2196_v41 = vor.u32 %v2195_v40, %v2192_v39 }
  0xf6   :  { %v888_v52 = vadd.f32 %v861_v27, %v770_v46  ;;  %624 = vst.msk [vmem:[#allocation2 + $0x50] sm:$0xff] %vm22_vm1, %v608_v44  ;;  %3029 = vmatmul.msk.bf16.gmra.mxu1 %vm22_vm1, %v1667_v9  ;;  %3086 = vmatmul.msk.bf16.gmra.mxu2 %vm22_vm1, %v3072_v23  ;;  %v3075_v27 = vld [vmem:[%s4715_s0 + $0x80] sm:$0xf] }
  0xf7   :  { %v936_v60 = vld [vmem:[#allocation2 + $0x40] sm:$0xff]  ;;  %v1668_v46 = vpack.c.b16 %v1659_v26, %v1658_v24  ;;  %v3076_v47 = vor.u32 %v3209_v28, %v3075_v27 }
  0xf8   :  { %3127 = vmatmul.msk.bf16.gmra.mxu3 %vm22_vm1, %v2256_v16  ;;  %v1070_v1 = vadd.f32 %v4276_v51, %v936_v60  ;;  %904 = vst.msk [vmem:[#allocation2 + $0x48] sm:$0xff] %vm22_vm1, %v888_v52  ;;  %v2174_v51 = vsel %vm3366_vm7, %v2169_v37, %v2173_v29  ;;  %3184 = vmatmul.msk.bf16.gmra.mxu0 %vm22_vm1, %v2534_v56  ;;  %v2206_v16 = vrot.slane %v2204_v22, 4  ;;  %v3004_v37 = vld [vmem:[%s4715_s0 + $0x8c] sm:$0x1]  ;;  %v2199_v29 = vshll.u32 %v3118_v32, 16 }
  0xf9   :  { %v1357_v38 = vld [vmem:[#allocation2 + $0x38] sm:$0xff]  ;;  %v864_v3 = vpop.f32.mrf.mxu2  ;;  %v2247_v13 = vunpack.c.l.b16 %v2174_v51  ;;  %v2213_v56 = vshll.u32 %v3120_v35, 16  ;;  %v2526_v60 = vunpack.c.l.b16 %v2486_v25  ;;  %v1622_v4 = vrot.slane %v3004_v37, 5 }
  0xfa   :  { %1086 = vst.msk [vmem:[#allocation2 + $0x40] sm:$0xff] %vm22_vm1, %v1070_v1  ;;  %v1475_v7 = vadd.f32 %v4218_v55, %v1357_v38  ;;  %v2207_v55 = vshll.u32 %v3119_v6, 16  ;;  %v1626_v51 = vrot.slane %v3006_v31, 5  ;;  %v3161_v22 = vld [vmem:[%s4715_s0 + $0x9c] sm:$0x1] }
  0xfb   :  { %v4358_v50 = vpop.f32.mrf.mxu3  ;;  %v585_v15 = vpop.f32.mrf.mxu1  ;;  %v2257_v1 = vpack.c.b16 %v2248_v30, %v2247_v13  ;;  %v2215_v54 = vrot.slane %v2213_v56, 5  ;;  %v2535_v11 = vpack.c.b16 %v2526_v60, %v2525_v58  ;;  %v3176_v13 = vrot.slane %v3158_v17, 9 }
  0xfc   :  { %1491 = vst.msk [vmem:[#allocation2 + $0x38] sm:$0xff] %vm22_vm1, %v1475_v7  ;;  %v609_v57 = vadd.f32 %v585_v15, %v491_v14  ;;  %v2209_v44 = vrot.slane %v2207_v55, 5  ;;  %v2201_v7 = vrot.slane %v2199_v29, 5  ;;  %v2197_v15 = vrot.slane %v2196_v41, 4 }
  0xfd   :  { %v771_v23 = vld [vmem:[#allocation2 + $0x50] sm:$0xff]  ;;  %v4374_v34 = vpop.f32.mrf.mxu0  ;;  %v1627_v27 = vsel %vm3345_vm4, %v3022_v5, %v1626_v51  ;;  %v2489_v30 = vrot.slane %v3159_v19, 5 }
  0xfe   :  { %v889_v9 = vadd.f32 %v864_v3, %v771_v23  ;;  %625 = vst.msk [vmem:[#allocation2 + $0x58] sm:$0xff] %vm22_vm1, %v609_v57  ;;  %v2210_v2 = vor.u32 %v2209_v44, %v2206_v16  ;;  %v3021_v3 = vrot.slane %v3003_v48, 9  ;;  %v3160_v57 = vld [vmem:[%s4715_s0 + $0x98] sm:$0xe]  ;;  %v3079_v16 = vld [vmem:[%s4715_s0 + $0x90] sm:$0xf] }
  0xff   :  { %v937_v10 = vld [vmem:[#allocation2 + $0x48] sm:$0xff]  ;;  %v3177_v32 = vrot.slane %v3160_v57, 9  ;;  %v3210_v44 = vld [vmem:[%s4715_s0 + $0x94] sm:$0xf0]  ;;  %v2490_v8 = vsel %vm3345_vm4, %v3176_v13, %v2489_v30 }
 0x100   :  { %v1071_v43 = vadd.f32 %v4315_v33, %v937_v10  ;;  %905 = vst.msk [vmem:[#allocation2 + $0x50] sm:$0xff] %vm22_vm1, %v889_v9  ;;  %v2211_v63 = vrot.slane %v2210_v2, 4  ;;  %v493_v9 = vld [vmem:[#allocation2 + $0x68] sm:$0xff]  ;;  %v2493_v10 = vrot.slane %v3161_v22, 5  ;;  %v3080_v53 = vor.u32 %v3210_v44, %v3079_v16 }
 0x101   :  { %v1358_v18 = vld [vmem:[#allocation2 + $0x40] sm:$0xff]  ;;  %v866_v45 = vpop.f32.mrf.mxu2  ;;  %v2527_v60 = vunpack.c.l.b16 %v2490_v8 }
 0x102   :  { %1087 = vst.msk [vmem:[#allocation2 + $0x48] sm:$0xff] %vm22_vm1, %v1071_v43  ;;  %v1476_v33 = vadd.f32 %v4256_v36, %v1358_v18  ;;  %v2216_v39 = vsel %vm3366_vm7, %v2211_v63, %v2215_v54  ;;  %v1661_v43 = vunpack.c.l.b16 %v1627_v27  ;;  %v2494_v48 = vsel %vm3345_vm4, %v3177_v32, %v2493_v10  ;;  %v1629_v10 = vld [vmem:[#allocation2 + $0x8] sm:$0xff] }
 0x103   :  { %v4393_v52 = vpop.f32.mrf.mxu3  ;;  %v588_v0 = vpop.f32.mrf.mxu1 }
 0x104   :  { %1492 = vst.msk [vmem:[#allocation2 + $0x40] sm:$0xff] %vm22_vm1, %v1476_v33  ;;  %v610_v36 = vadd.f32 %v588_v0, %v492_v62  ;;  %v2528_v62 = vunpack.c.l.b16 %v2494_v48  ;;  %v494_v0 = vld [vmem:[#allocation2 + $0x70] sm:$0xff] }
 0x105   :  { %v772_v38 = vld [vmem:[#allocation2 + $0x58] sm:$0xff]  ;;  %v4406_v14 = vpop.f32.mrf.mxu0 }
 0x106   :  { %v890_v6 = vadd.f32 %v866_v45, %v772_v38  ;;  %626 = vst.msk [vmem:[#allocation2 + $0x60] sm:$0xff] %vm22_vm1, %v610_v36  ;;  %3030 = vmatmul.msk.bf16.gmra.mxu1 %vm22_vm1, %v1668_v46  ;;  %3087 = vmatmul.msk.bf16.gmra.mxu2 %vm22_vm1, %v3076_v47  ;;  %v2250_v46 = vunpack.c.l.b16 %v2216_v39  ;;  %v2536_v2 = vpack.c.b16 %v2528_v62, %v2527_v60  ;;  %v1631_v62 = vld [vmem:[#allocation2 + $0x18] sm:$0xff] }
 0x107   :  { %v938_v12 = vld [vmem:[#allocation2 + $0x50] sm:$0xff] }
 0x108   :  { %3128 = vmatmul.msk.bf16.gmra.mxu3 %vm22_vm1, %v2257_v1  ;;  %v1072_v20 = vadd.f32 %v4358_v50, %v938_v12  ;;  %906 = vst.msk [vmem:[#allocation2 + $0x58] sm:$0xff] %vm22_vm1, %v890_v6  ;;  %v1623_v50 = vsel %vm3345_vm4, %v3021_v3, %v1622_v4  ;;  %3185 = vmatmul.msk.bf16.gmra.mxu0 %vm22_vm1, %v2535_v11 }
 0x109   :  { %v1359_v55 = vld [vmem:[#allocation2 + $0x48] sm:$0xff]  ;;  %v869_v23 = vpop.f32.mrf.mxu2  ;;  %v1660_v25 = vunpack.c.l.b16 %v1623_v50 }
 0x10a   :  { %1088 = vst.msk [vmem:[#allocation2 + $0x50] sm:$0xff] %vm22_vm1, %v1072_v20  ;;  %v1477_v24 = vadd.f32 %v4299_v21, %v1359_v55  ;;  %v2202_v21 = vsel %vm3366_vm7, %v2197_v15, %v2201_v7  ;;  %v495_v7 = vld [vmem:[#allocation2 + $0x78] sm:$0xff]  ;;  %v1628_v55 = vld [vmem:[#allocation2] sm:$0xff] }
 0x10b   :  { %v1052_v26 = vpop.f32.mrf.mxu3  ;;  %v590_v28 = vpop.f32.mrf.mxu1  ;;  %v2249_v45 = vunpack.c.l.b16 %v2202_v21  ;;  %v1669_v56 = vpack.c.b16 %v1661_v43, %v1660_v25 }
 0x10c   :  { %1493 = vst.msk [vmem:[#allocation2 + $0x48] sm:$0xff] %vm22_vm1, %v1477_v24  ;;  %v611_v35 = vadd.f32 %v590_v28, %v493_v9 }
 0x10d   :  { %v773_v40 = vld [vmem:[#allocation2 + $0x60] sm:$0xff]  ;;  %v4441_v47 = vpop.f32.mrf.mxu0  ;;  %v2258_v41 = vpack.c.b16 %v2250_v46, %v2249_v45  ;;  %v1630_v46 = vld [vmem:[#allocation2 + $0x10] sm:$0xff] }
 0x10e   :  { %v891_v42 = vadd.f32 %v869_v23, %v773_v40  ;;  %627 = vst.msk [vmem:[#allocation2 + $0x68] sm:$0xff] %vm22_vm1, %v611_v35 }
 0x10f   :  { %v939_v18 = vld [vmem:[#allocation2 + $0x58] sm:$0xff] }
 0x110   :  { %v1073_v37 = vadd.f32 %v4393_v52, %v939_v18  ;;  %907 = vst.msk [vmem:[#allocation2 + $0x60] sm:$0xff] %vm22_vm1, %v891_v42 }
 0x111   :  { %v1360_v29 = vld [vmem:[#allocation2 + $0x50] sm:$0xff]  ;;  %v871_v33 = vpop.f32.mrf.mxu2 }
 0x112   :  { %1089 = vst.msk [vmem:[#allocation2 + $0x58] sm:$0xff] %vm22_vm1, %v1073_v37  ;;  %v1478_v31 = vadd.f32 %v4331_v61, %v1360_v29 }
 0x113   :  { %v1054_v58 = vpop.f32.mrf.mxu3  ;;  %v593_v1 = vpop.f32.mrf.mxu1 }
 0x114   :  { %1494 = vst.msk [vmem:[#allocation2 + $0x50] sm:$0xff] %vm22_vm1, %v1478_v31  ;;  %v612_v59 = vadd.f32 %v593_v1, %v494_v0 }
 0x115   :  { %v774_v52 = vld [vmem:[#allocation2 + $0x68] sm:$0xff]  ;;  %v1463_v38 = vpop.f32.mrf.mxu0 }
 0x116   :  { %v892_v36 = vadd.f32 %v871_v33, %v774_v52  ;;  %628 = vst.msk [vmem:[#allocation2 + $0x70] sm:$0xff] %vm22_vm1, %v612_v59  ;;  %3031 = vmatmul.msk.bf16.gmra.mxu1 %vm22_vm1, %v1669_v56  ;;  %3088 = vmatmul.msk.bf16.gmra.mxu2 %vm22_vm1, %v3080_v53 }
 0x117   :  { %v940_v61 = vld [vmem:[#allocation2 + $0x60] sm:$0xff] }
 0x118   :  { %3129 = vmatmul.msk.bf16.gmra.mxu3 %vm22_vm1, %v2258_v41  ;;  %v1074_v3 = vadd.f32 %v1052_v26, %v940_v61  ;;  %908 = vst.msk [vmem:[#allocation2 + $0x68] sm:$0xff] %vm22_vm1, %v892_v36  ;;  %3186 = vmatmul.msk.bf16.gmra.mxu0 %vm22_vm1, %v2536_v2 }
 0x119   :  { %v1361_v4 = vld [vmem:[#allocation2 + $0x58] sm:$0xff]  ;;  %v874_v5 = vpop.f32.mrf.mxu2 }
 0x11a   :  { %1090 = vst.msk [vmem:[#allocation2 + $0x60] sm:$0xff] %vm22_vm1, %v1074_v3  ;;  %v1479_v51 = vadd.f32 %v4374_v34, %v1361_v4 }
 0x11b   :  { %v1057_v6 = vpop.f32.mrf.mxu3  ;;  %v595_v54 = vpop.f32.mrf.mxu1 }
 0x11c   :  { %1495 = vst.msk [vmem:[#allocation2 + $0x58] sm:$0xff] %vm22_vm1, %v1479_v51  ;;  %v613_v11 = vadd.f32 %v595_v54, %v495_v7 }
 0x11d   :  { %v775_v12 = vld [vmem:[#allocation2 + $0x70] sm:$0xff]  ;;  %v1465_v19 = vpop.f32.mrf.mxu0 }
 0x11e   :  { %v893_v15 = vadd.f32 %v874_v5, %v775_v12  ;;  %629 = vst.msk [vmem:[#allocation2 + $0x78] sm:$0xff] %vm22_vm1, %v613_v11  ;;  %v1632_v5 = vld [vmem:[#allocation2 + $0x20] sm:$0xff] }
 0x11f   :  { %v941_v17 = vld [vmem:[#allocation2 + $0x68] sm:$0xff] }
 0x120   :  { %v1075_v20 = vadd.f32 %v1054_v58, %v941_v17  ;;  %909 = vst.msk [vmem:[#allocation2 + $0x70] sm:$0xff] %vm22_vm1, %v893_v15 }
 0x121   :  { %v1362_v63 = vld [vmem:[#allocation2 + $0x60] sm:$0xff]  ;;  %v876_v57 = vpop.f32.mrf.mxu2 }
 0x122   :  { %1091 = vst.msk [vmem:[#allocation2 + $0x68] sm:$0xff] %vm22_vm1, %v1075_v20  ;;  %v1480_v34 = vadd.f32 %v4406_v14, %v1362_v63 }
 0x123   :  { %v1059_v22 = vpop.f32.mrf.mxu3  ;;  %v1706_v23 = vpop.f32.mrf.mxu1 }
 0x124   :  { %1496 = vst.msk [vmem:[#allocation2 + $0x60] sm:$0xff] %vm22_vm1, %v1480_v34  ;;  %v1746_v24 = vadd.f32 %v1706_v23, %v1628_v55 }
 0x125   :  { %v776_v26 = vld [vmem:[#allocation2 + $0x78] sm:$0xff]  ;;  %v2573_v9 = vpop.f32.mrf.mxu0 }
 0x126   :  { %v894_v50 = vadd.f32 %v876_v57, %v776_v26  ;;  %1762 = vst.msk [vmem:[#allocation2] sm:$0xff] %vm22_vm1, %v1746_v24  ;;  %v1633_v57 = vld [vmem:[#allocation2 + $0x28] sm:$0xff] }
 0x127   :  { %v942_v27 = vld [vmem:[#allocation2 + $0x70] sm:$0xff] }
 0x128   :  { %v1076_v28 = vadd.f32 %v1057_v6, %v942_v27  ;;  %910 = vst.msk [vmem:[#allocation2 + $0x78] sm:$0xff] %vm22_vm1, %v894_v50 }
 0x129   :  { %v1363_v13 = vld [vmem:[#allocation2 + $0x68] sm:$0xff]  ;;  %v1889_v30 = vpop.f32.mrf.mxu2 }
 0x12a   :  { %1092 = vst.msk [vmem:[#allocation2 + $0x70] sm:$0xff] %vm22_vm1, %v1076_v28  ;;  %v1481_v14 = vadd.f32 %v4441_v47, %v1363_v13 }
 0x12b   :  { %v2295_v32 = vpop.f32.mrf.mxu3  ;;  %v1708_v35 = vpop.f32.mrf.mxu1 }
 0x12c   :  { %1497 = vst.msk [vmem:[#allocation2 + $0x68] sm:$0xff] %vm22_vm1, %v1481_v14  ;;  %v1747_v21 = vadd.f32 %v1708_v35, %v1629_v10  ;;  %v1634_v35 = vld [vmem:[#allocation2 + $0x30] sm:$0xff] }
 0x12d   :  { %v1795_v39 = vld [vmem:[#allocation2] sm:$0xff]  ;;  %v2575_v25 = vpop.f32.mrf.mxu0 }
 0x12e   :  { %v1929_v40 = vadd.f32 %v1889_v30, %v1795_v39  ;;  %1763 = vst.msk [vmem:[#allocation2 + $0x8] sm:$0xff] %vm22_vm1, %v1747_v21 }
 0x12f   :  { %v943_v42 = vld [vmem:[#allocation2 + $0x78] sm:$0xff] }
 0x130   :  { %v1077_v43 = vadd.f32 %v1059_v22, %v943_v42  ;;  %1945 = vst.msk [vmem:[#allocation2] sm:$0xff] %vm22_vm1, %v1929_v40 }
 0x131   :  { %v1364_v16 = vld [vmem:[#allocation2 + $0x70] sm:$0xff]  ;;  %v1891_v44 = vpop.f32.mrf.mxu2 }
 0x132   :  { %1093 = vst.msk [vmem:[#allocation2 + $0x78] sm:$0xff] %vm22_vm1, %v1077_v43  ;;  %v1482_v18 = vadd.f32 %v1463_v38, %v1364_v16 }
 0x133   :  { %v2297_v45 = vpop.f32.mrf.mxu3  ;;  %v1711_v47 = vpop.f32.mrf.mxu1 }
 0x134   :  { %1498 = vst.msk [vmem:[#allocation2 + $0x70] sm:$0xff] %vm22_vm1, %v1482_v18  ;;  %v1748_v8 = vadd.f32 %v1711_v47, %v1630_v46 }
 0x135   :  { %v1796_v48 = vld [vmem:[#allocation2 + $0x8] sm:$0xff]  ;;  %v2578_v33 = vpop.f32.mrf.mxu0 }
 0x136   :  { %v1930_v37 = vadd.f32 %v1891_v44, %v1796_v48  ;;  %1764 = vst.msk [vmem:[#allocation2 + $0x10] sm:$0xff] %vm22_vm1, %v1748_v8 }
 0x137   :  { %v2217_v29 = vld [vmem:[#allocation2] sm:$0xff] }
 0x138   :  { %v2335_v53 = vadd.f32 %v2295_v32, %v2217_v29  ;;  %1946 = vst.msk [vmem:[#allocation2 + $0x8] sm:$0xff] %vm22_vm1, %v1930_v37 }
 0x139   :  { %v1365_v31 = vld [vmem:[#allocation2 + $0x78] sm:$0xff]  ;;  %v1894_v56 = vpop.f32.mrf.mxu2 }
 0x13a   :  { %2351 = vst.msk [vmem:[#allocation2] sm:$0xff] %vm22_vm1, %v2335_v53  ;;  %v1483_v58 = vadd.f32 %v1465_v19, %v1365_v31 }
 0x13b   :  { %v2300_v60 = vpop.f32.mrf.mxu3  ;;  %v1713_v0 = vpop.f32.mrf.mxu1 }
 0x13c   :  { %1499 = vst.msk [vmem:[#allocation2 + $0x78] sm:$0xff] %vm22_vm1, %v1483_v58  ;;  %v1749_v1 = vadd.f32 %v1713_v0, %v1631_v62 }
 0x13d   :  { %v1797_v41 = vld [vmem:[#allocation2 + $0x10] sm:$0xff]  ;;  %v4481_v38 = vpop.f32.mrf.mxu0 }
 0x13e   :  { %v1931_v59 = vadd.f32 %v1894_v56, %v1797_v41  ;;  %1765 = vst.msk [vmem:[#allocation2 + $0x18] sm:$0xff] %vm22_vm1, %v1749_v1  ;;  %v1635_v56 = vld [vmem:[#allocation2 + $0x38] sm:$0xff] }
 0x13f   :  { %v2218_v52 = vld [vmem:[#allocation2 + $0x8] sm:$0xff] }
 0x140   :  { %v2336_v36 = vadd.f32 %v2297_v45, %v2218_v52  ;;  %1947 = vst.msk [vmem:[#allocation2 + $0x10] sm:$0xff] %vm22_vm1, %v1931_v59 }
 0x141   :  { %v2495_v2 = vld [vmem:[#allocation2] sm:$0xff]  ;;  %v1896_v61 = vpop.f32.mrf.mxu2 }
 0x142   :  { %2352 = vst.msk [vmem:[#allocation2 + $0x8] sm:$0xff] %vm22_vm1, %v2336_v36  ;;  %v2613_v3 = vadd.f32 %v2573_v9, %v2495_v2 }
 0x143   :  { %v2302_v4 = vpop.f32.mrf.mxu3  ;;  %v1716_v51 = vpop.f32.mrf.mxu1 }
 0x144   :  { %2629 = vst.msk [vmem:[#allocation2] sm:$0xff] %vm22_vm1, %v2613_v3  ;;  %v1750_v6 = vadd.f32 %v1716_v51, %v1632_v5 }
 0x145   :  { %v1798_v7 = vld [vmem:[#allocation2 + $0x18] sm:$0xff]  ;;  %v4488_v22 = vpop.f32.mrf.mxu0 }
 0x146   :  { %v1932_v54 = vadd.f32 %v1896_v61, %v1798_v7  ;;  %1766 = vst.msk [vmem:[#allocation2 + $0x20] sm:$0xff] %vm22_vm1, %v1750_v6 }
 0x147   :  { %v2219_v11 = vld [vmem:[#allocation2 + $0x10] sm:$0xff] }
 0x148   :  { %v2337_v12 = vadd.f32 %v2300_v60, %v2219_v11  ;;  %1948 = vst.msk [vmem:[#allocation2 + $0x18] sm:$0xff] %vm22_vm1, %v1932_v54  ;;  %v1636_v54 = vld [vmem:[#allocation2 + $0x40] sm:$0xff] }
 0x149   :  { %v2496_v15 = vld [vmem:[#allocation2 + $0x8] sm:$0xff]  ;;  %v1899_v17 = vpop.f32.mrf.mxu2 }
 0x14a   :  { %2353 = vst.msk [vmem:[#allocation2 + $0x10] sm:$0xff] %vm22_vm1, %v2337_v12  ;;  %v2614_v19 = vadd.f32 %v2575_v25, %v2496_v15 }
 0x14b   :  { %v2305_v20 = vpop.f32.mrf.mxu3  ;;  %v2645_v63 = vld [vmem:[#allocation2] sm:$0xff]  ;;  %v1718_v34 = vpop.f32.mrf.mxu1 }
 0x14c   :  { %v2661_v55 = vpack.c.bf16 %v2645_v63, %v2645_v63  ;;  %2630 = vst.msk [vmem:[#allocation2 + $0x8] sm:$0xff] %vm22_vm1, %v2614_v19  ;;  %v1751_v23 = vadd.f32 %v1718_v34, %v1633_v57  ;;  %v2736_v13 = vmul.f32 %v2645_v63, %v2645_v63  ;;  %v2695_v32 = vsel %vm22_vm1, %v2645_v63, 0.0 }
 0x14d   :  { %v1799_v24 = vld [vmem:[#allocation2 + $0x20] sm:$0xff]  ;;  %v4501_v16 = vpop.f32.mrf.mxu0 }
 0x14e   :  { %2678 = vst.msk [vmem:[%s4716_s2] sm:$0xf] %vm2677_vm8, %v2661_v55  ;;  %v1933_v26 = vadd.f32 %v1899_v17, %v1799_v24  ;;  %v2752_v44 = vsel %vm22_vm1, %v2736_v13, 0.0  ;;  %v1637_v13 = vld [vmem:[#allocation2 + $0x48] sm:$0xff] }
 0x14f   :  { %v2220_v50 = vld [vmem:[#allocation2 + $0x18] sm:$0xff]  ;;  %1767 = vst.msk [vmem:[#allocation2 + $0x28] sm:$0xff] %vm22_vm1, %v1751_v23 }
 0x150   :  { %v2338_v27 = vadd.f32 %v2302_v4, %v2220_v50  ;;  %1949 = vst.msk [vmem:[#allocation2 + $0x20] sm:$0xff] %vm22_vm1, %v1933_v26 }
 0x151   :  { %v2497_v9 = vld [vmem:[#allocation2 + $0x10] sm:$0xff]  ;;  %v1901_v28 = vpop.f32.mrf.mxu2 }
 0x152   :  { %2354 = vst.msk [vmem:[#allocation2 + $0x18] sm:$0xff] %vm22_vm1, %v2338_v27  ;;  %v2615_v30 = vadd.f32 %v2578_v33, %v2497_v9 }
 0x153   :  { %v2307_v14 = vpop.f32.mrf.mxu3  ;;  %v2646_v10 = vld [vmem:[#allocation2 + $0x8] sm:$0xff]  ;;  %v1721_v21 = vpop.f32.mrf.mxu1 }
 0x154   :  { %v2662_v39 = vpack.c.bf16 %v2646_v10, %v2646_v10  ;;  %v2696_v40 = vsel %vm22_vm1, %v2646_v10, 0.0  ;;  %v2737_v42 = vmul.f32 %v2646_v10, %v2646_v10  ;;  %2631 = vst.msk [vmem:[#allocation2 + $0x10] sm:$0xff] %vm22_vm1, %v2615_v30  ;;  %v1752_v25 = vadd.f32 %v1721_v21, %v1634_v35 }
 0x155   :  { %v2697_v43 = vadd.f32 %v2696_v40, %v2695_v32  ;;  %v2588_v61 = vpop.f32.mrf.mxu0 }
 0x156   :  { %2679 = vst.msk [vmem:[%s4716_s2 + $0x4] sm:$0xf] %vm2677_vm8, %v2662_v39  ;;  %v2753_v18 = vsel %vm22_vm1, %v2737_v42, 0.0  ;;  %v1800_v45 = vld [vmem:[#allocation2 + $0x28] sm:$0xff] }
 0x157   :  { %v2754_v46 = vadd.f32 %v2753_v18, %v2752_v44  ;;  %v2221_v47 = vld [vmem:[#allocation2 + $0x20] sm:$0xff]  ;;  %v1934_v8 = vadd.f32 %v1901_v28, %v1800_v45  ;;  %1768 = vst.msk [vmem:[#allocation2 + $0x30] sm:$0xff] %vm22_vm1, %v1752_v25 }
 0x158   :  { %v2339_v48 = vadd.f32 %v2305_v20, %v2221_v47 }
 0x159   :  { %1950 = vst.msk [vmem:[#allocation2 + $0x28] sm:$0xff] %vm22_vm1, %v1934_v8  ;;  %v2498_v37 = vld [vmem:[#allocation2 + $0x18] sm:$0xff]  ;;  %v1904_v29 = vpop.f32.mrf.mxu2 }
 0x15a   :  { %2355 = vst.msk [vmem:[#allocation2 + $0x20] sm:$0xff] %vm22_vm1, %v2339_v48  ;;  %v2616_v33 = vadd.f32 %v4481_v38, %v2498_v37 }
 0x15b   :  { %v2310_v53 = vpop.f32.mrf.mxu3  ;;  %v2647_v31 = vld [vmem:[#allocation2 + $0x10] sm:$0xff]  ;;  %v1723_v58 = vpop.f32.mrf.mxu1 }
 0x15c   :  { %v2663_v60 = vpack.c.bf16 %v2647_v31, %v2647_v31  ;;  %v2698_v62 = vsel %vm22_vm1, %v2647_v31, 0.0  ;;  %v2738_v0 = vmul.f32 %v2647_v31, %v2647_v31  ;;  %2632 = vst.msk [vmem:[#allocation2 + $0x18] sm:$0xff] %vm22_vm1, %v2616_v33  ;;  %v1753_v1 = vadd.f32 %v1723_v58, %v1635_v56 }
 0x15d   :  { %v2699_v41 = vadd.f32 %v2698_v62, %v2697_v43  ;;  %v2590_v26 = vpop.f32.mrf.mxu0 }
 0x15e   :  { %2680 = vst.msk [vmem:[%s4716_s2 + $0x8] sm:$0xf] %vm2677_vm8, %v2663_v60  ;;  %v2755_v59 = vsel %vm22_vm1, %v2738_v0, 0.0  ;;  %v1801_v52 = vld [vmem:[#allocation2 + $0x30] sm:$0xff] }
 0x15f   :  { %v2756_v36 = vadd.f32 %v2755_v59, %v2754_v46  ;;  %v1935_v2 = vadd.f32 %v1904_v29, %v1801_v52  ;;  %1769 = vst.msk [vmem:[#allocation2 + $0x38] sm:$0xff] %vm22_vm1, %v1753_v1  ;;  %v1638_v46 = vld [vmem:[#allocation2 + $0x50] sm:$0xff]  ;;  %v1639_v1 = vld [vmem:[#allocation2 + $0x58] sm:$0xff] }
 0x160   :  { %v2222_v38 = vld [vmem:[#allocation2 + $0x28] sm:$0xff] }
 0x161   :  { %v2340_v3 = vadd.f32 %v2307_v14, %v2222_v38  ;;  %1951 = vst.msk [vmem:[#allocation2 + $0x30] sm:$0xff] %vm22_vm1, %v1935_v2  ;;  %v2499_v4 = vld [vmem:[#allocation2 + $0x20] sm:$0xff]  ;;  %v1906_v5 = vpop.f32.mrf.mxu2 }
 0x162   :  { %v2617_v51 = vadd.f32 %v4488_v22, %v2499_v4 }
 0x163   :  { %v2312_v6 = vpop.f32.mrf.mxu3  ;;  %v2648_v7 = vld [vmem:[#allocation2 + $0x18] sm:$0xff]  ;;  %2356 = vst.msk [vmem:[#allocation2 + $0x28] sm:$0xff] %vm22_vm1, %v2340_v3  ;;  %v1726_v11 = vpop.f32.mrf.mxu1 }
 0x164   :  { %v2664_v12 = vpack.c.bf16 %v2648_v7, %v2648_v7  ;;  %v2700_v15 = vsel %vm22_vm1, %v2648_v7, 0.0  ;;  %v2739_v17 = vmul.f32 %v2648_v7, %v2648_v7  ;;  %2633 = vst.msk [vmem:[#allocation2 + $0x20] sm:$0xff] %vm22_vm1, %v2617_v51  ;;  %v1754_v19 = vadd.f32 %v1726_v11, %v1636_v54  ;;  %v1640_v54 = vld [vmem:[#allocation2 + $0x60] sm:$0xff] }
 0x165   :  { %v2701_v20 = vadd.f32 %v2700_v15, %v2699_v41  ;;  %v2593_v8 = vpop.f32.mrf.mxu0 }
 0x166   :  { %2681 = vst.msk [vmem:[%s4716_s2 + $0xc] sm:$0xf] %vm2677_vm8, %v2664_v12  ;;  %v2757_v63 = vsel %vm22_vm1, %v2739_v17, 0.0  ;;  %v1802_v57 = vld [vmem:[#allocation2 + $0x38] sm:$0xff] }
 0x167   :  { %v2758_v34 = vadd.f32 %v2757_v63, %v2756_v36  ;;  %v1936_v22 = vadd.f32 %v1906_v5, %v1802_v57  ;;  %1770 = vst.msk [vmem:[#allocation2 + $0x40] sm:$0xff] %vm22_vm1, %v1754_v19 }
 0x168   :  { %v2223_v55 = vld [vmem:[#allocation2 + $0x30] sm:$0xff] }
 0x169   :  { %v2341_v23 = vadd.f32 %v2310_v53, %v2223_v55  ;;  %1952 = vst.msk [vmem:[#allocation2 + $0x38] sm:$0xff] %vm22_vm1, %v1936_v22  ;;  %v1909_v24 = vpop.f32.mrf.mxu2 }
 0x16a   :  { %v2500_v50 = vld [vmem:[#allocation2 + $0x28] sm:$0xff] }
 0x16b   :  { %v2315_v27 = vpop.f32.mrf.mxu3  ;;  %v2649_v9 = vld [vmem:[#allocation2 + $0x20] sm:$0xff]  ;;  %2357 = vst.msk [vmem:[#allocation2 + $0x30] sm:$0xff] %vm22_vm1, %v2341_v23  ;;  %v2618_v28 = vadd.f32 %v4501_v16, %v2500_v50  ;;  %v1728_v30 = vpop.f32.mrf.mxu1 }
 0x16c   :  { %v2665_v14 = vpack.c.bf16 %v2649_v9, %v2649_v9  ;;  %v2702_v32 = vsel %vm22_vm1, %v2649_v9, 0.0  ;;  %v2740_v10 = vmul.f32 %v2649_v9, %v2649_v9  ;;  %v1755_v35 = vadd.f32 %v1728_v30, %v1637_v13 }
 0x16d   :  { %v4536_v21 = vadd.f32 %v2702_v32, %v2701_v20  ;;  %2634 = vst.msk [vmem:[#allocation2 + $0x28] sm:$0xff] %vm22_vm1, %v2618_v28 }
 0x16e   :  { %2682 = vst.msk [vmem:[%s4716_s2 + $0x10] sm:$0xf] %vm2677_vm8, %v2665_v14  ;;  %v2759_v39 = vsel %vm22_vm1, %v2740_v10, 0.0  ;;  %v1803_v40 = vld [vmem:[#allocation2 + $0x40] sm:$0xff] }
 0x16f   :  { %v4544_v42 = vadd.f32 %v2759_v39, %v2758_v34  ;;  %v1937_v25 = vadd.f32 %v1909_v24, %v1803_v40  ;;  %1771 = vst.msk [vmem:[#allocation2 + $0x48] sm:$0xff] %vm22_vm1, %v1755_v35 }
 0x170   :  { %v2224_v43 = vld [vmem:[#allocation2 + $0x38] sm:$0xff] }
 0x171   :  { %v2342_v16 = vadd.f32 %v2312_v6, %v2224_v43  ;;  %1953 = vst.msk [vmem:[#allocation2 + $0x40] sm:$0xff] %vm22_vm1, %v1937_v25  ;;  %v1911_v44 = vpop.f32.mrf.mxu2  ;;  %v1642_v43 = vld [vmem:[#allocation2 + $0x70] sm:$0xff] }
 0x172   :  { %v2501_v18 = vld [vmem:[#allocation2 + $0x30] sm:$0xff] }
 0x173   :  { %2358 = vst.msk [vmem:[#allocation2 + $0x38] sm:$0xff] %vm22_vm1, %v2342_v16  ;;  %v2619_v45 = vadd.f32 %v2588_v61, %v2501_v18  ;;  %v1731_v47 = vpop.f32.mrf.mxu1  ;;  %v2317_v29 = vpop.f32.mrf.mxu3 }
 0x174   :  { %v4549_v48 = vld [vmem:[#allocation2 + $0x28] sm:$0xff]  ;;  %v1756_v37 = vadd.f32 %v1731_v47, %v1638_v46  ;;  %v2595_v61 = vpop.f32.mrf.mxu0 }
 0x175   :  { %v2666_v33 = vpack.c.bf16 %v4549_v48, %v4549_v48  ;;  %2635 = vst.msk [vmem:[#allocation2 + $0x30] sm:$0xff] %vm22_vm1, %v2619_v45 }
 0x176   :  { %v1804_v53 = vld [vmem:[#allocation2 + $0x48] sm:$0xff]  ;;  %1772 = vst.msk [vmem:[#allocation2 + $0x50] sm:$0xff] %vm22_vm1, %v1756_v37 }
 0x177   :  { %2683 = vst.msk [vmem:[%s4716_s2 + $0x14] sm:$0xf] %vm2677_vm8, %v2666_v33  ;;  %v1938_v31 = vadd.f32 %v1911_v44, %v1804_v53 }
 0x178   :  { %v2225_v56 = vld [vmem:[#allocation2 + $0x40] sm:$0xff] }
 0x179   :  { %v2343_v58 = vadd.f32 %v2315_v27, %v2225_v56  ;;  %1954 = vst.msk [vmem:[#allocation2 + $0x48] sm:$0xff] %vm22_vm1, %v1938_v31  ;;  %v1914_v60 = vpop.f32.mrf.mxu2  ;;  %v1643_v56 = vld [vmem:[#allocation2 + $0x78] sm:$0xff] }
 0x17a   :  { %v2502_v62 = vld [vmem:[#allocation2 + $0x38] sm:$0xff] }
 0x17b   :  { %2359 = vst.msk [vmem:[#allocation2 + $0x40] sm:$0xff] %vm22_vm1, %v2343_v58  ;;  %v2620_v0 = vadd.f32 %v2590_v26, %v2502_v62  ;;  %v1733_v41 = vpop.f32.mrf.mxu1  ;;  %v2320_v3 = vpop.f32.mrf.mxu3  ;;  %v1641_v26 = vld [vmem:[#allocation2 + $0x68] sm:$0xff] }
 0x17c   :  { %v4561_v59 = vld [vmem:[#allocation2 + $0x30] sm:$0xff]  ;;  %v1757_v52 = vadd.f32 %v1733_v41, %v1639_v1  ;;  %v2598_v57 = vpop.f32.mrf.mxu0 }
 0x17d   :  { %v2667_v36 = vpack.c.bf16 %v4561_v59, %v4561_v59  ;;  %2636 = vst.msk [vmem:[#allocation2 + $0x38] sm:$0xff] %vm22_vm1, %v2620_v0  ;;  %v1805_v2 = vld [vmem:[#allocation2 + $0x50] sm:$0xff] }
 0x17e   :  { %v1939_v38 = vadd.f32 %v1914_v60, %v1805_v2  ;;  %1773 = vst.msk [vmem:[#allocation2 + $0x58] sm:$0xff] %vm22_vm1, %v1757_v52 }
 0x17f   :  { %2684 = vst.msk [vmem:[%s4716_s2 + $0x18] sm:$0xf] %vm2677_vm8, %v2667_v36 }
 0x180   :  { %v2226_v4 = vld [vmem:[#allocation2 + $0x48] sm:$0xff]  ;;  %1955 = vst.msk [vmem:[#allocation2 + $0x50] sm:$0xff] %vm22_vm1, %v1939_v38 }
 0x181   :  { %v2344_v5 = vadd.f32 %v2317_v29, %v2226_v4  ;;  %v1916_v51 = vpop.f32.mrf.mxu2 }
 0x182   :  { %v2503_v6 = vld [vmem:[#allocation2 + $0x40] sm:$0xff] }
 0x183   :  { %2360 = vst.msk [vmem:[#allocation2 + $0x48] sm:$0xff] %vm22_vm1, %v2344_v5  ;;  %v2621_v7 = vadd.f32 %v2593_v8, %v2503_v6  ;;  %v1736_v11 = vpop.f32.mrf.mxu1  ;;  %v2322_v22 = vpop.f32.mrf.mxu3 }
 0x184   :  { %v4573_v12 = vld [vmem:[#allocation2 + $0x38] sm:$0xff]  ;;  %v1758_v15 = vadd.f32 %v1736_v11, %v1640_v54  ;;  %v2600_v35 = vpop.f32.mrf.mxu0 }
 0x185   :  { %v2668_v17 = vpack.c.bf16 %v4573_v12, %v4573_v12  ;;  %2637 = vst.msk [vmem:[#allocation2 + $0x40] sm:$0xff] %vm22_vm1, %v2621_v7  ;;  %v1806_v19 = vld [vmem:[#allocation2 + $0x58] sm:$0xff] }
 0x186   :  { %v1940_v20 = vadd.f32 %v1916_v51, %v1806_v19  ;;  %1774 = vst.msk [vmem:[#allocation2 + $0x60] sm:$0xff] %vm22_vm1, %v1758_v15 }
 0x187   :  { %2685 = vst.msk [vmem:[%s4716_s2 + $0x1c] sm:$0xf] %vm2677_vm8, %v2668_v17  ;;  %v2227_v63 = vld [vmem:[#allocation2 + $0x50] sm:$0xff] }
 0x188   :  { %v2345_v34 = vadd.f32 %v2320_v3, %v2227_v63  ;;  %1956 = vst.msk [vmem:[#allocation2 + $0x58] sm:$0xff] %vm22_vm1, %v1940_v20  ;;  %v2741_v63 = vmul.f32 %v4549_v48, %v4549_v48 }
 0x189   :  { %v1919_v55 = vpop.f32.mrf.mxu2 }
 0x18a   :  { %2361 = vst.msk [vmem:[#allocation2 + $0x50] sm:$0xff] %vm22_vm1, %v2345_v34  ;;  %v2504_v23 = vld [vmem:[#allocation2 + $0x48] sm:$0xff]  ;;  %v2742_v34 = vmul.f32 %v4561_v59, %v4561_v59 }
 0x18b   :  { %v2622_v24 = vadd.f32 %v2595_v61, %v2504_v23  ;;  %v1738_v50 = vpop.f32.mrf.mxu1  ;;  %v2325_v40 = vpop.f32.mrf.mxu3 }
 0x18c   :  { %v4585_v27 = vld [vmem:[#allocation2 + $0x40] sm:$0xff]  ;;  %v1759_v9 = vadd.f32 %v1738_v50, %v1641_v26  ;;  %v2603_v31 = vpop.f32.mrf.mxu0  ;;  %v2706_v26 = vsel %vm22_vm1, %v4561_v59, 0.0  ;;  %v2743_v50 = vmul.f32 %v4573_v12, %v4573_v12 }
 0x18d   :  { %v2669_v28 = vpack.c.bf16 %v4585_v27, %v4585_v27  ;;  %2638 = vst.msk [vmem:[#allocation2 + $0x48] sm:$0xff] %vm22_vm1, %v2622_v24  ;;  %v1807_v13 = vld [vmem:[#allocation2 + $0x60] sm:$0xff]  ;;  %v2761_v24 = vsel %vm22_vm1, %v2741_v63, 0.0 }
 0x18e   :  { %v1941_v30 = vadd.f32 %v1919_v55, %v1807_v13  ;;  %1775 = vst.msk [vmem:[#allocation2 + $0x68] sm:$0xff] %vm22_vm1, %v1759_v9  ;;  %v2762_v59 = vadd.f32 %v2761_v24, %v4544_v42 }
 0x18f   :  { %2686 = vst.msk [vmem:[%s4716_s2 + $0x20] sm:$0xf] %vm2677_vm8, %v2669_v28  ;;  %v2228_v14 = vld [vmem:[#allocation2 + $0x58] sm:$0xff] }
 0x190   :  { %v2346_v32 = vadd.f32 %v2322_v22, %v2228_v14  ;;  %1957 = vst.msk [vmem:[#allocation2 + $0x60] sm:$0xff] %vm22_vm1, %v1941_v30  ;;  %v2708_v14 = vsel %vm22_vm1, %v4573_v12, 0.0 }
 0x191   :  { %v2505_v10 = vld [vmem:[#allocation2 + $0x50] sm:$0xff]  ;;  %v1921_v25 = vpop.f32.mrf.mxu2 }
 0x192   :  { %2362 = vst.msk [vmem:[#allocation2 + $0x58] sm:$0xff] %vm22_vm1, %v2346_v32  ;;  %v2623_v39 = vadd.f32 %v2598_v57, %v2505_v10  ;;  %v2704_v57 = vsel %vm22_vm1, %v4549_v48, 0.0  ;;  %v2763_v48 = vsel %vm22_vm1, %v2742_v34, 0.0  ;;  %v2744_v32 = vmul.f32 %v4585_v27, %v4585_v27 }
 0x193   :  { %v1741_v16 = vpop.f32.mrf.mxu1  ;;  %v2327_v62 = vpop.f32.mrf.mxu3  ;;  %v2705_v13 = vadd.f32 %v2704_v57, %v4536_v21  ;;  %v2765_v21 = vsel %vm22_vm1, %v2743_v50, 0.0 }
 0x194   :  { %v4597_v44 = vld [vmem:[#allocation2 + $0x48] sm:$0xff]  ;;  %2639 = vst.msk [vmem:[#allocation2 + $0x50] sm:$0xff] %vm22_vm1, %v2623_v39  ;;  %v1760_v18 = vadd.f32 %v1741_v16, %v1642_v43  ;;  %v2605_v5 = vpop.f32.mrf.mxu0  ;;  %v2767_v42 = vsel %vm22_vm1, %v2744_v32, 0.0  ;;  %v2694_v32 = vld [vmem:[%s4717_s3] sm:$0x1] }
 0x195   :  { %v2670_v45 = vpack.c.bf16 %v4597_v44, %v4597_v44  ;;  %v1808_v46 = vld [vmem:[#allocation2 + $0x68] sm:$0xff]  ;;  %v2745_v12 = vmul.f32 %v4597_v44, %v4597_v44  ;;  %v2712_v16 = vsel %vm22_vm1, %v4597_v44, 0.0 }
 0x196   :  { %v1942_v47 = vadd.f32 %v1921_v25, %v1808_v46  ;;  %1776 = vst.msk [vmem:[#allocation2 + $0x70] sm:$0xff] %vm22_vm1, %v1760_v18  ;;  %v2764_v25 = vadd.f32 %v2763_v48, %v2762_v59 }
 0x197   :  { %2687 = vst.msk [vmem:[%s4716_s2 + $0x24] sm:$0xf] %vm2677_vm8, %v2670_v45  ;;  %v2229_v8 = vld [vmem:[#allocation2 + $0x60] sm:$0xff]  ;;  %v2769_v46 = vsel %vm22_vm1, %v2745_v12, 0.0 }
 0x198   :  { %v2347_v37 = vadd.f32 %v2325_v40, %v2229_v8  ;;  %1958 = vst.msk [vmem:[#allocation2 + $0x68] sm:$0xff] %vm22_vm1, %v1942_v47  ;;  %v2710_v40 = vsel %vm22_vm1, %v4585_v27, 0.0  ;;  %v2766_v45 = vadd.f32 %v2765_v21, %v2764_v25 }
 0x199   :  { %v2506_v29 = vld [vmem:[#allocation2 + $0x58] sm:$0xff]  ;;  %v1924_v0 = vpop.f32.mrf.mxu2 }
 0x19a   :  { %2363 = vst.msk [vmem:[#allocation2 + $0x60] sm:$0xff] %vm22_vm1, %v2347_v37  ;;  %v2624_v33 = vadd.f32 %v2600_v35, %v2506_v29  ;;  %v2707_v35 = vadd.f32 %v2706_v26, %v2705_v13  ;;  %v2768_v37 = vadd.f32 %v2767_v42, %v2766_v45 }
 0x19b   :  { %v4609_v53 = vld [vmem:[#allocation2 + $0x50] sm:$0xff]  ;;  %v1743_v58 = vpop.f32.mrf.mxu1  ;;  %v2330_v51 = vpop.f32.mrf.mxu3 }
 0x19c   :  { %v2671_v60 = vpack.c.bf16 %v4609_v53, %v4609_v53  ;;  %2640 = vst.msk [vmem:[#allocation2 + $0x58] sm:$0xff] %vm22_vm1, %v2624_v33  ;;  %v1761_v1 = vadd.f32 %v1743_v58, %v1643_v56  ;;  %v2608_v23 = vpop.f32.mrf.mxu0  ;;  %v2709_v43 = vadd.f32 %v2708_v14, %v2707_v35  ;;  %v2746_v18 = vmul.f32 %v4609_v53, %v4609_v53  ;;  %v2735_v35 = vld [vmem:[%s4718_s4] sm:$0x1] }
 0x19d   :  { %v1809_v41 = vld [vmem:[#allocation2 + $0x70] sm:$0xff]  ;;  %v2714_v47 = vsel %vm22_vm1, %v4609_v53, 0.0 }
 0x19e   :  { %2688 = vst.msk [vmem:[%s4716_s2 + $0x28] sm:$0xf] %vm2677_vm8, %v2671_v60  ;;  %v1943_v52 = vadd.f32 %v1924_v0, %v1809_v41  ;;  %v2711_v27 = vadd.f32 %v2710_v40, %v2709_v43  ;;  %v2771_v56 = vsel %vm22_vm1, %v2746_v18, 0.0  ;;  %v2770_v0 = vadd.f32 %v2769_v46, %v2768_v37 }
 0x19f   :  { %v2230_v36 = vld [vmem:[#allocation2 + $0x68] sm:$0xff]  ;;  %1777 = vst.msk [vmem:[#allocation2 + $0x78] sm:$0xff] %vm22_vm1, %v1761_v1 }
 0x1a0   :  { %v2348_v2 = vadd.f32 %v2327_v62, %v2230_v36  ;;  %1959 = vst.msk [vmem:[#allocation2 + $0x70] sm:$0xff] %vm22_vm1, %v1943_v52  ;;  %v2713_v29 = vadd.f32 %v2712_v16, %v2711_v27 }
 0x1a1   :  { %v2507_v61 = vld [vmem:[#allocation2 + $0x60] sm:$0xff]  ;;  %v1926_v7 = vpop.f32.mrf.mxu2 }
 0x1a2   :  { %2364 = vst.msk [vmem:[#allocation2 + $0x68] sm:$0xff] %vm22_vm1, %v2348_v2  ;;  %v2625_v38 = vadd.f32 %v2603_v31, %v2507_v61  ;;  %v2715_v1 = vadd.f32 %v2714_v47, %v2713_v29  ;;  %v2772_v2 = vadd.f32 %v2771_v56, %v2770_v0 }
 0x1a3   :  { %v2656_v3 = vld [vmem:[#allocation2 + $0x58] sm:$0xff]  ;;  %v2332_v55 = vpop.f32.mrf.mxu3 }
 0x1a4   :  { %v2672_v4 = vpack.c.bf16 %v2656_v3, %v2656_v3  ;;  %2641 = vst.msk [vmem:[#allocation2 + $0x60] sm:$0xff] %vm22_vm1, %v2625_v38  ;;  %v2747_v8 = vmul.f32 %v2656_v3, %v2656_v3  ;;  %v2610_v31 = vpop.f32.mrf.mxu0  ;;  %v2716_v58 = vsel %vm22_vm1, %v2656_v3, 0.0 }
 0x1a5   :  { %v2717_v61 = vadd.f32 %v2716_v58, %v2715_v1 }
 0x1a6   :  { %2689 = vst.msk [vmem:[%s4716_s2 + $0x2c] sm:$0xf] %vm2677_vm8, %v2672_v4  ;;  %v1810_v6 = vld [vmem:[#allocation2 + $0x78] sm:$0xff]  ;;  %v2773_v52 = vsel %vm22_vm1, %v2747_v8, 0.0 }
 0x1a7   :  { %v2231_v54 = vld [vmem:[#allocation2 + $0x70] sm:$0xff]  ;;  %v1944_v11 = vadd.f32 %v1926_v7, %v1810_v6 }
 0x1a8   :  { %v2349_v15 = vadd.f32 %v2330_v51, %v2231_v54 }
 0x1a9   :  { %1960 = vst.msk [vmem:[#allocation2 + $0x78] sm:$0xff] %vm22_vm1, %v1944_v11  ;;  %v2508_v17 = vld [vmem:[#allocation2 + $0x68] sm:$0xff] }
 0x1aa   :  { %2365 = vst.msk [vmem:[#allocation2 + $0x70] sm:$0xff] %vm22_vm1, %v2349_v15  ;;  %v2626_v49 = vadd.f32 %v2605_v5, %v2508_v17  ;;  %v2774_v5 = vadd.f32 %v2773_v52, %v2772_v2 }
 0x1ab   :  { %v2657_v19 = vld [vmem:[#allocation2 + $0x60] sm:$0xff] }
 0x1ac   :  { %v2673_v20 = vpack.c.bf16 %v2657_v19, %v2657_v19  ;;  %2642 = vst.msk [vmem:[#allocation2 + $0x68] sm:$0xff] %vm22_vm1, %v2626_v49  ;;  %v2748_v44 = vmul.f32 %v2657_v19, %v2657_v19  ;;  %v2718_v36 = vsel %vm22_vm1, %v2657_v19, 0.0 }
 0x1ad   :  { %v2719_v51 = vadd.f32 %v2718_v36, %v2717_v61 }
 0x1ae   :  { %2690 = vst.msk [vmem:[%s4716_s2 + $0x30] sm:$0xf] %vm2677_vm8, %v2673_v20  ;;  %v2775_v38 = vsel %vm22_vm1, %v2748_v44, 0.0 }
 0x1af   :  { %v2776_v54 = vadd.f32 %v2775_v38, %v2774_v5 }
 0x1b0   :  { %v2232_v22 = vld [vmem:[#allocation2 + $0x78] sm:$0xff] }
 0x1b1   :  { %v2350_v9 = vadd.f32 %v2332_v55, %v2232_v22  ;;  %v2509_v28 = vld [vmem:[#allocation2 + $0x70] sm:$0xff] }
 0x1b2   :  { %v2627_v30 = vadd.f32 %v2608_v23, %v2509_v28 }
 0x1b3   :  { %v2658_v10 = vld [vmem:[#allocation2 + $0x68] sm:$0xff]  ;;  %2366 = vst.msk [vmem:[#allocation2 + $0x78] sm:$0xff] %vm22_vm1, %v2350_v9 }
 0x1b4   :  { %v2674_v39 = vpack.c.bf16 %v2658_v10, %v2658_v10  ;;  %2643 = vst.msk [vmem:[#allocation2 + $0x70] sm:$0xff] %vm22_vm1, %v2627_v30  ;;  %v2749_v53 = vmul.f32 %v2658_v10, %v2658_v10  ;;  %v2720_v3 = vsel %vm22_vm1, %v2658_v10, 0.0 }
 0x1b5   :  { %v2721_v11 = vadd.f32 %v2720_v3, %v2719_v51 }
 0x1b6   :  { %2691 = vst.msk [vmem:[%s4716_s2 + $0x34] sm:$0xf] %vm2677_vm8, %v2674_v39  ;;  %v2777_v6 = vsel %vm22_vm1, %v2749_v53, 0.0 }
 0x1b7   :  { %v2778_v17 = vadd.f32 %v2777_v6, %v2776_v54 }
 0x1ba   :  { %v2510_v33 = vld [vmem:[#allocation2 + $0x78] sm:$0xff] }
 0x1bb   :  { %v2659_v60 = vld [vmem:[#allocation2 + $0x70] sm:$0xff]  ;;  %v2628_v62 = vadd.f32 %v2610_v31, %v2510_v33 }
 0x1bc   :  { %v2675_v41 = vpack.c.bf16 %v2659_v60, %v2659_v60  ;;  %v2750_v4 = vmul.f32 %v2659_v60, %v2659_v60  ;;  %v2722_v7 = vsel %vm22_vm1, %v2659_v60, 0.0 }
 0x1bd   :  { %2644 = vst.msk [vmem:[#allocation2 + $0x78] sm:$0xff] %vm22_vm1, %v2628_v62  ;;  %v2723_v49 = vadd.f32 %v2722_v7, %v2721_v11 }
 0x1be   :  { %2692 = vst.msk [vmem:[%s4716_s2 + $0x38] sm:$0xf] %vm2677_vm8, %v2675_v41  ;;  %v2779_v15 = vsel %vm22_vm1, %v2750_v4, 0.0 }
 0x1bf   :  { %v2780_v34 = vadd.f32 %v2779_v15, %v2778_v17 }
 0x1c4   :  { %v2660_v19 = vld [vmem:[#allocation2 + $0x78] sm:$0xff] }
 0x1c5   :  { %v2676_v20 = vpack.c.bf16 %v2660_v19, %v2660_v19  ;;  %v2724_v63 = vsel %vm22_vm1, %v2660_v19, 0.0  ;;  %v2751_v57 = vmul.f32 %v2660_v19, %v2660_v19 }
 0x1c6   :  { %v2725_v22 = vadd.f32 %v2724_v63, %v2723_v49 }
 0x1c7   :  { %2693 = vst.msk [vmem:[%s4716_s2 + $0x3c] sm:$0xf] %vm2677_vm8, %v2676_v20  ;;  %v2781_v55 = vsel %vm22_vm1, %v2751_v57, 0.0 }
 0x1c8   :  { %v2726_v23 = vrot.slane %v2725_v22, 4  ;;  %v2782_v24 = vadd.f32 %v2781_v55, %v2780_v34 }
 0x1ca   :  { %v2727_v26 = vadd.f32 %v2726_v23, %v2725_v22  ;;  %v2783_v50 = vrot.slane %v2782_v24, 4 }
 0x1cc   :  { %v2728_v9 = vrot.slane %v2727_v26, 2  ;;  %v2784_v28 = vadd.f32 %v2783_v50, %v2782_v24 }
 0x1ce   :  { %v2729_v13 = vadd.f32 %v2728_v9, %v2727_v26  ;;  %v2785_v30 = vrot.slane %v2784_v28, 2 }
 0x1d0   :  { %v2730_v48 = vrot.slane %v2729_v13, 1  ;;  %v2786_v14 = vadd.f32 %v2785_v30, %v2784_v28 }
 0x1d2   :  { %v2731_v10 = vadd.f32 %v2730_v48, %v2729_v13  ;;  %v2787_v59 = vrot.slane %v2786_v14, 1 }
 0x1d4   :  { %v2732_v39 = vadd.f32 %v2731_v10, %v2694_v32  ;;  %v2788_v21 = vadd.f32 %v2787_v59, %v2786_v14 }
 0x1d6   :  { %2734 = vst.msk [vmem:[%s4717_s3] sm:$0x1] %vm19_vm9, %v2732_v39  ;;  %v2789_v40 = vadd.f32 %v2788_v21, %v2735_v35 }
 0x1d8   :  { %2790 = vst.msk [vmem:[%s4718_s4] sm:$0x1] %vm19_vm9, %v2789_v40 }

// kernel: encoder_forward.19
= control target key start
LH: loop header
LB: loop body
LE: loop exit
PB: predicated region body
PF: predicated region fallthrough
CT: control target
= control target key end

     0   :  { %vm180_vm3 = vcmask 64512   ;;  %s513_s1 = inlined_call_operand.vmem [shape: f32[1,8], index: 1, kind: input, shape index: {}]   ;;  %s514_s2 = inlined_call_operand.vmem [shape: f32[1,8], index: 2, kind: input, shape index: {}]   ;;  %s515_s0 = inlined_call_operand.vmem [shape: bf16[128,8], index: 0, kind: input, shape index: {}]   ;;  %s516_s5 = inlined_call_operand.vmem [shape: bf16[128,8], index: 5, kind: input, shape index: {}]   ;;  %s517_s3 = inlined_call_operand.vmem [shape: f32[1,8], index: 3, kind: input, shape index: {}]   ;;  %s518_s4 = inlined_call_operand.vmem [shape: f32[1,8], index: 4, kind: input, shape index: {}]   ;;  %s519_s6 = inlined_call_operand.vmem [shape: f32[128,8], index: 6, kind: output, shape index: {}]  }
   0x1   :  { %v23_v0 = vld [vmem:[%s513_s1] sm:$0x1]  ;;  %v334_v12 = vld [vmem:[%s515_s0 + $0x8] sm:$0xff]   ;;  %v266_v15 = vld [vmem:[%s515_s0 + $0x10] sm:$0xff]  }
   0x2   :  { %v25_v1 = vld [vmem:[%s514_s2] sm:$0x1]  ;;  %v322_v2 = vmul.f32 0.0078125, %v23_v0  ;;  %v347_v16 = vld [vmem:[%s516_s5 + $0x8] sm:$0xff]   ;;  %v267_v17 = vld [vmem:[%s515_s0 + $0x18] sm:$0xff]   ;;  %v207_v21 = vunpack.c.l.bf16 %v334_v12  ;;  %v208_v27 = vunpack.c.h.bf16 %v334_v12  ;;  %v211_v28 = vunpack.c.l.bf16 %v266_v15 }
   0x3   :  { %v26_v3 = vmul.f32 0.0078125, %v25_v1  ;;  %v329_v11 = vld [vmem:[%s515_s0] sm:$0xff]   ;;  %v358_v22 = vld [vmem:[%s516_s5 + $0x10] sm:$0xff]   ;;  %v373_v29 = vld [vmem:[%s516_s5 + $0x18] sm:$0xff]   ;;  %v239_v32 = vunpack.c.l.bf16 %v347_v16  ;;  %v212_v33 = vunpack.c.h.bf16 %v266_v15  ;;  %v215_v34 = vunpack.c.l.bf16 %v267_v17 }
   0x4   :  { %v27_v4 = vmul.f32 %v322_v2, %v322_v2  ;;  %v339_v14 = vld [vmem:[%s516_s5] sm:$0xff]   ;;  %v203_v19 = vunpack.c.l.bf16 %v329_v11  ;;  %v204_v20 = vunpack.c.h.bf16 %v329_v11  ;;  %v269_v35 = vld [vmem:[%s515_s0 + $0x28] sm:$0xff]   ;;  %v240_v36 = vunpack.c.h.bf16 %v347_v16  ;;  %v270_v41 = vld [vmem:[%s515_s0 + $0x30] sm:$0xff]  }
   0x5   :  { %v268_v23 = vld [vmem:[%s515_s0 + $0x20] sm:$0xff]   ;;  %v235_v25 = vunpack.c.l.bf16 %v339_v14  ;;  %v236_v26 = vunpack.c.h.bf16 %v339_v14  ;;  %v243_v37 = vunpack.c.l.bf16 %v358_v22  ;;  %v216_v38 = vunpack.c.h.bf16 %v267_v17  ;;  %v399_v46 = vld [vmem:[%s516_s5 + $0x28] sm:$0xff]   ;;  %v404_v47 = vld [vmem:[%s515_s0 + $0x38] sm:$0xff]  }
   0x6   :  { %v28_v5 = vsub.f32 %v26_v3, %v27_v4  ;;  %v30_v30 = vld [vmem:[%s517_s3] sm:$0x1]  ;;  %v219_v39 = vunpack.c.l.bf16 %v268_v23  ;;  %v244_v43 = vunpack.c.h.bf16 %v358_v22  ;;  %v247_v44 = vunpack.c.l.bf16 %v373_v29  ;;  %v410_v52 = vld [vmem:[%s516_s5 + $0x30] sm:$0xff]   ;;  %v426_v1 = vld [vmem:[%s516_s5 + $0x38] sm:$0xff]  }
   0x7   :  { %v387_v40 = vld [vmem:[%s516_s5 + $0x20] sm:$0xff]   ;;  %v220_v45 = vunpack.c.h.bf16 %v268_v23  ;;  %v248_v49 = vunpack.c.h.bf16 %v373_v29  ;;  %v223_v50 = vunpack.c.l.bf16 %v269_v35  ;;  %v224_v51 = vunpack.c.h.bf16 %v269_v35 }
   0x8   :  { %v29_v6 = vmax.f32 %v28_v5, 0.0  ;;  %v43_v53 = vld [vmem:[%s518_s4] sm:$0x1]  ;;  %v251_v54 = vunpack.c.l.bf16 %v387_v40  ;;  %v252_v55 = vunpack.c.h.bf16 %v387_v40  ;;  %v227_v56 = vunpack.c.l.bf16 %v270_v41 }
   0x9   :  { %v228_v57 = vunpack.c.h.bf16 %v270_v41  ;;  %v255_v60 = vunpack.c.l.bf16 %v399_v46  ;;  %v231_v61 = vunpack.c.l.bf16 %v404_v47  ;;  %v256_v62 = vunpack.c.h.bf16 %v399_v46 }
   0xa   :  { %v31_v7 = vadd.f32 1e-05, %v29_v6  ;;  %v259_v63 = vunpack.c.l.bf16 %v410_v52  ;;  %v260_v0 = vunpack.c.h.bf16 %v410_v52  ;;  %v232_v3 = vunpack.c.h.bf16 %v404_v47 }
   0xb   :  { %v264_v15 = vunpack.c.h.bf16 %v426_v1 }
   0xc   :  { %279 = vrsqrt.f32 %v31_v7  ;;  %vm38_vm0 = vweird.f32 %v31_v7 }
  0x12   :  { %v280_v8 = vpop.eup %279 }
  0x13   :  { %v33_v9 = vmul.f32 %v280_v8, %v31_v7  ;;  %vm39_vm1 = vweird.f32 %v280_v8 }
  0x14   :  { %vm363_vm2 = vmor %vm38_vm0, %vm39_vm1 }
  0x15   :  { %v34_v10 = vmul.f32 %v280_v8, %v33_v9 }
  0x17   :  { %v35_v13 = vmul.f32 0.5, %v34_v10 }
  0x19   :  { %v36_v18 = vsub.f32 1.5, %v35_v13  ;;  %v263_v13 = vunpack.c.l.bf16 %v426_v1 }
  0x1b   :  { %v37_v31 = vmul.f32 %v280_v8, %v36_v18 }
  0x1d   :  { %v41_v42 = vsel %vm363_vm2, %v280_v8, %v37_v31 }
  0x1e   :  { %v42_v48 = vmul.f32 %v41_v42, %v30_v30 }
  0x20   :  { %v44_v58 = vmul.f32 %v42_v48, %v322_v2  ;;  %v79_v59 = vperm.slane %v42_v48, 0 }
  0x22   :  { %v45_v2 = vsub.f32 %v43_v53, %v44_v58  ;;  %v81_v4 = vmul.f32 %v203_v19, %v79_v59  ;;  %v82_v5 = vmul.f32 %v204_v20, %v79_v59  ;;  %v83_v6 = vmul.f32 %v207_v21, %v79_v59 }
  0x23   :  { %v84_v7 = vmul.f32 %v208_v27, %v79_v59  ;;  %v85_v8 = vmul.f32 %v211_v28, %v79_v59  ;;  %v86_v9 = vmul.f32 %v212_v33, %v79_v59  ;;  %v87_v10 = vmul.f32 %v215_v34, %v79_v59 }
  0x24   :  { %v98_v11 = vperm.slane %v45_v2, 0  ;;  %v88_v12 = vmul.f32 %v216_v38, %v79_v59  ;;  %v89_v17 = vmul.f32 %v219_v39, %v79_v59  ;;  %v90_v18 = vmul.f32 %v220_v45, %v79_v59 }
  0x25   :  { %v91_v22 = vmul.f32 %v223_v50, %v79_v59  ;;  %v92_v23 = vmul.f32 %v224_v51, %v79_v59  ;;  %v93_v41 = vmul.f32 %v227_v56, %v79_v59  ;;  %v94_v42 = vmul.f32 %v228_v57, %v79_v59 }
  0x26   :  { %v100_v24 = vadd.f32 %v98_v11, %v81_v4  ;;  %v101_v29 = vadd.f32 %v98_v11, %v82_v5  ;;  %v102_v30 = vadd.f32 %v98_v11, %v83_v6  ;;  %v103_v19 = vadd.f32 %v98_v11, %v84_v7 }
  0x27   :  { %v104_v20 = vadd.f32 %v98_v11, %v85_v8  ;;  %v105_v21 = vadd.f32 %v98_v11, %v86_v9  ;;  %v106_v27 = vadd.f32 %v98_v11, %v87_v10  ;;  %v107_v28 = vadd.f32 %v98_v11, %v88_v12 }
  0x28   :  { %v148_v31 = vadd.f32 %v235_v25, %v100_v24  ;;  %v149_v33 = vadd.f32 %v236_v26, %v101_v29  ;;  %v150_v34 = vadd.f32 %v239_v32, %v102_v30  ;;  %v151_v35 = vadd.f32 %v240_v36, %v103_v19 }
  0x29   :  { %v152_v38 = vadd.f32 %v243_v37, %v104_v20  ;;  %v153_v39 = vadd.f32 %v244_v43, %v105_v21  ;;  %v154_v50 = vadd.f32 %v247_v44, %v106_v27  ;;  %v155_v1 = vadd.f32 %v248_v49, %v107_v28 }
  0x2a   :  { %v164_v45 = vmax.f32 %v148_v31, 0.0  ;;  %v165_v47 = vmax.f32 %v149_v33, 0.0  ;;  %v166_v48 = vmax.f32 %v150_v34, 0.0  ;;  %v167_v51 = vmax.f32 %v151_v35, 0.0 }
  0x2b   :  { %v168_v53 = vmax.f32 %v152_v38, 0.0  ;;  %v169_v58 = vmax.f32 %v153_v39, 0.0  ;;  %v108_v14 = vadd.f32 %v98_v11, %v89_v17  ;;  %v109_v16 = vadd.f32 %v98_v11, %v90_v18 }
  0x2c   :  { %181 = vst.msk [vmem:[%s519_s6] sm:$0xff] %vm180_vm3, %v164_v45  ;;  %v110_v25 = vadd.f32 %v98_v11, %v91_v22  ;;  %v111_v26 = vadd.f32 %v98_v11, %v92_v23  ;;  %v112_v32 = vadd.f32 %v98_v11, %v93_v41  ;;  %v113_v36 = vadd.f32 %v98_v11, %v94_v42 }
  0x2d   :  { %182 = vst.msk [vmem:[%s519_s6 + $0x8] sm:$0xff] %vm180_vm3, %v165_v47  ;;  %v95_v37 = vmul.f32 %v231_v61, %v79_v59  ;;  %v96_v43 = vmul.f32 %v232_v3, %v79_v59  ;;  %v170_v44 = vmax.f32 %v154_v50, 0.0  ;;  %v156_v49 = vadd.f32 %v251_v54, %v108_v14 }
  0x2e   :  { %183 = vst.msk [vmem:[%s519_s6 + $0x10] sm:$0xff] %vm180_vm3, %v166_v48  ;;  %v157_v56 = vadd.f32 %v252_v55, %v109_v16  ;;  %v158_v57 = vadd.f32 %v255_v60, %v110_v25  ;;  %v171_v59 = vmax.f32 %v155_v1, 0.0  ;;  %v159_v61 = vadd.f32 %v256_v62, %v111_v26 }
  0x2f   :  { %184 = vst.msk [vmem:[%s519_s6 + $0x18] sm:$0xff] %vm180_vm3, %v167_v51  ;;  %v114_v3 = vadd.f32 %v98_v11, %v95_v37  ;;  %v115_v2 = vadd.f32 %v98_v11, %v96_v43  ;;  %v172_v40 = vmax.f32 %v156_v49, 0.0  ;;  %v160_v54 = vadd.f32 %v259_v63, %v112_v32 }
  0x30   :  { %185 = vst.msk [vmem:[%s519_s6 + $0x20] sm:$0xff] %vm180_vm3, %v168_v53  ;;  %v173_v55 = vmax.f32 %v157_v56, 0.0  ;;  %v161_v46 = vadd.f32 %v260_v0, %v113_v36  ;;  %v174_v60 = vmax.f32 %v158_v57, 0.0  ;;  %v175_v63 = vmax.f32 %v159_v61, 0.0 }
  0x31   :  { %186 = vst.msk [vmem:[%s519_s6 + $0x28] sm:$0xff] %vm180_vm3, %v169_v58  ;;  %v162_v62 = vadd.f32 %v263_v13, %v114_v3  ;;  %v163_v4 = vadd.f32 %v264_v15, %v115_v2  ;;  %v176_v52 = vmax.f32 %v160_v54, 0.0 }
  0x32   :  { %187 = vst.msk [vmem:[%s519_s6 + $0x30] sm:$0xff] %vm180_vm3, %v170_v44  ;;  %v177_v0 = vmax.f32 %v161_v46, 0.0 }
  0x33   :  { %188 = vst.msk [vmem:[%s519_s6 + $0x38] sm:$0xff] %vm180_vm3, %v171_v59  ;;  %v178_v5 = vmax.f32 %v162_v62, 0.0  ;;  %v179_v6 = vmax.f32 %v163_v4, 0.0 }
  0x34   :  { %189 = vst.msk [vmem:[%s519_s6 + $0x40] sm:$0xff] %vm180_vm3, %v172_v40 }
  0x35   :  { %190 = vst.msk [vmem:[%s519_s6 + $0x48] sm:$0xff] %vm180_vm3, %v173_v55 }
  0x36   :  { %191 = vst.msk [vmem:[%s519_s6 + $0x50] sm:$0xff] %vm180_vm3, %v174_v60 }
  0x37   :  { %192 = vst.msk [vmem:[%s519_s6 + $0x58] sm:$0xff] %vm180_vm3, %v175_v63 }
  0x38   :  { %193 = vst.msk [vmem:[%s519_s6 + $0x60] sm:$0xff] %vm180_vm3, %v176_v52 }
  0x39   :  { %194 = vst.msk [vmem:[%s519_s6 + $0x68] sm:$0xff] %vm180_vm3, %v177_v0 }
  0x3a   :  { %195 = vst.msk [vmem:[%s519_s6 + $0x70] sm:$0xff] %vm180_vm3, %v178_v5 }
  0x3b   :  { %196 = vst.msk [vmem:[%s519_s6 + $0x78] sm:$0xff] %vm180_vm3, %v179_v6 }

</bundles_post_ra>
